<compile_context>
chip_gen: v6e
topology: v6e:2x2x1
jax: 0.10.0
libtpu: 0.0.40
codegen_flags: <defaults>
</compile_context>

<pallas_src>
import jax
import jax.numpy as jnp
import numpy as np
from jax.experimental import pallas as pl
from jax.experimental.pallas import tpu as pltpu


_CONV_CFG = [(3, 8), (8, 8), (8, 16), (16, 16), (16, 16), (16, 16)]
_BN_EPS = 1e-5


def _rup8(v):
    return ((v + 7) // 8) * 8


# ----------------------------------------------------------------------------
# Fused forward kernel (single grid step == whole batch)
# ----------------------------------------------------------------------------

def _fused_forward_kernel(x_ref, *refs):
    # refs layout: 6 x (w, scale, shift), fc_w, fc_b, out, 6 pad bufs, 3 pool bufs
    conv_params = [(refs[3 * i], refs[3 * i + 1], refs[3 * i + 2])
                   for i in range(6)]
    fcw_ref, fcb_ref, o_ref = refs[18], refs[19], refs[20]
    pad_refs = refs[21:27]
    st_refs = refs[27:30]

    n, D, H, WC = x_ref.shape

    # Zero the padded conv-input buffers ONCE (single grid step, each buffer is
    # written exactly once below).  This establishes the 'same'-padding halo
    # and keeps the rows beyond the valid H extent at zero.
    for p in pad_refs:
        p[...] = jnp.zeros(p.shape, p.dtype)

    # ---- max_pool3d(kernel=(2,2,1), stride=(2,2,1)) on the raw input -------
    st0 = st_refs[0]
    for s in range(n):                                   # tiny static batch
        v = x_ref[s].reshape(D // 2, 2, H, WC)           # leading-dim split
        st0[s] = jnp.maximum(v[:, 0], v[:, 1])           # pool along D
    h = H // 2
    a = jnp.maximum(st0[:, :, pl.ds(0, h, 2), :],        # pool along H via
                    st0[:, :, pl.ds(1, h, 2), :])        # stride-2 ref reads

    li = 0
    for stage in range(3):
        for _ in range(2):                               # two conv+BN+ReLU
            w_ref, sc_ref, sh_ref = conv_params[li]
            p = pad_refs[li]
            d = a.shape[1]
            hl = p.shape[2] - 2                          # rup8(h)
            k9 = w_ref.shape[0]                          # 9 * W * Cin
            nout = w_ref.shape[1]                        # W * Cout

            # Write only the valid interior; halo + rows >= h stay zero.
            p[:, 1:1 + d, 1:1 + h, :] = a[:, :, :h, :]

            # Hoist the 3 sublane-offset (kh) slices; kd slices of them are
            # free leading-axis views.  Concatenate the 9 taps along K and do
            # ONE MXU matmul per layer.
            kh_slabs = [p[:, :, kh:kh + hl, :] for kh in range(3)]
            parts = [kh_slabs[kh][:, kd:kd + d]
                     for kd in range(3) for kh in range(3)]
            slab = jnp.concatenate(parts, axis=-1).reshape(n * d * hl, k9)
            acc = jnp.dot(slab.astype(jnp.bfloat16), w_ref[...],
                          preferred_element_type=jnp.float32)
            a = jnp.maximum(acc * sc_ref[...] + sh_ref[...], 0.0)
            a = a.reshape(n, d, hl, nout)    # rows >= h are garbage, never read
            li += 1

        if stage < 2:                                    # max_pool3d((2,2,1))
            st = st_refs[stage + 1]
            d = a.shape[1]
            for s in range(n):
                v = a[s].reshape(d // 2, 2, a.shape[2], a.shape[3])
                st[s] = jnp.maximum(v[:, 0], v[:, 1])    # pool along D
            h = h // 2
            a = jnp.maximum(st[:, :, pl.ds(0, h, 2), :], # pool along H; reads
                            st[:, :, pl.ds(1, h, 2), :]) # only valid rows

    # ---- flatten (PyTorch NCDHW order baked into fc_w) + Linear ------------
    d3 = a.shape[1]
    feats = [a[:, dd, hh, :] for dd in range(d3) for hh in range(h)]
    feat = jnp.concatenate(feats, axis=-1)               # (n, d3*h3*W*C)
    o_ref[...] = (jnp.dot(feat, fcw_ref[...],
                          preferred_element_type=jnp.float32) + fcb_ref[...])


# ----------------------------------------------------------------------------
# Wrapper
# ----------------------------------------------------------------------------

def scratch_nn_forward(x_ncdhw, params):
    """x_ncdhw: (N, 3, D, H, W) float32 (PyTorch layout)."""
    N, C, D, H, W = x_ncdhw.shape
    assert D % 8 == 0 and H % 8 == 0, "D and H must be divisible by 8"
    num_classes = params["fc_b"].shape[-1]

    # NCDHW -> (N, D, H, W*C): one tiny layout-conversion op outside the
    # kernel so the kernel is lane dense from the first load.
    x = jnp.transpose(x_ncdhw, (0, 2, 3, 4, 1)).astype(jnp.float32)
    x = x.reshape(N, D, H, W * C)

    douts = [D // 2, D // 2, D // 4, D // 4, D // 8, D // 8]
    houts = [H // 2, H // 2, H // 4, H // 4, H // 8, H // 8]

    pad_shapes = [(N, douts[i] + 2, _rup8(houts[i]) + 2, W * _CONV_CFG[i][0])
                  for i in range(6)]
    st_shapes = [
        (N, D // 2, H, W * C),
        (N, D // 4, _rup8(houts[1]), W * _CONV_CFG[1][1]),
        (N, D // 8, _rup8(houts[3]), W * _CONV_CFG[3][1]),
    ]
    scratch_shapes = ([pltpu.VMEM(s, jnp.float32) for s in pad_shapes]
                      + [pltpu.VMEM(s, jnp.float32) for s in st_shapes])

    def zmap(nd):
        return lambda i, _nd=nd: (0,) * _nd

    args = [x]
    in_specs = [pl.BlockSpec(x.shape, zmap(x.ndim))]
    for i in range(6):
        for nm in (f"w{i}", f"scale{i}", f"shift{i}"):
            arr = params[nm]
            args.append(arr)
            in_specs.append(pl.BlockSpec(arr.shape, zmap(arr.ndim)))
    for nm in ("fc_w", "fc_b"):
        arr = params[nm]
        args.append(arr)
        in_specs.append(pl.BlockSpec(arr.shape, zmap(arr.ndim)))

    out = pl.pallas_call(
        _fused_forward_kernel,
        out_shape=jax.ShapeDtypeStruct((N, num_classes), jnp.float32),
        grid=(1,),                         # batch folded into M; weights walked once
        in_specs=in_specs,
        out_specs=pl.BlockSpec((N, num_classes), zmap(2)),
        scratch_shapes=scratch_shapes,
        compiler_params=pltpu.CompilerParams(
            dimension_semantics=("arbitrary",)),
    )(*args)
    return out


# ----------------------------------------------------------------------------
# Parameter construction (deterministic, in-script)
# ----------------------------------------------------------------------------

def _band_weight(w, W):
    """(Cout, Cin, 3, 3, 3) conv weight -> (9*W*Cin, W*Cout) banded matrix.

    The 9 (kd, kh) taps are concatenated along K (matching the in-kernel slab
    concat order kd*3+kh); the kw taps, Cin and the W-direction 'same' zero
    padding are folded into each band."""
    cout, cin = w.shape[0], w.shape[1]
    band = np.zeros((9, W * cin, W * cout), np.float32)
    for kd in range(3):
        for kh in range(3):
            t = kd * 3 + kh
            for wo in range(W):
                for kw in range(3):
                    wi = wo + kw - 1
                    if 0 <= wi < W:
                        band[t, wi * cin:(wi + 1) * cin,
                             wo * cout:(wo + 1) * cout] = w[:, :, kd, kh, kw].T
    return band.reshape(9 * W * cin, W * cout)


def _fc_weight_flat(fc_w, d3, h3, W, C):
    """(num_classes, C*d3*h3*W) fc weight -> (d3*h3*W*C, num_classes) with the
    PyTorch NCDHW flatten order baked into the permutation, matching the
    in-kernel feature order ((d, h) blocks, then w*C + c within a block)."""
    nc = fc_w.shape[0]
    out = np.zeros((d3 * h3 * W * C, nc), np.float32)
    for d in range(d3):
        for h in range(h3):
            for w in range(W):
                for c in range(C):
                    torch_idx = ((c * d3 + d) * h3 + h) * W + w
                    ours = ((d * h3 + h) * W + w) * C + c
                    out[ours, :] = fc_w[:, torch_idx]
    return out


def init_params(key, D, H, W, num_classes=2):
    d3, h3 = D // 8, H // 8
    params = {}
    for i, (cin, cout) in enumerate(_CONV_CFG):
        k = jax.random.fold_in(key, i)
        kw_, kb_, kg_, kbe_, km_, kv_ = jax.random.split(k, 6)
        w = np.asarray(0.1 * jax.random.normal(kw_, (cout, cin, 3, 3, 3)),
                       np.float32)
        b = np.asarray(0.05 * jax.random.normal(kb_, (cout,)), np.float32)
        gamma = np.asarray(0.5 + jax.random.uniform(kg_, (cout,)), np.float32)
        beta = np.asarray(0.1 * jax.random.normal(kbe_, (cout,)), np.float32)
        mean = np.asarray(0.1 * jax.random.normal(km_, (cout,)), np.float32)
        var = np.asarray(0.5 + jax.random.uniform(kv_, (cout,)), np.float32)
        inv = gamma / np.sqrt(var + _BN_EPS)           # folded BN (inference)
        shift = (b - mean) * inv + beta
        params[f"w{i}"] = jnp.asarray(_band_weight(w, W), jnp.bfloat16)
        params[f"scale{i}"] = jnp.asarray(np.tile(inv, W)[None, :], jnp.float32)
        params[f"shift{i}"] = jnp.asarray(np.tile(shift, W)[None, :],
                                          jnp.float32)

    c_last = _CONV_CFG[-1][1]
    flat = c_last * d3 * h3 * W    # 40960 at full resolution; 512 for this test
    kf = jax.random.fold_in(key, 100)
    kfw, kfb = jax.random.split(kf)
    fc_w = np.asarray(0.02 * jax.random.normal(kfw, (num_classes, flat)),
                      np.float32)
    fc_b = np.asarray(0.01 * jax.random.normal(kfb, (num_classes,)), np.float32)
    params["fc_w"] = jnp.asarray(_fc_weight_flat(fc_w, d3, h3, W, c_last),
                                 jnp.float32)
    params["fc_b"] = jnp.asarray(fc_b[None, :], jnp.float32)
    return params


# ----------------------------------------------------------------------------
# Main
# ----------------------------------------------------------------------------

if __name__ == "__main__":
    key = jax.random.PRNGKey(0)
    k_in, k_par = jax.random.split(key)

    # Small input consistent with the module: (N, C=3, D, H, W).
    # D and H are halved by each of the 3 max-pools; W is untouched.
    N, C, D, H, W = 2, 3, 16, 16, 8
    x = jax.random.normal(k_in, (N, C, D, H, W), jnp.float32)

    params = init_params(k_par, D, H, W, num_classes=2)

    fwd = jax.jit(lambda xx: scratch_nn_forward(xx, params))
    out = jax.block_until_ready(fwd(x))
    assert out.shape == (N, 2) and out.dtype == jnp.float32
    print("KERNEL_OK")
</pallas_src>

<mosaic_0001>
module attributes {stable_mosaic.version = 11 : i64} {
  func.func @_fused_forward_kernel(%arg0: i32, %arg1: memref<2x16x16x24xf32, #tpu.memory_space<vmem>>, %arg2: memref<216x64xbf16, #tpu.memory_space<vmem>>, %arg3: memref<1x64xf32, #tpu.memory_space<vmem>>, %arg4: memref<1x64xf32, #tpu.memory_space<vmem>>, %arg5: memref<576x64xbf16, #tpu.memory_space<vmem>>, %arg6: memref<1x64xf32, #tpu.memory_space<vmem>>, %arg7: memref<1x64xf32, #tpu.memory_space<vmem>>, %arg8: memref<576x128xbf16, #tpu.memory_space<vmem>>, %arg9: memref<1x128xf32, #tpu.memory_space<vmem>>, %arg10: memref<1x128xf32, #tpu.memory_space<vmem>>, %arg11: memref<1152x128xbf16, #tpu.memory_space<vmem>>, %arg12: memref<1x128xf32, #tpu.memory_space<vmem>>, %arg13: memref<1x128xf32, #tpu.memory_space<vmem>>, %arg14: memref<1152x128xbf16, #tpu.memory_space<vmem>>, %arg15: memref<1x128xf32, #tpu.memory_space<vmem>>, %arg16: memref<1x128xf32, #tpu.memory_space<vmem>>, %arg17: memref<1152x128xbf16, #tpu.memory_space<vmem>>, %arg18: memref<1x128xf32, #tpu.memory_space<vmem>>, %arg19: memref<1x128xf32, #tpu.memory_space<vmem>>, %arg20: memref<512x2xf32, #tpu.memory_space<vmem>>, %arg21: memref<1x2xf32, #tpu.memory_space<vmem>>, %arg22: memref<2x2xf32, #tpu.memory_space<vmem>>, %arg23: memref<2x10x10x24xf32, #tpu.memory_space<vmem>>, %arg24: memref<2x10x10x64xf32, #tpu.memory_space<vmem>>, %arg25: memref<2x6x10x64xf32, #tpu.memory_space<vmem>>, %arg26: memref<2x6x10x128xf32, #tpu.memory_space<vmem>>, %arg27: memref<2x4x10x128xf32, #tpu.memory_space<vmem>>, %arg28: memref<2x4x10x128xf32, #tpu.memory_space<vmem>>, %arg29: memref<2x8x16x24xf32, #tpu.memory_space<vmem>>, %arg30: memref<2x4x8x64xf32, #tpu.memory_space<vmem>>, %arg31: memref<2x2x8x128xf32, #tpu.memory_space<vmem>>) attributes {dimension_semantics = [#tpu.dimension_semantics<arbitrary>], iteration_bounds = array<i64: 1>, scalar_prefetch = 0 : i64, scratch_operands = 9 : i64, tpu.core_type = #tpu.core_type<tc>, window_params = [{pipeline_mode = #tpu.pipeline_mode<synchronous>, transform_indices = @transform_0, window_bounds = array<i64: 2, 16, 16, 24>}, {pipeline_mode = #tpu.pipeline_mode<synchronous>, transform_indices = @transform_1, window_bounds = array<i64: 216, 64>}, {pipeline_mode = #tpu.pipeline_mode<synchronous>, transform_indices = @transform_2, window_bounds = array<i64: 1, 64>}, {pipeline_mode = #tpu.pipeline_mode<synchronous>, transform_indices = @transform_3, window_bounds = array<i64: 1, 64>}, {pipeline_mode = #tpu.pipeline_mode<synchronous>, transform_indices = @transform_4, window_bounds = array<i64: 576, 64>}, {pipeline_mode = #tpu.pipeline_mode<synchronous>, transform_indices = @transform_5, window_bounds = array<i64: 1, 64>}, {pipeline_mode = #tpu.pipeline_mode<synchronous>, transform_indices = @transform_6, window_bounds = array<i64: 1, 64>}, {pipeline_mode = #tpu.pipeline_mode<synchronous>, transform_indices = @transform_7, window_bounds = array<i64: 576, 128>}, {pipeline_mode = #tpu.pipeline_mode<synchronous>, transform_indices = @transform_8, window_bounds = array<i64: 1, 128>}, {pipeline_mode = #tpu.pipeline_mode<synchronous>, transform_indices = @transform_9, window_bounds = array<i64: 1, 128>}, {pipeline_mode = #tpu.pipeline_mode<synchronous>, transform_indices = @transform_10, window_bounds = array<i64: 1152, 128>}, {pipeline_mode = #tpu.pipeline_mode<synchronous>, transform_indices = @transform_11, window_bounds = array<i64: 1, 128>}, {pipeline_mode = #tpu.pipeline_mode<synchronous>, transform_indices = @transform_12, window_bounds = array<i64: 1, 128>}, {pipeline_mode = #tpu.pipeline_mode<synchronous>, transform_indices = @transform_13, window_bounds = array<i64: 1152, 128>}, {pipeline_mode = #tpu.pipeline_mode<synchronous>, transform_indices = @transform_14, window_bounds = array<i64: 1, 128>}, {pipeline_mode = #tpu.pipeline_mode<synchronous>, transform_indices = @transform_15, window_bounds = array<i64: 1, 128>}, {pipeline_mode = #tpu.pipeline_mode<synchronous>, transform_indices = @transform_16, window_bounds = array<i64: 1152, 128>}, {pipeline_mode = #tpu.pipeline_mode<synchronous>, transform_indices = @transform_17, window_bounds = array<i64: 1, 128>}, {pipeline_mode = #tpu.pipeline_mode<synchronous>, transform_indices = @transform_18, window_bounds = array<i64: 1, 128>}, {pipeline_mode = #tpu.pipeline_mode<synchronous>, transform_indices = @transform_19, window_bounds = array<i64: 512, 2>}, {pipeline_mode = #tpu.pipeline_mode<synchronous>, transform_indices = @transform_20, window_bounds = array<i64: 1, 2>}, {pipeline_mode = #tpu.pipeline_mode<synchronous>, transform_indices = @transform_21, window_bounds = array<i64: 2, 2>}]} {
    %cst = arith.constant 0.000000e+00 : f32
    %0 = vector.broadcast %cst : f32 to vector<2x10x10x24xf32>
    %c0 = arith.constant 0 : index
    %c0_0 = arith.constant 0 : index
    %c0_1 = arith.constant 0 : index
    %c0_2 = arith.constant 0 : index
    %1 = vector.load %arg23[%c0, %c0_0, %c0_1, %c0_2] : memref<2x10x10x24xf32, #tpu.memory_space<vmem>>, vector<2x10x10x24xf32>
    tpu.vector_store %arg23[%c0, %c0_0, %c0_1, %c0_2], %0 {strides = array<i32>} : memref<2x10x10x24xf32, #tpu.memory_space<vmem>>, vector<2x10x10x24xf32>,
    %cst_3 = arith.constant 0.000000e+00 : f32
    %2 = vector.broadcast %cst_3 : f32 to vector<2x10x10x64xf32>
    %c0_4 = arith.constant 0 : index
    %c0_5 = arith.constant 0 : index
    %c0_6 = arith.constant 0 : index
    %c0_7 = arith.constant 0 : index
    %3 = vector.load %arg24[%c0_4, %c0_5, %c0_6, %c0_7] : memref<2x10x10x64xf32, #tpu.memory_space<vmem>>, vector<2x10x10x64xf32>
    tpu.vector_store %arg24[%c0_4, %c0_5, %c0_6, %c0_7], %2 {strides = array<i32>} : memref<2x10x10x64xf32, #tpu.memory_space<vmem>>, vector<2x10x10x64xf32>,
    %cst_8 = arith.constant 0.000000e+00 : f32
    %4 = vector.broadcast %cst_8 : f32 to vector<2x6x10x64xf32>
    %c0_9 = arith.constant 0 : index
    %c0_10 = arith.constant 0 : index
    %c0_11 = arith.constant 0 : index
    %c0_12 = arith.constant 0 : index
    %5 = vector.load %arg25[%c0_9, %c0_10, %c0_11, %c0_12] : memref<2x6x10x64xf32, #tpu.memory_space<vmem>>, vector<2x6x10x64xf32>
    tpu.vector_store %arg25[%c0_9, %c0_10, %c0_11, %c0_12], %4 {strides = array<i32>} : memref<2x6x10x64xf32, #tpu.memory_space<vmem>>, vector<2x6x10x64xf32>,
    %cst_13 = arith.constant 0.000000e+00 : f32
    %6 = vector.broadcast %cst_13 : f32 to vector<2x6x10x128xf32>
    %c0_14 = arith.constant 0 : index
    %c0_15 = arith.constant 0 : index
    %c0_16 = arith.constant 0 : index
    %c0_17 = arith.constant 0 : index
    %7 = vector.load %arg26[%c0_14, %c0_15, %c0_16, %c0_17] : memref<2x6x10x128xf32, #tpu.memory_space<vmem>>, vector<2x6x10x128xf32>
    tpu.vector_store %arg26[%c0_14, %c0_15, %c0_16, %c0_17], %6 {strides = array<i32>} : memref<2x6x10x128xf32, #tpu.memory_space<vmem>>, vector<2x6x10x128xf32>,
    %cst_18 = arith.constant 0.000000e+00 : f32
    %8 = vector.broadcast %cst_18 : f32 to vector<2x4x10x128xf32>
    %c0_19 = arith.constant 0 : index
    %c0_20 = arith.constant 0 : index
    %c0_21 = arith.constant 0 : index
    %c0_22 = arith.constant 0 : index
    %9 = vector.load %arg27[%c0_19, %c0_20, %c0_21, %c0_22] : memref<2x4x10x128xf32, #tpu.memory_space<vmem>>, vector<2x4x10x128xf32>
    tpu.vector_store %arg27[%c0_19, %c0_20, %c0_21, %c0_22], %8 {strides = array<i32>} : memref<2x4x10x128xf32, #tpu.memory_space<vmem>>, vector<2x4x10x128xf32>,
    %cst_23 = arith.constant 0.000000e+00 : f32
    %10 = vector.broadcast %cst_23 : f32 to vector<2x4x10x128xf32>
    %c0_24 = arith.constant 0 : index
    %c0_25 = arith.constant 0 : index
    %c0_26 = arith.constant 0 : index
    %c0_27 = arith.constant 0 : index
    %11 = vector.load %arg28[%c0_24, %c0_25, %c0_26, %c0_27] : memref<2x4x10x128xf32, #tpu.memory_space<vmem>>, vector<2x4x10x128xf32>
    tpu.vector_store %arg28[%c0_24, %c0_25, %c0_26, %c0_27], %10 {strides = array<i32>} : memref<2x4x10x128xf32, #tpu.memory_space<vmem>>, vector<2x4x10x128xf32>,
    %c0_28 = arith.constant 0 : index
    %c0_29 = arith.constant 0 : index
    %c0_30 = arith.constant 0 : index
    %c0_31 = arith.constant 0 : index
    %12 = vector.load %arg1[%c0_28, %c0_29, %c0_30, %c0_31] : memref<2x16x16x24xf32, #tpu.memory_space<vmem>>, vector<1x16x16x24xf32>
    %13 = vector.shape_cast %12 : vector<1x16x16x24xf32> to vector<16x16x24xf32>
    %14 = vector.shape_cast %13 : vector<16x16x24xf32> to vector<8x2x16x24xf32>
    %15 = vector.extract_strided_slice %14 {offsets = [0, 0, 0, 0], sizes = [8, 1, 16, 24], strides = [1, 1, 1, 1]} : vector<8x2x16x24xf32> to vector<8x1x16x24xf32>
    %16 = vector.shape_cast %15 : vector<8x1x16x24xf32> to vector<8x16x24xf32>
    %17 = vector.extract_strided_slice %14 {offsets = [0, 1, 0, 0], sizes = [8, 1, 16, 24], strides = [1, 1, 1, 1]} : vector<8x2x16x24xf32> to vector<8x1x16x24xf32>
    %18 = vector.shape_cast %17 : vector<8x1x16x24xf32> to vector<8x16x24xf32>
    %19 = arith.maximumf %16, %18 : vector<8x16x24xf32>
    %c0_32 = arith.constant 0 : index
    %c0_33 = arith.constant 0 : index
    %c0_34 = arith.constant 0 : index
    %c0_35 = arith.constant 0 : index
    %20 = vector.load %arg29[%c0_32, %c0_33, %c0_34, %c0_35] : memref<2x8x16x24xf32, #tpu.memory_space<vmem>>, vector<1x8x16x24xf32>
    %21 = vector.shape_cast %20 : vector<1x8x16x24xf32> to vector<8x16x24xf32>
    %22 = vector.shape_cast %19 : vector<8x16x24xf32> to vector<1x8x16x24xf32>
    tpu.vector_store %arg29[%c0_32, %c0_33, %c0_34, %c0_35], %22 {strides = array<i32>} : memref<2x8x16x24xf32, #tpu.memory_space<vmem>>, vector<1x8x16x24xf32>,
    %c1 = arith.constant 1 : index
    %c0_36 = arith.constant 0 : index
    %c0_37 = arith.constant 0 : index
    %c0_38 = arith.constant 0 : index
    %23 = vector.load %arg1[%c1, %c0_36, %c0_37, %c0_38] : memref<2x16x16x24xf32, #tpu.memory_space<vmem>>, vector<1x16x16x24xf32>
    %24 = vector.shape_cast %23 : vector<1x16x16x24xf32> to vector<16x16x24xf32>
    %25 = vector.shape_cast %24 : vector<16x16x24xf32> to vector<8x2x16x24xf32>
    %26 = vector.extract_strided_slice %25 {offsets = [0, 0, 0, 0], sizes = [8, 1, 16, 24], strides = [1, 1, 1, 1]} : vector<8x2x16x24xf32> to vector<8x1x16x24xf32>
    %27 = vector.shape_cast %26 : vector<8x1x16x24xf32> to vector<8x16x24xf32>
    %28 = vector.extract_strided_slice %25 {offsets = [0, 1, 0, 0], sizes = [8, 1, 16, 24], strides = [1, 1, 1, 1]} : vector<8x2x16x24xf32> to vector<8x1x16x24xf32>
    %29 = vector.shape_cast %28 : vector<8x1x16x24xf32> to vector<8x16x24xf32>
    %30 = arith.maximumf %27, %29 : vector<8x16x24xf32>
    %c1_39 = arith.constant 1 : index
    %c0_40 = arith.constant 0 : index
    %c0_41 = arith.constant 0 : index
    %c0_42 = arith.constant 0 : index
    %31 = vector.load %arg29[%c1_39, %c0_40, %c0_41, %c0_42] : memref<2x8x16x24xf32, #tpu.memory_space<vmem>>, vector<1x8x16x24xf32>
    %32 = vector.shape_cast %31 : vector<1x8x16x24xf32> to vector<8x16x24xf32>
    %33 = vector.shape_cast %30 : vector<8x16x24xf32> to vector<1x8x16x24xf32>
    tpu.vector_store %arg29[%c1_39, %c0_40, %c0_41, %c0_42], %33 {strides = array<i32>} : memref<2x8x16x24xf32, #tpu.memory_space<vmem>>, vector<1x8x16x24xf32>,
    %c0_43 = arith.constant 0 : index
    %c0_44 = arith.constant 0 : index
    %c0_45 = arith.constant 0 : index
    %c0_46 = arith.constant 0 : index
    %34 = tpu.strided_load %arg29[%c0_43, %c0_44, %c0_45, %c0_46] {strides = array<i32: 1, 1, 2, 1>} : memref<2x8x16x24xf32, #tpu.memory_space<vmem>>, vector<2x8x8x24xf32>
    %c0_47 = arith.constant 0 : index
    %c0_48 = arith.constant 0 : index
    %c1_49 = arith.constant 1 : index
    %c0_50 = arith.constant 0 : index
    %35 = tpu.strided_load %arg29[%c0_47, %c0_48, %c1_49, %c0_50] {strides = array<i32: 1, 1, 2, 1>} : memref<2x8x16x24xf32, #tpu.memory_space<vmem>>, vector<2x8x8x24xf32>
    %36 = arith.maximumf %34, %35 : vector<2x8x8x24xf32>
    %c0_51 = arith.constant 0 : index
    %c1_52 = arith.constant 1 : index
    %c1_53 = arith.constant 1 : index
    %c0_54 = arith.constant 0 : index
    %37 = vector.load %arg23[%c0_51, %c1_52, %c1_53, %c0_54] : memref<2x10x10x24xf32, #tpu.memory_space<vmem>>, vector<2x8x8x24xf32>
    tpu.vector_store %arg23[%c0_51, %c1_52, %c1_53, %c0_54], %36 {strides = array<i32>} : memref<2x10x10x24xf32, #tpu.memory_space<vmem>>, vector<2x8x8x24xf32>,
    %c0_55 = arith.constant 0 : index
    %c0_56 = arith.constant 0 : index
    %c0_57 = arith.constant 0 : index
    %c0_58 = arith.constant 0 : index
    %38 = vector.load %arg23[%c0_55, %c0_56, %c0_57, %c0_58] : memref<2x10x10x24xf32, #tpu.memory_space<vmem>>, vector<2x10x8x24xf32>
    %c0_59 = arith.constant 0 : index
    %c0_60 = arith.constant 0 : index
    %c1_61 = arith.constant 1 : index
    %c0_62 = arith.constant 0 : index
    %39 = vector.load %arg23[%c0_59, %c0_60, %c1_61, %c0_62] : memref<2x10x10x24xf32, #tpu.memory_space<vmem>>, vector<2x10x8x24xf32>
    %c0_63 = arith.constant 0 : index
    %c0_64 = arith.constant 0 : index
    %c2 = arith.constant 2 : index
    %c0_65 = arith.constant 0 : index
    %40 = vector.load %arg23[%c0_63, %c0_64, %c2, %c0_65] : memref<2x10x10x24xf32, #tpu.memory_space<vmem>>, vector<2x10x8x24xf32>
    %41 = vector.extract_strided_slice %38 {offsets = [0, 0, 0, 0], sizes = [2, 8, 8, 24], strides = [1, 1, 1, 1]} : vector<2x10x8x24xf32> to vector<2x8x8x24xf32>
    %42 = vector.extract_strided_slice %39 {offsets = [0, 0, 0, 0], sizes = [2, 8, 8, 24], strides = [1, 1, 1, 1]} : vector<2x10x8x24xf32> to vector<2x8x8x24xf32>
    %43 = vector.extract_strided_slice %40 {offsets = [0, 0, 0, 0], sizes = [2, 8, 8, 24], strides = [1, 1, 1, 1]} : vector<2x10x8x24xf32> to vector<2x8x8x24xf32>
    %44 = vector.extract_strided_slice %38 {offsets = [0, 1, 0, 0], sizes = [2, 8, 8, 24], strides = [1, 1, 1, 1]} : vector<2x10x8x24xf32> to vector<2x8x8x24xf32>
    %45 = vector.extract_strided_slice %39 {offsets = [0, 1, 0, 0], sizes = [2, 8, 8, 24], strides = [1, 1, 1, 1]} : vector<2x10x8x24xf32> to vector<2x8x8x24xf32>
    %46 = vector.extract_strided_slice %40 {offsets = [0, 1, 0, 0], sizes = [2, 8, 8, 24], strides = [1, 1, 1, 1]} : vector<2x10x8x24xf32> to vector<2x8x8x24xf32>
    %47 = vector.extract_strided_slice %38 {offsets = [0, 2, 0, 0], sizes = [2, 8, 8, 24], strides = [1, 1, 1, 1]} : vector<2x10x8x24xf32> to vector<2x8x8x24xf32>
    %48 = vector.extract_strided_slice %39 {offsets = [0, 2, 0, 0], sizes = [2, 8, 8, 24], strides = [1, 1, 1, 1]} : vector<2x10x8x24xf32> to vector<2x8x8x24xf32>
    %49 = vector.extract_strided_slice %40 {offsets = [0, 2, 0, 0], sizes = [2, 8, 8, 24], strides = [1, 1, 1, 1]} : vector<2x10x8x24xf32> to vector<2x8x8x24xf32>
    %50 = tpu.concatenate %41, %42, %43, %44, %45, %46, %47, %48, %49 in 3 : vector<2x8x8x24xf32>, vector<2x8x8x24xf32>, vector<2x8x8x24xf32>, vector<2x8x8x24xf32>, vector<2x8x8x24xf32>, vector<2x8x8x24xf32>, vector<2x8x8x24xf32>, vector<2x8x8x24xf32>, vector<2x8x8x24xf32> -> vector<2x8x8x216xf32>
    %51 = vector.shape_cast %50 : vector<2x8x8x216xf32> to vector<128x216xf32>
    %52 = arith.truncf %51 : vector<128x216xf32> to vector<128x216xbf16>
    %c0_66 = arith.constant 0 : index
    %c0_67 = arith.constant 0 : index
    %53 = vector.load %arg2[%c0_66, %c0_67] : memref<216x64xbf16, #tpu.memory_space<vmem>>, vector<216x64xbf16>
    %cst_68 = arith.constant dense<0.000000e+00> : vector<128x64xf32>
    %54 = tpu.matmul %52, %53, %cst_68 {dimension_numbers = #tpu.dot_dimension_numbers<[1], [0], [0], [1], [0, 0, 1, 1], [], []>} : vector<128x216xbf16>, vector<216x64xbf16>, vector<128x64xf32> -> vector<128x64xf32>
    %c0_69 = arith.constant 0 : index
    %c0_70 = arith.constant 0 : index
    %55 = vector.load %arg3[%c0_69, %c0_70] : memref<1x64xf32, #tpu.memory_space<vmem>>, vector<1x64xf32>
    %56 = vector.broadcast %55 : vector<1x64xf32> to vector<128x64xf32>
    %57 = arith.mulf %54, %56 : vector<128x64xf32>
    %c0_71 = arith.constant 0 : index
    %c0_72 = arith.constant 0 : index
    %58 = vector.load %arg4[%c0_71, %c0_72] : memref<1x64xf32, #tpu.memory_space<vmem>>, vector<1x64xf32>
    %59 = vector.broadcast %58 : vector<1x64xf32> to vector<128x64xf32>
    %60 = arith.addf %57, %59 : vector<128x64xf32>
    %cst_73 = arith.constant 0.000000e+00 : f32
    %61 = vector.broadcast %cst_73 : f32 to vector<128x64xf32>
    %62 = arith.maximumf %60, %61 : vector<128x64xf32>
    %63 = vector.shape_cast %62 : vector<128x64xf32> to vector<2x8x8x64xf32>
    %c0_74 = arith.constant 0 : index
    %c1_75 = arith.constant 1 : index
    %c1_76 = arith.constant 1 : index
    %c0_77 = arith.constant 0 : index
    %64 = vector.load %arg24[%c0_74, %c1_75, %c1_76, %c0_77] : memref<2x10x10x64xf32, #tpu.memory_space<vmem>>, vector<2x8x8x64xf32>
    tpu.vector_store %arg24[%c0_74, %c1_75, %c1_76, %c0_77], %63 {strides = array<i32>} : memref<2x10x10x64xf32, #tpu.memory_space<vmem>>, vector<2x8x8x64xf32>,
    %c0_78 = arith.constant 0 : index
    %c0_79 = arith.constant 0 : index
    %c0_80 = arith.constant 0 : index
    %c0_81 = arith.constant 0 : index
    %65 = vector.load %arg24[%c0_78, %c0_79, %c0_80, %c0_81] : memref<2x10x10x64xf32, #tpu.memory_space<vmem>>, vector<2x10x8x64xf32>
    %c0_82 = arith.constant 0 : index
    %c0_83 = arith.constant 0 : index
    %c1_84 = arith.constant 1 : index
    %c0_85 = arith.constant 0 : index
    %66 = vector.load %arg24[%c0_82, %c0_83, %c1_84, %c0_85] : memref<2x10x10x64xf32, #tpu.memory_space<vmem>>, vector<2x10x8x64xf32>
    %c0_86 = arith.constant 0 : index
    %c0_87 = arith.constant 0 : index
    %c2_88 = arith.constant 2 : index
    %c0_89 = arith.constant 0 : index
    %67 = vector.load %arg24[%c0_86, %c0_87, %c2_88, %c0_89] : memref<2x10x10x64xf32, #tpu.memory_space<vmem>>, vector<2x10x8x64xf32>
    %68 = vector.extract_strided_slice %65 {offsets = [0, 0, 0, 0], sizes = [2, 8, 8, 64], strides = [1, 1, 1, 1]} : vector<2x10x8x64xf32> to vector<2x8x8x64xf32>
    %69 = vector.extract_strided_slice %66 {offsets = [0, 0, 0, 0], sizes = [2, 8, 8, 64], strides = [1, 1, 1, 1]} : vector<2x10x8x64xf32> to vector<2x8x8x64xf32>
    %70 = vector.extract_strided_slice %67 {offsets = [0, 0, 0, 0], sizes = [2, 8, 8, 64], strides = [1, 1, 1, 1]} : vector<2x10x8x64xf32> to vector<2x8x8x64xf32>
    %71 = vector.extract_strided_slice %65 {offsets = [0, 1, 0, 0], sizes = [2, 8, 8, 64], strides = [1, 1, 1, 1]} : vector<2x10x8x64xf32> to vector<2x8x8x64xf32>
    %72 = vector.extract_strided_slice %66 {offsets = [0, 1, 0, 0], sizes = [2, 8, 8, 64], strides = [1, 1, 1, 1]} : vector<2x10x8x64xf32> to vector<2x8x8x64xf32>
    %73 = vector.extract_strided_slice %67 {offsets = [0, 1, 0, 0], sizes = [2, 8, 8, 64], strides = [1, 1, 1, 1]} : vector<2x10x8x64xf32> to vector<2x8x8x64xf32>
    %74 = vector.extract_strided_slice %65 {offsets = [0, 2, 0, 0], sizes = [2, 8, 8, 64], strides = [1, 1, 1, 1]} : vector<2x10x8x64xf32> to vector<2x8x8x64xf32>
    %75 = vector.extract_strided_slice %66 {offsets = [0, 2, 0, 0], sizes = [2, 8, 8, 64], strides = [1, 1, 1, 1]} : vector<2x10x8x64xf32> to vector<2x8x8x64xf32>
    %76 = vector.extract_strided_slice %67 {offsets = [0, 2, 0, 0], sizes = [2, 8, 8, 64], strides = [1, 1, 1, 1]} : vector<2x10x8x64xf32> to vector<2x8x8x64xf32>
    %77 = tpu.concatenate %68, %69, %70, %71, %72, %73, %74, %75, %76 in 3 : vector<2x8x8x64xf32>, vector<2x8x8x64xf32>, vector<2x8x8x64xf32>, vector<2x8x8x64xf32>, vector<2x8x8x64xf32>, vector<2x8x8x64xf32>, vector<2x8x8x64xf32>, vector<2x8x8x64xf32>, vector<2x8x8x64xf32> -> vector<2x8x8x576xf32>
    %78 = vector.shape_cast %77 : vector<2x8x8x576xf32> to vector<128x576xf32>
    %79 = arith.truncf %78 : vector<128x576xf32> to vector<128x576xbf16>
    %c0_90 = arith.constant 0 : index
    %c0_91 = arith.constant 0 : index
    %80 = vector.load %arg5[%c0_90, %c0_91] : memref<576x64xbf16, #tpu.memory_space<vmem>>, vector<576x64xbf16>
    %cst_92 = arith.constant dense<0.000000e+00> : vector<128x64xf32>
    %81 = tpu.matmul %79, %80, %cst_92 {dimension_numbers = #tpu.dot_dimension_numbers<[1], [0], [0], [1], [0, 0, 1, 1], [], []>} : vector<128x576xbf16>, vector<576x64xbf16>, vector<128x64xf32> -> vector<128x64xf32>
    %c0_93 = arith.constant 0 : index
    %c0_94 = arith.constant 0 : index
    %82 = vector.load %arg6[%c0_93, %c0_94] : memref<1x64xf32, #tpu.memory_space<vmem>>, vector<1x64xf32>
    %83 = vector.broadcast %82 : vector<1x64xf32> to vector<128x64xf32>
    %84 = arith.mulf %81, %83 : vector<128x64xf32>
    %c0_95 = arith.constant 0 : index
    %c0_96 = arith.constant 0 : index
    %85 = vector.load %arg7[%c0_95, %c0_96] : memref<1x64xf32, #tpu.memory_space<vmem>>, vector<1x64xf32>
    %86 = vector.broadcast %85 : vector<1x64xf32> to vector<128x64xf32>
    %87 = arith.addf %84, %86 : vector<128x64xf32>
    %cst_97 = arith.constant 0.000000e+00 : f32
    %88 = vector.broadcast %cst_97 : f32 to vector<128x64xf32>
    %89 = arith.maximumf %87, %88 : vector<128x64xf32>
    %90 = vector.shape_cast %89 : vector<128x64xf32> to vector<2x8x8x64xf32>
    %91 = vector.extract_strided_slice %90 {offsets = [0, 0, 0, 0], sizes = [1, 8, 8, 64], strides = [1, 1, 1, 1]} : vector<2x8x8x64xf32> to vector<1x8x8x64xf32>
    %92 = vector.shape_cast %91 : vector<1x8x8x64xf32> to vector<8x8x64xf32>
    %93 = vector.shape_cast %92 : vector<8x8x64xf32> to vector<4x2x8x64xf32>
    %94 = vector.extract_strided_slice %93 {offsets = [0, 0, 0, 0], sizes = [4, 1, 8, 64], strides = [1, 1, 1, 1]} : vector<4x2x8x64xf32> to vector<4x1x8x64xf32>
    %95 = vector.shape_cast %94 : vector<4x1x8x64xf32> to vector<4x8x64xf32>
    %96 = vector.extract_strided_slice %93 {offsets = [0, 1, 0, 0], sizes = [4, 1, 8, 64], strides = [1, 1, 1, 1]} : vector<4x2x8x64xf32> to vector<4x1x8x64xf32>
    %97 = vector.shape_cast %96 : vector<4x1x8x64xf32> to vector<4x8x64xf32>
    %98 = arith.maximumf %95, %97 : vector<4x8x64xf32>
    %c0_98 = arith.constant 0 : index
    %c0_99 = arith.constant 0 : index
    %c0_100 = arith.constant 0 : index
    %c0_101 = arith.constant 0 : index
    %99 = vector.load %arg30[%c0_98, %c0_99, %c0_100, %c0_101] : memref<2x4x8x64xf32, #tpu.memory_space<vmem>>, vector<1x4x8x64xf32>
    %100 = vector.shape_cast %99 : vector<1x4x8x64xf32> to vector<4x8x64xf32>
    %101 = vector.shape_cast %98 : vector<4x8x64xf32> to vector<1x4x8x64xf32>
    tpu.vector_store %arg30[%c0_98, %c0_99, %c0_100, %c0_101], %101 {strides = array<i32>} : memref<2x4x8x64xf32, #tpu.memory_space<vmem>>, vector<1x4x8x64xf32>,
    %102 = vector.extract_strided_slice %90 {offsets = [1, 0, 0, 0], sizes = [1, 8, 8, 64], strides = [1, 1, 1, 1]} : vector<2x8x8x64xf32> to vector<1x8x8x64xf32>
    %103 = vector.shape_cast %102 : vector<1x8x8x64xf32> to vector<8x8x64xf32>
    %104 = vector.shape_cast %103 : vector<8x8x64xf32> to vector<4x2x8x64xf32>
    %105 = vector.extract_strided_slice %104 {offsets = [0, 0, 0, 0], sizes = [4, 1, 8, 64], strides = [1, 1, 1, 1]} : vector<4x2x8x64xf32> to vector<4x1x8x64xf32>
    %106 = vector.shape_cast %105 : vector<4x1x8x64xf32> to vector<4x8x64xf32>
    %107 = vector.extract_strided_slice %104 {offsets = [0, 1, 0, 0], sizes = [4, 1, 8, 64], strides = [1, 1, 1, 1]} : vector<4x2x8x64xf32> to vector<4x1x8x64xf32>
    %108 = vector.shape_cast %107 : vector<4x1x8x64xf32> to vector<4x8x64xf32>
    %109 = arith.maximumf %106, %108 : vector<4x8x64xf32>
    %c1_102 = arith.constant 1 : index
    %c0_103 = arith.constant 0 : index
    %c0_104 = arith.constant 0 : index
    %c0_105 = arith.constant 0 : index
    %110 = vector.load %arg30[%c1_102, %c0_103, %c0_104, %c0_105] : memref<2x4x8x64xf32, #tpu.memory_space<vmem>>, vector<1x4x8x64xf32>
    %111 = vector.shape_cast %110 : vector<1x4x8x64xf32> to vector<4x8x64xf32>
    %112 = vector.shape_cast %109 : vector<4x8x64xf32> to vector<1x4x8x64xf32>
    tpu.vector_store %arg30[%c1_102, %c0_103, %c0_104, %c0_105], %112 {strides = array<i32>} : memref<2x4x8x64xf32, #tpu.memory_space<vmem>>, vector<1x4x8x64xf32>,
    %c0_106 = arith.constant 0 : index
    %c0_107 = arith.constant 0 : index
    %c0_108 = arith.constant 0 : index
    %c0_109 = arith.constant 0 : index
    %113 = tpu.strided_load %arg30[%c0_106, %c0_107, %c0_108, %c0_109] {strides = array<i32: 1, 1, 2, 1>} : memref<2x4x8x64xf32, #tpu.memory_space<vmem>>, vector<2x4x4x64xf32>
    %c0_110 = arith.constant 0 : index
    %c0_111 = arith.constant 0 : index
    %c1_112 = arith.constant 1 : index
    %c0_113 = arith.constant 0 : index
    %114 = tpu.strided_load %arg30[%c0_110, %c0_111, %c1_112, %c0_113] {strides = array<i32: 1, 1, 2, 1>} : memref<2x4x8x64xf32, #tpu.memory_space<vmem>>, vector<2x4x4x64xf32>
    %115 = arith.maximumf %113, %114 : vector<2x4x4x64xf32>
    %c0_114 = arith.constant 0 : index
    %c1_115 = arith.constant 1 : index
    %c1_116 = arith.constant 1 : index
    %c0_117 = arith.constant 0 : index
    %116 = vector.load %arg25[%c0_114, %c1_115, %c1_116, %c0_117] : memref<2x6x10x64xf32, #tpu.memory_space<vmem>>, vector<2x4x4x64xf32>
    tpu.vector_store %arg25[%c0_114, %c1_115, %c1_116, %c0_117], %115 {strides = array<i32>} : memref<2x6x10x64xf32, #tpu.memory_space<vmem>>, vector<2x4x4x64xf32>,
    %c0_118 = arith.constant 0 : index
    %c0_119 = arith.constant 0 : index
    %c0_120 = arith.constant 0 : index
    %c0_121 = arith.constant 0 : index
    %117 = vector.load %arg25[%c0_118, %c0_119, %c0_120, %c0_121] : memref<2x6x10x64xf32, #tpu.memory_space<vmem>>, vector<2x6x8x64xf32>
    %c0_122 = arith.constant 0 : index
    %c0_123 = arith.constant 0 : index
    %c1_124 = arith.constant 1 : index
    %c0_125 = arith.constant 0 : index
    %118 = vector.load %arg25[%c0_122, %c0_123, %c1_124, %c0_125] : memref<2x6x10x64xf32, #tpu.memory_space<vmem>>, vector<2x6x8x64xf32>
    %c0_126 = arith.constant 0 : index
    %c0_127 = arith.constant 0 : index
    %c2_128 = arith.constant 2 : index
    %c0_129 = arith.constant 0 : index
    %119 = vector.load %arg25[%c0_126, %c0_127, %c2_128, %c0_129] : memref<2x6x10x64xf32, #tpu.memory_space<vmem>>, vector<2x6x8x64xf32>
    %120 = vector.extract_strided_slice %117 {offsets = [0, 0, 0, 0], sizes = [2, 4, 8, 64], strides = [1, 1, 1, 1]} : vector<2x6x8x64xf32> to vector<2x4x8x64xf32>
    %121 = vector.extract_strided_slice %118 {offsets = [0, 0, 0, 0], sizes = [2, 4, 8, 64], strides = [1, 1, 1, 1]} : vector<2x6x8x64xf32> to vector<2x4x8x64xf32>
    %122 = vector.extract_strided_slice %119 {offsets = [0, 0, 0, 0], sizes = [2, 4, 8, 64], strides = [1, 1, 1, 1]} : vector<2x6x8x64xf32> to vector<2x4x8x64xf32>
    %123 = vector.extract_strided_slice %117 {offsets = [0, 1, 0, 0], sizes = [2, 4, 8, 64], strides = [1, 1, 1, 1]} : vector<2x6x8x64xf32> to vector<2x4x8x64xf32>
    %124 = vector.extract_strided_slice %118 {offsets = [0, 1, 0, 0], sizes = [2, 4, 8, 64], strides = [1, 1, 1, 1]} : vector<2x6x8x64xf32> to vector<2x4x8x64xf32>
    %125 = vector.extract_strided_slice %119 {offsets = [0, 1, 0, 0], sizes = [2, 4, 8, 64], strides = [1, 1, 1, 1]} : vector<2x6x8x64xf32> to vector<2x4x8x64xf32>
    %126 = vector.extract_strided_slice %117 {offsets = [0, 2, 0, 0], sizes = [2, 4, 8, 64], strides = [1, 1, 1, 1]} : vector<2x6x8x64xf32> to vector<2x4x8x64xf32>
    %127 = vector.extract_strided_slice %118 {offsets = [0, 2, 0, 0], sizes = [2, 4, 8, 64], strides = [1, 1, 1, 1]} : vector<2x6x8x64xf32> to vector<2x4x8x64xf32>
    %128 = vector.extract_strided_slice %119 {offsets = [0, 2, 0, 0], sizes = [2, 4, 8, 64], strides = [1, 1, 1, 1]} : vector<2x6x8x64xf32> to vector<2x4x8x64xf32>
    %129 = tpu.concatenate %120, %121, %122, %123, %124, %125, %126, %127, %128 in 3 : vector<2x4x8x64xf32>, vector<2x4x8x64xf32>, vector<2x4x8x64xf32>, vector<2x4x8x64xf32>, vector<2x4x8x64xf32>, vector<2x4x8x64xf32>, vector<2x4x8x64xf32>, vector<2x4x8x64xf32>, vector<2x4x8x64xf32> -> vector<2x4x8x576xf32>
    %130 = vector.shape_cast %129 : vector<2x4x8x576xf32> to vector<64x576xf32>
    %131 = arith.truncf %130 : vector<64x576xf32> to vector<64x576xbf16>
    %c0_130 = arith.constant 0 : index
    %c0_131 = arith.constant 0 : index
    %132 = vector.load %arg8[%c0_130, %c0_131] : memref<576x128xbf16, #tpu.memory_space<vmem>>, vector<576x128xbf16>
    %cst_132 = arith.constant dense<0.000000e+00> : vector<64x128xf32>
    %133 = tpu.matmul %131, %132, %cst_132 {dimension_numbers = #tpu.dot_dimension_numbers<[1], [0], [0], [1], [0, 0, 1, 1], [], []>} : vector<64x576xbf16>, vector<576x128xbf16>, vector<64x128xf32> -> vector<64x128xf32>
    %c0_133 = arith.constant 0 : index
    %c0_134 = arith.constant 0 : index
    %134 = vector.load %arg9[%c0_133, %c0_134] : memref<1x128xf32, #tpu.memory_space<vmem>>, vector<1x128xf32>
    %135 = vector.broadcast %134 : vector<1x128xf32> to vector<64x128xf32>
    %136 = arith.mulf %133, %135 : vector<64x128xf32>
    %c0_135 = arith.constant 0 : index
    %c0_136 = arith.constant 0 : index
    %137 = vector.load %arg10[%c0_135, %c0_136] : memref<1x128xf32, #tpu.memory_space<vmem>>, vector<1x128xf32>
    %138 = vector.broadcast %137 : vector<1x128xf32> to vector<64x128xf32>
    %139 = arith.addf %136, %138 : vector<64x128xf32>
    %cst_137 = arith.constant 0.000000e+00 : f32
    %140 = vector.broadcast %cst_137 : f32 to vector<64x128xf32>
    %141 = arith.maximumf %139, %140 : vector<64x128xf32>
    %142 = vector.shape_cast %141 : vector<64x128xf32> to vector<2x4x8x128xf32>
    %143 = vector.extract_strided_slice %142 {offsets = [0, 0, 0, 0], sizes = [2, 4, 4, 128], strides = [1, 1, 1, 1]} : vector<2x4x8x128xf32> to vector<2x4x4x128xf32>
    %c0_138 = arith.constant 0 : index
    %c1_139 = arith.constant 1 : index
    %c1_140 = arith.constant 1 : index
    %c0_141 = arith.constant 0 : index
    %144 = vector.load %arg26[%c0_138, %c1_139, %c1_140, %c0_141] : memref<2x6x10x128xf32, #tpu.memory_space<vmem>>, vector<2x4x4x128xf32>
    tpu.vector_store %arg26[%c0_138, %c1_139, %c1_140, %c0_141], %143 {strides = array<i32>} : memref<2x6x10x128xf32, #tpu.memory_space<vmem>>, vector<2x4x4x128xf32>,
    %c0_142 = arith.constant 0 : index
    %c0_143 = arith.constant 0 : index
    %c0_144 = arith.constant 0 : index
    %c0_145 = arith.constant 0 : index
    %145 = vector.load %arg26[%c0_142, %c0_143, %c0_144, %c0_145] : memref<2x6x10x128xf32, #tpu.memory_space<vmem>>, vector<2x6x8x128xf32>
    %c0_146 = arith.constant 0 : index
    %c0_147 = arith.constant 0 : index
    %c1_148 = arith.constant 1 : index
    %c0_149 = arith.constant 0 : index
    %146 = vector.load %arg26[%c0_146, %c0_147, %c1_148, %c0_149] : memref<2x6x10x128xf32, #tpu.memory_space<vmem>>, vector<2x6x8x128xf32>
    %c0_150 = arith.constant 0 : index
    %c0_151 = arith.constant 0 : index
    %c2_152 = arith.constant 2 : index
    %c0_153 = arith.constant 0 : index
    %147 = vector.load %arg26[%c0_150, %c0_151, %c2_152, %c0_153] : memref<2x6x10x128xf32, #tpu.memory_space<vmem>>, vector<2x6x8x128xf32>
    %148 = vector.extract_strided_slice %145 {offsets = [0, 0, 0, 0], sizes = [2, 4, 8, 128], strides = [1, 1, 1, 1]} : vector<2x6x8x128xf32> to vector<2x4x8x128xf32>
    %149 = vector.extract_strided_slice %146 {offsets = [0, 0, 0, 0], sizes = [2, 4, 8, 128], strides = [1, 1, 1, 1]} : vector<2x6x8x128xf32> to vector<2x4x8x128xf32>
    %150 = vector.extract_strided_slice %147 {offsets = [0, 0, 0, 0], sizes = [2, 4, 8, 128], strides = [1, 1, 1, 1]} : vector<2x6x8x128xf32> to vector<2x4x8x128xf32>
    %151 = vector.extract_strided_slice %145 {offsets = [0, 1, 0, 0], sizes = [2, 4, 8, 128], strides = [1, 1, 1, 1]} : vector<2x6x8x128xf32> to vector<2x4x8x128xf32>
    %152 = vector.extract_strided_slice %146 {offsets = [0, 1, 0, 0], sizes = [2, 4, 8, 128], strides = [1, 1, 1, 1]} : vector<2x6x8x128xf32> to vector<2x4x8x128xf32>
    %153 = vector.extract_strided_slice %147 {offsets = [0, 1, 0, 0], sizes = [2, 4, 8, 128], strides = [1, 1, 1, 1]} : vector<2x6x8x128xf32> to vector<2x4x8x128xf32>
    %154 = vector.extract_strided_slice %145 {offsets = [0, 2, 0, 0], sizes = [2, 4, 8, 128], strides = [1, 1, 1, 1]} : vector<2x6x8x128xf32> to vector<2x4x8x128xf32>
    %155 = vector.extract_strided_slice %146 {offsets = [0, 2, 0, 0], sizes = [2, 4, 8, 128], strides = [1, 1, 1, 1]} : vector<2x6x8x128xf32> to vector<2x4x8x128xf32>
    %156 = vector.extract_strided_slice %147 {offsets = [0, 2, 0, 0], sizes = [2, 4, 8, 128], strides = [1, 1, 1, 1]} : vector<2x6x8x128xf32> to vector<2x4x8x128xf32>
    %157 = tpu.concatenate %148, %149, %150, %151, %152, %153, %154, %155, %156 in 3 : vector<2x4x8x128xf32>, vector<2x4x8x128xf32>, vector<2x4x8x128xf32>, vector<2x4x8x128xf32>, vector<2x4x8x128xf32>, vector<2x4x8x128xf32>, vector<2x4x8x128xf32>, vector<2x4x8x128xf32>, vector<2x4x8x128xf32> -> vector<2x4x8x1152xf32>
    %158 = vector.shape_cast %157 : vector<2x4x8x1152xf32> to vector<64x1152xf32>
    %159 = arith.truncf %158 : vector<64x1152xf32> to vector<64x1152xbf16>
    %c0_154 = arith.constant 0 : index
    %c0_155 = arith.constant 0 : index
    %160 = vector.load %arg11[%c0_154, %c0_155] : memref<1152x128xbf16, #tpu.memory_space<vmem>>, vector<1152x128xbf16>
    %cst_156 = arith.constant dense<0.000000e+00> : vector<64x128xf32>
    %161 = tpu.matmul %159, %160, %cst_156 {dimension_numbers = #tpu.dot_dimension_numbers<[1], [0], [0], [1], [0, 0, 1, 1], [], []>} : vector<64x1152xbf16>, vector<1152x128xbf16>, vector<64x128xf32> -> vector<64x128xf32>
    %c0_157 = arith.constant 0 : index
    %c0_158 = arith.constant 0 : index
    %162 = vector.load %arg12[%c0_157, %c0_158] : memref<1x128xf32, #tpu.memory_space<vmem>>, vector<1x128xf32>
    %163 = vector.broadcast %162 : vector<1x128xf32> to vector<64x128xf32>
    %164 = arith.mulf %161, %163 : vector<64x128xf32>
    %c0_159 = arith.constant 0 : index
    %c0_160 = arith.constant 0 : index
    %165 = vector.load %arg13[%c0_159, %c0_160] : memref<1x128xf32, #tpu.memory_space<vmem>>, vector<1x128xf32>
    %166 = vector.broadcast %165 : vector<1x128xf32> to vector<64x128xf32>
    %167 = arith.addf %164, %166 : vector<64x128xf32>
    %cst_161 = arith.constant 0.000000e+00 : f32
    %168 = vector.broadcast %cst_161 : f32 to vector<64x128xf32>
    %169 = arith.maximumf %167, %168 : vector<64x128xf32>
    %170 = vector.shape_cast %169 : vector<64x128xf32> to vector<2x4x8x128xf32>
    %171 = vector.extract_strided_slice %170 {offsets = [0, 0, 0, 0], sizes = [1, 4, 8, 128], strides = [1, 1, 1, 1]} : vector<2x4x8x128xf32> to vector<1x4x8x128xf32>
    %172 = vector.shape_cast %171 : vector<1x4x8x128xf32> to vector<4x8x128xf32>
    %173 = vector.shape_cast %172 : vector<4x8x128xf32> to vector<2x2x8x128xf32>
    %174 = vector.extract_strided_slice %173 {offsets = [0, 0, 0, 0], sizes = [2, 1, 8, 128], strides = [1, 1, 1, 1]} : vector<2x2x8x128xf32> to vector<2x1x8x128xf32>
    %175 = vector.shape_cast %174 : vector<2x1x8x128xf32> to vector<2x8x128xf32>
    %176 = vector.extract_strided_slice %173 {offsets = [0, 1, 0, 0], sizes = [2, 1, 8, 128], strides = [1, 1, 1, 1]} : vector<2x2x8x128xf32> to vector<2x1x8x128xf32>
    %177 = vector.shape_cast %176 : vector<2x1x8x128xf32> to vector<2x8x128xf32>
    %178 = arith.maximumf %175, %177 : vector<2x8x128xf32>
    %c0_162 = arith.constant 0 : index
    %c0_163 = arith.constant 0 : index
    %c0_164 = arith.constant 0 : index
    %c0_165 = arith.constant 0 : index
    %179 = vector.load %arg31[%c0_162, %c0_163, %c0_164, %c0_165] : memref<2x2x8x128xf32, #tpu.memory_space<vmem>>, vector<1x2x8x128xf32>
    %180 = vector.shape_cast %179 : vector<1x2x8x128xf32> to vector<2x8x128xf32>
    %181 = vector.shape_cast %178 : vector<2x8x128xf32> to vector<1x2x8x128xf32>
    tpu.vector_store %arg31[%c0_162, %c0_163, %c0_164, %c0_165], %181 {strides = array<i32>} : memref<2x2x8x128xf32, #tpu.memory_space<vmem>>, vector<1x2x8x128xf32>,
    %182 = vector.extract_strided_slice %170 {offsets = [1, 0, 0, 0], sizes = [1, 4, 8, 128], strides = [1, 1, 1, 1]} : vector<2x4x8x128xf32> to vector<1x4x8x128xf32>
    %183 = vector.shape_cast %182 : vector<1x4x8x128xf32> to vector<4x8x128xf32>
    %184 = vector.shape_cast %183 : vector<4x8x128xf32> to vector<2x2x8x128xf32>
    %185 = vector.extract_strided_slice %184 {offsets = [0, 0, 0, 0], sizes = [2, 1, 8, 128], strides = [1, 1, 1, 1]} : vector<2x2x8x128xf32> to vector<2x1x8x128xf32>
    %186 = vector.shape_cast %185 : vector<2x1x8x128xf32> to vector<2x8x128xf32>
    %187 = vector.extract_strided_slice %184 {offsets = [0, 1, 0, 0], sizes = [2, 1, 8, 128], strides = [1, 1, 1, 1]} : vector<2x2x8x128xf32> to vector<2x1x8x128xf32>
    %188 = vector.shape_cast %187 : vector<2x1x8x128xf32> to vector<2x8x128xf32>
    %189 = arith.maximumf %186, %188 : vector<2x8x128xf32>
    %c1_166 = arith.constant 1 : index
    %c0_167 = arith.constant 0 : index
    %c0_168 = arith.constant 0 : index
    %c0_169 = arith.constant 0 : index
    %190 = vector.load %arg31[%c1_166, %c0_167, %c0_168, %c0_169] : memref<2x2x8x128xf32, #tpu.memory_space<vmem>>, vector<1x2x8x128xf32>
    %191 = vector.shape_cast %190 : vector<1x2x8x128xf32> to vector<2x8x128xf32>
    %192 = vector.shape_cast %189 : vector<2x8x128xf32> to vector<1x2x8x128xf32>
    tpu.vector_store %arg31[%c1_166, %c0_167, %c0_168, %c0_169], %192 {strides = array<i32>} : memref<2x2x8x128xf32, #tpu.memory_space<vmem>>, vector<1x2x8x128xf32>,
    %c0_170 = arith.constant 0 : index
    %c0_171 = arith.constant 0 : index
    %c0_172 = arith.constant 0 : index
    %c0_173 = arith.constant 0 : index
    %193 = tpu.strided_load %arg31[%c0_170, %c0_171, %c0_172, %c0_173] {strides = array<i32: 1, 1, 2, 1>} : memref<2x2x8x128xf32, #tpu.memory_space<vmem>>, vector<2x2x2x128xf32>
    %c0_174 = arith.constant 0 : index
    %c0_175 = arith.constant 0 : index
    %c1_176 = arith.constant 1 : index
    %c0_177 = arith.constant 0 : index
    %194 = tpu.strided_load %arg31[%c0_174, %c0_175, %c1_176, %c0_177] {strides = array<i32: 1, 1, 2, 1>} : memref<2x2x8x128xf32, #tpu.memory_space<vmem>>, vector<2x2x2x128xf32>
    %195 = arith.maximumf %193, %194 : vector<2x2x2x128xf32>
    %c0_178 = arith.constant 0 : index
    %c1_179 = arith.constant 1 : index
    %c1_180 = arith.constant 1 : index
    %c0_181 = arith.constant 0 : index
    %196 = vector.load %arg27[%c0_178, %c1_179, %c1_180, %c0_181] : memref<2x4x10x128xf32, #tpu.memory_space<vmem>>, vector<2x2x2x128xf32>
    tpu.vector_store %arg27[%c0_178, %c1_179, %c1_180, %c0_181], %195 {strides = array<i32>} : memref<2x4x10x128xf32, #tpu.memory_space<vmem>>, vector<2x2x2x128xf32>,
    %c0_182 = arith.constant 0 : index
    %c0_183 = arith.constant 0 : index
    %c0_184 = arith.constant 0 : index
    %c0_185 = arith.constant 0 : index
    %197 = vector.load %arg27[%c0_182, %c0_183, %c0_184, %c0_185] : memref<2x4x10x128xf32, #tpu.memory_space<vmem>>, vector<2x4x8x128xf32>
    %c0_186 = arith.constant 0 : index
    %c0_187 = arith.constant 0 : index
    %c1_188 = arith.constant 1 : index
    %c0_189 = arith.constant 0 : index
    %198 = vector.load %arg27[%c0_186, %c0_187, %c1_188, %c0_189] : memref<2x4x10x128xf32, #tpu.memory_space<vmem>>, vector<2x4x8x128xf32>
    %c0_190 = arith.constant 0 : index
    %c0_191 = arith.constant 0 : index
    %c2_192 = arith.constant 2 : index
    %c0_193 = arith.constant 0 : index
    %199 = vector.load %arg27[%c0_190, %c0_191, %c2_192, %c0_193] : memref<2x4x10x128xf32, #tpu.memory_space<vmem>>, vector<2x4x8x128xf32>
    %200 = vector.extract_strided_slice %197 {offsets = [0, 0, 0, 0], sizes = [2, 2, 8, 128], strides = [1, 1, 1, 1]} : vector<2x4x8x128xf32> to vector<2x2x8x128xf32>
    %201 = vector.extract_strided_slice %198 {offsets = [0, 0, 0, 0], sizes = [2, 2, 8, 128], strides = [1, 1, 1, 1]} : vector<2x4x8x128xf32> to vector<2x2x8x128xf32>
    %202 = vector.extract_strided_slice %199 {offsets = [0, 0, 0, 0], sizes = [2, 2, 8, 128], strides = [1, 1, 1, 1]} : vector<2x4x8x128xf32> to vector<2x2x8x128xf32>
    %203 = vector.extract_strided_slice %197 {offsets = [0, 1, 0, 0], sizes = [2, 2, 8, 128], strides = [1, 1, 1, 1]} : vector<2x4x8x128xf32> to vector<2x2x8x128xf32>
    %204 = vector.extract_strided_slice %198 {offsets = [0, 1, 0, 0], sizes = [2, 2, 8, 128], strides = [1, 1, 1, 1]} : vector<2x4x8x128xf32> to vector<2x2x8x128xf32>
    %205 = vector.extract_strided_slice %199 {offsets = [0, 1, 0, 0], sizes = [2, 2, 8, 128], strides = [1, 1, 1, 1]} : vector<2x4x8x128xf32> to vector<2x2x8x128xf32>
    %206 = vector.extract_strided_slice %197 {offsets = [0, 2, 0, 0], sizes = [2, 2, 8, 128], strides = [1, 1, 1, 1]} : vector<2x4x8x128xf32> to vector<2x2x8x128xf32>
    %207 = vector.extract_strided_slice %198 {offsets = [0, 2, 0, 0], sizes = [2, 2, 8, 128], strides = [1, 1, 1, 1]} : vector<2x4x8x128xf32> to vector<2x2x8x128xf32>
    %208 = vector.extract_strided_slice %199 {offsets = [0, 2, 0, 0], sizes = [2, 2, 8, 128], strides = [1, 1, 1, 1]} : vector<2x4x8x128xf32> to vector<2x2x8x128xf32>
    %209 = tpu.concatenate %200, %201, %202, %203, %204, %205, %206, %207, %208 in 3 : vector<2x2x8x128xf32>, vector<2x2x8x128xf32>, vector<2x2x8x128xf32>, vector<2x2x8x128xf32>, vector<2x2x8x128xf32>, vector<2x2x8x128xf32>, vector<2x2x8x128xf32>, vector<2x2x8x128xf32>, vector<2x2x8x128xf32> -> vector<2x2x8x1152xf32>
    %210 = vector.shape_cast %209 : vector<2x2x8x1152xf32> to vector<32x1152xf32>
    %211 = arith.truncf %210 : vector<32x1152xf32> to vector<32x1152xbf16>
    %c0_194 = arith.constant 0 : index
    %c0_195 = arith.constant 0 : index
    %212 = vector.load %arg14[%c0_194, %c0_195] : memref<1152x128xbf16, #tpu.memory_space<vmem>>, vector<1152x128xbf16>
    %cst_196 = arith.constant dense<0.000000e+00> : vector<32x128xf32>
    %213 = tpu.matmul %211, %212, %cst_196 {dimension_numbers = #tpu.dot_dimension_numbers<[1], [0], [0], [1], [0, 0, 1, 1], [], []>} : vector<32x1152xbf16>, vector<1152x128xbf16>, vector<32x128xf32> -> vector<32x128xf32>
    %c0_197 = arith.constant 0 : index
    %c0_198 = arith.constant 0 : index
    %214 = vector.load %arg15[%c0_197, %c0_198] : memref<1x128xf32, #tpu.memory_space<vmem>>, vector<1x128xf32>
    %215 = vector.broadcast %214 : vector<1x128xf32> to vector<32x128xf32>
    %216 = arith.mulf %213, %215 : vector<32x128xf32>
    %c0_199 = arith.constant 0 : index
    %c0_200 = arith.constant 0 : index
    %217 = vector.load %arg16[%c0_199, %c0_200] : memref<1x128xf32, #tpu.memory_space<vmem>>, vector<1x128xf32>
    %218 = vector.broadcast %217 : vector<1x128xf32> to vector<32x128xf32>
    %219 = arith.addf %216, %218 : vector<32x128xf32>
    %cst_201 = arith.constant 0.000000e+00 : f32
    %220 = vector.broadcast %cst_201 : f32 to vector<32x128xf32>
    %221 = arith.maximumf %219, %220 : vector<32x128xf32>
    %222 = vector.shape_cast %221 : vector<32x128xf32> to vector<2x2x8x128xf32>
    %223 = vector.extract_strided_slice %222 {offsets = [0, 0, 0, 0], sizes = [2, 2, 2, 128], strides = [1, 1, 1, 1]} : vector<2x2x8x128xf32> to vector<2x2x2x128xf32>
    %c0_202 = arith.constant 0 : index
    %c1_203 = arith.constant 1 : index
    %c1_204 = arith.constant 1 : index
    %c0_205 = arith.constant 0 : index
    %224 = vector.load %arg28[%c0_202, %c1_203, %c1_204, %c0_205] : memref<2x4x10x128xf32, #tpu.memory_space<vmem>>, vector<2x2x2x128xf32>
    tpu.vector_store %arg28[%c0_202, %c1_203, %c1_204, %c0_205], %223 {strides = array<i32>} : memref<2x4x10x128xf32, #tpu.memory_space<vmem>>, vector<2x2x2x128xf32>,
    %c0_206 = arith.constant 0 : index
    %c0_207 = arith.constant 0 : index
    %c0_208 = arith.constant 0 : index
    %c0_209 = arith.constant 0 : index
    %225 = vector.load %arg28[%c0_206, %c0_207, %c0_208, %c0_209] : memref<2x4x10x128xf32, #tpu.memory_space<vmem>>, vector<2x4x8x128xf32>
    %c0_210 = arith.constant 0 : index
    %c0_211 = arith.constant 0 : index
    %c1_212 = arith.constant 1 : index
    %c0_213 = arith.constant 0 : index
    %226 = vector.load %arg28[%c0_210, %c0_211, %c1_212, %c0_213] : memref<2x4x10x128xf32, #tpu.memory_space<vmem>>, vector<2x4x8x128xf32>
    %c0_214 = arith.constant 0 : index
    %c0_215 = arith.constant 0 : index
    %c2_216 = arith.constant 2 : index
    %c0_217 = arith.constant 0 : index
    %227 = vector.load %arg28[%c0_214, %c0_215, %c2_216, %c0_217] : memref<2x4x10x128xf32, #tpu.memory_space<vmem>>, vector<2x4x8x128xf32>
    %228 = vector.extract_strided_slice %225 {offsets = [0, 0, 0, 0], sizes = [2, 2, 8, 128], strides = [1, 1, 1, 1]} : vector<2x4x8x128xf32> to vector<2x2x8x128xf32>
    %229 = vector.extract_strided_slice %226 {offsets = [0, 0, 0, 0], sizes = [2, 2, 8, 128], strides = [1, 1, 1, 1]} : vector<2x4x8x128xf32> to vector<2x2x8x128xf32>
    %230 = vector.extract_strided_slice %227 {offsets = [0, 0, 0, 0], sizes = [2, 2, 8, 128], strides = [1, 1, 1, 1]} : vector<2x4x8x128xf32> to vector<2x2x8x128xf32>
    %231 = vector.extract_strided_slice %225 {offsets = [0, 1, 0, 0], sizes = [2, 2, 8, 128], strides = [1, 1, 1, 1]} : vector<2x4x8x128xf32> to vector<2x2x8x128xf32>
    %232 = vector.extract_strided_slice %226 {offsets = [0, 1, 0, 0], sizes = [2, 2, 8, 128], strides = [1, 1, 1, 1]} : vector<2x4x8x128xf32> to vector<2x2x8x128xf32>
    %233 = vector.extract_strided_slice %227 {offsets = [0, 1, 0, 0], sizes = [2, 2, 8, 128], strides = [1, 1, 1, 1]} : vector<2x4x8x128xf32> to vector<2x2x8x128xf32>
    %234 = vector.extract_strided_slice %225 {offsets = [0, 2, 0, 0], sizes = [2, 2, 8, 128], strides = [1, 1, 1, 1]} : vector<2x4x8x128xf32> to vector<2x2x8x128xf32>
    %235 = vector.extract_strided_slice %226 {offsets = [0, 2, 0, 0], sizes = [2, 2, 8, 128], strides = [1, 1, 1, 1]} : vector<2x4x8x128xf32> to vector<2x2x8x128xf32>
    %236 = vector.extract_strided_slice %227 {offsets = [0, 2, 0, 0], sizes = [2, 2, 8, 128], strides = [1, 1, 1, 1]} : vector<2x4x8x128xf32> to vector<2x2x8x128xf32>
    %237 = tpu.concatenate %228, %229, %230, %231, %232, %233, %234, %235, %236 in 3 : vector<2x2x8x128xf32>, vector<2x2x8x128xf32>, vector<2x2x8x128xf32>, vector<2x2x8x128xf32>, vector<2x2x8x128xf32>, vector<2x2x8x128xf32>, vector<2x2x8x128xf32>, vector<2x2x8x128xf32>, vector<2x2x8x128xf32> -> vector<2x2x8x1152xf32>
    %238 = vector.shape_cast %237 : vector<2x2x8x1152xf32> to vector<32x1152xf32>
    %239 = arith.truncf %238 : vector<32x1152xf32> to vector<32x1152xbf16>
    %c0_218 = arith.constant 0 : index
    %c0_219 = arith.constant 0 : index
    %240 = vector.load %arg17[%c0_218, %c0_219] : memref<1152x128xbf16, #tpu.memory_space<vmem>>, vector<1152x128xbf16>
    %cst_220 = arith.constant dense<0.000000e+00> : vector<32x128xf32>
    %241 = tpu.matmul %239, %240, %cst_220 {dimension_numbers = #tpu.dot_dimension_numbers<[1], [0], [0], [1], [0, 0, 1, 1], [], []>} : vector<32x1152xbf16>, vector<1152x128xbf16>, vector<32x128xf32> -> vector<32x128xf32>
    %c0_221 = arith.constant 0 : index
    %c0_222 = arith.constant 0 : index
    %242 = vector.load %arg18[%c0_221, %c0_222] : memref<1x128xf32, #tpu.memory_space<vmem>>, vector<1x128xf32>
    %243 = vector.broadcast %242 : vector<1x128xf32> to vector<32x128xf32>
    %244 = arith.mulf %241, %243 : vector<32x128xf32>
    %c0_223 = arith.constant 0 : index
    %c0_224 = arith.constant 0 : index
    %245 = vector.load %arg19[%c0_223, %c0_224] : memref<1x128xf32, #tpu.memory_space<vmem>>, vector<1x128xf32>
    %246 = vector.broadcast %245 : vector<1x128xf32> to vector<32x128xf32>
    %247 = arith.addf %244, %246 : vector<32x128xf32>
    %cst_225 = arith.constant 0.000000e+00 : f32
    %248 = vector.broadcast %cst_225 : f32 to vector<32x128xf32>
    %249 = arith.maximumf %247, %248 : vector<32x128xf32>
    %250 = vector.shape_cast %249 : vector<32x128xf32> to vector<2x2x8x128xf32>
    %251 = vector.extract_strided_slice %250 {offsets = [0, 0, 0, 0], sizes = [2, 1, 1, 128], strides = [1, 1, 1, 1]} : vector<2x2x8x128xf32> to vector<2x1x1x128xf32>
    %252 = vector.shape_cast %251 : vector<2x1x1x128xf32> to vector<2x128xf32>
    %253 = vector.extract_strided_slice %250 {offsets = [0, 0, 1, 0], sizes = [2, 1, 1, 128], strides = [1, 1, 1, 1]} : vector<2x2x8x128xf32> to vector<2x1x1x128xf32>
    %254 = vector.shape_cast %253 : vector<2x1x1x128xf32> to vector<2x128xf32>
    %255 = vector.extract_strided_slice %250 {offsets = [0, 1, 0, 0], sizes = [2, 1, 1, 128], strides = [1, 1, 1, 1]} : vector<2x2x8x128xf32> to vector<2x1x1x128xf32>
    %256 = vector.shape_cast %255 : vector<2x1x1x128xf32> to vector<2x128xf32>
    %257 = vector.extract_strided_slice %250 {offsets = [0, 1, 1, 0], sizes = [2, 1, 1, 128], strides = [1, 1, 1, 1]} : vector<2x2x8x128xf32> to vector<2x1x1x128xf32>
    %258 = vector.shape_cast %257 : vector<2x1x1x128xf32> to vector<2x128xf32>
    %259 = tpu.concatenate %252, %254, %256, %258 in 1 : vector<2x128xf32>, vector<2x128xf32>, vector<2x128xf32>, vector<2x128xf32> -> vector<2x512xf32>
    %c0_226 = arith.constant 0 : index
    %c0_227 = arith.constant 0 : index
    %260 = vector.load %arg20[%c0_226, %c0_227] : memref<512x2xf32, #tpu.memory_space<vmem>>, vector<512x2xf32>
    %cst_228 = arith.constant dense<0.000000e+00> : vector<2x2xf32>
    %261 = tpu.matmul %259, %260, %cst_228 {dimension_numbers = #tpu.dot_dimension_numbers<[1], [0], [0], [1], [0, 0, 1, 1], [], []>} : vector<2x512xf32>, vector<512x2xf32>, vector<2x2xf32> -> vector<2x2xf32>
    %c0_229 = arith.constant 0 : index
    %c0_230 = arith.constant 0 : index
    %262 = vector.load %arg21[%c0_229, %c0_230] : memref<1x2xf32, #tpu.memory_space<vmem>>, vector<1x2xf32>
    %263 = vector.broadcast %262 : vector<1x2xf32> to vector<2x2xf32>
    %264 = arith.addf %261, %263 : vector<2x2xf32>
    %c0_231 = arith.constant 0 : index
    %c0_232 = arith.constant 0 : index
    %265 = vector.load %arg22[%c0_231, %c0_232] : memref<2x2xf32, #tpu.memory_space<vmem>>, vector<2x2xf32>
    tpu.vector_store %arg22[%c0_231, %c0_232], %264 {strides = array<i32>} : memref<2x2xf32, #tpu.memory_space<vmem>>, vector<2x2xf32>,
    return
  }
  func.func @transform_0(%arg0: i32) -> (i32, i32, i32, i32) {
    %c0_i32 = arith.constant 0 : i32
    %c0_i32_0 = arith.constant 0 : i32
    %c0_i32_1 = arith.constant 0 : i32
    %c0_i32_2 = arith.constant 0 : i32
    %c0_i32_3 = arith.constant 0 : i32
    return %c0_i32, %c0_i32_0, %c0_i32_1, %c0_i32_2 : i32, i32, i32, i32
  }
  func.func @transform_1(%arg0: i32) -> (i32, i32) {
    %c0_i32 = arith.constant 0 : i32
    %c0_i32_0 = arith.constant 0 : i32
    %c0_i32_1 = arith.constant 0 : i32
    return %c0_i32, %c0_i32_0 : i32, i32
  }
  func.func @transform_2(%arg0: i32) -> (i32, i32) {
    %c0_i32 = arith.constant 0 : i32
    %c0_i32_0 = arith.constant 0 : i32
    %c0_i32_1 = arith.constant 0 : i32
    return %c0_i32, %c0_i32_0 : i32, i32
  }
  func.func @transform_3(%arg0: i32) -> (i32, i32) {
    %c0_i32 = arith.constant 0 : i32
    %c0_i32_0 = arith.constant 0 : i32
    %c0_i32_1 = arith.constant 0 : i32
    return %c0_i32, %c0_i32_0 : i32, i32
  }
  func.func @transform_4(%arg0: i32) -> (i32, i32) {
    %c0_i32 = arith.constant 0 : i32
    %c0_i32_0 = arith.constant 0 : i32
    %c0_i32_1 = arith.constant 0 : i32
    return %c0_i32, %c0_i32_0 : i32, i32
  }
  func.func @transform_5(%arg0: i32) -> (i32, i32) {
    %c0_i32 = arith.constant 0 : i32
    %c0_i32_0 = arith.constant 0 : i32
    %c0_i32_1 = arith.constant 0 : i32
    return %c0_i32, %c0_i32_0 : i32, i32
  }
  func.func @transform_6(%arg0: i32) -> (i32, i32) {
    %c0_i32 = arith.constant 0 : i32
    %c0_i32_0 = arith.constant 0 : i32
    %c0_i32_1 = arith.constant 0 : i32
    return %c0_i32, %c0_i32_0 : i32, i32
  }
  func.func @transform_7(%arg0: i32) -> (i32, i32) {
    %c0_i32 = arith.constant 0 : i32
    %c0_i32_0 = arith.constant 0 : i32
    %c0_i32_1 = arith.constant 0 : i32
    return %c0_i32, %c0_i32_0 : i32, i32
  }
  func.func @transform_8(%arg0: i32) -> (i32, i32) {
    %c0_i32 = arith.constant 0 : i32
    %c0_i32_0 = arith.constant 0 : i32
    %c0_i32_1 = arith.constant 0 : i32
    return %c0_i32, %c0_i32_0 : i32, i32
  }
  func.func @transform_9(%arg0: i32) -> (i32, i32) {
    %c0_i32 = arith.constant 0 : i32
    %c0_i32_0 = arith.constant 0 : i32
    %c0_i32_1 = arith.constant 0 : i32
    return %c0_i32, %c0_i32_0 : i32, i32
  }
  func.func @transform_10(%arg0: i32) -> (i32, i32) {
    %c0_i32 = arith.constant 0 : i32
    %c0_i32_0 = arith.constant 0 : i32
    %c0_i32_1 = arith.constant 0 : i32
    return %c0_i32, %c0_i32_0 : i32, i32
  }
  func.func @transform_11(%arg0: i32) -> (i32, i32) {
    %c0_i32 = arith.constant 0 : i32
    %c0_i32_0 = arith.constant 0 : i32
    %c0_i32_1 = arith.constant 0 : i32
    return %c0_i32, %c0_i32_0 : i32, i32
  }
  func.func @transform_12(%arg0: i32) -> (i32, i32) {
    %c0_i32 = arith.constant 0 : i32
    %c0_i32_0 = arith.constant 0 : i32
    %c0_i32_1 = arith.constant 0 : i32
    return %c0_i32, %c0_i32_0 : i32, i32
  }
  func.func @transform_13(%arg0: i32) -> (i32, i32) {
    %c0_i32 = arith.constant 0 : i32
    %c0_i32_0 = arith.constant 0 : i32
    %c0_i32_1 = arith.constant 0 : i32
    return %c0_i32, %c0_i32_0 : i32, i32
  }
  func.func @transform_14(%arg0: i32) -> (i32, i32) {
    %c0_i32 = arith.constant 0 : i32
    %c0_i32_0 = arith.constant 0 : i32
    %c0_i32_1 = arith.constant 0 : i32
    return %c0_i32, %c0_i32_0 : i32, i32
  }
  func.func @transform_15(%arg0: i32) -> (i32, i32) {
    %c0_i32 = arith.constant 0 : i32
    %c0_i32_0 = arith.constant 0 : i32
    %c0_i32_1 = arith.constant 0 : i32
    return %c0_i32, %c0_i32_0 : i32, i32
  }
  func.func @transform_16(%arg0: i32) -> (i32, i32) {
    %c0_i32 = arith.constant 0 : i32
    %c0_i32_0 = arith.constant 0 : i32
    %c0_i32_1 = arith.constant 0 : i32
    return %c0_i32, %c0_i32_0 : i32, i32
  }
  func.func @transform_17(%arg0: i32) -> (i32, i32) {
    %c0_i32 = arith.constant 0 : i32
    %c0_i32_0 = arith.constant 0 : i32
    %c0_i32_1 = arith.constant 0 : i32
    return %c0_i32, %c0_i32_0 : i32, i32
  }
  func.func @transform_18(%arg0: i32) -> (i32, i32) {
    %c0_i32 = arith.constant 0 : i32
    %c0_i32_0 = arith.constant 0 : i32
    %c0_i32_1 = arith.constant 0 : i32
    return %c0_i32, %c0_i32_0 : i32, i32
  }
  func.func @transform_19(%arg0: i32) -> (i32, i32) {
    %c0_i32 = arith.constant 0 : i32
    %c0_i32_0 = arith.constant 0 : i32
    %c0_i32_1 = arith.constant 0 : i32
    return %c0_i32, %c0_i32_0 : i32, i32
  }
  func.func @transform_20(%arg0: i32) -> (i32, i32) {
    %c0_i32 = arith.constant 0 : i32
    %c0_i32_0 = arith.constant 0 : i32
    %c0_i32_1 = arith.constant 0 : i32
    return %c0_i32, %c0_i32_0 : i32, i32
  }
  func.func @transform_21(%arg0: i32) -> (i32, i32) {
    %c0_i32 = arith.constant 0 : i32
    %c0_i32_0 = arith.constant 0 : i32
    %c0_i32_1 = arith.constant 0 : i32
    return %c0_i32, %c0_i32_0 : i32, i32
  }
}

</mosaic_0001>

<bundles_post_ra>
// kernel: _lambda_.1
= control target key start
LH: loop header
LB: loop body
LE: loop exit
PB: predicated region body
PF: predicated region fallthrough
CT: control target
= control target key end

     0   :  { %s11586_s0 = inlined_call_operand.vmem [shape: f32[2,16,16,24], index: 0, kind: input, shape index: {}]   ;;  %s11587_s1 = inlined_call_operand.hbm [shape: bf16[216,64], index: 1, kind: input, shape index: {}]   ;;  %s11588_s2 = inlined_call_operand.hbm [shape: f32[1,64], index: 2, kind: input, shape index: {}]   ;;  %s11589_s3 = inlined_call_operand.hbm [shape: f32[1,64], index: 3, kind: input, shape index: {}]   ;;  %s11590_s4 = inlined_call_operand.vmem [shape: bf16[576,64], index: 4, kind: input, shape index: {}]   ;;  %s11591_s5 = inlined_call_operand.hbm [shape: f32[1,64], index: 5, kind: input, shape index: {}]   ;;  %s11592_s6 = inlined_call_operand.hbm [shape: f32[1,64], index: 6, kind: input, shape index: {}]   ;;  %s11593_s7 = inlined_call_operand.vmem [shape: bf16[576,128], index: 7, kind: input, shape index: {}]   ;;  %s11594_s8 = inlined_call_operand.hbm [shape: f32[1,128], index: 8, kind: input, shape index: {}]   ;;  %s11595_s9 = inlined_call_operand.hbm [shape: f32[1,128], index: 9, kind: input, shape index: {}]   ;;  %s11596_s10 = inlined_call_operand.vmem [shape: bf16[1152,128], index: 10, kind: input, shape index: {}]   ;;  %s11597_s11 = inlined_call_operand.hbm [shape: f32[1,128], index: 11, kind: input, shape index: {}]   ;;  %s11598_s12 = inlined_call_operand.hbm [shape: f32[1,128], index: 12, kind: input, shape index: {}]   ;;  %s11599_s13 = inlined_call_operand.vmem [shape: bf16[1152,128], index: 13, kind: input, shape index: {}]   ;;  %s11600_s14 = inlined_call_operand.hbm [shape: f32[1,128], index: 14, kind: input, shape index: {}]   ;;  %s11601_s15 = inlined_call_operand.vmem [shape: f32[1,128], index: 15, kind: input, shape index: {}]   ;;  %s11602_s16 = inlined_call_operand.vmem [shape: bf16[1152,128], index: 16, kind: input, shape index: {}]   ;;  %s11603_s17 = inlined_call_operand.vmem [shape: f32[1,128], index: 17, kind: input, shape index: {}]   ;;  %s11604_s18 = inlined_call_operand.vmem [shape: f32[1,128], index: 18, kind: input, shape index: {}]   ;;  %s11605_s19 = inlined_call_operand.vmem [shape: f32[512,2], index: 19, kind: input, shape index: {}]   ;;  %s11606_s20 = inlined_call_operand.vmem [shape: f32[1,2], index: 20, kind: input, shape index: {}]   ;;  %s11607_s21 = inlined_call_operand.hbm [shape: f32[2,2], index: 21, kind: output, shape index: {}]  }
   0x1   :  { %11612 = sst [smem:[#allocation43_spill]] %s11586_s0 }
   0x2   :  { %11613 = sst [smem:[#allocation44_spill]] %s11587_s1 }
   0x3   :  { %11614 = sst [smem:[#allocation45_spill]] %s11588_s2 }
   0x4   :  { %11615 = sst [smem:[#allocation46_spill]] %s11589_s3 }
   0x5   :  { %11616 = sst [smem:[#allocation47_spill]] %s11590_s4 }
   0x6   :  { %11617 = sst [smem:[#allocation48_spill]] %s11591_s5 }
   0x7   :  { %26 = vsyncpa [#allocation12], 0 }
   0x8   :  { %27 = vsyncpa [#allocation15], 0 }
   0x9   :  { %28 = vsyncpa [#allocation18], 0 }
   0xa   :  { %29 = vsyncpa [#allocation21], 0 }
   0xb   :  { %30 = vsyncpa [#allocation24], 0 }
   0xc   :  { %31 = vsyncpa [#allocation27], 0 }
   0xd   :  { %32 = vsyncpa [#allocation13], 0  ;;  %s8715_s2 = smov [#allocation14]   ;;  %s8716_s26 = smov [#allocation17]  }
   0xe   :  { %s53_s25 = sshll.u32 %s8715_s2, 4  ;;  %s75_s27 = sshll.u32 %s8716_s26, 4  ;;  %s54_s25 = int_to_ptr.vmem [resolvable:$true] %s53_s25  ;;  %s76_s27 = int_to_ptr.vmem [resolvable:$true] %s75_s27 }
   0xf   :  { %s8489_s3 = scalar_lea.vmem %s54_s25, 16  ;;  %s8493_s28 = scalar_lea.vmem %s54_s25, 32 }
  0x10   :  { %p8490_p0 = scmp.ne.s32.totalorder %s54_s25, %s8489_s3  ;;  %p8494_p1 = scmp.lt.s32.totalorder %s54_s25, %s54_s25 }
  0x11   :  { %p8495_p2 = scmp.lt.s32.totalorder %s8493_s28, %s8489_s3 }
  0x13   :  { %p8496_p3 = por %p8495_p2, %p8494_p1 }
  0x15   :  { %p8497_p4 = pnand %p8496_p3, %p8490_p0 }
  0x17   :  { %8500 = shalt.err (!%p8497_p4)
}
  0x18   :  { %s11618_s4 = sld [smem:[#allocation45_spill]]  ;;  %s8509_s30 = scalar_lea.vmem %s76_s27, 16 }
  0x19   :  { %p8510_p5 = scmp.ne.s32.totalorder %s76_s27, %s8509_s30  ;;  %s8513_s5 = scalar_lea.vmem %s76_s27, 32 }
  0x1a   :  { %p8514_p6 = scmp.lt.s32.totalorder %s76_s27, %s76_s27  ;;  %p8515_p7 = scmp.lt.s32.totalorder %s8513_s5, %s8509_s30 }
  0x1c   :  { %p8516_p8 = por %p8515_p7, %p8514_p6 }
  0x1e   :  { %56 = dma.hbm_to_vmem [thread:$0]  %s11618_s4, 16, %s54_s25, [#allocation15]  }
  0x1f   :  { %p8517_p9 = pnand %p8516_p8, %p8510_p5 }
  0x21   :  { %8520 = shalt.err (!%p8517_p9)
}
  0x22   :  { %s11619_s1 = sld [smem:[#allocation48_spill]]  ;;  %s8717_s24 = smov [#allocation20]  }
  0x23   :  { %s97_s2 = sshll.u32 %s8717_s24, 4  ;;  %s8718_s26 = smov [#allocation23]   ;;  %s98_s2 = int_to_ptr.vmem [resolvable:$true] %s97_s2 }
  0x24   :  { %s119_s3 = sshll.u32 %s8718_s26, 4  ;;  %s8529_s28 = scalar_lea.vmem %s98_s2, 16  ;;  %s120_s3 = int_to_ptr.vmem [resolvable:$true] %s119_s3 }
  0x25   :  { %p8530_p10 = scmp.ne.s32.totalorder %s98_s2, %s8529_s28  ;;  %s8533_s25 = scalar_lea.vmem %s98_s2, 32 }
  0x26   :  { %p8534_p11 = scmp.lt.s32.totalorder %s98_s2, %s98_s2  ;;  %p8535_p12 = scmp.lt.s32.totalorder %s8533_s25, %s8529_s28 }
  0x28   :  { %78 = dma.hbm_to_vmem [thread:$0]  %s11619_s1, 16, %s76_s27, [#allocation18]  }
  0x29   :  { %p8536_p13 = por %p8535_p12, %p8534_p11 }
  0x2b   :  { %p8537_p0 = pnand %p8536_p13, %p8530_p10 }
  0x2d   :  { %8540 = shalt.err (!%p8537_p0)
}
  0x2e   :  { %100 = dma.hbm_to_vmem [thread:$0]  %s11594_s8, 16, %s98_s2, [#allocation21]  }
  0x2f   :  { %s8549_s4 = scalar_lea.vmem %s120_s3, 16  ;;  %s8553_s27 = scalar_lea.vmem %s120_s3, 32 }
  0x30   :  { %p8550_p1 = scmp.ne.s32.totalorder %s120_s3, %s8549_s4  ;;  %p8554_p2 = scmp.lt.s32.totalorder %s120_s3, %s120_s3 }
  0x31   :  { %p8555_p3 = scmp.lt.s32.totalorder %s8553_s27, %s8549_s4 }
  0x33   :  { %p8556_p4 = por %p8555_p3, %p8554_p2 }
  0x35   :  { %p8557_p5 = pnand %p8556_p4, %p8550_p1 }
  0x37   :  { %8560 = shalt.err (!%p8557_p5)
}
  0x38   :  { %122 = dma.hbm_to_vmem [thread:$0]  %s11597_s11, 16, %s120_s3, [#allocation24]  }
  0x39   :  { %s8719_s22 = smov [#allocation11]  }
  0x3a   :  { %s40_s23 = sshll.u32 %s8719_s22, 4  ;;  %s41_s23 = int_to_ptr.vmem [resolvable:$true] %s40_s23 }
  0x3b   :  { %s8569_s1 = scalar_lea.vmem %s41_s23, 1728  ;;  %p8574_p7 = scmp.lt.s32.totalorder %s41_s23, %s41_s23 }
  0x3c   :  { %p8570_p6 = scmp.ne.s32.totalorder %s41_s23, %s8569_s1  ;;  %p8575_p8 = scmp.lt.s32.totalorder %s8569_s1, %s8569_s1 }
  0x3e   :  { %p8576_p9 = por %p8575_p8, %p8574_p7 }
  0x40   :  { %p8577_p10 = pnand %p8576_p9, %p8570_p6 }
  0x42   :  { %8580 = shalt.err (!%p8577_p10)
}
  0x43   :  { %s8720_s8 = smov 64   ;;  %s8721_s24 = smov 4  }
  0x44   :  { %s11620_s28 = sld [smem:[#allocation44_spill]]  ;;  %s8722_s25 = smov [#allocation16]  }
  0x45   :  { %s63_s11 = sshll.u32 %s8722_s25, 4  ;;  %s8723_s3 = smov [#allocation19]   ;;  %s64_s11 = int_to_ptr.vmem [resolvable:$true] %s63_s11 }
  0x46   :  { %s85_s29 = sshll.u32 %s8723_s3, 4  ;;  %s8589_s0 = scalar_lea.vmem %s64_s11, 16  ;;  %s86_s29 = int_to_ptr.vmem [resolvable:$true] %s85_s29 }
  0x47   :  { %p8590_p11 = scmp.ne.s32.totalorder %s64_s11, %s8589_s0  ;;  %s8593_s4 = scalar_lea.vmem %s64_s11, 32 }
  0x48   :  { %p8594_p12 = scmp.lt.s32.totalorder %s64_s11, %s64_s11  ;;  %p8595_p13 = scmp.lt.s32.totalorder %s8593_s4, %s8589_s0 }
  0x4a   :  { %46 = dma.hbm_to_vmem [thread:$0]  %s11620_s28, 1728, %s41_s23, [#allocation12], %s8720_s8, %s8720_s8, %s8721_s24  }
  0x4b   :  { %p8596_p0 = por %p8595_p13, %p8594_p12 }
  0x4d   :  { %p8597_p1 = pnand %p8596_p0, %p8590_p11 }
  0x4f   :  { %8600 = shalt.err (!%p8597_p1)
}
  0x50   :  { %s11621_s5 = sld [smem:[#allocation46_spill]]  ;;  %s8609_s22 = scalar_lea.vmem %s86_s29, 16 }
  0x51   :  { %p8610_p2 = scmp.ne.s32.totalorder %s86_s29, %s8609_s22  ;;  %s8613_s23 = scalar_lea.vmem %s86_s29, 32 }
  0x52   :  { %p8614_p3 = scmp.lt.s32.totalorder %s86_s29, %s86_s29  ;;  %p8615_p4 = scmp.lt.s32.totalorder %s8613_s23, %s8609_s22 }
  0x54   :  { %p8616_p5 = por %p8615_p4, %p8614_p3 }
  0x56   :  { %66 = dma.hbm_to_vmem [thread:$0]  %s11621_s5, 16, %s64_s11, [#allocation15]  }
  0x57   :  { %p8617_p6 = pnand %p8616_p5, %p8610_p2 }
  0x59   :  { %8620 = shalt.err (!%p8617_p6)
}
  0x5a   :  { %88 = dma.hbm_to_vmem [thread:$0]  %s11592_s6, 16, %s86_s29, [#allocation18]  }
  0x5b   :  { %s8724_s2 = smov [#allocation22]   ;;  %s8725_s28 = smov [#allocation25]  }
  0x5c   :  { %s107_s26 = sshll.u32 %s8724_s2, 4  ;;  %s129_s25 = sshll.u32 %s8725_s28, 4  ;;  %s108_s26 = int_to_ptr.vmem [resolvable:$true] %s107_s26  ;;  %s130_s25 = int_to_ptr.vmem [resolvable:$true] %s129_s25 }
  0x5d   :  { %s8629_s3 = scalar_lea.vmem %s108_s26, 16  ;;  %s8633_s11 = scalar_lea.vmem %s108_s26, 32 }
  0x5e   :  { %p8630_p7 = scmp.ne.s32.totalorder %s108_s26, %s8629_s3  ;;  %p8634_p8 = scmp.lt.s32.totalorder %s108_s26, %s108_s26 }
  0x5f   :  { %p8635_p9 = scmp.lt.s32.totalorder %s8633_s11, %s8629_s3 }
  0x61   :  { %p8636_p10 = por %p8635_p9, %p8634_p8 }
  0x63   :  { %p8637_p11 = pnand %p8636_p10, %p8630_p7 }
  0x65   :  { %8640 = shalt.err (!%p8637_p11)
}
  0x66   :  { %110 = dma.hbm_to_vmem [thread:$0]  %s11595_s9, 16, %s108_s26, [#allocation21]  }
  0x67   :  { %s8649_s27 = scalar_lea.vmem %s130_s25, 16  ;;  %s8653_s6 = scalar_lea.vmem %s130_s25, 32 }
  0x68   :  { %p8650_p12 = scmp.ne.s32.totalorder %s130_s25, %s8649_s27  ;;  %p8654_p13 = scmp.lt.s32.totalorder %s130_s25, %s130_s25 }
  0x69   :  { %p8655_p0 = scmp.lt.s32.totalorder %s8653_s6, %s8649_s27 }
  0x6b   :  { %p8656_p1 = por %p8655_p0, %p8654_p13 }
  0x6d   :  { %p8657_p2 = pnand %p8656_p1, %p8650_p12 }
  0x6f   :  { %8660 = shalt.err (!%p8657_p2)
}
  0x70   :  { %132 = dma.hbm_to_vmem [thread:$0]  %s11598_s12, 16, %s130_s25, [#allocation24]  }
  0x71   :  { %s8726_s5 = smov [#allocation26]  }
  0x72   :  { %s141_s22 = sshll.u32 %s8726_s5, 4  ;;  %s142_s22 = int_to_ptr.vmem [resolvable:$true] %s141_s22 }
  0x73   :  { %s8669_s23 = scalar_lea.vmem %s142_s22, 16  ;;  %s8673_s1 = scalar_lea.vmem %s142_s22, 32 }
  0x74   :  { %p8670_p3 = scmp.ne.s32.totalorder %s142_s22, %s8669_s23  ;;  %p8674_p4 = scmp.lt.s32.totalorder %s142_s22, %s142_s22 }
  0x75   :  { %p8675_p5 = scmp.lt.s32.totalorder %s8673_s1, %s8669_s23 }
  0x77   :  { %p8676_p6 = por %p8675_p5, %p8674_p4 }
  0x79   :  { %p8677_p7 = pnand %p8676_p6, %p8670_p3 }
  0x7b   :  { %8680 = shalt.err (!%p8677_p7)
}
  0x7c   :  { %144 = dma.hbm_to_vmem [thread:$0]  %s11600_s14, 16, %s142_s22, [#allocation27]  }
  0x7d   :  { %8701 = dma.done.wait [#allocation12], 1728  }
  0x7e   :  { %8702 = vsyncadd [#allocation12], 4294965568 }
  0x7f   :  { %8703 = dma.done.wait [#allocation15], 32  }
  0x80   :  { %8704 = vsyncadd [#allocation15], 4294967264 }
  0x81   :  { %8705 = dma.done.wait [#allocation18], 32  }
  0x82   :  { %8706 = vsyncadd [#allocation18], 4294967264 }
  0x83   :  { %8707 = dma.done.wait [#allocation21], 32  }
  0x84   :  { %8708 = vsyncadd [#allocation21], 4294967264 }
  0x85   :  { %8709 = dma.done.wait [#allocation24], 32  }
  0x86   :  { %8710 = vsyncadd [#allocation24], 4294967264 }
  0x87   :  { %8711 = dma.done.wait [#allocation27], 16  }
  0x88   :  { %8712 = vsyncadd [#allocation27], 4294967280  ;;  %vm188_vm0 = vcmask 195584   ;;  %vm190_vm1 = vcmask 189440   ;;  %v8727_v0 = vmov 0.0   ;;  %v8728_v1 = vmov 0  }
  0x89   :  { %192 = vst.msk [vmem:[#allocation2 + $0x10] sm:$0xff] %vm188_vm0, %v8727_v0  ;;  %194 = vst.msk [vmem:[#allocation2 + $0x20] sm:$0xff] %vm188_vm0, %v8727_v0  ;;  %1367 = vmatprep.subr.bf16.mxu0 %v8728_v1  ;;  %s11622_s2 = sld [smem:[#allocation43_spill]]  ;;  %s8729_s4 = smov 24   ;;  %vm230_vm2 = vcmask 523264   ;;  %vm1363_vm3 = vcmask 1043456  }
  0x8a   :  { %193 = vst.msk [vmem:[#allocation2 + $0x18] sm:$0x3] %vm190_vm1, %v8727_v0  ;;  %195 = vst.msk [vmem:[#allocation2 + $0x28] sm:$0x3] %vm190_vm1, %v8727_v0  ;;  %s8730_s29 = smov 120   ;;  %s8731_s22 = smov 48  }
  0x8b   :  { %189 = vst.msk [vmem:[#allocation2] sm:$0xff] %vm188_vm0, %v8727_v0  ;;  %196 = vst.msk [vmem:[#allocation2 + $0x30] sm:$0xff] %vm188_vm0, %v8727_v0  ;;  %s8732_s23 = smov 16   ;;  %s8733_s1 = smov 72   ;;  %vm1096_vm4 = vcmask 392192   ;;  %vm1164_vm5 = vcmask 130048  }
  0x8c   :  { %191 = vst.msk [vmem:[#allocation2 + $0x8] sm:$0x3] %vm190_vm1, %v8727_v0  ;;  %197 = vst.msk [vmem:[#allocation2 + $0x38] sm:$0x3] %vm190_vm1, %v8727_v0  ;;  %s8734_s12 = smov 40   ;;  %s8735_s24 = smov 96  }
  0x8d   :  { %198 = vst.msk [vmem:[#allocation2 + $0x40] sm:$0xff] %vm188_vm0, %v8727_v0  ;;  %200 = vst.msk [vmem:[#allocation2 + $0x50] sm:$0xff] %vm188_vm0, %v8727_v0  ;;  %vm1113_vm6 = vcmask 588800   ;;  %vm1130_vm7 = vcmask 785408   ;;  %vm1181_vm8 = vcmask 326656   ;;  %vm232_vm9 = vcmask 517120  }
  0x8e   :  { %199 = vst.msk [vmem:[#allocation2 + $0x48] sm:$0x3] %vm190_vm1, %v8727_v0  ;;  %201 = vst.msk [vmem:[#allocation2 + $0x58] sm:$0x3] %vm190_vm1, %v8727_v0  ;;  %vm1147_vm10 = vcmask 982016   ;;  %vm1338_vm11 = vcmask 719872  }
  0x8f   :  { %202 = vst.msk [vmem:[#allocation2 + $0x60] sm:$0xff] %vm188_vm0, %v8727_v0  ;;  %204 = vst.msk [vmem:[#allocation2 + $0x70] sm:$0xff] %vm188_vm0, %v8727_v0  ;;  %v352_v2 = vld [vmem:[%s11622_s2] sm:$0xff]  ;;  %v353_v3 = vld [vmem:[%s11622_s2 + $0x8] sm:$0xff]  ;;  %vm2619_vm12 = vcmask 519168   ;;  %vm6188_vm13 = vcmask 1041409  }
  0x90   :  { %203 = vst.msk [vmem:[#allocation2 + $0x68] sm:$0x3] %vm190_vm1, %v8727_v0  ;;  %205 = vst.msk [vmem:[#allocation2 + $0x78] sm:$0x3] %vm190_vm1, %v8727_v0  ;;  %v354_v4 = vld [vmem:[%s11622_s2 + $0x10] sm:$0xff]  ;;  %v355_v5 = vld [vmem:[%s11622_s2 + $0x18] sm:$0xff] }
  0x91   :  { %206 = vst.msk [vmem:[#allocation2 + $0x80] sm:$0xff] %vm188_vm0, %v8727_v0  ;;  %208 = vst.msk [vmem:[#allocation2 + $0x90] sm:$0xff] %vm188_vm0, %v8727_v0  ;;  %v356_v6 = vld [vmem:[%s11622_s2 + $0x20] sm:$0xff]  ;;  %v357_v7 = vld [vmem:[%s11622_s2 + $0x28] sm:$0xff]  ;;  %v384_v8 = vmax.f32 %v352_v2, %v354_v4  ;;  %v385_v11 = vmax.f32 %v353_v3, %v355_v5  ;;  %vm6413_vm14 = vcmask 9216  }
  0x92   :  { %207 = vst.msk [vmem:[#allocation2 + $0x88] sm:$0x3] %vm190_vm1, %v8727_v0  ;;  %209 = vst.msk [vmem:[#allocation2 + $0x98] sm:$0x3] %vm190_vm1, %v8727_v0  ;;  %v358_v9 = vld [vmem:[%s11622_s2 + $0x30] sm:$0xff]  ;;  %v359_v10 = vld [vmem:[%s11622_s2 + $0x38] sm:$0xff] }
  0x93   :  { %210 = vst.msk [vmem:[#allocation2 + $0xa0] sm:$0xff] %vm188_vm0, %v8727_v0  ;;  %212 = vst.msk [vmem:[#allocation2 + $0xb0] sm:$0xff] %vm188_vm0, %v8727_v0  ;;  %v386_v12 = vmax.f32 %v356_v6, %v358_v9  ;;  %v387_v13 = vmax.f32 %v357_v7, %v359_v10  ;;  %v360_v14 = vld [vmem:[%s11622_s2 + $0x40] sm:$0xff]  ;;  %v361_v15 = vld [vmem:[%s11622_s2 + $0x48] sm:$0xff] }
  0x94   :  { %211 = vst.msk [vmem:[#allocation2 + $0xa8] sm:$0x3] %vm190_vm1, %v8727_v0  ;;  %213 = vst.msk [vmem:[#allocation2 + $0xb8] sm:$0x3] %vm190_vm1, %v8727_v0  ;;  %v362_v16 = vld [vmem:[%s11622_s2 + $0x50] sm:$0xff]  ;;  %v363_v17 = vld [vmem:[%s11622_s2 + $0x58] sm:$0xff] }
  0x95   :  { %214 = vst.msk [vmem:[#allocation2 + $0xc0] sm:$0xff] %vm188_vm0, %v8727_v0  ;;  %216 = vst.msk [vmem:[#allocation2 + $0xd0] sm:$0xff] %vm188_vm0, %v8727_v0  ;;  %v364_v18 = vld [vmem:[%s11622_s2 + $0x60] sm:$0xff]  ;;  %v388_v19 = vmax.f32 %v360_v14, %v362_v16  ;;  %v389_v20 = vmax.f32 %v361_v15, %v363_v17  ;;  %v365_v21 = vld [vmem:[%s11622_s2 + $0x68] sm:$0xff] }
  0x96   :  { %215 = vst.msk [vmem:[#allocation2 + $0xc8] sm:$0x3] %vm190_vm1, %v8727_v0  ;;  %217 = vst.msk [vmem:[#allocation2 + $0xd8] sm:$0x3] %vm190_vm1, %v8727_v0  ;;  %v366_v22 = vld [vmem:[%s11622_s2 + $0x70] sm:$0xff]  ;;  %v367_v23 = vld [vmem:[%s11622_s2 + $0x78] sm:$0xff] }
  0x97   :  { %218 = vst.msk [vmem:[#allocation2 + $0xe0] sm:$0xff] %vm188_vm0, %v8727_v0  ;;  %220 = vst.msk [vmem:[#allocation2 + $0xf0] sm:$0xff] %vm188_vm0, %v8727_v0  ;;  %v368_v24 = vld [vmem:[%s11622_s2 + $0x80] sm:$0xff]  ;;  %v369_v25 = vld [vmem:[%s11622_s2 + $0x88] sm:$0xff]  ;;  %v390_v27 = vmax.f32 %v364_v18, %v366_v22  ;;  %v391_v28 = vmax.f32 %v365_v21, %v367_v23 }
  0x98   :  { %219 = vst.msk [vmem:[#allocation2 + $0xe8] sm:$0x3] %vm190_vm1, %v8727_v0  ;;  %221 = vst.msk [vmem:[#allocation2 + $0xf8] sm:$0x3] %vm190_vm1, %v8727_v0  ;;  %v370_v26 = vld [vmem:[%s11622_s2 + $0x90] sm:$0xff]  ;;  %v371_v29 = vld [vmem:[%s11622_s2 + $0x98] sm:$0xff] }
  0x99   :  { %222 = vst.msk [vmem:[#allocation2 + $0x100] sm:$0xff] %vm188_vm0, %v8727_v0  ;;  %224 = vst.msk [vmem:[#allocation2 + $0x110] sm:$0xff] %vm188_vm0, %v8727_v0  ;;  %v392_v30 = vmax.f32 %v368_v24, %v370_v26  ;;  %v372_v31 = vld [vmem:[%s11622_s2 + $0xa0] sm:$0xff]  ;;  %v373_v32 = vld [vmem:[%s11622_s2 + $0xa8] sm:$0xff]  ;;  %v393_v33 = vmax.f32 %v369_v25, %v371_v29 }
  0x9a   :  { %223 = vst.msk [vmem:[#allocation2 + $0x108] sm:$0x3] %vm190_vm1, %v8727_v0  ;;  %225 = vst.msk [vmem:[#allocation2 + $0x118] sm:$0x3] %vm190_vm1, %v8727_v0  ;;  %v374_v34 = vld [vmem:[%s11622_s2 + $0xb0] sm:$0xff]  ;;  %v375_v35 = vld [vmem:[%s11622_s2 + $0xb8] sm:$0xff] }
  0x9b   :  { %226 = vst.msk [vmem:[#allocation2 + $0x120] sm:$0xff] %vm188_vm0, %v8727_v0  ;;  %228 = vst.msk [vmem:[#allocation2 + $0x130] sm:$0xff] %vm188_vm0, %v8727_v0  ;;  %v376_v36 = vld [vmem:[%s11622_s2 + $0xc0] sm:$0xff]  ;;  %v377_v37 = vld [vmem:[%s11622_s2 + $0xc8] sm:$0xff]  ;;  %v394_v40 = vmax.f32 %v372_v31, %v374_v34  ;;  %v395_v41 = vmax.f32 %v373_v32, %v375_v35 }
  0x9c   :  { %227 = vst.msk [vmem:[#allocation2 + $0x128] sm:$0x3] %vm190_vm1, %v8727_v0  ;;  %229 = vst.msk [vmem:[#allocation2 + $0x138] sm:$0x3] %vm190_vm1, %v8727_v0  ;;  %v378_v38 = vld [vmem:[%s11622_s2 + $0xd0] sm:$0xff]  ;;  %v379_v39 = vld [vmem:[%s11622_s2 + $0xd8] sm:$0xff] }
  0x9d   :  { %296 = vst [vmem:[#allocation5] sm:$0xff] %v8727_v0  ;;  %297 = vst [vmem:[#allocation5 + $0x8] sm:$0x3] %v8727_v0  ;;  %v396_v42 = vmax.f32 %v376_v36, %v378_v38  ;;  %v397_v43 = vmax.f32 %v377_v37, %v379_v39  ;;  %v380_v44 = vld [vmem:[%s11622_s2 + $0xe0] sm:$0xff]  ;;  %v381_v45 = vld [vmem:[%s11622_s2 + $0xe8] sm:$0xff] }
  0x9e   :  { %298 = vst [vmem:[#allocation5 + $0x10] sm:$0xff] %v8727_v0  ;;  %299 = vst [vmem:[#allocation5 + $0x18] sm:$0x3] %v8727_v0  ;;  %v382_v46 = vld [vmem:[%s11622_s2 + $0xf0] sm:$0xff]  ;;  %v383_v49 = vld [vmem:[%s11622_s2 + $0xf8] sm:$0xff] }
  0x9f   :  { %300 = vst [vmem:[#allocation5 + $0x20] sm:$0xff] %v8727_v0  ;;  %301 = vst [vmem:[#allocation5 + $0x28] sm:$0x3] %v8727_v0  ;;  %v398_v50 = vmax.f32 %v380_v44, %v382_v46  ;;  %v399_v54 = vmax.f32 %v381_v45, %v383_v49  ;;  %v6435_v56 = vld [vmem:[%s11622_s2 + $0x100] sm:$0xff]  ;;  %v6436_v59 = vld [vmem:[%s11622_s2 + $0x108] sm:$0xff] }
  0xa0   :  { %302 = vst [vmem:[#allocation5 + $0x30] sm:$0xff] %v8727_v0  ;;  %303 = vst [vmem:[#allocation5 + $0x38] sm:$0x3] %v8727_v0  ;;  %v6437_v63 = vld [vmem:[%s11622_s2 + $0x110] sm:$0xff]  ;;  %v6438_v3 = vld [vmem:[%s11622_s2 + $0x118] sm:$0xff] }
  0xa1   :  { %304 = vst [vmem:[#allocation5 + $0x40] sm:$0xff] %v8727_v0  ;;  %305 = vst [vmem:[#allocation5 + $0x48] sm:$0x3] %v8727_v0  ;;  %v449_v4 = vmax.f32 %v6435_v56, %v6437_v63  ;;  %v598_v5 = vld [vmem:[#allocation2 + $0x1] sm:$0xff]  ;;  %v6441_v17 = vld [vmem:[%s11622_s2 + $0x130] sm:$0xff] }
  0xa2   :  { %306 = vst [vmem:[#allocation5 + $0x50] sm:$0xff] %v8727_v0  ;;  %307 = vst [vmem:[#allocation5 + $0x58] sm:$0x3] %v8727_v0  ;;  %v6439_v9 = vld [vmem:[%s11622_s2 + $0x120] sm:$0xff]  ;;  %v6445_v32 = vld [vmem:[%s11622_s2 + $0x150] sm:$0xff] }
  0xa3   :  { %308 = vst [vmem:[#allocation5 + $0x60] sm:$0xff] %v8727_v0  ;;  %309 = vst [vmem:[#allocation5 + $0x68] sm:$0x3] %v8727_v0  ;;  %v618_v18 = vld [vmem:[#allocation2 + $0x2] sm:$0xff]  ;;  %v451_v21 = vmax.f32 %v6439_v9, %v6441_v17  ;;  %v6446_v44 = vld [vmem:[%s11622_s2 + $0x158] sm:$0xff] }
  0xa4   :  { %310 = vst [vmem:[#allocation5 + $0x70] sm:$0xff] %v8727_v0  ;;  %311 = vst [vmem:[#allocation5 + $0x78] sm:$0x3] %v8727_v0  ;;  %v6443_v24 = vld [vmem:[%s11622_s2 + $0x140] sm:$0xff]  ;;  %v6444_v36 = vld [vmem:[%s11622_s2 + $0x148] sm:$0xff] }
  0xa5   :  { %312 = vst [vmem:[#allocation5 + $0x80] sm:$0xff] %v8727_v0  ;;  %313 = vst [vmem:[#allocation5 + $0x88] sm:$0x3] %v8727_v0  ;;  %v453_v37 = vmax.f32 %v6443_v24, %v6445_v32  ;;  %v454_v46 = vmax.f32 %v6444_v36, %v6446_v44  ;;  %v8163_v56 = vld [vmem:[#allocation11 + $0x30] sm:$0xff]   ;;  %v6454_v9 = vld [vmem:[%s11622_s2 + $0x198] sm:$0xff] }
  0xa6   :  { %314 = vst [vmem:[#allocation5 + $0x90] sm:$0xff] %v8727_v0  ;;  %315 = vst [vmem:[#allocation5 + $0x98] sm:$0x3] %v8727_v0  ;;  %v6461_v32 = vld [vmem:[%s11622_s2 + $0x1d0] sm:$0xff] }
  0xa7   :  { %316 = vst [vmem:[#allocation5 + $0xa0] sm:$0xff] %v8727_v0  ;;  %317 = vst [vmem:[#allocation5 + $0xa8] sm:$0x3] %v8727_v0 }
  0xa8   :  { %318 = vst [vmem:[#allocation5 + $0xb0] sm:$0xff] %v8727_v0  ;;  %319 = vst [vmem:[#allocation5 + $0xb8] sm:$0x3] %v8727_v0 }
  0xa9   :  { %320 = vst [vmem:[#allocation6] sm:$0xff] %v8727_v0  ;;  %321 = vst [vmem:[#allocation6 + $0x8] sm:$0x3] %v8727_v0 }
  0xaa   :  { %322 = vst [vmem:[#allocation6 + $0x10] sm:$0xff] %v8727_v0  ;;  %323 = vst [vmem:[#allocation6 + $0x18] sm:$0x3] %v8727_v0 }
  0xab   :  { %324 = vst [vmem:[#allocation6 + $0x20] sm:$0xff] %v8727_v0  ;;  %325 = vst [vmem:[#allocation6 + $0x28] sm:$0x3] %v8727_v0 }
  0xac   :  { %326 = vst [vmem:[#allocation6 + $0x30] sm:$0xff] %v8727_v0  ;;  %327 = vst [vmem:[#allocation6 + $0x38] sm:$0x3] %v8727_v0 }
  0xad   :  { %328 = vst [vmem:[#allocation6 + $0x40] sm:$0xff] %v8727_v0  ;;  %329 = vst [vmem:[#allocation6 + $0x48] sm:$0x3] %v8727_v0 }
  0xae   :  { %330 = vst [vmem:[#allocation6 + $0x50] sm:$0xff] %v8727_v0  ;;  %331 = vst [vmem:[#allocation6 + $0x58] sm:$0x3] %v8727_v0 }
  0xaf   :  { %332 = vst [vmem:[#allocation6 + $0x60] sm:$0xff] %v8727_v0  ;;  %333 = vst [vmem:[#allocation6 + $0x68] sm:$0x3] %v8727_v0 }
  0xb0   :  { %334 = vst [vmem:[#allocation6 + $0x70] sm:$0xff] %v8727_v0  ;;  %335 = vst [vmem:[#allocation6 + $0x78] sm:$0x3] %v8727_v0 }
  0xb1   :  { %336 = vst [vmem:[#allocation7] sm:$0xff] %v8727_v0  ;;  %337 = vst [vmem:[#allocation7 + $0x8] sm:$0x3] %v8727_v0 }
  0xb2   :  { %338 = vst [vmem:[#allocation7 + $0x10] sm:$0xff] %v8727_v0  ;;  %339 = vst [vmem:[#allocation7 + $0x18] sm:$0x3] %v8727_v0 }
  0xb3   :  { %340 = vst [vmem:[#allocation7 + $0x20] sm:$0xff] %v8727_v0  ;;  %341 = vst [vmem:[#allocation7 + $0x28] sm:$0x3] %v8727_v0 }
  0xb4   :  { %342 = vst [vmem:[#allocation7 + $0x30] sm:$0xff] %v8727_v0  ;;  %343 = vst [vmem:[#allocation7 + $0x38] sm:$0x3] %v8727_v0 }
  0xb5   :  { %344 = vst [vmem:[#allocation7 + $0x40] sm:$0xff] %v8727_v0  ;;  %345 = vst [vmem:[#allocation7 + $0x48] sm:$0x3] %v8727_v0 }
  0xb6   :  { %346 = vst [vmem:[#allocation7 + $0x50] sm:$0xff] %v8727_v0  ;;  %347 = vst [vmem:[#allocation7 + $0x58] sm:$0x3] %v8727_v0 }
  0xb7   :  { %348 = vst [vmem:[#allocation7 + $0x60] sm:$0xff] %v8727_v0  ;;  %349 = vst [vmem:[#allocation7 + $0x68] sm:$0x3] %v8727_v0 }
  0xb8   :  { %350 = vst [vmem:[#allocation7 + $0x70] sm:$0xff] %v8727_v0  ;;  %351 = vst [vmem:[#allocation7 + $0x78] sm:$0x3] %v8727_v0 }
  0xb9   :  { %400 = vst.msk [vmem:[#allocation8] sm:$0xff] %vm188_vm0, %v384_v8  ;;  %401 = vst.msk [vmem:[#allocation8 + $0x8] sm:$0xff] %vm188_vm0, %v385_v11  ;;  %v450_v8 = vmax.f32 %v6436_v59, %v6438_v3  ;;  %v6450_v59 = vld [vmem:[%s11622_s2 + $0x178] sm:$0xff] }
  0xba   :  { %402 = vst.msk [vmem:[#allocation8 + $0x10] sm:$0xff] %vm188_vm0, %v386_v12  ;;  %403 = vst.msk [vmem:[#allocation8 + $0x18] sm:$0xff] %vm188_vm0, %v387_v13  ;;  %v6440_v13 = vld [vmem:[%s11622_s2 + $0x128] sm:$0xff] }
  0xbb   :  { %404 = vst.msk [vmem:[#allocation8 + $0x20] sm:$0xff] %vm188_vm0, %v388_v19  ;;  %405 = vst.msk [vmem:[#allocation8 + $0x28] sm:$0xff] %vm188_vm0, %v389_v20  ;;  %v6442_v20 = vld [vmem:[%s11622_s2 + $0x138] sm:$0xff] }
  0xbc   :  { %406 = vst.msk [vmem:[#allocation8 + $0x30] sm:$0xff] %vm188_vm0, %v390_v27  ;;  %407 = vst.msk [vmem:[#allocation8 + $0x38] sm:$0xff] %vm188_vm0, %v391_v28  ;;  %v452_v25 = vmax.f32 %v6440_v13, %v6442_v20  ;;  %v6456_v20 = vld [vmem:[%s11622_s2 + $0x1a8] sm:$0xff] }
  0xbd   :  { %408 = vst.msk [vmem:[#allocation8 + $0x40] sm:$0xff] %vm188_vm0, %v392_v30  ;;  %409 = vst.msk [vmem:[#allocation8 + $0x48] sm:$0xff] %vm188_vm0, %v393_v33 }
  0xbe   :  { %410 = vst.msk [vmem:[#allocation8 + $0x50] sm:$0xff] %vm188_vm0, %v394_v40  ;;  %411 = vst.msk [vmem:[#allocation8 + $0x58] sm:$0xff] %vm188_vm0, %v395_v41 }
  0xbf   :  { %412 = vst.msk [vmem:[#allocation8 + $0x60] sm:$0xff] %vm188_vm0, %v396_v42  ;;  %413 = vst.msk [vmem:[#allocation8 + $0x68] sm:$0xff] %vm188_vm0, %v397_v43 }
  0xc0   :  { %v482_v47 = vld [vmem:[#allocation8] ss:$2 sm:$0xff]  ;;  %v514_v48 = vld [vmem:[#allocation8 + $0x1] ss:$2 sm:$0xff]  ;;  %414 = vst.msk [vmem:[#allocation8 + $0x70] sm:$0xff] %vm188_vm0, %v398_v50  ;;  %415 = vst.msk [vmem:[#allocation8 + $0x78] sm:$0xff] %vm188_vm0, %v399_v54 }
  0xc1   :  { %v484_v51 = vld [vmem:[#allocation8 + $0x10] ss:$2 sm:$0xff]  ;;  %v516_v52 = vld [vmem:[#allocation8 + $0x11] ss:$2 sm:$0xff]  ;;  %v545_v53 = vmax.f32 %v482_v47, %v514_v48  ;;  %466 = vst.msk [vmem:[#allocation8 + $0x80] sm:$0xff] %vm188_vm0, %v449_v4  ;;  %467 = vst.msk [vmem:[#allocation8 + $0x88] sm:$0xff] %vm188_vm0, %v450_v8 }
  0xc2   :  { %v546_v55 = vmax.f32 %v484_v51, %v516_v52  ;;  %v486_v57 = vld [vmem:[#allocation8 + $0x20] ss:$2 sm:$0xff]  ;;  %v518_v58 = vld [vmem:[#allocation8 + $0x21] ss:$2 sm:$0xff]  ;;  %468 = vst.msk [vmem:[#allocation8 + $0x90] sm:$0xff] %vm188_vm0, %v451_v21  ;;  %469 = vst.msk [vmem:[#allocation8 + $0x98] sm:$0xff] %vm188_vm0, %v452_v25 }
  0xc3   :  { %562 = vst.msk [vmem:[#allocation2 + $0x11] sm:$0xff] %vm188_vm0, %v545_v53  ;;  %v547_v60 = vmax.f32 %v486_v57, %v518_v58  ;;  %v488_v61 = vld [vmem:[#allocation8 + $0x30] ss:$2 sm:$0xff]  ;;  %v520_v62 = vld [vmem:[#allocation8 + $0x31] ss:$2 sm:$0xff]  ;;  %470 = vst.msk [vmem:[#allocation8 + $0xa0] sm:$0xff] %vm188_vm0, %v453_v37 }
  0xc4   :  { %563 = vst.msk [vmem:[#allocation2 + $0x21] sm:$0xff] %vm188_vm0, %v546_v55  ;;  %v548_v2 = vmax.f32 %v488_v61, %v520_v62  ;;  %v490_v6 = vld [vmem:[#allocation8 + $0x40] ss:$2 sm:$0xff]  ;;  %v522_v7 = vld [vmem:[#allocation8 + $0x41] ss:$2 sm:$0xff]  ;;  %471 = vst.msk [vmem:[#allocation8 + $0xa8] sm:$0xff] %vm188_vm0, %v454_v46 }
  0xc5   :  { %564 = vst.msk [vmem:[#allocation2 + $0x31] sm:$0xff] %vm188_vm0, %v547_v60  ;;  %v549_v10 = vmax.f32 %v490_v6, %v522_v7  ;;  %v492_v11 = vld [vmem:[#allocation8 + $0x50] ss:$2 sm:$0xff]  ;;  %v524_v12 = vld [vmem:[#allocation8 + $0x51] ss:$2 sm:$0xff]  ;;  %v6448_v57 = vld [vmem:[%s11622_s2 + $0x168] sm:$0xff] }
  0xc6   :  { %565 = vst.msk [vmem:[#allocation2 + $0x41] sm:$0xff] %vm188_vm0, %v548_v2  ;;  %v494_v14 = vld [vmem:[#allocation8 + $0x60] ss:$2 sm:$0xff]  ;;  %v526_v15 = vld [vmem:[#allocation8 + $0x61] ss:$2 sm:$0xff]  ;;  %v550_v16 = vmax.f32 %v492_v11, %v524_v12  ;;  %v8162_v53 = vld [vmem:[#allocation11 + $0x38] sm:$0xff]   ;;  %v456_v2 = vmax.f32 %v6448_v57, %v6450_v59 }
  0xc7   :  { %566 = vst.msk [vmem:[#allocation2 + $0x51] sm:$0xff] %vm188_vm0, %v549_v10  ;;  %v551_v19 = vmax.f32 %v494_v14, %v526_v15  ;;  %v496_v30 = vld [vmem:[#allocation8 + $0x70] ss:$2 sm:$0xff]  ;;  %v528_v31 = vld [vmem:[#allocation8 + $0x71] ss:$2 sm:$0xff]  ;;  %1368 = vmatpush1.bf16.msra.mxu0 %v8162_v53  ;;  %v6451_v60 = vld [vmem:[%s11622_s2 + $0x180] sm:$0xff] }
  0xc8   :  { %567 = vst.msk [vmem:[#allocation2 + $0x61] sm:$0xff] %vm188_vm0, %v550_v16  ;;  %v552_v35 = vmax.f32 %v496_v30, %v528_v31  ;;  %v498_v42 = vld [vmem:[#allocation8 + $0x80] ss:$2 sm:$0xff]  ;;  %v530_v43 = vld [vmem:[#allocation8 + $0x81] ss:$2 sm:$0xff]  ;;  %1369 = vmatprep.subr.bf16.mxu0 %v8728_v1  ;;  %v6449_v58 = vld [vmem:[%s11622_s2 + $0x170] sm:$0xff] }
  0xc9   :  { %568 = vst.msk [vmem:[#allocation2 + $0x71] sm:$0xff] %vm188_vm0, %v551_v19  ;;  %v553_v45 = vmax.f32 %v498_v42, %v530_v43  ;;  %v500_v50 = vld [vmem:[#allocation8 + $0x90] ss:$2 sm:$0xff]  ;;  %v532_v51 = vld [vmem:[#allocation8 + $0x91] ss:$2 sm:$0xff]  ;;  %v6452_v61 = vld [vmem:[%s11622_s2 + $0x188] sm:$0xff] }
  0xca   :  { %v619_v22 = vld [vmem:[#allocation2 + $0x12] sm:$0xff]  ;;  %569 = vst.msk [vmem:[#allocation2 + $0x81] sm:$0xff] %vm188_vm0, %v552_v35  ;;  %v554_v52 = vmax.f32 %v500_v50, %v532_v51  ;;  %473 = vst.msk [vmem:[#allocation8 + $0xb8] sm:$0xff] %vm188_vm0, %v456_v2  ;;  %v458_v11 = vmax.f32 %v6452_v61, %v6454_v9  ;;  %v8164_v12 = vld [vmem:[#allocation11 + $0x28] sm:$0xff]  }
  0xcb   :  { %v9159_v23 = vld [vmem:[#allocation2 + $0x11] sm:$0xff]  ;;  %v9165_v26 = vld [vmem:[#allocation2 + $0x22] sm:$0xff]  ;;  %v7647_v33 = vpack.i.bf16 %v619_v22, %v618_v18  ;;  %231 = vst.msk [vmem:[#allocation3] sm:$0xff] %vm230_vm2, %v8727_v0  ;;  %234 = vst.msk [vmem:[#allocation3 + $0x10] sm:$0xff] %vm230_vm2, %v8727_v0  ;;  %1370 = vmatpush1.bf16.msra.mxu0 %v8163_v56 }
  0xcc   :  { %v7642_v27 = vpack.i.bf16 %v9159_v23, %v598_v5  ;;  %v9168_v28 = vld [vmem:[#allocation2 + $0x20] sm:$0xff]  ;;  %v7652_v29 = vpack.i.bf16 %v9165_v26, %v619_v22  ;;  %v9178_v34 = vld [vmem:[#allocation2 + $0x30] sm:$0xff]  ;;  %236 = vst.msk [vmem:[#allocation3 + $0x20] sm:$0xff] %vm230_vm2, %v8727_v0  ;;  %238 = vst.msk [vmem:[#allocation3 + $0x30] sm:$0xff] %vm230_vm2, %v8727_v0  ;;  %1371 = vmatprep.subr.bf16.mxu0 %v8728_v1 }
  0xcd   :  { %v9184_v38 = vld [vmem:[#allocation2 + $0x21] sm:$0xff]  ;;  %v7657_v39 = vpack.i.bf16 %v9178_v34, %v9168_v28  ;;  %v9188_v40 = vld [vmem:[#allocation2 + $0x31] sm:$0xff]  ;;  %240 = vst.msk [vmem:[#allocation3 + $0x40] sm:$0xff] %vm230_vm2, %v8727_v0  ;;  %242 = vst.msk [vmem:[#allocation3 + $0x50] sm:$0xff] %vm230_vm2, %v8727_v0 }
  0xce   :  { %7643 = vrot.lane.b32.xlu0 %v7642_v27, %s8729_s4  ;;  %7653 = vrot.lane.b32.xlu1 %v7652_v29, %s8730_s29  ;;  %v579_v41 = vld [vmem:[#allocation2 + $0x10] sm:$0xff]  ;;  %244 = vst.msk [vmem:[#allocation3 + $0x60] sm:$0xff] %vm230_vm2, %v8727_v0  ;;  %246 = vst.msk [vmem:[#allocation3 + $0x70] sm:$0xff] %vm230_vm2, %v8727_v0  ;;  %v7667_v48 = vpack.i.bf16 %v9188_v40, %v9184_v38  ;;  %v7672_v54 = vpack.i.bf16 %v9184_v38, %v9159_v23  ;;  %v582_v3 = vld [vmem:[#allocation2 + $0x40] sm:$0xff] }
  0xcf   :  { %v7662_v47 = vpack.i.bf16 %v9168_v28, %v579_v41  ;;  %248 = vst.msk [vmem:[#allocation3 + $0x80] sm:$0xff] %vm230_vm2, %v8727_v0  ;;  %250 = vst.msk [vmem:[#allocation3 + $0x90] sm:$0xff] %vm230_vm2, %v8727_v0  ;;  %v621_v49 = vld [vmem:[#allocation2 + $0x32] sm:$0xff]  ;;  %v622_v4 = vld [vmem:[#allocation2 + $0x42] sm:$0xff]  ;;  %1372 = vmatpush1.bf16.msra.mxu0 %v8164_v12  ;;  %v7702_v22 = vpack.i.bf16 %v582_v3, %v9178_v34 }
  0xd0   :  { %252 = vst.msk [vmem:[#allocation3 + $0xa0] sm:$0xff] %vm230_vm2, %v8727_v0  ;;  %254 = vst.msk [vmem:[#allocation3 + $0xb0] sm:$0xff] %vm230_vm2, %v8727_v0  ;;  %v7677_v55 = vpack.i.bf16 %v621_v49, %v9165_v26  ;;  %v6453_v62 = vld [vmem:[%s11622_s2 + $0x190] sm:$0xff]  ;;  %v502_v5 = vld [vmem:[#allocation8 + $0xa0] ss:$2 sm:$0xff]  ;;  %v7692_v13 = vpack.i.bf16 %v622_v4, %v621_v49  ;;  %1373 = vmatprep.subr.bf16.mxu0 %v8728_v1 }
  0xd1   :  { %256 = vst.msk [vmem:[#allocation3 + $0xc0] sm:$0xff] %vm230_vm2, %v8727_v0  ;;  %258 = vst.msk [vmem:[#allocation3 + $0xd0] sm:$0xff] %vm230_vm2, %v8727_v0  ;;  %v457_v6 = vmax.f32 %v6451_v60, %v6453_v62  ;;  %v9296_v7 = vld [vmem:[#allocation2 + $0x50] sm:$0xff]  ;;  %v534_v8 = vld [vmem:[#allocation8 + $0xa1] ss:$2 sm:$0xff] }
  0xd2   :  { %7648 = vrot.lane.b32.xlu0 %v7647_v33, %s8731_s22  ;;  %260 = vst.msk [vmem:[#allocation3 + $0xe0] sm:$0xff] %vm230_vm2, %v8727_v0  ;;  %262 = vst.msk [vmem:[#allocation3 + $0xf0] sm:$0xff] %vm230_vm2, %v8727_v0  ;;  %7658 = vrot.lane.b32.xlu1 %v7657_v39, %s8732_s23  ;;  %v555_v10 = vmax.f32 %v502_v5, %v534_v8  ;;  %v602_v14 = vld [vmem:[#allocation2 + $0x41] sm:$0xff]  ;;  %v7697_v15 = vpack.i.bf16 %v9296_v7, %v582_v3  ;;  %v9310_v17 = vld [vmem:[#allocation2 + $0x51] sm:$0xff] }
  0xd3   :  { %264 = vst.msk [vmem:[#allocation3 + $0x100] sm:$0xff] %vm230_vm2, %v8727_v0  ;;  %266 = vst.msk [vmem:[#allocation3 + $0x110] sm:$0xff] %vm230_vm2, %v8727_v0  ;;  %v8165_v16 = vld [vmem:[#allocation11 + $0x20] sm:$0xff]   ;;  %v8166_v18 = vld [vmem:[#allocation11 + $0x18] sm:$0xff]   ;;  %v7707_v28 = vpack.i.bf16 %v9310_v17, %v602_v14  ;;  %v7712_v37 = vpack.i.bf16 %v602_v14, %v9188_v40 }
  0xd4   :  { %268 = vst.msk [vmem:[#allocation3 + $0x120] sm:$0xff] %vm230_vm2, %v8727_v0  ;;  %270 = vst.msk [vmem:[#allocation3 + $0x130] sm:$0xff] %vm230_vm2, %v8727_v0  ;;  %v6455_v19 = vld [vmem:[%s11622_s2 + $0x1a0] sm:$0xff]  ;;  %v6457_v21 = vld [vmem:[%s11622_s2 + $0x1b0] sm:$0xff]  ;;  %1374 = vmatpush1.bf16.msra.mxu0 %v8165_v16 }
  0xd5   :  { %272 = vst.msk [vmem:[#allocation4] sm:$0xff] %vm230_vm2, %v8727_v0  ;;  %274 = vst.msk [vmem:[#allocation4 + $0x10] sm:$0xff] %vm230_vm2, %v8727_v0  ;;  %v9324_v23 = vld [vmem:[#allocation2 + $0x52] sm:$0xff]  ;;  %v459_v27 = vmax.f32 %v6455_v19, %v6457_v21  ;;  %v6459_v30 = vld [vmem:[%s11622_s2 + $0x1c0] sm:$0xff]  ;;  %1375 = vmatprep.subr.bf16.mxu0 %v8728_v1 }
  0xd6   :  { %276 = vst.msk [vmem:[#allocation4 + $0x20] sm:$0xff] %vm230_vm2, %v8727_v0  ;;  %278 = vst.msk [vmem:[#allocation4 + $0x30] sm:$0xff] %vm230_vm2, %v8727_v0  ;;  %7663 = vrot.lane.b32.xlu0 %v7662_v47, %s8733_s1  ;;  %7668 = vrot.lane.b32.xlu1 %v7667_v48, %s8734_s12  ;;  %v6458_v26 = vld [vmem:[%s11622_s2 + $0x1b8] sm:$0xff]  ;;  %v6460_v31 = vld [vmem:[%s11622_s2 + $0x1c8] sm:$0xff]  ;;  %v461_v35 = vmax.f32 %v6459_v30, %v6461_v32  ;;  %v7717_v41 = vpack.i.bf16 %v9324_v23, %v622_v4 }
  0xd7   :  { %280 = vst.msk [vmem:[#allocation4 + $0x40] sm:$0xff] %vm230_vm2, %v8727_v0  ;;  %282 = vst.msk [vmem:[#allocation4 + $0x50] sm:$0xff] %vm230_vm2, %v8727_v0  ;;  %v460_v33 = vmax.f32 %v6456_v20, %v6458_v26  ;;  %v6462_v34 = vld [vmem:[%s11622_s2 + $0x1d8] sm:$0xff]  ;;  %v8167_v43 = vld [vmem:[#allocation11 + $0x10] sm:$0xff]  }
  0xd8   :  { %284 = vst.msk [vmem:[#allocation4 + $0x60] sm:$0xff] %vm230_vm2, %v8727_v0  ;;  %286 = vst.msk [vmem:[#allocation4 + $0x70] sm:$0xff] %vm230_vm2, %v8727_v0  ;;  %v462_v36 = vmax.f32 %v6460_v31, %v6462_v34  ;;  %1376 = vmatpush1.bf16.msra.mxu0 %v8166_v18  ;;  %v624_v44 = vld [vmem:[#allocation2 + $0x62] sm:$0xff]  ;;  %v6465_v46 = vld [vmem:[%s11622_s2 + $0x1f0] sm:$0xff] }
  0xd9   :  { %288 = vst.msk [vmem:[#allocation4 + $0x80] sm:$0xff] %vm230_vm2, %v8727_v0  ;;  %290 = vst.msk [vmem:[#allocation4 + $0x90] sm:$0xff] %vm230_vm2, %v8727_v0  ;;  %1377 = vmatprep.subr.bf16.mxu0 %v8728_v1  ;;  %v6463_v40 = vld [vmem:[%s11622_s2 + $0x1e0] sm:$0xff]  ;;  %v8168_v47 = vld [vmem:[#allocation11 + $0x8] sm:$0xff]  }
  0xda   :  { %292 = vst.msk [vmem:[#allocation4 + $0xa0] sm:$0xff] %vm230_vm2, %v8727_v0  ;;  %294 = vst.msk [vmem:[#allocation4 + $0xb0] sm:$0xff] %vm230_vm2, %v8727_v0  ;;  %v6447_v0 = vld [vmem:[%s11622_s2 + $0x160] sm:$0xff]  ;;  %7673 = vrot.lane.b32.xlu0 %v7672_v54, %s8735_s24  ;;  %7678 = vrot.lane.b32.xlu1 %v7677_v55, %s8720_s8  ;;  %v463_v49 = vmax.f32 %v6463_v40, %v6465_v46  ;;  %v9369_v51 = vld [vmem:[#allocation2 + $0x70] sm:$0xff] }
  0xdb   :  { %570 = vst.msk [vmem:[#allocation2 + $0xb1] sm:$0xff] %vm188_vm0, %v553_v45  ;;  %571 = vst.msk [vmem:[#allocation2 + $0xc1] sm:$0xff] %vm188_vm0, %v554_v52  ;;  %v455_v63 = vmax.f32 %v6447_v0, %v6449_v58  ;;  %v6464_v45 = vld [vmem:[%s11622_s2 + $0x1e8] sm:$0xff]  ;;  %v584_v50 = vld [vmem:[#allocation2 + $0x60] sm:$0xff]  ;;  %v7732_v0 = vpack.i.bf16 %v624_v44, %v9324_v23 }
  0xdc   :  { %474 = vst.msk [vmem:[#allocation8 + $0xc0] sm:$0xff] %vm188_vm0, %v457_v6  ;;  %572 = vst.msk [vmem:[#allocation2 + $0xd1] sm:$0xff] %vm188_vm0, %v555_v10  ;;  %1378 = vmatpush1.bf16.msra.mxu0 %v8167_v43  ;;  %v8169_v58 = vld [vmem:[#allocation11] sm:$0xff]   ;;  %v7737_v59 = vpack.i.bf16 %v9369_v51, %v584_v50  ;;  %v8170_v61 = vld [vmem:[#allocation11 + $0x68] ss:$0 sps:$4 sm:$0xff]   ;;  %v7742_v2 = vpack.i.bf16 %v584_v50, %v9296_v7 }
  0xdd   :  { %472 = vst.msk [vmem:[#allocation8 + $0xb0] sm:$0xff] %vm188_vm0, %v455_v63  ;;  %475 = vst.msk [vmem:[#allocation8 + $0xc8] sm:$0xff] %vm188_vm0, %v458_v11  ;;  %1379 = vmatprep.subr.bf16.mxu0 %v8728_v1  ;;  %v604_v62 = vld [vmem:[#allocation2 + $0x61] sm:$0xff]  ;;  %v605_v63 = vld [vmem:[#allocation2 + $0x71] sm:$0xff]  ;;  %v1365_v5 = vsel %vm1363_vm3, %v8170_v61, 0 }
  0xde   :  { %7683 = vrot.lane.b32.xlu0 %v7667_v48, %s8729_s4  ;;  %7688 = vrot.lane.b32.xlu1 %v7677_v55, %s8731_s22  ;;  %476 = vst.msk [vmem:[#allocation8 + $0xd0] sm:$0xff] %vm188_vm0, %v459_v27  ;;  %477 = vst.msk [vmem:[#allocation8 + $0xd8] sm:$0xff] %vm188_vm0, %v460_v33  ;;  %v6466_v48 = vld [vmem:[%s11622_s2 + $0x1f8] sm:$0xff]  ;;  %v7747_v3 = vpack.i.bf16 %v605_v63, %v604_v62  ;;  %v7752_v9 = vpack.i.bf16 %v604_v62, %v9310_v17  ;;  %v8171_v7 = vld [vmem:[#allocation11 + $0x60] sm:$0xff]  }
  0xdf   :  { %478 = vst.msk [vmem:[#allocation8 + $0xe0] sm:$0xff] %vm188_vm0, %v461_v35  ;;  %479 = vst.msk [vmem:[#allocation8 + $0xe8] sm:$0xff] %vm188_vm0, %v462_v36  ;;  %v464_v52 = vmax.f32 %v6464_v45, %v6466_v48  ;;  %v625_v4 = vld [vmem:[#allocation2 + $0x72] sm:$0xff]  ;;  %v626_v12 = vld [vmem:[#allocation2 + $0x82] sm:$0xff] }
  0xe0   :  { %480 = vst.msk [vmem:[#allocation8 + $0xf0] sm:$0xff] %vm188_vm0, %v463_v49  ;;  %1380 = vmatpush1.bf16.msra.mxu0 %v8168_v47  ;;  %v7757_v11 = vpack.i.bf16 %v625_v4, %v624_v44  ;;  %v586_v14 = vld [vmem:[#allocation2 + $0x80] sm:$0xff]  ;;  %v7772_v16 = vpack.i.bf16 %v626_v12, %v625_v4  ;;  %v607_v19 = vld [vmem:[#allocation2 + $0x91] sm:$0xff]  ;;  %v8174_v23 = vld [vmem:[#allocation11 + $0x48] sm:$0xff]  }
  0xe1   :  { %481 = vst.msk [vmem:[#allocation8 + $0xf8] sm:$0xff] %vm188_vm0, %v464_v52  ;;  %1381 = vmatprep.subr.bf16.mxu0 %v8728_v1  ;;  %v606_v18 = vld [vmem:[#allocation2 + $0x81] sm:$0xff]  ;;  %v8173_v20 = vld [vmem:[#allocation11 + $0x50] sm:$0xff]   ;;  %v7782_v21 = vpack.i.bf16 %v586_v14, %v9369_v51 }
  0xe2   :  { %7693 = vrot.lane.b32.xlu0 %v7692_v13, %s8730_s29  ;;  %7698 = vrot.lane.b32.xlu1 %v7697_v15, %s8732_s23  ;;  %v8172_v13 = vld [vmem:[#allocation11 + $0x58] sm:$0xff]   ;;  %v587_v15 = vld [vmem:[#allocation2 + $0x90] sm:$0xff]  ;;  %v8175_v27 = vld [vmem:[#allocation11 + $0x40] sm:$0xff]  }
  0xe3   :  { %v7777_v17 = vpack.i.bf16 %v587_v15, %v586_v14  ;;  %v609_v26 = vld [vmem:[#allocation2 + $0xb1] sm:$0xff]  ;;  %v630_v32 = vld [vmem:[#allocation2 + $0xc2] sm:$0xff] }
  0xe4   :  { %v504_v24 = vld [vmem:[#allocation8 + $0xb0] ss:$2 sm:$0xff]  ;;  %v536_v25 = vld [vmem:[#allocation8 + $0xb1] ss:$2 sm:$0xff]  ;;  %v506_v38 = vld [vmem:[#allocation8 + $0xc0] ss:$2 sm:$0xff]  ;;  %1382 = vmatpush1.bf16.msra.mxu0 %v8169_v58 }
  0xe5   :  { %v556_v29 = vmax.f32 %v504_v24, %v536_v25  ;;  %v538_v39 = vld [vmem:[#allocation8 + $0xc1] ss:$2 sm:$0xff]  ;;  %v508_v53 = vld [vmem:[#allocation8 + $0xd0] ss:$2 sm:$0xff]  ;;  %v540_v54 = vld [vmem:[#allocation8 + $0xd1] ss:$2 sm:$0xff]  ;;  %1387 = vmatprep.subr.bf16.mxu0 %v8728_v1  ;;  %v7787_v24 = vpack.i.bf16 %v607_v19, %v606_v18 }
  0xe6   :  { %7703 = vrot.lane.b32.xlu0 %v7702_v22, %s8733_s1  ;;  %7708 = vrot.lane.b32.xlu1 %v7707_v28, %s8734_s12  ;;  %v557_v42 = vmax.f32 %v506_v38, %v538_v39  ;;  %v510_v55 = vld [vmem:[#allocation8 + $0xe0] ss:$2 sm:$0xff]  ;;  %v542_v56 = vld [vmem:[#allocation8 + $0xe1] ss:$2 sm:$0xff]  ;;  %v558_v57 = vmax.f32 %v508_v53, %v540_v54  ;;  %v627_v22 = vld [vmem:[#allocation2 + $0x92] sm:$0xff] }
  0xe7   :  { %573 = vst.msk [vmem:[#allocation2 + $0xe1] sm:$0xff] %vm188_vm0, %v556_v29  ;;  %v559_v60 = vmax.f32 %v510_v55, %v542_v56  ;;  %v608_v25 = vld [vmem:[#allocation2 + $0xa1] sm:$0xff]  ;;  %v629_v30 = vld [vmem:[#allocation2 + $0xb2] sm:$0xff]  ;;  %v7797_v31 = vpack.i.bf16 %v627_v22, %v626_v12 }
  0xe8   :  { %574 = vst.msk [vmem:[#allocation2 + $0xf1] sm:$0xff] %vm188_vm0, %v557_v42  ;;  %575 = vst.msk [vmem:[#allocation2 + $0x101] sm:$0xff] %vm188_vm0, %v558_v57  ;;  %v512_v6 = vld [vmem:[#allocation8 + $0xf0] ss:$2 sm:$0xff]  ;;  %v544_v8 = vld [vmem:[#allocation8 + $0xf1] ss:$2 sm:$0xff]  ;;  %1388 = vmatpush2.bf16.msra.mxu0 %v1365_v5  ;;  %v7802_v33 = vpack.i.bf16 %v609_v26, %v608_v25  ;;  %v7812_v38 = vpack.i.bf16 %v630_v32, %v629_v30 }
  0xe9   :  { %576 = vst.msk [vmem:[#allocation2 + $0x111] sm:$0xff] %vm188_vm0, %v559_v60  ;;  %v560_v10 = vmax.f32 %v512_v6, %v544_v8  ;;  %1389 = vmatprep.subr.bf16.mxu0 %v8728_v1  ;;  %v628_v29 = vld [vmem:[#allocation2 + $0xa2] sm:$0xff]  ;;  %v591_v35 = vld [vmem:[#allocation2 + $0xd0] sm:$0xff] }
  0xea   :  { %7713 = vrot.lane.b32.xlu0 %v7712_v37, %s8735_s24  ;;  %7718 = vrot.lane.b32.xlu1 %v7717_v41, %s8720_s8  ;;  %v590_v34 = vld [vmem:[#allocation2 + $0xc0] sm:$0xff]  ;;  %v7807_v36 = vpack.i.bf16 %v629_v30, %v628_v29  ;;  %v589_v37 = vld [vmem:[#allocation2 + $0xb0] sm:$0xff] }
  0xeb   :  { %577 = vst.msk [vmem:[#allocation2 + $0x121] sm:$0xff] %vm188_vm0, %v560_v10  ;;  %v610_v39 = vld [vmem:[#allocation2 + $0xc1] sm:$0xff]  ;;  %v7817_v42 = vpack.i.bf16 %v591_v35, %v590_v34  ;;  %v631_v43 = vld [vmem:[#allocation2 + $0xd2] sm:$0xff] }
  0xec   :  { %1390 = vmatpush2.bf16.msra.mxu0 %v8171_v7  ;;  %v7832_v40 = vpack.i.bf16 %v610_v39, %v609_v26  ;;  %v7837_v45 = vpack.i.bf16 %v631_v43, %v630_v32  ;;  %v597_v10 = vld [vmem:[#allocation2 + $0x130] sm:$0xff]  ;;  %v578_v22 = vld [vmem:[#allocation2] sm:$0xff] }
  0xed   :  { %1391 = vmatprep.subr.bf16.mxu0 %v8728_v1  ;;  %v617_v12 = vld [vmem:[#allocation2 + $0x131] sm:$0xff] }
  0xee   :  { %7723 = vrot.lane.b32.xlu0 %v7707_v28, %s8729_s4  ;;  %7728 = vrot.lane.b32.xlu1 %v7717_v41, %s8731_s22  ;;  %v7792_v28 = vpack.i.bf16 %v606_v18, %v605_v63  ;;  %v611_v41 = vld [vmem:[#allocation2 + $0xd1] sm:$0xff]  ;;  %v632_v46 = vld [vmem:[#allocation2 + $0xe2] sm:$0xff] }
  0xef   :  { %v7827_v44 = vpack.i.bf16 %v611_v41, %v610_v39  ;;  %v592_v47 = vld [vmem:[#allocation2 + $0xe0] sm:$0xff]  ;;  %v593_v48 = vld [vmem:[#allocation2 + $0xf0] sm:$0xff]  ;;  %v7852_v49 = vpack.i.bf16 %v632_v46, %v631_v43 }
  0xf0   :  { %1392 = vmatpush2.bf16.msra.mxu0 %v8172_v13  ;;  %v612_v50 = vld [vmem:[#allocation2 + $0xe1] sm:$0xff]  ;;  %v613_v51 = vld [vmem:[#allocation2 + $0xf1] sm:$0xff]  ;;  %v7857_v52 = vpack.i.bf16 %v593_v48, %v592_v47  ;;  %v7862_v53 = vpack.i.bf16 %v592_v47, %v591_v35 }
  0xf1   :  { %1393 = vmatprep.subr.bf16.mxu0 %v8728_v1  ;;  %v633_v54 = vld [vmem:[#allocation2 + $0xf2] sm:$0xff]  ;;  %v7872_v55 = vpack.i.bf16 %v612_v50, %v611_v41  ;;  %v634_v57 = vld [vmem:[#allocation2 + $0x102] sm:$0xff] }
  0xf2   :  { %7733 = vrot.lane.b32.xlu0 %v7732_v0, %s8730_s29  ;;  %7738 = vrot.lane.b32.xlu1 %v7737_v59, %s8732_s23  ;;  %v7867_v0 = vpack.i.bf16 %v613_v51, %v612_v50  ;;  %v7877_v56 = vpack.i.bf16 %v633_v54, %v632_v46  ;;  %v594_v58 = vld [vmem:[#allocation2 + $0x100] sm:$0xff]  ;;  %v9420_v59 = vld [vmem:[#allocation2 + $0x110] sm:$0xff]  ;;  %v7892_v60 = vpack.i.bf16 %v634_v57, %v633_v54 }
  0xf3   :  { %v614_v61 = vld [vmem:[#allocation2 + $0x101] sm:$0xff]  ;;  %v9424_v62 = vld [vmem:[#allocation2 + $0x111] sm:$0xff]  ;;  %v7897_v63 = vpack.i.bf16 %v9420_v59, %v594_v58 }
  0xf4   :  { %1394 = vmatpush2.bf16.msra.mxu0 %v8173_v20  ;;  %v7907_v4 = vpack.i.bf16 %v9424_v62, %v614_v61  ;;  %v7912_v5 = vpack.i.bf16 %v614_v61, %v613_v51  ;;  %v9433_v8 = vld [vmem:[#allocation2 + $0x122] sm:$0xff]  ;;  %v9452_v19 = vld [vmem:[#allocation2 + $0x132] sm:$0xff] }
  0xf5   :  { %1395 = vmatprep.subr.bf16.mxu0 %v8728_v1  ;;  %v9439_v7 = vld [vmem:[#allocation2 + $0x121] sm:$0xff]  ;;  %v7957_v26 = vpack.i.bf16 %v9452_v19, %v9433_v8 }
  0xf6   :  { %7743 = vrot.lane.b32.xlu0 %v7742_v2, %s8733_s1  ;;  %7748 = vrot.lane.b32.xlu1 %v7747_v3, %s8734_s12  ;;  %v7902_v2 = vpack.i.bf16 %v594_v58, %v593_v48 }
  0xf8   :  { %1396 = vmatpush2.bf16.msra.mxu0 %v8174_v23  ;;  %v7952_v23 = vpack.i.bf16 %v9439_v7, %v9424_v62 }
  0xf9   :  { %1397 = vmatprep.subr.bf16.mxu0 %v8728_v1  ;;  %v7822_v1 = vpack.i.bf16 %v590_v34, %v589_v37  ;;  %v8465_v37 = vld [vmem:[#allocation2 + $0x10] sm:$0xff] }
  0xfa   :  { %7753 = vrot.lane.b32.xlu0 %v7752_v9, %s8735_s24  ;;  %7758 = vrot.lane.b32.xlu1 %v7757_v11, %s8720_s8  ;;  %v596_v9 = vld [vmem:[#allocation2 + $0x120] sm:$0xff] }
  0xfb   :  { %v7937_v13 = vpack.i.bf16 %v597_v10, %v596_v9 }
  0xfc   :  { %1398 = vmatpush2.bf16.msra.mxu0 %v8175_v27 }
  0xfe   :  { %7763 = vrot.lane.b32.xlu0 %v7747_v3, %s8729_s4  ;;  %7768 = vrot.lane.b32.xlu1 %v7757_v11, %s8731_s22  ;;  %v635_v3 = vld [vmem:[#allocation2 + $0x112] sm:$0xff] }
  0xff   :  { %v7917_v6 = vpack.i.bf16 %v635_v3, %v634_v57  ;;  %v7932_v11 = vpack.i.bf16 %v9433_v8, %v635_v3 }
 0x102   :  { %7773 = vrot.lane.b32.xlu0 %v7772_v16, %s8730_s29  ;;  %7778 = vrot.lane.b32.xlu1 %v7777_v17, %s8732_s23  ;;  %v7942_v16 = vpack.i.bf16 %v596_v9, %v9420_v59  ;;  %v7947_v17 = vpack.i.bf16 %v617_v12, %v9439_v7  ;;  %v8466_v9 = vld [vmem:[#allocation2 + $0x30] sm:$0xff] }
 0x106   :  { %7783 = vrot.lane.b32.xlu0 %v7782_v21, %s8733_s1  ;;  %7788 = vrot.lane.b32.xlu1 %v7787_v24, %s8734_s12  ;;  %v8464_v21 = vld [vmem:[#allocation5] sm:$0xff] }
 0x107   :  { %235 = vst.msk [vmem:[#allocation3 + $0x18] sm:$0x3] %vm232_vm9, %v8464_v21  ;;  %233 = vst.msk [vmem:[#allocation3 + $0x8] sm:$0x3] %vm232_vm9, %v8464_v21 }
 0x108   :  { %237 = vst.msk [vmem:[#allocation3 + $0x28] sm:$0x3] %vm232_vm9, %v8464_v21  ;;  %239 = vst.msk [vmem:[#allocation3 + $0x38] sm:$0x3] %vm232_vm9, %v8464_v21 }
 0x109   :  { %241 = vst.msk [vmem:[#allocation3 + $0x48] sm:$0x3] %vm232_vm9, %v8464_v21  ;;  %243 = vst.msk [vmem:[#allocation3 + $0x58] sm:$0x3] %vm232_vm9, %v8464_v21 }
 0x10a   :  { %7793 = vrot.lane.b32.xlu0 %v7792_v28, %s8735_s24  ;;  %7798 = vrot.lane.b32.xlu1 %v7797_v31, %s8720_s8  ;;  %245 = vst.msk [vmem:[#allocation3 + $0x68] sm:$0x3] %vm232_vm9, %v8464_v21  ;;  %247 = vst.msk [vmem:[#allocation3 + $0x78] sm:$0x3] %vm232_vm9, %v8464_v21 }
 0x10b   :  { %249 = vst.msk [vmem:[#allocation3 + $0x88] sm:$0x3] %vm232_vm9, %v8464_v21  ;;  %251 = vst.msk [vmem:[#allocation3 + $0x98] sm:$0x3] %vm232_vm9, %v8464_v21 }
 0x10c   :  { %253 = vst.msk [vmem:[#allocation3 + $0xa8] sm:$0x3] %vm232_vm9, %v8464_v21  ;;  %255 = vst.msk [vmem:[#allocation3 + $0xb8] sm:$0x3] %vm232_vm9, %v8464_v21 }
 0x10d   :  { %257 = vst.msk [vmem:[#allocation3 + $0xc8] sm:$0x3] %vm232_vm9, %v8464_v21  ;;  %259 = vst.msk [vmem:[#allocation3 + $0xd8] sm:$0x3] %vm232_vm9, %v8464_v21 }
 0x10e   :  { %7803 = vrot.lane.b32.xlu0 %v7802_v33, %s8729_s4  ;;  %7808 = vrot.lane.b32.xlu1 %v7807_v36, %s8731_s22  ;;  %261 = vst.msk [vmem:[#allocation3 + $0xe8] sm:$0x3] %vm232_vm9, %v8464_v21  ;;  %263 = vst.msk [vmem:[#allocation3 + $0xf8] sm:$0x3] %vm232_vm9, %v8464_v21 }
 0x10f   :  { %265 = vst.msk [vmem:[#allocation3 + $0x108] sm:$0x3] %vm232_vm9, %v8464_v21  ;;  %267 = vst.msk [vmem:[#allocation3 + $0x118] sm:$0x3] %vm232_vm9, %v8464_v21 }
 0x110   :  { %269 = vst.msk [vmem:[#allocation3 + $0x128] sm:$0x3] %vm232_vm9, %v8464_v21  ;;  %271 = vst.msk [vmem:[#allocation3 + $0x138] sm:$0x3] %vm232_vm9, %v8464_v21 }
 0x111   :  { %273 = vst.msk [vmem:[#allocation4 + $0x8] sm:$0x3] %vm232_vm9, %v8464_v21  ;;  %275 = vst.msk [vmem:[#allocation4 + $0x18] sm:$0x3] %vm232_vm9, %v8464_v21 }
 0x112   :  { %7813 = vrot.lane.b32.xlu0 %v7812_v38, %s8730_s29  ;;  %7818 = vrot.lane.b32.xlu1 %v7817_v42, %s8732_s23  ;;  %277 = vst.msk [vmem:[#allocation4 + $0x28] sm:$0x3] %vm232_vm9, %v8464_v21  ;;  %279 = vst.msk [vmem:[#allocation4 + $0x38] sm:$0x3] %vm232_vm9, %v8464_v21 }
 0x113   :  { %281 = vst.msk [vmem:[#allocation4 + $0x48] sm:$0x3] %vm232_vm9, %v8464_v21  ;;  %283 = vst.msk [vmem:[#allocation4 + $0x58] sm:$0x3] %vm232_vm9, %v8464_v21 }
 0x114   :  { %285 = vst.msk [vmem:[#allocation4 + $0x68] sm:$0x3] %vm232_vm9, %v8464_v21  ;;  %287 = vst.msk [vmem:[#allocation4 + $0x78] sm:$0x3] %vm232_vm9, %v8464_v21 }
 0x115   :  { %289 = vst.msk [vmem:[#allocation4 + $0x88] sm:$0x3] %vm232_vm9, %v8464_v21  ;;  %291 = vst.msk [vmem:[#allocation4 + $0x98] sm:$0x3] %vm232_vm9, %v8464_v21 }
 0x116   :  { %7823 = vrot.lane.b32.xlu0 %v7822_v1, %s8733_s1  ;;  %7828 = vrot.lane.b32.xlu1 %v7827_v44, %s8734_s12  ;;  %293 = vst.msk [vmem:[#allocation4 + $0xa8] sm:$0x3] %vm232_vm9, %v8464_v21  ;;  %295 = vst.msk [vmem:[#allocation4 + $0xb8] sm:$0x3] %vm232_vm9, %v8464_v21 }
 0x11a   :  { %7833 = vrot.lane.b32.xlu0 %v7832_v40, %s8735_s24  ;;  %7838 = vrot.lane.b32.xlu1 %v7837_v45, %s8720_s8 }
 0x11e   :  { %7843 = vrot.lane.b32.xlu0 %v7827_v44, %s8729_s4  ;;  %7848 = vrot.lane.b32.xlu1 %v7837_v45, %s8731_s22 }
 0x122   :  { %7853 = vrot.lane.b32.xlu0 %v7852_v49, %s8730_s29  ;;  %7858 = vrot.lane.b32.xlu1 %v7857_v52, %s8732_s23 }
 0x126   :  { %7863 = vrot.lane.b32.xlu0 %v7862_v53, %s8733_s1  ;;  %7868 = vrot.lane.b32.xlu1 %v7867_v0, %s8734_s12 }
 0x12a   :  { %7873 = vrot.lane.b32.xlu0 %v7872_v55, %s8735_s24  ;;  %7878 = vrot.lane.b32.xlu1 %v7877_v56, %s8720_s8 }
 0x12e   :  { %7883 = vrot.lane.b32.xlu0 %v7867_v0, %s8729_s4  ;;  %7888 = vrot.lane.b32.xlu1 %v7877_v56, %s8731_s22 }
 0x132   :  { %7893 = vrot.lane.b32.xlu0 %v7892_v60, %s8730_s29  ;;  %7898 = vrot.lane.b32.xlu1 %v7897_v63, %s8732_s23 }
 0x136   :  { %7903 = vrot.lane.b32.xlu0 %v7902_v2, %s8733_s1  ;;  %7908 = vrot.lane.b32.xlu1 %v7907_v4, %s8734_s12 }
 0x13a   :  { %7913 = vrot.lane.b32.xlu0 %v7912_v5, %s8735_s24  ;;  %7918 = vrot.lane.b32.xlu1 %v7917_v6, %s8720_s8 }
 0x13e   :  { %7923 = vrot.lane.b32.xlu0 %v7907_v4, %s8729_s4  ;;  %7928 = vrot.lane.b32.xlu1 %v7917_v6, %s8731_s22 }
 0x140   :  { %v9442_v14 = vpop.permute.xlu0 %7643  ;;  %v9444_v15 = vpop.permute.xlu1 %7653 }
 0x141   :  { %v7646_v24 = vunpack.i.h.bf16 %v9442_v14  ;;  %v7645_v25 = vunpack.i.l.bf16 %v9442_v14  ;;  %v7656_v33 = vunpack.i.h.bf16 %v9444_v15  ;;  %v7655_v34 = vunpack.i.l.bf16 %v9444_v15 }
 0x142   :  { %7933 = vrot.lane.b32.xlu0 %v7932_v11, %s8730_s29  ;;  %7938 = vrot.lane.b32.xlu1 %v7937_v13, %s8732_s23  ;;  %v8467_v11 = vld [vmem:[#allocation2 + $0x20] sm:$0xff]  ;;  %s11623_s29 = sld [smem:[#allocation47_spill]] }
 0x143   :  { %v1081_v38 = vsel %vm188_vm0, %v8465_v37, %v7646_v24  ;;  %v1080_v39 = vsel %vm188_vm0, %v578_v22, %v7645_v25 }
 0x144   :  { %v9450_v18 = vpop.permute.xlu0 %7648  ;;  %v9454_v20 = vpop.permute.xlu1 %7658 }
 0x145   :  { %v7651_v27 = vunpack.i.h.bf16 %v9450_v18  ;;  %v7650_v28 = vunpack.i.l.bf16 %v9450_v18  ;;  %v7661_v30 = vunpack.i.h.bf16 %v9454_v20  ;;  %v7660_v31 = vunpack.i.l.bf16 %v9454_v20 }
 0x146   :  { %7943 = vrot.lane.b32.xlu0 %v7942_v16, %s8733_s1  ;;  %7948 = vrot.lane.b32.xlu1 %v7947_v17, %s8734_s12 }
 0x147   :  { %v1097_v1 = vsel %vm1096_vm4, %v1080_v39, %v7650_v28  ;;  %v1098_v43 = vsel %vm1096_vm4, %v1081_v38, %v7651_v27  ;;  %v1165_v47 = vsel %vm1164_vm5, %v7655_v34, %v7660_v31  ;;  %v1166_v48 = vsel %vm1164_vm5, %v7656_v33, %v7661_v30 }
 0x148   :  { %v7664_v29 = vpop.permute.xlu0 %7663  ;;  %v7669_v32 = vpop.permute.xlu1 %7668 }
 0x149   :  { %v7666_v35 = vunpack.i.h.bf16 %v7664_v29  ;;  %v7665_v36 = vunpack.i.l.bf16 %v7664_v29  ;;  %v7671_v41 = vunpack.i.h.bf16 %v7669_v32  ;;  %v7670_v42 = vunpack.i.l.bf16 %v7669_v32 }
 0x14a   :  { %7953 = vrot.lane.b32.xlu0 %v7952_v23, %s8735_s24  ;;  %7958 = vrot.lane.b32.xlu1 %v7957_v26, %s8720_s8 }
 0x14b   :  { %v1114_v49 = vsel %vm1113_vm6, %v1097_v1, %v7665_v36  ;;  %v1115_v50 = vsel %vm1113_vm6, %v1098_v43, %v7666_v35  ;;  %v1182_v0 = vsel %vm1181_vm8, %v1165_v47, %v7670_v42  ;;  %v1183_v55 = vsel %vm1181_vm8, %v1166_v48, %v7671_v41 }
 0x14c   :  { %v7674_v44 = vpop.permute.xlu0 %7673  ;;  %v7679_v40 = vpop.permute.xlu1 %7678 }
 0x14d   :  { %v7676_v45 = vunpack.i.h.bf16 %v7674_v44  ;;  %v7675_v46 = vunpack.i.l.bf16 %v7674_v44  ;;  %v7681_v51 = vunpack.i.h.bf16 %v7679_v40  ;;  %v7680_v52 = vunpack.i.l.bf16 %v7679_v40 }
 0x14f   :  { %v1131_v53 = vsel %vm1130_vm7, %v1114_v49, %v7675_v46  ;;  %v1132_v54 = vsel %vm1130_vm7, %v1115_v50, %v7676_v45  ;;  %v1198_v57 = vsel %vm230_vm2, %v1182_v0, %v7680_v52  ;;  %v1199_v58 = vsel %vm230_vm2, %v1183_v55, %v7681_v51  ;;  %v8468_v51 = vld [vmem:[#allocation2 + $0x50] sm:$0xff] }
 0x150   :  { %v7684_v56 = vpop.permute.xlu0 %7683  ;;  %v1148_v59 = vsel %vm1147_vm10, %v1131_v53, %v7655_v34  ;;  %v1149_v60 = vsel %vm1147_vm10, %v1132_v54, %v7656_v33  ;;  %v7689_v61 = vpop.permute.xlu1 %7688  ;;  %v1215_v62 = vpack.c.bf16 %v1199_v58, %v1198_v57  ;;  %v8469_v53 = vld [vmem:[#allocation2 + $0x40] sm:$0xff] }
 0x151   :  { %v1214_v63 = vpack.c.bf16 %v1149_v60, %v1148_v59  ;;  %v7686_v2 = vunpack.i.h.bf16 %v7684_v56  ;;  %v7685_v3 = vunpack.i.l.bf16 %v7684_v56  ;;  %v7691_v6 = vunpack.i.h.bf16 %v7689_v61 }
 0x152   :  { %6481 = vmatprep.mubr.msk.bf16.mxu0 %vm1338_vm11, %v1215_v62  ;;  %v7690_v8 = vunpack.i.l.bf16 %v7689_v61 }
 0x153   :  { %1400 = vmatmul.mubr.bf16.vlgmr.msra.gmra.mxu0 %v1214_v63  ;;  %v1083_v10 = vsel %vm188_vm0, %v8466_v9, %v7686_v2  ;;  %v1082_v7 = vsel %vm188_vm0, %v8467_v11, %v7685_v3 }
 0x154   :  { %v7694_v4 = vpop.permute.xlu0 %7693  ;;  %v7699_v5 = vpop.permute.xlu1 %7698  ;;  %v1099_v22 = vsel %vm1096_vm4, %v1082_v7, %v7690_v8  ;;  %v1100_v23 = vsel %vm1096_vm4, %v1083_v10, %v7691_v6 }
 0x155   :  { %v7701_v13 = vunpack.i.h.bf16 %v7699_v5  ;;  %v7700_v14 = vunpack.i.l.bf16 %v7699_v5  ;;  %v7696_v15 = vunpack.i.h.bf16 %v7694_v4  ;;  %v7695_v16 = vunpack.i.l.bf16 %v7694_v4 }
 0x157   :  { %v1168_v25 = vsel %vm1164_vm5, %v7696_v15, %v7701_v13  ;;  %v1167_v26 = vsel %vm1164_vm5, %v7695_v16, %v7700_v14 }
 0x158   :  { %v7704_v12 = vpop.permute.xlu0 %7703  ;;  %v7709_v17 = vpop.permute.xlu1 %7708 }
 0x159   :  { %v7706_v18 = vunpack.i.h.bf16 %v7704_v12  ;;  %v7705_v19 = vunpack.i.l.bf16 %v7704_v12  ;;  %v7711_v20 = vunpack.i.h.bf16 %v7709_v17  ;;  %v7710_v21 = vunpack.i.l.bf16 %v7709_v17 }
 0x15b   :  { %v1116_v30 = vsel %vm1113_vm6, %v1099_v22, %v7705_v19  ;;  %v1117_v31 = vsel %vm1113_vm6, %v1100_v23, %v7706_v18  ;;  %v1184_v34 = vsel %vm1181_vm8, %v1167_v26, %v7710_v21  ;;  %v1185_v35 = vsel %vm1181_vm8, %v1168_v25, %v7711_v20 }
 0x15c   :  { %v7714_v24 = vpop.permute.xlu0 %7713  ;;  %v7719_v27 = vpop.permute.xlu1 %7718 }
 0x15d   :  { %v7716_v28 = vunpack.i.h.bf16 %v7714_v24  ;;  %v7715_v29 = vunpack.i.l.bf16 %v7714_v24  ;;  %v7721_v32 = vunpack.i.h.bf16 %v7719_v27  ;;  %v7720_v33 = vunpack.i.l.bf16 %v7719_v27 }
 0x15f   :  { %v1133_v36 = vsel %vm1130_vm7, %v1116_v30, %v7715_v29  ;;  %v1134_v37 = vsel %vm1130_vm7, %v1117_v31, %v7716_v28  ;;  %v1200_v38 = vsel %vm230_vm2, %v1184_v34, %v7720_v33  ;;  %v1201_v39 = vsel %vm230_vm2, %v1185_v35, %v7721_v32  ;;  %v8470_v32 = vld [vmem:[#allocation2 + $0x70] sm:$0xff]  ;;  %v8471_v34 = vld [vmem:[#allocation2 + $0x60] sm:$0xff] }
 0x160   :  { %v7724_v41 = vpop.permute.xlu0 %7723  ;;  %v1150_v42 = vsel %vm1147_vm10, %v1133_v36, %v7695_v16  ;;  %v1151_v1 = vsel %vm1147_vm10, %v1134_v37, %v7696_v15  ;;  %v1217_v43 = vpack.c.bf16 %v1201_v39, %v1200_v38  ;;  %v7729_v44 = vpop.permute.xlu1 %7728 }
 0x161   :  { %v1216_v40 = vpack.c.bf16 %v1151_v1, %v1150_v42  ;;  %v7726_v45 = vunpack.i.h.bf16 %v7724_v41  ;;  %v7725_v46 = vunpack.i.l.bf16 %v7724_v41  ;;  %v7731_v49 = vunpack.i.h.bf16 %v7729_v44 }
 0x162   :  { %6482 = vmatprep.mubr.msk.bf16.mxu0 %vm1338_vm11, %v1217_v43  ;;  %v7730_v50 = vunpack.i.l.bf16 %v7729_v44 }
 0x163   :  { %1408 = vmatmul.mubr.bf16.gmra.mxu0 %v1216_v40  ;;  %v1085_v52 = vsel %vm188_vm0, %v8468_v51, %v7726_v45  ;;  %v1084_v54 = vsel %vm188_vm0, %v8469_v53, %v7725_v46 }
 0x164   :  { %v7734_v47 = vpop.permute.xlu0 %7733  ;;  %v7739_v48 = vpop.permute.xlu1 %7738  ;;  %v1101_v2 = vsel %vm1096_vm4, %v1084_v54, %v7730_v50  ;;  %v1102_v3 = vsel %vm1096_vm4, %v1085_v52, %v7731_v49 }
 0x165   :  { %v7741_v55 = vunpack.i.h.bf16 %v7739_v48  ;;  %v7740_v56 = vunpack.i.l.bf16 %v7739_v48  ;;  %v7736_v57 = vunpack.i.h.bf16 %v7734_v47  ;;  %v7735_v58 = vunpack.i.l.bf16 %v7734_v47 }
 0x167   :  { %v1170_v5 = vsel %vm1164_vm5, %v7736_v57, %v7741_v55  ;;  %v1169_v6 = vsel %vm1164_vm5, %v7735_v58, %v7740_v56 }
 0x168   :  { %v7744_v0 = vpop.permute.xlu0 %7743  ;;  %v7749_v59 = vpop.permute.xlu1 %7748 }
 0x169   :  { %v7746_v60 = vunpack.i.h.bf16 %v7744_v0  ;;  %v7745_v61 = vunpack.i.l.bf16 %v7744_v0  ;;  %v7751_v62 = vunpack.i.h.bf16 %v7749_v59  ;;  %v7750_v63 = vunpack.i.l.bf16 %v7749_v59 }
 0x16b   :  { %v1118_v11 = vsel %vm1113_vm6, %v1101_v2, %v7745_v61  ;;  %v1119_v7 = vsel %vm1113_vm6, %v1102_v3, %v7746_v60  ;;  %v1186_v14 = vsel %vm1181_vm8, %v1169_v6, %v7750_v63  ;;  %v1187_v15 = vsel %vm1181_vm8, %v1170_v5, %v7751_v62  ;;  %v588_v6 = vld [vmem:[#allocation2 + $0xa0] sm:$0xff] }
 0x16c   :  { %v7754_v4 = vpop.permute.xlu0 %7753  ;;  %v7759_v8 = vpop.permute.xlu1 %7758 }
 0x16d   :  { %v7756_v9 = vunpack.i.h.bf16 %v7754_v4  ;;  %v7755_v10 = vunpack.i.l.bf16 %v7754_v4  ;;  %v7761_v12 = vunpack.i.h.bf16 %v7759_v8  ;;  %v7760_v13 = vunpack.i.l.bf16 %v7759_v8 }
 0x16f   :  { %v1135_v16 = vsel %vm1130_vm7, %v1118_v11, %v7755_v10  ;;  %v1136_v17 = vsel %vm1130_vm7, %v1119_v7, %v7756_v9  ;;  %v1202_v18 = vsel %vm230_vm2, %v1186_v14, %v7760_v13  ;;  %v1203_v19 = vsel %vm230_vm2, %v1187_v15, %v7761_v12  ;;  %v8472_v13 = vld [vmem:[#allocation2 + $0xb0] sm:$0xff] }
 0x170   :  { %v7764_v20 = vpop.permute.xlu0 %7763  ;;  %v1152_v21 = vsel %vm1147_vm10, %v1135_v16, %v7735_v58  ;;  %v1153_v22 = vsel %vm1147_vm10, %v1136_v17, %v7736_v57  ;;  %v1219_v23 = vpack.c.bf16 %v1203_v19, %v1202_v18  ;;  %v7769_v24 = vpop.permute.xlu1 %7768 }
 0x171   :  { %v1218_v25 = vpack.c.bf16 %v1153_v22, %v1152_v21  ;;  %v7766_v26 = vunpack.i.h.bf16 %v7764_v20  ;;  %v7765_v27 = vunpack.i.l.bf16 %v7764_v20  ;;  %v7771_v30 = vunpack.i.h.bf16 %v7769_v24 }
 0x172   :  { %6483 = vmatprep.mubr.msk.bf16.mxu0 %vm1338_vm11, %v1219_v23  ;;  %v7770_v31 = vunpack.i.l.bf16 %v7769_v24 }
 0x173   :  { %1416 = vmatmul.mubr.bf16.gmra.mxu0 %v1218_v25  ;;  %v1087_v33 = vsel %vm188_vm0, %v8470_v32, %v7766_v26  ;;  %v1086_v35 = vsel %vm188_vm0, %v8471_v34, %v7765_v27 }
 0x174   :  { %v7774_v28 = vpop.permute.xlu0 %7773  ;;  %v7779_v29 = vpop.permute.xlu1 %7778  ;;  %v1103_v45 = vsel %vm1096_vm4, %v1086_v35, %v7770_v31  ;;  %v1104_v46 = vsel %vm1096_vm4, %v1087_v33, %v7771_v30 }
 0x175   :  { %v7781_v37 = vunpack.i.h.bf16 %v7779_v29  ;;  %v7780_v38 = vunpack.i.l.bf16 %v7779_v29  ;;  %v7776_v39 = vunpack.i.h.bf16 %v7774_v28  ;;  %v7775_v41 = vunpack.i.l.bf16 %v7774_v28 }
 0x177   :  { %v1172_v48 = vsel %vm1164_vm5, %v7776_v39, %v7781_v37  ;;  %v1171_v49 = vsel %vm1164_vm5, %v7775_v41, %v7780_v38 }
 0x178   :  { %v7784_v36 = vpop.permute.xlu0 %7783  ;;  %v7789_v42 = vpop.permute.xlu1 %7788 }
 0x179   :  { %v7786_v1 = vunpack.i.h.bf16 %v7784_v36  ;;  %v7785_v43 = vunpack.i.l.bf16 %v7784_v36  ;;  %v7791_v44 = vunpack.i.h.bf16 %v7789_v42  ;;  %v7790_v40 = vunpack.i.l.bf16 %v7789_v42 }
 0x17b   :  { %v1120_v53 = vsel %vm1113_vm6, %v1103_v45, %v7785_v43  ;;  %v1121_v54 = vsel %vm1113_vm6, %v1104_v46, %v7786_v1  ;;  %v1188_v56 = vsel %vm1181_vm8, %v1171_v49, %v7790_v40  ;;  %v1189_v57 = vsel %vm1181_vm8, %v1172_v48, %v7791_v44 }
 0x17c   :  { %v7794_v47 = vpop.permute.xlu0 %7793  ;;  %v7799_v50 = vpop.permute.xlu1 %7798 }
 0x17d   :  { %v7796_v51 = vunpack.i.h.bf16 %v7794_v47  ;;  %v7795_v52 = vunpack.i.l.bf16 %v7794_v47  ;;  %v7801_v0 = vunpack.i.h.bf16 %v7799_v50  ;;  %v7800_v55 = vunpack.i.l.bf16 %v7799_v50 }
 0x17f   :  { %v1137_v58 = vsel %vm1130_vm7, %v1120_v53, %v7795_v52  ;;  %v1138_v59 = vsel %vm1130_vm7, %v1121_v54, %v7796_v51  ;;  %v1204_v60 = vsel %vm230_vm2, %v1188_v56, %v7800_v55  ;;  %v1205_v61 = vsel %vm230_vm2, %v1189_v57, %v7801_v0  ;;  %v8473_v0 = vld [vmem:[#allocation2 + $0xd0] sm:$0xff]  ;;  %v8474_v56 = vld [vmem:[#allocation2 + $0xc0] sm:$0xff] }
 0x180   :  { %v7804_v62 = vpop.permute.xlu0 %7803  ;;  %v1154_v63 = vsel %vm1147_vm10, %v1137_v58, %v7775_v41  ;;  %v1155_v2 = vsel %vm1147_vm10, %v1138_v59, %v7776_v39  ;;  %v1221_v3 = vpack.c.bf16 %v1205_v61, %v1204_v60  ;;  %v7809_v4 = vpop.permute.xlu1 %7808 }
 0x181   :  { %v1220_v5 = vpack.c.bf16 %v1155_v2, %v1154_v63  ;;  %v7806_v8 = vunpack.i.h.bf16 %v7804_v62  ;;  %v7805_v9 = vunpack.i.l.bf16 %v7804_v62  ;;  %v7811_v7 = vunpack.i.h.bf16 %v7809_v4 }
 0x182   :  { %6484 = vmatprep.mubr.msk.bf16.mxu0 %vm1338_vm11, %v1221_v3  ;;  %v7810_v12 = vunpack.i.l.bf16 %v7809_v4 }
 0x183   :  { %1424 = vmatmul.mubr.bf16.gmra.mxu0 %v1220_v5  ;;  %v1089_v14 = vsel %vm188_vm0, %v8472_v13, %v7806_v8  ;;  %v1088_v15 = vsel %vm188_vm0, %v588_v6, %v7805_v9 }
 0x184   :  { %v7814_v10 = vpop.permute.xlu0 %7813  ;;  %v7819_v11 = vpop.permute.xlu1 %7818  ;;  %v1105_v26 = vsel %vm1096_vm4, %v1088_v15, %v7810_v12  ;;  %v1106_v27 = vsel %vm1096_vm4, %v1089_v14, %v7811_v7 }
 0x185   :  { %v7821_v17 = vunpack.i.h.bf16 %v7819_v11  ;;  %v7820_v18 = vunpack.i.l.bf16 %v7819_v11  ;;  %v7816_v19 = vunpack.i.h.bf16 %v7814_v10  ;;  %v7815_v20 = vunpack.i.l.bf16 %v7814_v10 }
 0x187   :  { %v1174_v29 = vsel %vm1164_vm5, %v7816_v19, %v7821_v17  ;;  %v1173_v30 = vsel %vm1164_vm5, %v7815_v20, %v7820_v18 }
 0x188   :  { %v7824_v16 = vpop.permute.xlu0 %7823  ;;  %v7829_v21 = vpop.permute.xlu1 %7828 }
 0x189   :  { %v7826_v22 = vunpack.i.h.bf16 %v7824_v16  ;;  %v7825_v23 = vunpack.i.l.bf16 %v7824_v16  ;;  %v7831_v24 = vunpack.i.h.bf16 %v7829_v21  ;;  %v7830_v25 = vunpack.i.l.bf16 %v7829_v21 }
 0x18b   :  { %v1122_v34 = vsel %vm1113_vm6, %v1105_v26, %v7825_v23  ;;  %v1123_v35 = vsel %vm1113_vm6, %v1106_v27, %v7826_v22  ;;  %v1190_v38 = vsel %vm1181_vm8, %v1173_v30, %v7830_v25  ;;  %v1191_v39 = vsel %vm1181_vm8, %v1174_v29, %v7831_v24 }
 0x18c   :  { %v7834_v28 = vpop.permute.xlu0 %7833  ;;  %v7839_v31 = vpop.permute.xlu1 %7838 }
 0x18d   :  { %v7836_v32 = vunpack.i.h.bf16 %v7834_v28  ;;  %v7835_v33 = vunpack.i.l.bf16 %v7834_v28  ;;  %v7841_v36 = vunpack.i.h.bf16 %v7839_v31  ;;  %v7840_v37 = vunpack.i.l.bf16 %v7839_v31 }
 0x18f   :  { %v1139_v41 = vsel %vm1130_vm7, %v1122_v34, %v7835_v33  ;;  %v1140_v42 = vsel %vm1130_vm7, %v1123_v35, %v7836_v32  ;;  %v1206_v1 = vsel %vm230_vm2, %v1190_v38, %v7840_v37  ;;  %v1207_v43 = vsel %vm230_vm2, %v1191_v39, %v7841_v36  ;;  %v8475_v36 = vld [vmem:[#allocation2 + $0xf0] sm:$0xff]  ;;  %v8476_v38 = vld [vmem:[#allocation2 + $0xe0] sm:$0xff] }
 0x190   :  { %v7844_v44 = vpop.permute.xlu0 %7843  ;;  %v1156_v40 = vsel %vm1147_vm10, %v1139_v41, %v7815_v20  ;;  %v1157_v45 = vsel %vm1147_vm10, %v1140_v42, %v7816_v19  ;;  %v1223_v46 = vpack.c.bf16 %v1207_v43, %v1206_v1  ;;  %v7849_v47 = vpop.permute.xlu1 %7848 }
 0x191   :  { %v1222_v48 = vpack.c.bf16 %v1157_v45, %v1156_v40  ;;  %v7846_v49 = vunpack.i.h.bf16 %v7844_v44  ;;  %v7845_v50 = vunpack.i.l.bf16 %v7844_v44  ;;  %v7851_v53 = vunpack.i.h.bf16 %v7849_v47 }
 0x192   :  { %6485 = vmatprep.mubr.msk.bf16.mxu0 %vm1338_vm11, %v1223_v46  ;;  %v7850_v54 = vunpack.i.l.bf16 %v7849_v47 }
 0x193   :  { %1432 = vmatmul.mubr.bf16.gmra.mxu0 %v1222_v48  ;;  %v1091_v55 = vsel %vm188_vm0, %v8473_v0, %v7846_v49  ;;  %v1090_v57 = vsel %vm188_vm0, %v8474_v56, %v7845_v50 }
 0x194   :  { %v7854_v51 = vpop.permute.xlu0 %7853  ;;  %v7859_v52 = vpop.permute.xlu1 %7858  ;;  %v1107_v6 = vsel %vm1096_vm4, %v1090_v57, %v7850_v54  ;;  %v1108_v8 = vsel %vm1096_vm4, %v1091_v55, %v7851_v53 }
 0x195   :  { %v7861_v59 = vunpack.i.h.bf16 %v7859_v52  ;;  %v7860_v60 = vunpack.i.l.bf16 %v7859_v52  ;;  %v7856_v61 = vunpack.i.h.bf16 %v7854_v51  ;;  %v7855_v62 = vunpack.i.l.bf16 %v7854_v51 }
 0x197   :  { %v1176_v10 = vsel %vm1164_vm5, %v7856_v61, %v7861_v59  ;;  %v1175_v11 = vsel %vm1164_vm5, %v7855_v62, %v7860_v60 }
 0x198   :  { %v7864_v58 = vpop.permute.xlu0 %7863  ;;  %v7869_v63 = vpop.permute.xlu1 %7868 }
 0x199   :  { %v7866_v2 = vunpack.i.h.bf16 %v7864_v58  ;;  %v7865_v3 = vunpack.i.l.bf16 %v7864_v58  ;;  %v7871_v4 = vunpack.i.h.bf16 %v7869_v63  ;;  %v7870_v5 = vunpack.i.l.bf16 %v7869_v63 }
 0x19b   :  { %v1124_v14 = vsel %vm1113_vm6, %v1107_v6, %v7865_v3  ;;  %v1125_v15 = vsel %vm1113_vm6, %v1108_v8, %v7866_v2  ;;  %v1192_v18 = vsel %vm1181_vm8, %v1175_v11, %v7870_v5  ;;  %v1193_v19 = vsel %vm1181_vm8, %v1176_v10, %v7871_v4  ;;  %v8176_v11 = vld [vmem:[%s11623_s29 + $0x118] sm:$0xff]  }
 0x19c   :  { %v7874_v9 = vpop.permute.xlu0 %7873  ;;  %v7879_v7 = vpop.permute.xlu1 %7878  ;;  %7516 = vmatprep.subr.bf16.mxu0 %v8176_v11 }
 0x19d   :  { %v7876_v12 = vunpack.i.h.bf16 %v7874_v9  ;;  %v7875_v13 = vunpack.i.l.bf16 %v7874_v9  ;;  %v7881_v16 = vunpack.i.h.bf16 %v7879_v7  ;;  %v7880_v17 = vunpack.i.l.bf16 %v7879_v7  ;;  %7517 = vmatpush3.bf16.msra.mxu0 %v8176_v11 }
 0x19f   :  { %v1141_v20 = vsel %vm1130_vm7, %v1124_v14, %v7875_v13  ;;  %v1142_v21 = vsel %vm1130_vm7, %v1125_v15, %v7876_v12  ;;  %v1208_v22 = vsel %vm230_vm2, %v1192_v18, %v7880_v17  ;;  %v1209_v23 = vsel %vm230_vm2, %v1193_v19, %v7881_v16  ;;  %v8177_v15 = vld [vmem:[%s11623_s29 + $0x110] sm:$0xff]  }
 0x1a0   :  { %v7884_v24 = vpop.permute.xlu0 %7883  ;;  %v1158_v25 = vsel %vm1147_vm10, %v1141_v20, %v7855_v62  ;;  %v1159_v26 = vsel %vm1147_vm10, %v1142_v21, %v7856_v61  ;;  %v1225_v27 = vpack.c.bf16 %v1209_v23, %v1208_v22  ;;  %v7889_v28 = vpop.permute.xlu1 %7888  ;;  %v8477_v18 = vld [vmem:[#allocation2 + $0x110] sm:$0xff]  ;;  %v8478_v20 = vld [vmem:[#allocation2 + $0x100] sm:$0xff]  ;;  %7518 = vmatprep.subr.bf16.mxu0 %v8177_v15 }
 0x1a1   :  { %v1224_v29 = vpack.c.bf16 %v1159_v26, %v1158_v25  ;;  %v7886_v30 = vunpack.i.h.bf16 %v7884_v24  ;;  %v7885_v31 = vunpack.i.l.bf16 %v7884_v24  ;;  %v7891_v34 = vunpack.i.h.bf16 %v7889_v28  ;;  %7519 = vmatpush3.bf16.msra.mxu0 %v8177_v15  ;;  %v8193_v15 = vld [vmem:[%s11623_s29 + $0x8] sm:$0xff]  }
 0x1a2   :  { %6486 = vmatprep.mubr.msk.bf16.mxu0 %vm1338_vm11, %v1225_v27  ;;  %v7890_v35 = vunpack.i.l.bf16 %v7889_v28 }
 0x1a3   :  { %1440 = vmatmul.mubr.bf16.gmra.mxu0 %v1224_v29  ;;  %v1093_v37 = vsel %vm188_vm0, %v8475_v36, %v7886_v30  ;;  %v1092_v39 = vsel %vm188_vm0, %v8476_v38, %v7885_v31 }
 0x1a4   :  { %v7894_v32 = vpop.permute.xlu0 %7893  ;;  %v7899_v33 = vpop.permute.xlu1 %7898  ;;  %v1109_v49 = vsel %vm1096_vm4, %v1092_v39, %v7890_v35  ;;  %v1110_v50 = vsel %vm1096_vm4, %v1093_v37, %v7891_v34 }
 0x1a5   :  { %v7901_v42 = vunpack.i.h.bf16 %v7899_v33  ;;  %v7900_v1 = vunpack.i.l.bf16 %v7899_v33  ;;  %v7896_v43 = vunpack.i.h.bf16 %v7894_v32  ;;  %v7895_v44 = vunpack.i.l.bf16 %v7894_v32  ;;  %v8178_v32 = vld [vmem:[%s11623_s29 + $0x108] sm:$0xff]  }
 0x1a6   :  { %7520 = vmatprep.subr.bf16.mxu0 %v8178_v32 }
 0x1a7   :  { %v1178_v52 = vsel %vm1164_vm5, %v7896_v43, %v7901_v42  ;;  %v1177_v53 = vsel %vm1164_vm5, %v7895_v44, %v7900_v1  ;;  %7521 = vmatpush3.bf16.msra.mxu0 %v8178_v32 }
 0x1a8   :  { %v7904_v41 = vpop.permute.xlu0 %7903  ;;  %v7909_v40 = vpop.permute.xlu1 %7908 }
 0x1a9   :  { %v7906_v45 = vunpack.i.h.bf16 %v7904_v41  ;;  %v7905_v46 = vunpack.i.l.bf16 %v7904_v41  ;;  %v7911_v47 = vunpack.i.h.bf16 %v7909_v40  ;;  %v7910_v48 = vunpack.i.l.bf16 %v7909_v40 }
 0x1ab   :  { %v1126_v56 = vsel %vm1113_vm6, %v1109_v49, %v7905_v46  ;;  %v1127_v57 = vsel %vm1113_vm6, %v1110_v50, %v7906_v45  ;;  %v1194_v60 = vsel %vm1181_vm8, %v1177_v53, %v7910_v48  ;;  %v1195_v61 = vsel %vm1181_vm8, %v1178_v52, %v7911_v47  ;;  %v8179_v48 = vld [vmem:[%s11623_s29 + $0x100] sm:$0xff]  }
 0x1ac   :  { %v7914_v51 = vpop.permute.xlu0 %7913  ;;  %v7919_v54 = vpop.permute.xlu1 %7918  ;;  %7522 = vmatprep.subr.bf16.mxu0 %v8179_v48 }
 0x1ad   :  { %v7916_v0 = vunpack.i.h.bf16 %v7914_v51  ;;  %v7915_v55 = vunpack.i.l.bf16 %v7914_v51  ;;  %v7921_v58 = vunpack.i.h.bf16 %v7919_v54  ;;  %v7920_v59 = vunpack.i.l.bf16 %v7919_v54  ;;  %7523 = vmatpush3.bf16.msra.mxu0 %v8179_v48 }
 0x1af   :  { %v1143_v62 = vsel %vm1130_vm7, %v1126_v56, %v7915_v55  ;;  %v1144_v63 = vsel %vm1130_vm7, %v1127_v57, %v7916_v0  ;;  %v1210_v2 = vsel %vm230_vm2, %v1194_v60, %v7920_v59  ;;  %v1211_v3 = vsel %vm230_vm2, %v1195_v61, %v7921_v58  ;;  %v8180_v0 = vld [vmem:[%s11623_s29 + $0x78] sm:$0xff]   ;;  %v8182_v56 = vld [vmem:[%s11623_s29 + $0x70] sm:$0xff]   ;;  %v8184_v58 = vld [vmem:[%s11623_s29 + $0x68] sm:$0xff]  }
 0x1b0   :  { %v7924_v4 = vpop.permute.xlu0 %7923  ;;  %v1160_v5 = vsel %vm1147_vm10, %v1143_v62, %v7895_v44  ;;  %v1161_v6 = vsel %vm1147_vm10, %v1144_v63, %v7896_v43  ;;  %v1227_v8 = vpack.c.bf16 %v1211_v3, %v1210_v2  ;;  %v7929_v9 = vpop.permute.xlu1 %7928  ;;  %v8181_v55 = vld [vmem:[%s11623_s29 + $0x38] sm:$0xff]   ;;  %6802 = vmatprep.subr.bf16.mxu1 %v8180_v0  ;;  %v8183_v57 = vld [vmem:[%s11623_s29 + $0x30] sm:$0xff]   ;;  %v8185_v59 = vld [vmem:[%s11623_s29 + $0x28] sm:$0xff]  }
 0x1b1   :  { %v1226_v10 = vpack.c.bf16 %v1161_v6, %v1160_v5  ;;  %v7926_v7 = vunpack.i.h.bf16 %v7924_v4  ;;  %v7925_v12 = vunpack.i.l.bf16 %v7924_v4  ;;  %v7931_v16 = vunpack.i.h.bf16 %v7929_v9  ;;  %6803 = vmatpush3.bf16.msra.mxu1 %v8181_v55  ;;  %v8186_v60 = vld [vmem:[%s11623_s29 + $0x60] sm:$0xff]   ;;  %v8188_v62 = vld [vmem:[%s11623_s29 + $0x58] sm:$0xff]   ;;  %v9682_v2 = vld [vmem:[#allocation14] ss:$0 sm:$0xff] }
 0x1b2   :  { %6487 = vmatprep.mubr.msk.bf16.mxu0 %vm1338_vm11, %v1227_v8  ;;  %v7930_v17 = vunpack.i.l.bf16 %v7929_v9  ;;  %6804 = vmatprep.subr.bf16.mxu1 %v8182_v56  ;;  %v8187_v61 = vld [vmem:[%s11623_s29 + $0x20] sm:$0xff]   ;;  %v8189_v63 = vld [vmem:[%s11623_s29 + $0x18] sm:$0xff]   ;;  %v9684_v4 = vld [vmem:[#allocation16] ss:$0 sm:$0xff] }
 0x1b3   :  { %1448 = vmatmul.mubr.bf16.gmra.mxu0 %v1226_v10  ;;  %v1095_v19 = vsel %vm188_vm0, %v8477_v18, %v7926_v7  ;;  %v1094_v21 = vsel %vm188_vm0, %v8478_v20, %v7925_v12  ;;  %v8190_v5 = vld [vmem:[%s11623_s29 + $0x50] sm:$0xff]   ;;  %v8194_v18 = vld [vmem:[%s11623_s29 + $0x40] sm:$0xff]  }
 0x1b4   :  { %v7934_v13 = vpop.permute.xlu0 %7933  ;;  %v7939_v14 = vpop.permute.xlu1 %7938  ;;  %v1111_v33 = vsel %vm1096_vm4, %v1094_v21, %v7930_v17  ;;  %v1112_v34 = vsel %vm1096_vm4, %v1095_v19, %v7931_v16  ;;  %v8191_v8 = vld [vmem:[%s11623_s29 + $0x10] sm:$0xff]   ;;  %v8195_v19 = vld [vmem:[%s11623_s29] sm:$0xff]  }
 0x1b5   :  { %v7941_v23 = vunpack.i.h.bf16 %v7939_v14  ;;  %v7940_v24 = vunpack.i.l.bf16 %v7939_v14  ;;  %v7936_v25 = vunpack.i.h.bf16 %v7934_v13  ;;  %v7935_v26 = vunpack.i.l.bf16 %v7934_v13  ;;  %6805 = vmatpush3.bf16.msra.mxu1 %v8183_v57  ;;  %v8192_v13 = vld [vmem:[%s11623_s29 + $0x48] sm:$0xff]  }
 0x1b6   :  { %6806 = vmatprep.subr.bf16.mxu1 %v8184_v58  ;;  %v1563_v20 = vld [vmem:[#allocation3 + $0x1] sm:$0xff] }
 0x1b7   :  { %v1180_v36 = vsel %vm1164_vm5, %v7936_v25, %v7941_v23  ;;  %v1179_v37 = vsel %vm1164_vm5, %v7935_v26, %v7940_v24 }
 0x1b8   :  { %v7944_v22 = vpop.permute.xlu0 %7943  ;;  %v7949_v27 = vpop.permute.xlu1 %7948 }
 0x1b9   :  { %v7946_v28 = vunpack.i.h.bf16 %v7944_v22  ;;  %v7945_v29 = vunpack.i.l.bf16 %v7944_v22  ;;  %v7951_v30 = vunpack.i.h.bf16 %v7949_v27  ;;  %v7950_v31 = vunpack.i.l.bf16 %v7949_v27  ;;  %6807 = vmatpush3.bf16.msra.mxu1 %v8185_v59 }
 0x1ba   :  { %6808 = vmatprep.subr.bf16.mxu1 %v8186_v60 }
 0x1bb   :  { %v1128_v42 = vsel %vm1113_vm6, %v1111_v33, %v7945_v29  ;;  %v1129_v1 = vsel %vm1113_vm6, %v1112_v34, %v7946_v28  ;;  %v1196_v40 = vsel %vm1181_vm8, %v1179_v37, %v7950_v31  ;;  %v1197_v45 = vsel %vm1181_vm8, %v1180_v36, %v7951_v30 }
 0x1bc   :  { %v7954_v35 = vpop.permute.xlu0 %7953  ;;  %v7959_v38 = vpop.permute.xlu1 %7958 }
 0x1bd   :  { %v7956_v39 = vunpack.i.h.bf16 %v7954_v35  ;;  %v7955_v41 = vunpack.i.l.bf16 %v7954_v35  ;;  %v7961_v43 = vunpack.i.h.bf16 %v7959_v38  ;;  %v7960_v44 = vunpack.i.l.bf16 %v7959_v38  ;;  %6809 = vmatpush3.bf16.msra.mxu1 %v8187_v61 }
 0x1be   :  { %6810 = vmatprep.subr.bf16.mxu1 %v8188_v62 }
 0x1bf   :  { %v1145_v46 = vsel %vm1130_vm7, %v1128_v42, %v7955_v41  ;;  %v1146_v47 = vsel %vm1130_vm7, %v1129_v1, %v7956_v39  ;;  %v1212_v49 = vsel %vm230_vm2, %v1196_v40, %v7960_v44  ;;  %v1213_v50 = vsel %vm230_vm2, %v1197_v45, %v7961_v43 }
 0x1c0   :  { %v1162_v51 = vsel %vm1147_vm10, %v1145_v46, %v7935_v26  ;;  %v1163_v52 = vsel %vm1147_vm10, %v1146_v47, %v7936_v25  ;;  %v1229_v53 = vpack.c.bf16 %v1213_v50, %v1212_v49 }
 0x1c1   :  { %v1228_v54 = vpack.c.bf16 %v1163_v52, %v1162_v51  ;;  %6811 = vmatpush3.bf16.msra.mxu1 %v8189_v63 }
 0x1c2   :  { %6488 = vmatprep.mubr.msk.bf16.mxu0 %vm1338_vm11, %v1229_v53  ;;  %6812 = vmatprep.subr.bf16.mxu1 %v8190_v5 }
 0x1c3   :  { %1456 = vmatmul.mubr.bf16.gmra.mxu0 %v1228_v54 }
 0x1c5   :  { %6813 = vmatpush3.bf16.msra.mxu1 %v8191_v8 }
 0x1c6   :  { %6814 = vmatprep.subr.bf16.mxu1 %v8192_v13 }
 0x1c9   :  { %6815 = vmatpush3.bf16.msra.mxu1 %v8193_v15 }
 0x1ca   :  { %6816 = vmatprep.subr.bf16.mxu1 %v8194_v18 }
 0x1cd   :  { %6817 = vmatpush3.bf16.msra.mxu1 %v8195_v19  ;;  %v1592_v19 = vld [vmem:[#allocation3 + $0x92] sm:$0xff] }
 0x213   :  { %v1401_v3 = vpop.f32.mrf.mxu0 }
 0x214   :  { %v1471_v6 = vmul.f32 %v9682_v2, %v1401_v3 }
 0x215   :  { %v1403_v9 = vpop.f32.mrf.mxu0 }
 0x216   :  { %v1494_v10 = vadd.f32 %v9684_v4, %v1471_v6 }
 0x217   :  { %v1404_v11 = vpop.f32.mrf.mxu0 }
 0x218   :  { %v1510_v7 = vmax.f32 %v1494_v10, 0.0  ;;  %v1472_v12 = vmul.f32 %v9682_v2, %v1404_v11 }
 0x219   :  { %v1406_v14 = vpop.f32.mrf.mxu0 }
 0x21a   :  { %1527 = vst.msk [vmem:[#allocation3 + $0x11] sm:$0xff] %vm230_vm2, %v1510_v7  ;;  %v1495_v16 = vadd.f32 %v9684_v4, %v1472_v12 }
 0x21c   :  { %v1511_v17 = vmax.f32 %v1495_v16, 0.0 }
 0x21e   :  { %1528 = vst.msk [vmem:[#allocation3 + $0x21] sm:$0xff] %vm230_vm2, %v1511_v17 }
 0x221   :  { %v9710_v21 = vld [vmem:[#allocation3 + $0x11] sm:$0xff] }
 0x222   :  { %v7967_v22 = vpack.i.bf16 %v9710_v21, %v1563_v20  ;;  %v9715_v26 = vld [vmem:[#allocation3 + $0x10] sm:$0xff] }
 0x223   :  { %v1409_v23 = vpop.f32.mrf.mxu0 }
 0x224   :  { %v1473_v24 = vmul.f32 %v9682_v2, %v1409_v23  ;;  %7968 = vrot.lane.b32.xlu1 %v7967_v22, %s8720_s8 }
 0x225   :  { %v1411_v25 = vpop.f32.mrf.mxu0  ;;  %v9717_v27 = vld [vmem:[#allocation3 + $0x20] sm:$0xff] }
 0x226   :  { %v1496_v28 = vadd.f32 %v9684_v4, %v1473_v24  ;;  %v7962_v29 = vpack.i.bf16 %v9717_v27, %v9715_v26  ;;  %v9727_v36 = vld [vmem:[#allocation3 + $0x22] sm:$0xff] }
 0x227   :  { %v1412_v30 = vpop.f32.mrf.mxu0  ;;  %v9731_v38 = vld [vmem:[#allocation3 + $0x21] sm:$0xff] }
 0x228   :  { %v1512_v31 = vmax.f32 %v1496_v28, 0.0  ;;  %v1474_v32 = vmul.f32 %v9682_v2, %v1412_v30  ;;  %7963 = vrot.lane.b32.xlu0 %v7962_v29, %s8720_s8 }
 0x229   :  { %v1414_v33 = vpop.f32.mrf.mxu0 }
 0x22a   :  { %1529 = vst.msk [vmem:[#allocation3 + $0x31] sm:$0xff] %vm230_vm2, %v1512_v31  ;;  %v1497_v34 = vadd.f32 %v9684_v4, %v1474_v32  ;;  %v8196_v32 = vld [vmem:[%s11623_s29 + $0xf8] sm:$0xff]  }
 0x22b   :  { %6866 = vmatprep.subr.bf16.mxu1 %v8196_v32 }
 0x22c   :  { %v1513_v35 = vmax.f32 %v1497_v34, 0.0 }
 0x22e   :  { %1530 = vst.msk [vmem:[#allocation3 + $0x41] sm:$0xff] %vm230_vm2, %v1513_v35 }
 0x231   :  { %v9729_v37 = vld [vmem:[#allocation3 + $0x32] sm:$0xff] }
 0x232   :  { %v9733_v39 = vld [vmem:[#allocation3 + $0x31] sm:$0xff]  ;;  %v1867_v41 = vpack.c.bf16 %v9729_v37, %v9727_v36 }
 0x233   :  { %v7977_v42 = vpack.i.bf16 %v9733_v39, %v9731_v38  ;;  %v1417_v1 = vpop.f32.mrf.mxu0  ;;  %v9742_v40 = vld [vmem:[#allocation3 + $0x30] sm:$0xff] }
 0x234   :  { %v1475_v43 = vmul.f32 %v9682_v2, %v1417_v1  ;;  %7524 = vmatprep.mubr.msk.bf16.mxu0 %vm230_vm2, %v1867_v41  ;;  %v1573_v1 = vld [vmem:[#allocation3 + $0xa1] sm:$0xff] }
 0x235   :  { %7978 = vrot.lane.b32.xlu1 %v7977_v42, %s8720_s8  ;;  %v1419_v44 = vpop.f32.mrf.mxu0  ;;  %v9744_v45 = vld [vmem:[#allocation3 + $0x40] sm:$0xff] }
 0x236   :  { %v1498_v46 = vadd.f32 %v9684_v4, %v1475_v43  ;;  %v7972_v47 = vpack.i.bf16 %v9744_v45, %v9742_v40  ;;  %v9754_v54 = vld [vmem:[#allocation3 + $0x42] sm:$0xff] }
 0x237   :  { %v1420_v48 = vpop.f32.mrf.mxu0  ;;  %v9758_v55 = vld [vmem:[#allocation3 + $0x41] sm:$0xff] }
 0x238   :  { %v1514_v49 = vmax.f32 %v1498_v46, 0.0  ;;  %v1476_v50 = vmul.f32 %v9682_v2, %v1420_v48  ;;  %7973 = vrot.lane.b32.xlu0 %v7972_v47, %s8720_s8 }
 0x239   :  { %v1422_v51 = vpop.f32.mrf.mxu0 }
 0x23a   :  { %1531 = vst.msk [vmem:[#allocation3 + $0x51] sm:$0xff] %vm230_vm2, %v1514_v49  ;;  %v1499_v52 = vadd.f32 %v9684_v4, %v1476_v50 }
 0x23c   :  { %v1515_v53 = vmax.f32 %v1499_v52, 0.0 }
 0x23e   :  { %1532 = vst.msk [vmem:[#allocation3 + $0x61] sm:$0xff] %vm230_vm2, %v1515_v53 }
 0x241   :  { %v9756_v0 = vld [vmem:[#allocation3 + $0x52] sm:$0xff] }
 0x242   :  { %v9760_v56 = vld [vmem:[#allocation3 + $0x51] sm:$0xff]  ;;  %v1871_v57 = vpack.c.bf16 %v9756_v0, %v9754_v54 }
 0x243   :  { %v7987_v58 = vpack.i.bf16 %v9760_v56, %v9758_v55  ;;  %v1425_v59 = vpop.f32.mrf.mxu0  ;;  %v9769_v62 = vld [vmem:[#allocation3 + $0x50] sm:$0xff] }
 0x244   :  { %v1477_v60 = vmul.f32 %v9682_v2, %v1425_v59  ;;  %7525 = vmatmul.mubr.msk.bf16.vlgmr.msra.gmra.mxu0 %vm230_vm2, %v1871_v57 }
 0x245   :  { %7988 = vrot.lane.b32.xlu1 %v7987_v58, %s8720_s8  ;;  %v1427_v61 = vpop.f32.mrf.mxu0  ;;  %v9771_v63 = vld [vmem:[#allocation3 + $0x60] sm:$0xff] }
 0x246   :  { %v1500_v3 = vadd.f32 %v9684_v4, %v1477_v60  ;;  %v7982_v5 = vpack.i.bf16 %v9771_v63, %v9769_v62  ;;  %v9781_v12 = vld [vmem:[#allocation3 + $0x62] sm:$0xff] }
 0x247   :  { %v1428_v6 = vpop.f32.mrf.mxu0  ;;  %v9785_v14 = vld [vmem:[#allocation3 + $0x61] sm:$0xff] }
 0x248   :  { %v1516_v8 = vmax.f32 %v1500_v3, 0.0  ;;  %v1478_v9 = vmul.f32 %v9682_v2, %v1428_v6  ;;  %7983 = vrot.lane.b32.xlu0 %v7982_v5, %s8720_s8 }
 0x249   :  { %v1430_v10 = vpop.f32.mrf.mxu0 }
 0x24a   :  { %1533 = vst.msk [vmem:[#allocation3 + $0x71] sm:$0xff] %vm230_vm2, %v1516_v8  ;;  %v1501_v11 = vadd.f32 %v9684_v4, %v1478_v9 }
 0x24c   :  { %v1517_v7 = vmax.f32 %v1501_v11, 0.0 }
 0x24e   :  { %1534 = vst.msk [vmem:[#allocation3 + $0x81] sm:$0xff] %vm230_vm2, %v1517_v7 }
 0x251   :  { %v9783_v13 = vld [vmem:[#allocation3 + $0x72] sm:$0xff] }
 0x252   :  { %v9787_v15 = vld [vmem:[#allocation3 + $0x71] sm:$0xff]  ;;  %v1875_v16 = vpack.c.bf16 %v9783_v13, %v9781_v12 }
 0x253   :  { %v7997_v17 = vpack.i.bf16 %v9787_v15, %v9785_v14  ;;  %v1433_v18 = vpop.f32.mrf.mxu0  ;;  %v9798_v24 = vld [vmem:[#allocation3 + $0x70] sm:$0xff] }
 0x254   :  { %v1479_v20 = vmul.f32 %v9682_v2, %v1433_v18  ;;  %7528 = vmatprep.mubr.msk.bf16.mxu0 %vm230_vm2, %v1875_v16 }
 0x255   :  { %7998 = vrot.lane.b32.xlu1 %v7997_v17, %s8720_s8  ;;  %v1435_v22 = vpop.f32.mrf.mxu0  ;;  %v9796_v23 = vld [vmem:[#allocation3 + $0x82] sm:$0xff] }
 0x256   :  { %v9800_v25 = vld [vmem:[#allocation3 + $0x80] sm:$0xff]  ;;  %v1502_v28 = vadd.f32 %v9684_v4, %v1479_v20  ;;  %v1879_v29 = vpack.c.bf16 %v1592_v19, %v9796_v23 }
 0x257   :  { %v7992_v30 = vpack.i.bf16 %v9800_v25, %v9798_v24  ;;  %v1436_v31 = vpop.f32.mrf.mxu0 }
 0x258   :  { %v1518_v33 = vmax.f32 %v1502_v28, 0.0  ;;  %v1480_v34 = vmul.f32 %v9682_v2, %v1436_v31  ;;  %7529 = vmatmul.mubr.msk.bf16.gmra.mxu0 %vm230_vm2, %v1879_v29 }
 0x259   :  { %7993 = vrot.lane.b32.xlu0 %v7992_v30, %s8720_s8  ;;  %v1438_v35 = vpop.f32.mrf.mxu0 }
 0x25a   :  { %1535 = vst.msk [vmem:[#allocation3 + $0xb1] sm:$0xff] %vm230_vm2, %v1518_v33  ;;  %v1503_v41 = vadd.f32 %v9684_v4, %v1480_v34 }
 0x25c   :  { %v1519_v42 = vmax.f32 %v1503_v41, 0.0 }
 0x25e   :  { %1536 = vst.msk [vmem:[#allocation3 + $0xc1] sm:$0xff] %vm230_vm2, %v1519_v42 }
 0x261   :  { %v9815_v43 = vld [vmem:[#allocation3 + $0xb1] sm:$0xff] }
 0x262   :  { %v8007_v44 = vpack.i.bf16 %v9815_v43, %v1573_v1  ;;  %v9820_v49 = vld [vmem:[#allocation3 + $0xb0] sm:$0xff] }
 0x263   :  { %v1441_v46 = vpop.f32.mrf.mxu0 }
 0x264   :  { %v1481_v47 = vmul.f32 %v9682_v2, %v1441_v46  ;;  %8008 = vrot.lane.b32.xlu1 %v8007_v44, %s8720_s8 }
 0x265   :  { %v1443_v48 = vpop.f32.mrf.mxu0  ;;  %v9822_v50 = vld [vmem:[#allocation3 + $0xc0] sm:$0xff] }
 0x266   :  { %v1504_v51 = vadd.f32 %v9684_v4, %v1481_v47  ;;  %v8002_v52 = vpack.i.bf16 %v9822_v50, %v9820_v49  ;;  %v9832_v3 = vld [vmem:[#allocation3 + $0xc2] sm:$0xff] }
 0x267   :  { %v1444_v53 = vpop.f32.mrf.mxu0  ;;  %v9836_v6 = vld [vmem:[#allocation3 + $0xc1] sm:$0xff] }
 0x268   :  { %v1520_v57 = vmax.f32 %v1504_v51, 0.0  ;;  %v1482_v58 = vmul.f32 %v9682_v2, %v1444_v53  ;;  %8003 = vrot.lane.b32.xlu0 %v8002_v52, %s8720_s8 }
 0x269   :  { %v1446_v59 = vpop.f32.mrf.mxu0 }
 0x26a   :  { %1537 = vst.msk [vmem:[#allocation3 + $0xd1] sm:$0xff] %vm230_vm2, %v1520_v57  ;;  %v1505_v60 = vadd.f32 %v9684_v4, %v1482_v58 }
 0x26c   :  { %v1521_v61 = vmax.f32 %v1505_v60, 0.0 }
 0x26e   :  { %1538 = vst.msk [vmem:[#allocation3 + $0xe1] sm:$0xff] %vm230_vm2, %v1521_v61 }
 0x271   :  { %v9834_v5 = vld [vmem:[#allocation3 + $0xd2] sm:$0xff] }
 0x272   :  { %v9838_v8 = vld [vmem:[#allocation3 + $0xd1] sm:$0xff]  ;;  %v1884_v9 = vpack.c.bf16 %v9834_v5, %v9832_v3 }
 0x273   :  { %v8017_v10 = vpack.i.bf16 %v9838_v8, %v9836_v6  ;;  %v1449_v11 = vpop.f32.mrf.mxu0  ;;  %v9847_v17 = vld [vmem:[#allocation3 + $0xd0] sm:$0xff] }
 0x274   :  { %v1483_v7 = vmul.f32 %v9682_v2, %v1449_v11  ;;  %7532 = vmatprep.mubr.msk.bf16.mxu0 %vm230_vm2, %v1884_v9 }
 0x275   :  { %8018 = vrot.lane.b32.xlu1 %v8017_v10, %s8720_s8  ;;  %v1451_v16 = vpop.f32.mrf.mxu0  ;;  %v9849_v18 = vld [vmem:[#allocation3 + $0xe0] sm:$0xff] }
 0x276   :  { %v1506_v19 = vadd.f32 %v9684_v4, %v1483_v7  ;;  %v8012_v20 = vpack.i.bf16 %v9849_v18, %v9847_v17  ;;  %v9859_v33 = vld [vmem:[#allocation3 + $0xe2] sm:$0xff] }
 0x277   :  { %v1452_v22 = vpop.f32.mrf.mxu0  ;;  %v9863_v35 = vld [vmem:[#allocation3 + $0xe1] sm:$0xff] }
 0x278   :  { %v1522_v28 = vmax.f32 %v1506_v19, 0.0  ;;  %v1484_v29 = vmul.f32 %v9682_v2, %v1452_v22  ;;  %8013 = vrot.lane.b32.xlu0 %v8012_v20, %s8720_s8  ;;  %v1602_v20 = vld [vmem:[#allocation3 + $0x132] sm:$0xff] }
 0x279   :  { %v1454_v30 = vpop.f32.mrf.mxu0 }
 0x27a   :  { %1539 = vst.msk [vmem:[#allocation3 + $0xf1] sm:$0xff] %vm230_vm2, %v1522_v28  ;;  %v1507_v31 = vadd.f32 %v9684_v4, %v1484_v29  ;;  %v8047_v30 = vpack.i.bf16 %v9754_v54, %v9729_v37 }
 0x27c   :  { %v1523_v32 = vmax.f32 %v1507_v31, 0.0 }
 0x27e   :  { %1540 = vst.msk [vmem:[#allocation3 + $0x101] sm:$0xff] %vm230_vm2, %v1523_v32 }
 0x281   :  { %v9861_v34 = vld [vmem:[#allocation3 + $0xf2] sm:$0xff] }
 0x282   :  { %v9865_v41 = vld [vmem:[#allocation3 + $0xf1] sm:$0xff]  ;;  %v1888_v42 = vpack.c.bf16 %v9861_v34, %v9859_v33 }
 0x283   :  { %v8027_v1 = vpack.i.bf16 %v9865_v41, %v9863_v35  ;;  %v1457_v44 = vpop.f32.mrf.mxu0  ;;  %v9874_v48 = vld [vmem:[#allocation3 + $0xf0] sm:$0xff] }
 0x284   :  { %v1485_v46 = vmul.f32 %v9682_v2, %v1457_v44  ;;  %7533 = vmatmul.mubr.msk.bf16.gmra.mxu0 %vm230_vm2, %v1888_v42  ;;  %v9908_v42 = vld [vmem:[#allocation3 + $0x81] sm:$0xff] }
 0x285   :  { %8028 = vrot.lane.b32.xlu1 %v8027_v1, %s8720_s8  ;;  %v1459_v47 = vpop.f32.mrf.mxu0  ;;  %v9876_v51 = vld [vmem:[#allocation3 + $0x100] sm:$0xff]  ;;  %v1572_v1 = vld [vmem:[#allocation3 + $0x91] sm:$0xff] }
 0x286   :  { %v1508_v52 = vadd.f32 %v9684_v4, %v1485_v46  ;;  %v8022_v53 = vpack.i.bf16 %v9876_v51, %v9874_v48  ;;  %v9886_v10 = vld [vmem:[#allocation3 + $0x102] sm:$0xff] }
 0x287   :  { %v1460_v57 = vpop.f32.mrf.mxu0  ;;  %v9890_v7 = vld [vmem:[#allocation3 + $0x101] sm:$0xff] }
 0x288   :  { %v1524_v58 = vmax.f32 %v1508_v52, 0.0  ;;  %v1486_v59 = vmul.f32 %v9682_v2, %v1460_v57  ;;  %8023 = vrot.lane.b32.xlu0 %v8022_v53, %s8720_s8  ;;  %v1543_v47 = vld [vmem:[#allocation3] sm:$0xff]  ;;  %v8057_v53 = vpack.i.bf16 %v1572_v1, %v9908_v42  ;;  %v1584_v57 = vld [vmem:[#allocation3 + $0x12] sm:$0xff]  ;;  %v8052_v1 = vpack.i.bf16 %v9781_v12, %v9756_v0 }
 0x289   :  { %v1462_v60 = vpop.f32.mrf.mxu0 }
 0x28a   :  { %1541 = vst.msk [vmem:[#allocation3 + $0x111] sm:$0xff] %vm230_vm2, %v1524_v58  ;;  %v1509_v61 = vadd.f32 %v9684_v4, %v1486_v59  ;;  %v1583_v58 = vld [vmem:[#allocation3 + $0x2] sm:$0xff] }
 0x28c   :  { %v1525_v9 = vmax.f32 %v1509_v61, 0.0  ;;  %v8042_v61 = vpack.i.bf16 %v9727_v36, %v1584_v57 }
 0x28e   :  { %1542 = vst.msk [vmem:[#allocation3 + $0x121] sm:$0xff] %vm230_vm2, %v1525_v9 }
 0x291   :  { %v9888_v11 = vld [vmem:[#allocation3 + $0x112] sm:$0xff] }
 0x292   :  { %v9892_v16 = vld [vmem:[#allocation3 + $0x111] sm:$0xff]  ;;  %v1892_v2 = vpack.c.bf16 %v9888_v11, %v9886_v10 }
 0x293   :  { %v8037_v19 = vpack.i.bf16 %v9892_v16, %v9890_v7  ;;  %v9900_v22 = vld [vmem:[#allocation3 + $0x110] sm:$0xff] }
 0x294   :  { %7536 = vmatprep.mubr.msk.bf16.mxu0 %vm230_vm2, %v1892_v2 }
 0x295   :  { %8038 = vrot.lane.b32.xlu1 %v8037_v19, %s8720_s8  ;;  %v1601_v4 = vld [vmem:[#allocation3 + $0x122] sm:$0xff] }
 0x296   :  { %v9902_v28 = vld [vmem:[#allocation3 + $0x120] sm:$0xff]  ;;  %v7969_v29 = vpop.permute.xlu1 %7968  ;;  %v1896_v31 = vpack.c.bf16 %v1602_v20, %v1601_v4 }
 0x297   :  { %v8032_v32 = vpack.i.bf16 %v9902_v28, %v9900_v22  ;;  %v7971_v44 = vunpack.i.h.bf16 %v7969_v29  ;;  %v7970_v46 = vunpack.i.l.bf16 %v7969_v29  ;;  %v9922_v29 = vld [vmem:[#allocation3 + $0xb2] sm:$0xff] }
 0x298   :  { %7537 = vmatmul.mubr.msk.bf16.gmra.mxu0 %vm230_vm2, %v1896_v31  ;;  %v8067_v31 = vpack.i.bf16 %v9832_v3, %v9922_v29 }
 0x299   :  { %8048 = vrot.lane.b32.xlu1 %v8047_v30, %s8720_s8  ;;  %8033 = vrot.lane.b32.xlu0 %v8032_v32, %s8720_s8  ;;  %v1811_v9 = vsel %vm230_vm2, %v1543_v47, %v7970_v46  ;;  %v1812_v2 = vsel %vm230_vm2, %v9715_v26, %v7971_v44  ;;  %v8197_v32 = vld [vmem:[%s11623_s29 + $0xb8] sm:$0xff]   ;;  %v8198_v44 = vld [vmem:[%s11623_s29 + $0xf0] sm:$0xff]   ;;  %v8077_v46 = vpack.i.bf16 %v9886_v10, %v9861_v34 }
 0x29a   :  { %v7964_v52 = vpop.permute.xlu0 %7963  ;;  %v1863_v26 = vpack.c.bf16 %v1812_v2, %v1811_v9  ;;  %v8199_v47 = vld [vmem:[%s11623_s29 + $0xb0] sm:$0xff]   ;;  %v9958_v2 = vld [vmem:[#allocation3 + $0x121] sm:$0xff] }
 0x29b   :  { %v7966_v59 = vunpack.i.h.bf16 %v7964_v52  ;;  %v7965_v60 = vunpack.i.l.bf16 %v7964_v52  ;;  %v8062_v52 = vpack.i.bf16 %v9796_v23, %v9783_v13  ;;  %v8072_v23 = vpack.i.bf16 %v9859_v33, %v9834_v5 }
 0x29d   :  { %8058 = vrot.lane.b32.xlu1 %v8057_v53, %s8720_s8  ;;  %8043 = vrot.lane.b32.xlu0 %v8042_v61, %s8720_s8  ;;  %v1827_v19 = vsel %vm230_vm2, %v1583_v58, %v7965_v60  ;;  %v1828_v20 = vsel %vm230_vm2, %v1584_v57, %v7966_v59  ;;  %v8200_v53 = vld [vmem:[%s11623_s29 + $0xe8] sm:$0xff]   ;;  %v8087_v58 = vpack.i.bf16 %v1601_v4, %v9888_v11  ;;  %v8202_v60 = vld [vmem:[%s11623_s29 + $0xe0] sm:$0xff]   ;;  %v1582_v4 = vld [vmem:[#allocation3 + $0x131] sm:$0xff] }
 0x29e   :  { %v1864_v30 = vpack.c.bf16 %v1828_v20, %v1827_v19  ;;  %v8201_v59 = vld [vmem:[%s11623_s29 + $0xa8] sm:$0xff]   ;;  %v8203_v20 = vld [vmem:[%s11623_s29 + $0xa0] sm:$0xff]  }
 0x2a0   :  { %2241 = vmatprep.mubr.bf16.mxu1 %v1864_v30 }
 0x2a1   :  { %8068 = vrot.lane.b32.xlu1 %v8067_v31, %s8720_s8  ;;  %8053 = vrot.lane.b32.xlu0 %v8052_v1, %s8720_s8  ;;  %v8204_v1 = vld [vmem:[%s11623_s29 + $0xd8] sm:$0xff]  }
 0x2a2   :  { %2242 = vmatmul.mubr.bf16.vlgmr.msra.gmra.mxu1 %v1863_v26 }
 0x2a3   :  { %6867 = vmatpush3.bf16.msra.mxu1 %v8197_v32  ;;  %v8082_v32 = vpack.i.bf16 %v1582_v4, %v9958_v2 }
 0x2a4   :  { %6868 = vmatprep.subr.bf16.mxu1 %v8198_v44 }
 0x2a5   :  { %8078 = vrot.lane.b32.xlu1 %v8077_v46, %s8720_s8  ;;  %8063 = vrot.lane.b32.xlu0 %v8062_v52, %s8720_s8 }
 0x2a7   :  { %v7979_v57 = vpop.permute.xlu1 %7978  ;;  %6869 = vmatpush3.bf16.msra.mxu1 %v8199_v47 }
 0x2a8   :  { %6870 = vmatprep.subr.bf16.mxu1 %v8200_v53  ;;  %v7981_v61 = vunpack.i.h.bf16 %v7979_v57  ;;  %v7980_v9 = vunpack.i.l.bf16 %v7979_v57  ;;  %v8205_v53 = vld [vmem:[%s11623_s29 + $0x98] sm:$0xff]  }
 0x2a9   :  { %8088 = vrot.lane.b32.xlu1 %v8087_v58, %s8720_s8  ;;  %8073 = vrot.lane.b32.xlu0 %v8072_v23, %s8720_s8  ;;  %v8209_v58 = vld [vmem:[%s11623_s29 + $0x88] sm:$0xff]  }
 0x2aa   :  { %v7974_v19 = vpop.permute.xlu0 %7973  ;;  %v1813_v26 = vsel %vm230_vm2, %v9717_v27, %v7980_v9  ;;  %v1814_v44 = vsel %vm230_vm2, %v9742_v40, %v7981_v61  ;;  %v8206_v27 = vld [vmem:[%s11623_s29 + $0xd0] sm:$0xff]   ;;  %v8211_v9 = vld [vmem:[%s11623_s29 + $0x80] sm:$0xff]  }
 0x2ab   :  { %6871 = vmatpush3.bf16.msra.mxu1 %v8201_v59  ;;  %v7976_v30 = vunpack.i.h.bf16 %v7974_v19  ;;  %v7975_v31 = vunpack.i.l.bf16 %v7974_v19  ;;  %v9980_v57 = vpack.c.bf16 %v1814_v44, %v1813_v26  ;;  %v8210_v59 = vld [vmem:[%s11623_s29 + $0xc0] sm:$0xff]  }
 0x2ac   :  { %6872 = vmatprep.subr.bf16.mxu1 %v8202_v60 }
 0x2ad   :  { %8083 = vrot.lane.b32.xlu0 %v8082_v32, %s8720_s8  ;;  %v1829_v46 = vsel %vm230_vm2, %v9727_v36, %v7975_v31  ;;  %v1830_v47 = vsel %vm230_vm2, %v9729_v37, %v7976_v30  ;;  %v8207_v36 = vld [vmem:[%s11623_s29 + $0x90] sm:$0xff]   ;;  %v8208_v37 = vld [vmem:[%s11623_s29 + $0xc8] sm:$0xff]  }
 0x2ae   :  { %v1868_v52 = vpack.c.bf16 %v1830_v47, %v1829_v46 }
 0x2af   :  { %6873 = vmatpush3.bf16.msra.mxu1 %v8203_v20 }
 0x2b0   :  { %6874 = vmatprep.subr.bf16.mxu1 %v8204_v1  ;;  %2249 = vmatprep.mubr.bf16.mxu1 %v1868_v52 }
 0x2b1   :  { %2250 = vmatmul.mubr.bf16.gmra.mxu1 %v9980_v57 }
 0x2b3   :  { %6875 = vmatpush3.bf16.msra.mxu1 %v8205_v53 }
 0x2b4   :  { %6876 = vmatprep.subr.bf16.mxu1 %v8206_v27 }
 0x2b7   :  { %v7989_v40 = vpop.permute.xlu1 %7988  ;;  %6877 = vmatpush3.bf16.msra.mxu1 %v8207_v36 }
 0x2b8   :  { %6878 = vmatprep.subr.bf16.mxu1 %v8208_v37  ;;  %v7991_v23 = vunpack.i.h.bf16 %v7989_v40  ;;  %v7990_v60 = vunpack.i.l.bf16 %v7989_v40 }
 0x2ba   :  { %v7984_v61 = vpop.permute.xlu0 %7983  ;;  %v1815_v20 = vsel %vm230_vm2, %v9744_v45, %v7990_v60  ;;  %v1816_v30 = vsel %vm230_vm2, %v9769_v62, %v7991_v23  ;;  %v1553_v23 = vld [vmem:[#allocation3 + $0xa0] sm:$0xff] }
 0x2bb   :  { %6879 = vmatpush3.bf16.msra.mxu1 %v8209_v58  ;;  %v7986_v4 = vunpack.i.h.bf16 %v7984_v61  ;;  %v7985_v19 = vunpack.i.l.bf16 %v7984_v61  ;;  %v10009_v26 = vpack.c.bf16 %v1816_v30, %v1815_v20  ;;  %v1593_v60 = vld [vmem:[#allocation3 + $0xa2] sm:$0xff] }
 0x2bc   :  { %6880 = vmatprep.subr.bf16.mxu1 %v8210_v59 }
 0x2bd   :  { %v1831_v31 = vsel %vm230_vm2, %v9754_v54, %v7985_v19  ;;  %v1832_v32 = vsel %vm230_vm2, %v9756_v0, %v7986_v4 }
 0x2be   :  { %v1872_v1 = vpack.c.bf16 %v1832_v32, %v1831_v31 }
 0x2bf   :  { %6881 = vmatpush3.bf16.msra.mxu1 %v8211_v9 }
 0x2c0   :  { %2257 = vmatprep.mubr.bf16.mxu1 %v1872_v1 }
 0x2c1   :  { %2258 = vmatmul.mubr.bf16.gmra.mxu1 %v10009_v26 }
 0x2c7   :  { %v7999_v44 = vpop.permute.xlu1 %7998 }
 0x2c8   :  { %v8001_v46 = vunpack.i.h.bf16 %v7999_v44  ;;  %v8000_v47 = vunpack.i.l.bf16 %v7999_v44 }
 0x2ca   :  { %v1817_v62 = vsel %vm230_vm2, %v9771_v63, %v8000_v47  ;;  %v1818_v54 = vsel %vm230_vm2, %v9798_v24, %v8001_v46 }
 0x2cb   :  { %v7994_v45 = vpop.permute.xlu0 %7993  ;;  %v10020_v37 = vpack.c.bf16 %v1818_v54, %v1817_v62 }
 0x2cc   :  { %v7996_v52 = vunpack.i.h.bf16 %v7994_v45  ;;  %v7995_v53 = vunpack.i.l.bf16 %v7994_v45 }
 0x2ce   :  { %v1833_v0 = vsel %vm230_vm2, %v9781_v12, %v7995_v53  ;;  %v1834_v27 = vsel %vm230_vm2, %v9783_v13, %v7996_v52 }
 0x2cf   :  { %v1876_v36 = vpack.c.bf16 %v1834_v27, %v1833_v0 }
 0x2d1   :  { %2265 = vmatprep.mubr.bf16.mxu1 %v1876_v36 }
 0x2d2   :  { %2266 = vmatmul.mubr.bf16.gmra.mxu1 %v10020_v37 }
 0x2d6   :  { %v8009_v40 = vpop.permute.xlu1 %8008 }
 0x2d7   :  { %v8011_v58 = vunpack.i.h.bf16 %v8009_v40  ;;  %v8010_v59 = vunpack.i.l.bf16 %v8009_v40 }
 0x2d9   :  { %v1819_v9 = vsel %vm230_vm2, %v1553_v23, %v8010_v59  ;;  %v1820_v12 = vsel %vm230_vm2, %v9820_v49, %v8011_v58 }
 0x2da   :  { %v8004_v63 = vpop.permute.xlu0 %8003  ;;  %v1880_v20 = vpack.c.bf16 %v1820_v12, %v1819_v9 }
 0x2db   :  { %v8006_v61 = vunpack.i.h.bf16 %v8004_v63  ;;  %v8005_v24 = vunpack.i.l.bf16 %v8004_v63 }
 0x2dd   :  { %v1835_v13 = vsel %vm230_vm2, %v1593_v60, %v8005_v24  ;;  %v1836_v4 = vsel %vm230_vm2, %v9922_v29, %v8006_v61 }
 0x2de   :  { %v1881_v19 = vpack.c.bf16 %v1836_v4, %v1835_v13 }
 0x2e0   :  { %2273 = vmatprep.mubr.bf16.mxu1 %v1881_v19 }
 0x2e1   :  { %2274 = vmatmul.mubr.bf16.gmra.mxu1 %v1880_v20 }
 0x2e7   :  { %v8019_v30 = vpop.permute.xlu1 %8018 }
 0x2e8   :  { %v8021_v31 = vunpack.i.h.bf16 %v8019_v30  ;;  %v8020_v32 = vunpack.i.l.bf16 %v8019_v30 }
 0x2ea   :  { %v8014_v1 = vpop.permute.xlu0 %8013  ;;  %v1821_v47 = vsel %vm230_vm2, %v9822_v50, %v8020_v32  ;;  %v1822_v49 = vsel %vm230_vm2, %v9847_v17, %v8021_v31 }
 0x2eb   :  { %v8016_v44 = vunpack.i.h.bf16 %v8014_v1  ;;  %v8015_v46 = vunpack.i.l.bf16 %v8014_v1  ;;  %v10037_v53 = vpack.c.bf16 %v1822_v49, %v1821_v47 }
 0x2ed   :  { %v1837_v45 = vsel %vm230_vm2, %v9832_v3, %v8015_v46  ;;  %v1838_v29 = vsel %vm230_vm2, %v9834_v5, %v8016_v44 }
 0x2ee   :  { %v1885_v52 = vpack.c.bf16 %v1838_v29, %v1837_v45  ;;  %v1552_v45 = vld [vmem:[#allocation3 + $0x90] sm:$0xff] }
 0x2f0   :  { %2281 = vmatprep.mubr.bf16.mxu1 %v1885_v52 }
 0x2f1   :  { %2282 = vmatmul.mubr.bf16.gmra.mxu1 %v10037_v53 }
 0x2f7   :  { %v8029_v62 = vpop.permute.xlu1 %8028 }
 0x2f8   :  { %v8031_v54 = vunpack.i.h.bf16 %v8029_v62  ;;  %v8030_v0 = vunpack.i.l.bf16 %v8029_v62 }
 0x2fa   :  { %v8024_v27 = vpop.permute.xlu0 %8023  ;;  %v1823_v17 = vsel %vm230_vm2, %v9849_v18, %v8030_v0  ;;  %v1824_v3 = vsel %vm230_vm2, %v9874_v48, %v8031_v54 }
 0x2fb   :  { %v8026_v50 = vunpack.i.h.bf16 %v8024_v27  ;;  %v8025_v36 = vunpack.i.l.bf16 %v8024_v27  ;;  %v10048_v59 = vpack.c.bf16 %v1824_v3, %v1823_v17 }
 0x2fd   :  { %v1839_v5 = vsel %vm230_vm2, %v9859_v33, %v8025_v36  ;;  %v1840_v40 = vsel %vm230_vm2, %v9861_v34, %v8026_v50 }
 0x2fe   :  { %v1889_v58 = vpack.c.bf16 %v1840_v40, %v1839_v5 }
 0x300   :  { %2289 = vmatprep.mubr.bf16.mxu1 %v1889_v58 }
 0x301   :  { %2290 = vmatmul.mubr.bf16.gmra.mxu1 %v10048_v59 }
 0x307   :  { %v8039_v23 = vpop.permute.xlu1 %8038 }
 0x308   :  { %v8041_v63 = vunpack.i.h.bf16 %v8039_v23  ;;  %v8040_v60 = vunpack.i.l.bf16 %v8039_v23 }
 0x30a   :  { %v1825_v48 = vsel %vm230_vm2, %v9876_v51, %v8040_v60  ;;  %v1826_v33 = vsel %vm230_vm2, %v9900_v22, %v8041_v63 }
 0x30b   :  { %v8034_v61 = vpop.permute.xlu0 %8033  ;;  %v1891_v4 = vpack.c.bf16 %v1826_v33, %v1825_v48  ;;  %v8049_v30 = vpop.permute.xlu1 %8048 }
 0x30c   :  { %v8036_v18 = vunpack.i.h.bf16 %v8034_v61  ;;  %v8035_v24 = vunpack.i.l.bf16 %v8034_v61  ;;  %v8051_v31 = vunpack.i.h.bf16 %v8049_v30  ;;  %v8050_v32 = vunpack.i.l.bf16 %v8049_v30 }
 0x30e   :  { %v1841_v34 = vsel %vm230_vm2, %v9886_v10, %v8035_v24  ;;  %v1842_v9 = vsel %vm230_vm2, %v9888_v11, %v8036_v18  ;;  %v1845_v11 = vsel %vm230_vm2, %v9733_v39, %v8050_v32  ;;  %v1846_v1 = vsel %vm230_vm2, %v9758_v55, %v8051_v31  ;;  %v1562_v24 = vld [vmem:[#allocation3 + $0x130] sm:$0xff] }
 0x30f   :  { %v8044_v12 = vpop.permute.xlu0 %8043  ;;  %v1893_v13 = vpack.c.bf16 %v1842_v9, %v1841_v34  ;;  %v8059_v44 = vpop.permute.xlu1 %8058  ;;  %v1869_v46 = vpack.c.bf16 %v1846_v1, %v1845_v11 }
 0x310   :  { %v8046_v19 = vunpack.i.h.bf16 %v8044_v12  ;;  %v8045_v20 = vunpack.i.l.bf16 %v8044_v12  ;;  %v8061_v49 = vunpack.i.h.bf16 %v8059_v44 }
 0x311   :  { %2297 = vmatprep.mubr.bf16.mxu1 %v1893_v13 }
 0x312   :  { %2298 = vmatmul.mubr.bf16.gmra.mxu1 %v1891_v4  ;;  %v1844_v51 = vsel %vm230_vm2, %v9731_v38, %v8046_v19  ;;  %v1843_v22 = vsel %vm230_vm2, %v9710_v21, %v8045_v20  ;;  %v8060_v21 = vunpack.i.l.bf16 %v8059_v44  ;;  %v1860_v52 = vsel %vm230_vm2, %v1552_v45, %v8061_v49 }
 0x313   :  { %2338 = vmatprep.mubr.bf16.mxu1 %v9980_v57  ;;  %v1865_v10 = vpack.c.bf16 %v1844_v51, %v1843_v22  ;;  %v8054_v57 = vpop.permute.xlu0 %8053  ;;  %v8069_v50 = vpop.permute.xlu1 %8068 }
 0x314   :  { %v8056_v38 = vunpack.i.h.bf16 %v8054_v57  ;;  %v8055_v47 = vunpack.i.l.bf16 %v8054_v57  ;;  %v1859_v55 = vsel %vm230_vm2, %v9800_v25, %v8060_v21  ;;  %v8071_v36 = vunpack.i.h.bf16 %v8069_v50 }
 0x315   :  { %v1878_v27 = vpack.c.bf16 %v1860_v52, %v1859_v55  ;;  %v8070_v17 = vunpack.i.l.bf16 %v8069_v50 }
 0x316   :  { %v1848_v39 = vsel %vm230_vm2, %v9785_v14, %v8056_v38  ;;  %v1852_v3 = vsel %vm230_vm2, %v9836_v6, %v8071_v36  ;;  %v8213_v36 = vld [vmem:[%s11593_s7 + $0x38] sm:$0xff]  }
 0x317   :  { %v8064_v29 = vpop.permute.xlu0 %8063  ;;  %v1851_v25 = vsel %vm230_vm2, %v9815_v43, %v8070_v17  ;;  %v8214_v17 = vld [vmem:[%s11593_s7 + $0x70] sm:$0xff]  }
 0x318   :  { %v8066_v54 = vunpack.i.h.bf16 %v8064_v29  ;;  %v8065_v0 = vunpack.i.l.bf16 %v8064_v29  ;;  %v1882_v40 = vpack.c.bf16 %v1852_v3, %v1851_v25  ;;  %v8215_v25 = vld [vmem:[%s11593_s7 + $0x30] sm:$0xff]   ;;  %v8216_v3 = vld [vmem:[%s11593_s7 + $0x68] sm:$0xff]  }
 0x31a   :  { %2339 = vmatmul.mubr.bf16.vlgmr.msra.gmra.mxu1 %v1865_v10 }
 0x31b   :  { %2346 = vmatprep.mubr.bf16.mxu1 %v10009_v26  ;;  %v1847_v26 = vsel %vm230_vm2, %v9760_v56, %v8055_v47  ;;  %v1850_v56 = vsel %vm230_vm2, %v9908_v42, %v8066_v54  ;;  %v8074_v5 = vpop.permute.xlu0 %8073 }
 0x31c   :  { %v1873_v62 = vpack.c.bf16 %v1848_v39, %v1847_v26  ;;  %v8076_v58 = vunpack.i.h.bf16 %v8074_v5 }
 0x31e   :  { %v1854_v23 = vsel %vm230_vm2, %v9863_v35, %v8076_v58  ;;  %v8218_v58 = vld [vmem:[%s11593_s7 + $0x60] sm:$0xff]  }
 0x31f   :  { %v8084_v63 = vpop.permute.xlu0 %8083 }
 0x320   :  { %v8086_v18 = vunpack.i.h.bf16 %v8084_v63  ;;  %v8085_v6 = vunpack.i.l.bf16 %v8084_v63 }
 0x322   :  { %2347 = vmatmul.mubr.bf16.gmra.mxu1 %v1869_v46  ;;  %v1861_v35 = vsel %vm230_vm2, %v9902_v28, %v8085_v6  ;;  %v1862_v33 = vsel %vm230_vm2, %v1562_v24, %v8086_v18  ;;  %v7526_v18 = vpop.f32.mrf.mxu0 }
 0x323   :  { %2354 = vmatprep.mubr.bf16.mxu1 %v10020_v37  ;;  %v1849_v37 = vsel %vm230_vm2, %v9787_v15, %v8065_v0  ;;  %v8075_v15 = vunpack.i.l.bf16 %v8074_v5  ;;  %v1895_v13 = vpack.c.bf16 %v1862_v33, %v1861_v35 }
 0x324   :  { %v1877_v14 = vpack.c.bf16 %v1850_v56, %v1849_v37 }
 0x325   :  { %v1853_v42 = vsel %vm230_vm2, %v9838_v8, %v8075_v15 }
 0x326   :  { %v1886_v60 = vpack.c.bf16 %v1854_v23, %v1853_v42  ;;  %v8219_v23 = vld [vmem:[%s11593_s7 + $0x20] sm:$0xff]  }
 0x32a   :  { %2355 = vmatmul.mubr.bf16.gmra.mxu1 %v1873_v62 }
 0x32b   :  { %2362 = vmatprep.mubr.bf16.mxu1 %v1878_v27 }
 0x332   :  { %2363 = vmatmul.mubr.bf16.gmra.mxu1 %v1877_v14  ;;  %v8212_v14 = vld [vmem:[%s11593_s7 + $0x78] sm:$0xff]  }
 0x333   :  { %2370 = vmatprep.mubr.bf16.mxu1 %v10037_v53  ;;  %v8079_v53 = vpop.permute.xlu1 %8078  ;;  %6942 = vmatprep.subr.bf16.mxu0 %v8212_v14 }
 0x334   :  { %v8081_v43 = vunpack.i.h.bf16 %v8079_v53  ;;  %v8080_v61 = vunpack.i.l.bf16 %v8079_v53  ;;  %6943 = vmatpush3.bf16.msra.mxu0 %v8213_v36  ;;  %v8220_v53 = vld [vmem:[%s11593_s7 + $0x58] sm:$0xff]  }
 0x335   :  { %6944 = vmatprep.subr.bf16.mxu0 %v8214_v17 }
 0x336   :  { %v1855_v48 = vsel %vm230_vm2, %v9865_v41, %v8080_v61  ;;  %v8221_v61 = vld [vmem:[%s11593_s7 + $0x18] sm:$0xff]  }
 0x337   :  { %v8089_v8 = vpop.permute.xlu1 %8088 }
 0x338   :  { %v8091_v9 = vunpack.i.h.bf16 %v8089_v8  ;;  %v8090_v12 = vunpack.i.l.bf16 %v8089_v8  ;;  %6945 = vmatpush3.bf16.msra.mxu0 %v8215_v25 }
 0x339   :  { %6946 = vmatprep.subr.bf16.mxu0 %v8216_v3 }
 0x33a   :  { %2371 = vmatmul.mubr.bf16.gmra.mxu1 %v1882_v40  ;;  %v1858_v41 = vsel %vm230_vm2, %v9958_v2, %v8091_v9  ;;  %v8217_v40 = vld [vmem:[%s11593_s7 + $0x28] sm:$0xff]   ;;  %v10181_v9 = vld [vmem:[#allocation17] ss:$0 sm:$0xff] }
 0x33b   :  { %2378 = vmatprep.mubr.bf16.mxu1 %v10048_v59  ;;  %v1856_v59 = vsel %vm230_vm2, %v9890_v7, %v8081_v43 }
 0x33c   :  { %v1890_v34 = vpack.c.bf16 %v1856_v59, %v1855_v48  ;;  %6947 = vmatpush3.bf16.msra.mxu0 %v8217_v40  ;;  %v2437_v48 = vpop.f32.mrf.mxu0 }
 0x33d   :  { %6948 = vmatprep.subr.bf16.mxu0 %v8218_v58 }
 0x340   :  { %6949 = vmatpush3.bf16.msra.mxu0 %v8219_v23 }
 0x341   :  { %6950 = vmatprep.subr.bf16.mxu0 %v8220_v53 }
 0x342   :  { %2379 = vmatmul.mubr.bf16.gmra.mxu1 %v1886_v60 }
 0x343   :  { %2386 = vmatprep.mubr.bf16.mxu1 %v1891_v4  ;;  %v1857_v4 = vsel %vm230_vm2, %v9892_v16, %v8090_v12 }
 0x344   :  { %v1894_v19 = vpack.c.bf16 %v1858_v41, %v1857_v4  ;;  %6951 = vmatpush3.bf16.msra.mxu0 %v8221_v61 }
 0x34a   :  { %2387 = vmatmul.mubr.bf16.gmra.mxu1 %v1890_v34  ;;  %v7527_v34 = vpop.f32.mrf.mxu0 }
 0x34b   :  { %2394 = vmatprep.mubr.bf16.mxu1 %v1895_v13 }
 0x352   :  { %2395 = vmatmul.mubr.bf16.gmra.mxu1 %v1894_v19 }
 0x362   :  { %v6818_v7 = vpop.f32.mrf.mxu1 }
 0x364   :  { %v6819_v20 = vpop.f32.mrf.mxu1 }
 0x365   :  { %v10102_v51 = vadd.f32 %v6819_v20, %v6818_v7 }
 0x366   :  { %v10104_v28 = vpop.f32.mrf.mxu1 }
 0x368   :  { %v10106_v22 = vpop.f32.mrf.mxu1 }
 0x369   :  { %v6823_v13 = vadd.f32 %v10106_v22, %v10104_v28 }
 0x371   :  { %v6824_v30 = vpop.f32.mrf.mxu1 }
 0x373   :  { %v6825_v10 = vpop.f32.mrf.mxu1 }
 0x374   :  { %v10108_v31 = vadd.f32 %v6825_v10, %v6824_v30  ;;  %v2440_v30 = vpop.f32.mrf.mxu0  ;;  %v10186_v10 = vld [vmem:[#allocation19] ss:$0 sm:$0xff] }
 0x375   :  { %v10110_v32 = vpop.f32.mrf.mxu1 }
 0x376   :  { %v7530_v28 = vpop.f32.mrf.mxu0 }
 0x377   :  { %v10112_v16 = vpop.f32.mrf.mxu1 }
 0x378   :  { %v2453_v40 = vpop.f32.mrf.mxu0 }
 0x37a   :  { %v7531_v61 = vpop.f32.mrf.mxu0 }
 0x381   :  { %v6830_v11 = vpop.f32.mrf.mxu1 }
 0x383   :  { %v6831_v2 = vpop.f32.mrf.mxu1 }
 0x384   :  { %v10114_v1 = vadd.f32 %v6831_v2, %v6830_v11 }
 0x385   :  { %v10116_v57 = vpop.f32.mrf.mxu1 }
 0x387   :  { %v10118_v44 = vpop.f32.mrf.mxu1 }
 0x392   :  { %v6836_v46 = vpop.f32.mrf.mxu1 }
 0x394   :  { %v6837_v38 = vpop.f32.mrf.mxu1 }
 0x395   :  { %v10120_v47 = vadd.f32 %v6837_v38, %v6836_v46 }
 0x396   :  { %v10122_v49 = vpop.f32.mrf.mxu1 }
 0x398   :  { %v10124_v21 = vpop.f32.mrf.mxu1 }
 0x3a1   :  { %v6842_v45 = vpop.f32.mrf.mxu1 }
 0x3a3   :  { %v6843_v26 = vpop.f32.mrf.mxu1 }
 0x3a4   :  { %v10126_v39 = vadd.f32 %v6843_v26, %v6842_v45 }
 0x3a5   :  { %v10128_v29 = vpop.f32.mrf.mxu1 }
 0x3a7   :  { %v10130_v55 = vpop.f32.mrf.mxu1 }
 0x3b1   :  { %v6848_v52 = vpop.f32.mrf.mxu1 }
 0x3b3   :  { %v6849_v62 = vpop.f32.mrf.mxu1 }
 0x3b4   :  { %v10132_v54 = vadd.f32 %v6849_v62, %v6848_v52  ;;  %v6829_v52 = vadd.f32 %v10112_v16, %v10110_v32 }
 0x3b5   :  { %v10134_v0 = vpop.f32.mrf.mxu1 }
 0x3b7   :  { %v10136_v27 = vpop.f32.mrf.mxu1 }
 0x3c1   :  { %v6854_v37 = vpop.f32.mrf.mxu1 }
 0x3c3   :  { %v6855_v56 = vpop.f32.mrf.mxu1 }
 0x3c4   :  { %v10138_v50 = vadd.f32 %v6855_v56, %v6854_v37 }
 0x3c5   :  { %v10155_v5 = vpop.f32.mrf.mxu1 }
 0x3c7   :  { %v10163_v15 = vpop.f32.mrf.mxu1 }
 0x3d2   :  { %v6860_v42 = vpop.f32.mrf.mxu1 }
 0x3d4   :  { %v6861_v63 = vpop.f32.mrf.mxu1 }
 0x3d5   :  { %v10171_v60 = vadd.f32 %v6861_v63, %v6860_v42 }
 0x3d6   :  { %v10173_v43 = vpop.f32.mrf.mxu1 }
 0x3d8   :  { %v10178_v6 = vpop.f32.mrf.mxu1 }
 0x3da   :  { %v6882_v24 = vpop.f32.mrf.mxu1 }
 0x3dc   :  { %v6883_v59 = vpop.f32.mrf.mxu1 }
 0x3dd   :  { %v6884_v8 = vadd.f32 %v6883_v59, %v6882_v24  ;;  %v6835_v24 = vadd.f32 %v10118_v44, %v10116_v57 }
 0x3de   :  { %v6885_v35 = vpop.f32.mrf.mxu1 }
 0x3df   :  { %v2341_v33 = vadd.f32 %v6884_v8, %v10102_v51 }
 0x3e0   :  { %v6886_v12 = vpop.f32.mrf.mxu1 }
 0x3e1   :  { %v2438_v4 = vadd.f32 %v2437_v48, %v2341_v33  ;;  %v6887_v41 = vadd.f32 %v6886_v12, %v6885_v35 }
 0x3e2   :  { %v6888_v19 = vpop.f32.mrf.mxu1 }
 0x3e3   :  { %v2507_v7 = vmul.f32 %v10181_v9, %v2438_v4  ;;  %v2344_v20 = vadd.f32 %v6887_v41, %v6823_v13  ;;  %v2456_v4 = vpop.f32.mrf.mxu0 }
 0x3e4   :  { %v6889_v11 = vpop.f32.mrf.mxu1 }
 0x3e5   :  { %v2441_v2 = vadd.f32 %v2440_v30, %v2344_v20  ;;  %v6890_v46 = vadd.f32 %v6889_v11, %v6888_v19  ;;  %v2530_v38 = vadd.f32 %v10186_v10, %v2507_v7 }
 0x3e6   :  { %v6891_v51 = vpop.f32.mrf.mxu1 }
 0x3e7   :  { %v2508_v45 = vmul.f32 %v10181_v9, %v2441_v2  ;;  %v2349_v26 = vadd.f32 %v6890_v46, %v10108_v31  ;;  %v2546_v36 = vmax.f32 %v2530_v38, 0.0  ;;  %v10210_v38 = vpop.f32.mrf.mxu0 }
 0x3e8   :  { %v6892_v22 = vpop.f32.mrf.mxu1 }
 0x3e9   :  { %v2531_v62 = vadd.f32 %v10186_v10, %v2508_v45  ;;  %v2446_v37 = vadd.f32 %v7526_v18, %v2349_v26  ;;  %v6893_v56 = vadd.f32 %v6892_v22, %v6891_v51  ;;  %v8223_v51 = vld [vmem:[%s11593_s7 + $0x50] sm:$0xff]   ;;  %v6841_v22 = vadd.f32 %v10124_v21, %v10122_v49  ;;  %v8227_v21 = vld [vmem:[%s11593_s7 + $0x8] sm:$0xff]  }
 0x3ea   :  { %v6894_v14 = vpop.f32.mrf.mxu1  ;;  %v8225_v26 = vld [vmem:[%s11593_s7 + $0x10] sm:$0xff]   ;;  %6952 = vmatprep.subr.bf16.mxu0 %v8223_v51 }
 0x3eb   :  { %v2547_v17 = vmax.f32 %v2531_v62, 0.0  ;;  %v2509_v25 = vmul.f32 %v10181_v9, %v2446_v37  ;;  %v2352_v3 = vadd.f32 %v6893_v56, %v6829_v52  ;;  %v8224_v56 = vld [vmem:[%s11593_s7 + $0xb8] sm:$0xff]   ;;  %6953 = vmatpush3.bf16.msra.mxu0 %v8225_v26 }
 0x3ec   :  { %v6895_v58 = vpop.f32.mrf.mxu1 }
 0x3ed   :  { %v2562_v42 = vmax.f32 %v2546_v36, %v2547_v17  ;;  %v2449_v23 = vadd.f32 %v7527_v34, %v2352_v3  ;;  %v6896_v31 = vadd.f32 %v6895_v58, %v6894_v14  ;;  %v2532_v32 = vadd.f32 %v10186_v10, %v2509_v25  ;;  %v8226_v14 = vld [vmem:[%s11593_s7 + $0x48] sm:$0xff]   ;;  %v2469_v3 = vpop.f32.mrf.mxu0 }
 0x3ee   :  { %v6897_v53 = vpop.f32.mrf.mxu1  ;;  %6954 = vmatprep.subr.bf16.mxu0 %v8226_v14  ;;  %v6853_v14 = vadd.f32 %v10136_v27, %v10134_v0 }
 0x3ef   :  { %2566 = vst.msk [vmem:[#allocation9] sm:$0xff] %vm230_vm2, %v2562_v42  ;;  %v2510_v16 = vmul.f32 %v10181_v9, %v2449_v23  ;;  %v2357_v63 = vadd.f32 %v6896_v31, %v10114_v1  ;;  %v2548_v33 = vmax.f32 %v2532_v32, 0.0  ;;  %v2640_v31 = vld [vmem:[#allocation4 + $0x1] sm:$0xff]  ;;  %6955 = vmatpush3.bf16.msra.mxu0 %v8227_v21 }
 0x3f0   :  { %v6898_v18 = vpop.f32.mrf.mxu1 }
 0x3f1   :  { %v2533_v48 = vadd.f32 %v10186_v10, %v2510_v16  ;;  %v2454_v59 = vadd.f32 %v2453_v40, %v2357_v63  ;;  %v6899_v8 = vadd.f32 %v6898_v18, %v6897_v53 }
 0x3f2   :  { %v6900_v35 = vpop.f32.mrf.mxu1 }
 0x3f3   :  { %v2549_v34 = vmax.f32 %v2533_v48, 0.0  ;;  %v2511_v12 = vmul.f32 %v10181_v9, %v2454_v59  ;;  %v2360_v13 = vadd.f32 %v6899_v8, %v6835_v24  ;;  %v8228_v59 = vld [vmem:[%s11593_s7 + $0xf0] sm:$0xff]  }
 0x3f4   :  { %v6901_v41 = vpop.f32.mrf.mxu1  ;;  %v8230_v8 = vld [vmem:[%s11593_s7 + $0xb0] sm:$0xff]  }
 0x3f5   :  { %v2563_v19 = vmax.f32 %v2548_v33, %v2549_v34  ;;  %v2457_v7 = vadd.f32 %v2456_v4, %v2360_v13  ;;  %v6902_v1 = vadd.f32 %v6901_v41, %v6900_v35  ;;  %v2534_v57 = vadd.f32 %v10186_v10, %v2511_v12  ;;  %v7535_v35 = vpop.f32.mrf.mxu0 }
 0x3f6   :  { %v6903_v20 = vpop.f32.mrf.mxu1  ;;  %v2579_v30 = vld [vmem:[#allocation9] ss:$2 sm:$0xf]  ;;  %v2595_v11 = vld [vmem:[#allocation9 + $0x1] ss:$2 sm:$0xf]  ;;  %v6847_v33 = vadd.f32 %v10130_v55, %v10128_v29 }
 0x3f7   :  { %2567 = vst.msk [vmem:[#allocation9 + $0x8] sm:$0xff] %vm230_vm2, %v2563_v19  ;;  %v2512_v44 = vmul.f32 %v10181_v9, %v2457_v7  ;;  %v2365_v2 = vadd.f32 %v6902_v1, %v10120_v47  ;;  %v2610_v46 = vmax.f32 %v2579_v30, %v2595_v11  ;;  %v8222_v47 = vld [vmem:[%s11593_s7 + $0xf8] sm:$0xff]   ;;  %v8231_v19 = vld [vmem:[%s11593_s7] sm:$0xff]   ;;  %v2472_v30 = vpop.f32.mrf.mxu0 }
 0x3f8   :  { %v6904_v45 = vpop.f32.mrf.mxu1  ;;  %6982 = vmatprep.subr.bf16.mxu1 %v8222_v47  ;;  %v8233_v47 = vld [vmem:[%s11593_s7 + $0xa8] sm:$0xff]  }
 0x3f9   :  { %v2535_v52 = vadd.f32 %v10186_v10, %v2512_v44  ;;  %v2462_v62 = vadd.f32 %v7530_v28, %v2365_v2  ;;  %v6905_v37 = vadd.f32 %v6904_v45, %v6903_v20  ;;  %2620 = vst.msk [vmem:[#allocation4 + $0x11] sm:$0xf] %vm2619_vm12, %v2610_v46  ;;  %v2550_v28 = vmax.f32 %v2534_v57, 0.0  ;;  %6983 = vmatpush3.bf16.msra.mxu1 %v8224_v56  ;;  %v10267_v56 = vpop.f32.mrf.mxu0 }
 0x3fa   :  { %v6906_v49 = vpop.f32.mrf.mxu1  ;;  %6984 = vmatprep.subr.bf16.mxu1 %v8228_v59 }
 0x3fb   :  { %v2551_v36 = vmax.f32 %v2535_v52, 0.0  ;;  %v2513_v17 = vmul.f32 %v10181_v9, %v2462_v62  ;;  %v2368_v25 = vadd.f32 %v6905_v37, %v6841_v22  ;;  %v8232_v37 = vld [vmem:[%s11593_s7 + $0xe8] sm:$0xff]  }
 0x3fc   :  { %v6907_v40 = vpop.f32.mrf.mxu1 }
 0x3fd   :  { %v2564_v58 = vmax.f32 %v2550_v28, %v2551_v36  ;;  %v2465_v42 = vadd.f32 %v7531_v61, %v2368_v25  ;;  %v6908_v23 = vadd.f32 %v6907_v40, %v6906_v49  ;;  %v2536_v63 = vadd.f32 %v10186_v10, %v2513_v17  ;;  %v8229_v61 = vld [vmem:[%s11593_s7 + $0x40] sm:$0xff]   ;;  %6985 = vmatpush3.bf16.msra.mxu1 %v8230_v8 }
 0x3fe   :  { %v6909_v53 = vpop.f32.mrf.mxu1  ;;  %v2581_v32 = vld [vmem:[#allocation9 + $0x8] ss:$2 sm:$0xf]  ;;  %v2597_v16 = vld [vmem:[#allocation9 + $0x9] ss:$2 sm:$0xf]  ;;  %6956 = vmatprep.subr.bf16.mxu0 %v8229_v61  ;;  %6986 = vmatprep.subr.bf16.mxu1 %v8232_v37 }
 0x3ff   :  { %2568 = vst.msk [vmem:[#allocation9 + $0x10] sm:$0xff] %vm230_vm2, %v2564_v58  ;;  %v2514_v18 = vmul.f32 %v10181_v9, %v2465_v42  ;;  %v2373_v24 = vadd.f32 %v6908_v23, %v10126_v39  ;;  %v2611_v48 = vmax.f32 %v2581_v32, %v2597_v16  ;;  %v2552_v29 = vmax.f32 %v2536_v63, 0.0  ;;  %6957 = vmatpush3.bf16.msra.mxu0 %v8231_v19  ;;  %v2485_v42 = vpop.f32.mrf.mxu0  ;;  %v8234_v61 = vld [vmem:[%s11593_s7 + $0xe0] sm:$0xff]   ;;  %v10317_v37 = vld [vmem:[%s11593_s7 + $0x118] sm:$0xff]  }
 0x400   :  { %v6910_v34 = vpop.f32.mrf.mxu1  ;;  %v10247_v12 = vld [vmem:[#allocation4 + $0x11] sm:$0xff]  ;;  %v8235_v8 = vld [vmem:[%s11593_s7 + $0xa0] sm:$0xff]   ;;  %7540 = vmatprep.subr.bf16.mxu0 %v10317_v37 }
 0x401   :  { %v2537_v39 = vadd.f32 %v10186_v10, %v2514_v18  ;;  %v2470_v13 = vadd.f32 %v2469_v3, %v2373_v24  ;;  %v6911_v4 = vadd.f32 %v6910_v34, %v6909_v53  ;;  %v8097_v41 = vpack.i.bf16 %v10247_v12, %v2640_v31  ;;  %2621 = vst.msk [vmem:[#allocation4 + $0x21] sm:$0xf] %vm2619_vm12, %v2611_v48  ;;  %v10271_v21 = vld [vmem:[#allocation4 + $0x10] sm:$0xff] }
 0x402   :  { %v6912_v7 = vpop.f32.mrf.mxu1  ;;  %6987 = vmatpush3.bf16.msra.mxu1 %v8233_v47  ;;  %v6865_v47 = vadd.f32 %v10178_v6, %v10173_v43 }
 0x403   :  { %v2553_v55 = vmax.f32 %v2537_v39, 0.0  ;;  %v2515_v1 = vmul.f32 %v10181_v9, %v2470_v13  ;;  %v2376_v20 = vadd.f32 %v6911_v4, %v6847_v33  ;;  %8098 = vrot.lane.b32.xlu1 %v8097_v41, %s8720_s8  ;;  %v6859_v33 = vadd.f32 %v10163_v15, %v10155_v5  ;;  %6988 = vmatprep.subr.bf16.mxu1 %v8234_v61 }
 0x404   :  { %v6913_v11 = vpop.f32.mrf.mxu1 }
 0x405   :  { %v2565_v57 = vmax.f32 %v2552_v29, %v2553_v55  ;;  %v2473_v44 = vadd.f32 %v2472_v30, %v2376_v20  ;;  %v6914_v2 = vadd.f32 %v6913_v11, %v6912_v7  ;;  %v2538_v26 = vadd.f32 %v10186_v10, %v2515_v1 }
 0x406   :  { %v6915_v46 = vpop.f32.mrf.mxu1  ;;  %v2583_v51 = vld [vmem:[#allocation9 + $0x10] ss:$2 sm:$0xf]  ;;  %v2599_v45 = vld [vmem:[#allocation9 + $0x11] ss:$2 sm:$0xf]  ;;  %6989 = vmatpush3.bf16.msra.mxu1 %v8235_v8 }
 0x407   :  { %2569 = vst.msk [vmem:[#allocation9 + $0x18] sm:$0xff] %vm230_vm2, %v2565_v57  ;;  %v2516_v22 = vmul.f32 %v10181_v9, %v2473_v44  ;;  %v2381_v52 = vadd.f32 %v6914_v2, %v10132_v54  ;;  %v2612_v62 = vmax.f32 %v2583_v51, %v2599_v45  ;;  %v2554_v40 = vmax.f32 %v2538_v26, 0.0 }
 0x408   :  { %v6916_v49 = vpop.f32.mrf.mxu1  ;;  %v10273_v28 = vld [vmem:[#allocation4 + $0x20] sm:$0xff] }
 0x409   :  { %v2539_v54 = vadd.f32 %v10186_v10, %v2516_v22  ;;  %v2478_v36 = vadd.f32 %v10210_v38, %v2381_v52  ;;  %v6917_v17 = vadd.f32 %v6916_v49, %v6915_v46  ;;  %v8092_v25 = vpack.i.bf16 %v10273_v28, %v10271_v21  ;;  %2622 = vst.msk [vmem:[#allocation4 + $0x31] sm:$0xf] %vm2619_vm12, %v2612_v62  ;;  %v10294_v39 = vld [vmem:[#allocation4 + $0x21] sm:$0xff]  ;;  %v8236_v52 = vld [vmem:[%s11593_s7 + $0xd8] sm:$0xff]  }
 0x40a   :  { %v6918_v3 = vpop.f32.mrf.mxu1  ;;  %v8237_v62 = vld [vmem:[%s11593_s7 + $0x98] sm:$0xff]   ;;  %6990 = vmatprep.subr.bf16.mxu1 %v8236_v52 }
 0x40b   :  { %v2555_v0 = vmax.f32 %v2539_v54, 0.0  ;;  %v2517_v27 = vmul.f32 %v10181_v9, %v2478_v36  ;;  %v2384_v58 = vadd.f32 %v6917_v17, %v6853_v14  ;;  %8093 = vrot.lane.b32.xlu0 %v8092_v25, %s8720_s8  ;;  %6991 = vmatpush3.bf16.msra.mxu1 %v8237_v62  ;;  %v2653_v52 = vld [vmem:[#allocation4 + $0x12] sm:$0xff] }
 0x40c   :  { %v6919_v23 = vpop.f32.mrf.mxu1 }
 0x40d   :  { %v2570_v31 = vmax.f32 %v2554_v40, %v2555_v0  ;;  %v2481_v38 = vadd.f32 %v7535_v35, %v2384_v58  ;;  %v6920_v53 = vadd.f32 %v6919_v23, %v6918_v3  ;;  %v2540_v18 = vadd.f32 %v10186_v10, %v2517_v27  ;;  %v7539_v35 = vpop.f32.mrf.mxu0 }
 0x40e   :  { %v6921_v32 = vpop.f32.mrf.mxu1  ;;  %v2585_v16 = vld [vmem:[#allocation9 + $0x18] ss:$2 sm:$0xf]  ;;  %v2601_v63 = vld [vmem:[#allocation9 + $0x19] ss:$2 sm:$0xf] }
 0x40f   :  { %2575 = vst.msk [vmem:[#allocation9 + $0x20] sm:$0xff] %vm230_vm2, %v2570_v31  ;;  %v2518_v24 = vmul.f32 %v10181_v9, %v2481_v38  ;;  %v2389_v48 = vadd.f32 %v6920_v53, %v10138_v50  ;;  %v2613_v59 = vmax.f32 %v2585_v16, %v2601_v63  ;;  %v2556_v29 = vmax.f32 %v2540_v18, 0.0  ;;  %v2488_v1 = vpop.f32.mrf.mxu0  ;;  %v8239_v53 = vld [vmem:[%s11593_s7 + $0xd0] sm:$0xff]  }
 0x410   :  { %v6922_v34 = vpop.f32.mrf.mxu1  ;;  %v10296_v13 = vld [vmem:[#allocation4 + $0x31] sm:$0xff]  ;;  %6992 = vmatprep.subr.bf16.mxu1 %v8239_v53 }
 0x411   :  { %v2541_v50 = vadd.f32 %v10186_v10, %v2518_v24  ;;  %v2486_v4 = vadd.f32 %v2485_v42, %v2389_v48  ;;  %v6923_v41 = vadd.f32 %v6922_v34, %v6921_v32  ;;  %v8107_v19 = vpack.i.bf16 %v10296_v13, %v10294_v39  ;;  %2623 = vst.msk [vmem:[#allocation4 + $0x41] sm:$0xf] %vm2619_vm12, %v2613_v59  ;;  %v10321_v49 = vld [vmem:[#allocation4 + $0x30] sm:$0xff] }
 0x412   :  { %v6924_v7 = vpop.f32.mrf.mxu1  ;;  %v8240_v32 = vld [vmem:[%s11593_s7 + $0x90] sm:$0xff]  }
 0x413   :  { %v2557_v55 = vmax.f32 %v2541_v50, 0.0  ;;  %v2519_v5 = vmul.f32 %v10181_v9, %v2486_v4  ;;  %v2392_v15 = vadd.f32 %v6923_v41, %v6859_v33  ;;  %8108 = vrot.lane.b32.xlu1 %v8107_v19, %s8720_s8  ;;  %6993 = vmatpush3.bf16.msra.mxu1 %v8240_v32 }
 0x414   :  { %v6925_v20 = vpop.f32.mrf.mxu1 }
 0x415   :  { %v2571_v30 = vmax.f32 %v2556_v29, %v2557_v55  ;;  %v2489_v11 = vadd.f32 %v2488_v1, %v2392_v15  ;;  %v6926_v57 = vadd.f32 %v6925_v20, %v6924_v7  ;;  %v2542_v51 = vadd.f32 %v10186_v10, %v2519_v5  ;;  %v8245_v7 = vld [vmem:[%s11593_s7 + $0xc0] sm:$0xff]   ;;  %v2645_v20 = vld [vmem:[#allocation4 + $0x51] sm:$0xff] }
 0x416   :  { %v6927_v44 = vpop.f32.mrf.mxu1  ;;  %v2587_v2 = vld [vmem:[#allocation9 + $0x20] ss:$2 sm:$0xf]  ;;  %v2603_v46 = vld [vmem:[#allocation9 + $0x21] ss:$2 sm:$0xf] }
 0x417   :  { %2576 = vst.msk [vmem:[#allocation9 + $0x28] sm:$0xff] %vm230_vm2, %v2571_v30  ;;  %v2520_v45 = vmul.f32 %v10181_v9, %v2489_v11  ;;  %v2397_v26 = vadd.f32 %v6926_v57, %v10171_v60  ;;  %v2614_v22 = vmax.f32 %v2587_v2, %v2603_v46  ;;  %v2558_v43 = vmax.f32 %v2542_v51, 0.0  ;;  %v8246_v29 = vld [vmem:[%s11593_s7 + $0x80] sm:$0xff]  }
 0x418   :  { %v6928_v14 = vpop.f32.mrf.mxu1  ;;  %v10323_v60 = vld [vmem:[#allocation4 + $0x40] sm:$0xff] }
 0x419   :  { %v2543_v54 = vadd.f32 %v10186_v10, %v2520_v45  ;;  %v2494_v36 = vadd.f32 %v10267_v56, %v2397_v26  ;;  %v6929_v17 = vadd.f32 %v6928_v14, %v6927_v44  ;;  %v8102_v25 = vpack.i.bf16 %v10323_v60, %v10321_v49  ;;  %2624 = vst.msk [vmem:[#allocation4 + $0x71] sm:$0xf] %vm2619_vm12, %v2614_v22  ;;  %v2646_v56 = vld [vmem:[#allocation4 + $0x61] sm:$0xff] }
 0x41a   :  { %v10376_v1 = vld [vmem:[#allocation4 + $0x41] sm:$0xff] }
 0x41b   :  { %v2559_v6 = vmax.f32 %v2543_v54, 0.0  ;;  %v2521_v3 = vmul.f32 %v10181_v9, %v2494_v36  ;;  %v2400_v40 = vadd.f32 %v6929_v17, %v6865_v47  ;;  %8103 = vrot.lane.b32.xlu0 %v8102_v25, %s8720_s8  ;;  %v8137_v30 = vpack.i.bf16 %v2645_v20, %v10376_v1  ;;  %v10395_v26 = vld [vmem:[#allocation4 + $0x22] sm:$0xff]  ;;  %v10408_v54 = vld [vmem:[#allocation4 + $0x32] sm:$0xff] }
 0x41c   :  { %v8132_v47 = vpack.i.bf16 %v10395_v26, %v2653_v52  ;;  %v10404_v14 = vld [vmem:[#allocation4 + $0x42] sm:$0xff]  ;;  %v2651_v25 = vld [vmem:[#allocation4 + $0xb1] sm:$0xff] }
 0x41d   :  { %v2572_v0 = vmax.f32 %v2558_v43, %v2559_v6  ;;  %v2497_v27 = vadd.f32 %v7539_v35, %v2400_v40  ;;  %v2544_v23 = vadd.f32 %v10186_v10, %v2521_v3  ;;  %v8243_v35 = vld [vmem:[%s11593_s7 + $0x88] sm:$0xff]   ;;  %v8142_v36 = vpack.i.bf16 %v10404_v14, %v10408_v54 }
 0x41e   :  { %v2589_v58 = vld [vmem:[#allocation9 + $0x28] ss:$2 sm:$0xf]  ;;  %v2605_v42 = vld [vmem:[#allocation9 + $0x29] ss:$2 sm:$0xf] }
 0x41f   :  { %2577 = vst.msk [vmem:[#allocation9 + $0x30] sm:$0xff] %vm230_vm2, %v2572_v0  ;;  %v2522_v31 = vmul.f32 %v10181_v9, %v2497_v27  ;;  %v2615_v38 = vmax.f32 %v2589_v58, %v2605_v42  ;;  %v2560_v9 = vmax.f32 %v2544_v23, 0.0  ;;  %v2628_v0 = vld [vmem:[#allocation4] sm:$0xff] }
 0x420   :  { %v10342_v16 = vld [vmem:[#allocation4 + $0x71] sm:$0xff]  ;;  %v2658_v20 = vld [vmem:[#allocation4 + $0x62] sm:$0xff] }
 0x421   :  { %v2545_v63 = vadd.f32 %v10186_v10, %v2522_v31  ;;  %v8117_v18 = vpack.i.bf16 %v10342_v16, %v2646_v56  ;;  %2625 = vst.msk [vmem:[#allocation4 + $0x81] sm:$0xf] %vm2619_vm12, %v2615_v38  ;;  %v8242_v10 = vld [vmem:[%s11593_s7 + $0xc8] sm:$0xff]   ;;  %v10355_v33 = vld [vmem:[#allocation4 + $0x70] sm:$0xff] }
 0x422   :  { %6994 = vmatprep.subr.bf16.mxu1 %v8242_v10  ;;  %v10383_v57 = vld [vmem:[#allocation4 + $0x72] sm:$0xff]  ;;  %v2652_v56 = vld [vmem:[#allocation4 + $0x2] sm:$0xff] }
 0x423   :  { %v2561_v24 = vmax.f32 %v2545_v63, 0.0  ;;  %8118 = vrot.lane.b32.xlu1 %v8117_v18, %s8720_s8  ;;  %6995 = vmatpush3.bf16.msra.mxu1 %v8243_v35  ;;  %v8241_v18 = vld [vmem:[%s11593_s7 + $0x110] sm:$0xff]  }
 0x424   :  { %6996 = vmatprep.subr.bf16.mxu1 %v8245_v7 }
 0x425   :  { %v2573_v48 = vmax.f32 %v2560_v9, %v2561_v24 }
 0x426   :  { %v2591_v59 = vld [vmem:[#allocation9 + $0x30] ss:$2 sm:$0xf]  ;;  %v2607_v61 = vld [vmem:[#allocation9 + $0x31] ss:$2 sm:$0xf] }
 0x427   :  { %2578 = vst.msk [vmem:[#allocation9 + $0x38] sm:$0xff] %vm230_vm2, %v2573_v48  ;;  %v2616_v8 = vmax.f32 %v2591_v59, %v2607_v61  ;;  %6997 = vmatpush3.bf16.msra.mxu1 %v8246_v29  ;;  %v2634_v29 = vld [vmem:[#allocation4 + $0x60] sm:$0xff] }
 0x428   :  { %v10357_v34 = vld [vmem:[#allocation4 + $0x80] sm:$0xff] }
 0x429   :  { %v8112_v50 = vpack.i.bf16 %v10357_v34, %v10355_v33  ;;  %2626 = vst.msk [vmem:[#allocation4 + $0x91] sm:$0xf] %vm2619_vm12, %v2616_v8  ;;  %v10369_v55 = vld [vmem:[#allocation4 + $0x81] sm:$0xff] }
 0x42a   :  { %v10380_v11 = vld [vmem:[#allocation4 + $0x82] sm:$0xff] }
 0x42b   :  { %8113 = vrot.lane.b32.xlu0 %v8112_v50, %s8720_s8  ;;  %v8147_v46 = vpack.i.bf16 %v10380_v11, %v10383_v57 }
 0x42e   :  { %v2593_v4 = vld [vmem:[#allocation9 + $0x38] ss:$2 sm:$0xf]  ;;  %v2609_v41 = vld [vmem:[#allocation9 + $0x39] ss:$2 sm:$0xf] }
 0x42f   :  { %v2617_v19 = vmax.f32 %v2593_v4, %v2609_v41 }
 0x430   :  { %v10371_v5 = vld [vmem:[#allocation4 + $0x91] sm:$0xff] }
 0x431   :  { %v8127_v15 = vpack.i.bf16 %v10371_v5, %v10369_v55  ;;  %2627 = vst.msk [vmem:[#allocation4 + $0xa1] sm:$0xf] %vm2619_vm12, %v2617_v19  ;;  %v10385_v44 = vld [vmem:[#allocation4 + $0x90] sm:$0xff] }
 0x432   :  { %v10399_v22 = vld [vmem:[#allocation4 + $0x92] sm:$0xff] }
 0x433   :  { %8128 = vrot.lane.b32.xlu1 %v8127_v15, %s8720_s8 }
 0x437   :  { %8138 = vrot.lane.b32.xlu1 %v8137_v30, %s8720_s8 }
 0x438   :  { %v10387_v2 = vld [vmem:[#allocation4 + $0xa0] sm:$0xff] }
 0x439   :  { %v8122_v51 = vpack.i.bf16 %v10387_v2, %v10385_v44  ;;  %v10393_v45 = vld [vmem:[#allocation4 + $0xa2] sm:$0xff] }
 0x43a   :  { %v8157_v62 = vpack.i.bf16 %v10393_v45, %v10399_v22  ;;  %v10412_v17 = vld [vmem:[#allocation4 + $0xa1] sm:$0xff] }
 0x43b   :  { %8148 = vrot.lane.b32.xlu1 %v8147_v46, %s8720_s8  ;;  %8123 = vrot.lane.b32.xlu0 %v8122_v51, %s8720_s8  ;;  %v8152_v43 = vpack.i.bf16 %v2651_v25, %v10412_v17 }
 0x43f   :  { %8158 = vrot.lane.b32.xlu1 %v8157_v62, %s8720_s8  ;;  %8133 = vrot.lane.b32.xlu0 %v8132_v47, %s8720_s8 }
 0x443   :  { %8143 = vrot.lane.b32.xlu0 %v8142_v36, %s8720_s8 }
 0x447   :  { %8153 = vrot.lane.b32.xlu0 %v8152_v43, %s8720_s8  ;;  %s8736_s8 = smov [#allocation28]  }
 0x448   :  { %s6421_s4 = sshll.u32 %s8736_s8, 4  ;;  %s6422_s4 = int_to_ptr.vmem [resolvable:$true] %s6421_s4 }
 0x449   :  { %s8681_s22 = scalar_lea.vmem %s6422_s4, 32  ;;  %p8686_p9 = scmp.lt.s32.totalorder %s6422_s4, %s6422_s4 }
 0x44a   :  { %p8682_p8 = scmp.ne.s32.totalorder %s6422_s4, %s8681_s22  ;;  %p8687_p10 = scmp.lt.s32.totalorder %s8681_s22, %s8681_s22 }
 0x44c   :  { %p8688_p11 = por %p8687_p10, %p8686_p9 }
 0x44e   :  { %p8689_p12 = pnand %p8688_p11, %p8682_p8 }
 0x475   :  { %v8099_v6 = vpop.permute.xlu1 %8098 }
 0x476   :  { %v8101_v3 = vunpack.i.h.bf16 %v8099_v6  ;;  %v8100_v40 = vunpack.i.l.bf16 %v8099_v6 }
 0x478   :  { %v2776_v23 = vsel %vm230_vm2, %v2628_v0, %v8100_v40  ;;  %v2777_v31 = vsel %vm230_vm2, %v10271_v21, %v8101_v3  ;;  %v8244_v21 = vld [vmem:[%s11593_s7 + $0x108] sm:$0xff]  }
 0x479   :  { %v2804_v63 = vpack.c.bf16 %v2777_v31, %v2776_v23 }
 0x47d   :  { %v8094_v27 = vpop.permute.xlu0 %8093 }
 0x47e   :  { %v8096_v58 = vunpack.i.h.bf16 %v8094_v27  ;;  %v8095_v42 = vunpack.i.l.bf16 %v8094_v27 }
 0x480   :  { %v2784_v38 = vsel %vm230_vm2, %v2652_v56, %v8095_v42  ;;  %v2785_v53 = vsel %vm230_vm2, %v2653_v52, %v8096_v58 }
 0x481   :  { %v2805_v32 = vpack.c.bf16 %v2785_v53, %v2784_v38  ;;  %v2633_v38 = vld [vmem:[#allocation4 + $0x50] sm:$0xff] }
 0x483   :  { %3154 = vmatprep.mubr.bf16.mxu0 %v2805_v32 }
 0x484   :  { %3155 = vmatmul.mubr.bf16.vlgmr.msra.gmra.mxu0 %v2804_v63 }
 0x485   :  { %v8109_v9 = vpop.permute.xlu1 %8108  ;;  %7541 = vmatpush3.bf16.msra.mxu0 %v10317_v37  ;;  %v8247_v37 = vld [vmem:[%s11593_s7 + $0x100] sm:$0xff]  }
 0x486   :  { %v8111_v24 = vunpack.i.h.bf16 %v8109_v9  ;;  %v8110_v48 = vunpack.i.l.bf16 %v8109_v9  ;;  %7542 = vmatprep.subr.bf16.mxu0 %v8241_v18 }
 0x488   :  { %v2778_v59 = vsel %vm230_vm2, %v10273_v28, %v8110_v48  ;;  %v2779_v61 = vsel %vm230_vm2, %v10321_v49, %v8111_v24  ;;  %v2808_v24 = vpack.c.bf16 %v10408_v54, %v10395_v26 }
 0x489   :  { %v2807_v8 = vpack.c.bf16 %v2779_v61, %v2778_v59  ;;  %7543 = vmatpush3.bf16.msra.mxu0 %v8241_v18 }
 0x48a   :  { %7544 = vmatprep.subr.bf16.mxu0 %v8244_v21 }
 0x48b   :  { %3219 = vmatprep.mubr.bf16.mxu1 %v2807_v8 }
 0x48d   :  { %v8104_v10 = vpop.permute.xlu0 %8103  ;;  %7545 = vmatpush3.bf16.msra.mxu0 %v8244_v21 }
 0x48e   :  { %v8106_v35 = vunpack.i.h.bf16 %v8104_v10  ;;  %v8105_v50 = vunpack.i.l.bf16 %v8104_v10  ;;  %7546 = vmatprep.subr.bf16.mxu0 %v8247_v37 }
 0x490   :  { %v2786_v4 = vsel %vm230_vm2, %v10395_v26, %v8105_v50  ;;  %v2787_v28 = vsel %vm230_vm2, %v10408_v54, %v8106_v35  ;;  %v2657_v26 = vld [vmem:[#allocation4 + $0x52] sm:$0xff]  ;;  %v2817_v35 = vpack.c.bf16 %v10399_v22, %v10380_v11 }
 0x491   :  { %v2809_v49 = vpack.c.bf16 %v2787_v28, %v2786_v4  ;;  %7547 = vmatpush3.bf16.msra.mxu0 %v8247_v37 }
 0x493   :  { %3162 = vmatprep.mubr.bf16.mxu0 %v2809_v49 }
 0x494   :  { %3163 = vmatmul.mubr.bf16.gmra.mxu0 %v2807_v8 }
 0x495   :  { %v8119_v41 = vpop.permute.xlu1 %8118 }
 0x496   :  { %v8121_v19 = vunpack.i.h.bf16 %v8119_v41  ;;  %v8120_v7 = vunpack.i.l.bf16 %v8119_v41  ;;  %v2663_v41 = vld [vmem:[#allocation4 + $0xb2] sm:$0xff] }
 0x498   :  { %v2780_v51 = vsel %vm230_vm2, %v2634_v29, %v8120_v7  ;;  %v2781_v52 = vsel %vm230_vm2, %v10355_v33, %v8121_v19 }
 0x499   :  { %v2813_v25 = vpack.c.bf16 %v2781_v52, %v2780_v51  ;;  %v8249_v52 = vld [vmem:[%s11596_s10 + $0x38] sm:$0xff]  }
 0x49d   :  { %v8114_v15 = vpop.permute.xlu0 %8113 }
 0x49e   :  { %v8116_v30 = vunpack.i.h.bf16 %v8114_v15  ;;  %v8115_v46 = vunpack.i.l.bf16 %v8114_v15 }
 0x4a0   :  { %v2788_v62 = vsel %vm230_vm2, %v2658_v20, %v8115_v46  ;;  %v2789_v47 = vsel %vm230_vm2, %v10383_v57, %v8116_v30 }
 0x4a1   :  { %v2814_v36 = vpack.c.bf16 %v2789_v47, %v2788_v62  ;;  %v8250_v62 = vld [vmem:[%s11596_s10 + $0x70] sm:$0xff]   ;;  %v8253_v47 = vld [vmem:[%s11596_s10 + $0xb8] sm:$0xff]  }
 0x4a3   :  { %3170 = vmatprep.mubr.bf16.mxu0 %v2814_v36  ;;  %v8254_v36 = vld [vmem:[%s11596_s10 + $0x68] sm:$0xff]  }
 0x4a4   :  { %3171 = vmatmul.mubr.bf16.gmra.mxu0 %v2813_v25  ;;  %v8256_v25 = vld [vmem:[%s11596_s10 + $0xf0] sm:$0xff]  }
 0x4a5   :  { %v8129_v43 = vpop.permute.xlu1 %8128 }
 0x4a6   :  { %v8131_v6 = vunpack.i.h.bf16 %v8129_v43  ;;  %v8130_v3 = vunpack.i.l.bf16 %v8129_v43  ;;  %v8255_v43 = vld [vmem:[%s11596_s10 + $0x28] sm:$0xff]  }
 0x4a8   :  { %v2782_v33 = vsel %vm230_vm2, %v10357_v34, %v8130_v3  ;;  %v2783_v23 = vsel %vm230_vm2, %v10385_v44, %v8131_v6  ;;  %v8257_v6 = vld [vmem:[%s11596_s10 + $0xb0] sm:$0xff]   ;;  %v8258_v3 = vld [vmem:[%s11596_s10 + $0x60] sm:$0xff]  }
 0x4a9   :  { %v8139_v40 = vpop.permute.xlu1 %8138  ;;  %v2816_v9 = vpack.c.bf16 %v2783_v23, %v2782_v33  ;;  %v8265_v33 = vld [vmem:[%s11596_s10 + $0xa0] sm:$0xff]   ;;  %v8266_v23 = vld [vmem:[%s11596_s10 + $0x50] sm:$0xff]  }
 0x4aa   :  { %v8141_v58 = vunpack.i.h.bf16 %v8139_v40  ;;  %v8140_v42 = vunpack.i.l.bf16 %v8139_v40  ;;  %v8260_v40 = vld [vmem:[%s11596_s10 + $0xe8] sm:$0xff]  }
 0x4ac   :  { %v2800_v34 = vsel %vm230_vm2, %v10323_v60, %v8140_v42  ;;  %v2801_v44 = vsel %vm230_vm2, %v2633_v38, %v8141_v58  ;;  %v2812_v60 = vpack.c.bf16 %v2657_v26, %v10404_v14  ;;  %v8264_v58 = vld [vmem:[%s11596_s10 + $0xe0] sm:$0xff]   ;;  %v8263_v42 = vld [vmem:[%s11596_s10 + $0x18] sm:$0xff]  }
 0x4ad   :  { %v8124_v0 = vpop.permute.xlu0 %8123  ;;  %v2811_v10 = vpack.c.bf16 %v2801_v44, %v2800_v34  ;;  %v8269_v38 = vld [vmem:[%s11596_s10 + $0x98] sm:$0xff]   ;;  %v8275_v34 = vld [vmem:[%s11596_s10] sm:$0xff]   ;;  %v8277_v44 = vld [vmem:[%s11596_s10 + $0x88] sm:$0xff]  }
 0x4ae   :  { %v8126_v27 = vunpack.i.h.bf16 %v8124_v0  ;;  %v8125_v56 = vunpack.i.l.bf16 %v8124_v0  ;;  %v8259_v0 = vld [vmem:[%s11596_s10 + $0x20] sm:$0xff]  }
 0x4b0   :  { %v2790_v57 = vsel %vm230_vm2, %v10380_v11, %v8125_v56  ;;  %v2791_v31 = vsel %vm230_vm2, %v10399_v22, %v8126_v27  ;;  %v8261_v27 = vld [vmem:[%s11596_s10 + $0xa8] sm:$0xff]   ;;  %v8262_v56 = vld [vmem:[%s11596_s10 + $0x58] sm:$0xff]  }
 0x4b1   :  { %v8134_v53 = vpop.permute.xlu0 %8133  ;;  %v2818_v32 = vpack.c.bf16 %v2791_v31, %v2790_v57  ;;  %v8268_v57 = vld [vmem:[%s11596_s10 + $0xd8] sm:$0xff]   ;;  %v8267_v31 = vld [vmem:[%s11596_s10 + $0x10] sm:$0xff]  }
 0x4b2   :  { %v8136_v63 = vunpack.i.h.bf16 %v8134_v53  ;;  %v8135_v18 = vunpack.i.l.bf16 %v8134_v53  ;;  %v8270_v53 = vld [vmem:[%s11596_s10 + $0x48] sm:$0xff]  }
 0x4b3   :  { %3178 = vmatprep.mubr.bf16.mxu0 %v2818_v32  ;;  %v8272_v32 = vld [vmem:[%s11596_s10 + $0xd0] sm:$0xff]  }
 0x4b4   :  { %v2793_v48 = vsel %vm230_vm2, %v10294_v39, %v8136_v63  ;;  %v2792_v21 = vsel %vm230_vm2, %v10247_v12, %v8135_v18  ;;  %3179 = vmatmul.mubr.bf16.gmra.mxu0 %v2816_v9  ;;  %v8149_v12 = vpop.permute.xlu1 %8148  ;;  %v8271_v63 = vld [vmem:[%s11596_s10 + $0x8] sm:$0xff]   ;;  %v8273_v18 = vld [vmem:[%s11596_s10 + $0x90] sm:$0xff]  }
 0x4b5   :  { %v2806_v59 = vpack.c.bf16 %v2793_v48, %v2792_v21  ;;  %v8144_v61 = vpop.permute.xlu0 %8143  ;;  %7548 = vmatprep.mubr.msk.bf16.mxu0 %vm230_vm2, %v2808_v24  ;;  %v8151_v28 = vunpack.i.h.bf16 %v8149_v12  ;;  %v8150_v49 = vunpack.i.l.bf16 %v8149_v12  ;;  %v8276_v24 = vld [vmem:[%s11596_s10 + $0xc8] sm:$0xff]   ;;  %v8278_v48 = vld [vmem:[%s11596_s10 + $0x178] sm:$0xff]   ;;  %v8279_v21 = vld [vmem:[%s11596_s10 + $0xc0] sm:$0xff]  }
 0x4b6   :  { %v8146_v8 = vunpack.i.h.bf16 %v8144_v61  ;;  %v8145_v37 = vunpack.i.l.bf16 %v8144_v61  ;;  %v8284_v61 = vld [vmem:[%s11596_s10 + $0x1f8] sm:$0xff]  }
 0x4b7   :  { %3220 = vmatmul.mubr.bf16.vlgmr.msra.gmra.mxu1 %v2806_v59  ;;  %v2796_v7 = vsel %vm230_vm2, %v10342_v16, %v8150_v49  ;;  %v2797_v11 = vsel %vm230_vm2, %v10369_v55, %v8151_v28  ;;  %v8281_v59 = vld [vmem:[%s11596_s10 + $0x80] sm:$0xff]  }
 0x4b8   :  { %3227 = vmatprep.mubr.bf16.mxu1 %v2811_v10  ;;  %v2794_v54 = vsel %vm230_vm2, %v10296_v13, %v8145_v37  ;;  %v2795_v39 = vsel %vm230_vm2, %v10376_v1, %v8146_v8  ;;  %v2639_v13 = vld [vmem:[#allocation4 + $0xb0] sm:$0xff]  ;;  %v2821_v1 = vpack.c.bf16 %v2663_v41, %v10393_v45  ;;  %v8159_v22 = vpop.permute.xlu1 %8158  ;;  %v2815_v20 = vpack.c.bf16 %v2797_v11, %v2796_v7 }
 0x4b9   :  { %v8154_v50 = vpop.permute.xlu0 %8153  ;;  %v2810_v4 = vpack.c.bf16 %v2795_v39, %v2794_v54  ;;  %v8161_v30 = vunpack.i.h.bf16 %v8159_v22  ;;  %v8160_v46 = vunpack.i.l.bf16 %v8159_v22 }
 0x4ba   :  { %v8156_v14 = vunpack.i.h.bf16 %v8154_v50  ;;  %v8155_v19 = vunpack.i.l.bf16 %v8154_v50 }
 0x4bb   :  { %v2798_v16 = vsel %vm230_vm2, %v10371_v5, %v8160_v46  ;;  %v2799_v55 = vsel %vm230_vm2, %v10412_v17, %v8161_v30  ;;  %v8252_v5 = vld [vmem:[%s11596_s10 + $0xf8] sm:$0xff]   ;;  %v8251_v17 = vld [vmem:[%s11596_s10 + $0x30] sm:$0xff]  }
 0x4bc   :  { %7549 = vmatmul.mubr.msk.bf16.vlgmr.msra.gmra.mxu0 %vm230_vm2, %v2812_v60  ;;  %v2802_v29 = vsel %vm230_vm2, %v10387_v2, %v8155_v19  ;;  %v2803_v15 = vsel %vm230_vm2, %v2639_v13, %v8156_v14  ;;  %v2819_v45 = vpack.c.bf16 %v2799_v55, %v2798_v16  ;;  %v8248_v2 = vld [vmem:[%s11596_s10 + $0x78] sm:$0xff]   ;;  %7070 = vmatprep.subr.bf16.mxu0 %v8252_v5  ;;  %v10596_v16 = vld [vmem:[#allocation20] ss:$0 sm:$0xff] }
 0x4bd   :  { %7552 = vmatprep.mubr.msk.bf16.mxu0 %vm230_vm2, %v2817_v35  ;;  %v2820_v51 = vpack.c.bf16 %v2803_v15, %v2802_v29  ;;  %7030 = vmatprep.subr.bf16.mxu1 %v8248_v2  ;;  %v10598_v2 = vld [vmem:[#allocation22] ss:$0 sm:$0xff] }
 0x4be   :  { %7031 = vmatpush3.bf16.msra.mxu1 %v8249_v52  ;;  %7071 = vmatpush3.bf16.msra.mxu0 %v8253_v47 }
 0x4bf   :  { %3228 = vmatmul.mubr.bf16.gmra.mxu1 %v2810_v4  ;;  %7032 = vmatprep.subr.bf16.mxu1 %v8250_v62 }
 0x4c0   :  { %3235 = vmatprep.mubr.bf16.mxu1 %v2816_v9  ;;  %7072 = vmatprep.subr.bf16.mxu0 %v8256_v25  ;;  %v8274_v9 = vld [vmem:[%s11596_s10 + $0x40] sm:$0xff]  }
 0x4c2   :  { %7033 = vmatpush3.bf16.msra.mxu1 %v8251_v17  ;;  %7073 = vmatpush3.bf16.msra.mxu0 %v8257_v6 }
 0x4c3   :  { %7034 = vmatprep.subr.bf16.mxu1 %v8254_v36  ;;  %7074 = vmatprep.subr.bf16.mxu0 %v8260_v40 }
 0x4c4   :  { %7553 = vmatmul.mubr.msk.bf16.gmra.mxu0 %vm230_vm2, %v2821_v1 }
 0x4c6   :  { %7035 = vmatpush3.bf16.msra.mxu1 %v8255_v43  ;;  %7075 = vmatpush3.bf16.msra.mxu0 %v8261_v27 }
 0x4c7   :  { %3236 = vmatmul.mubr.bf16.gmra.mxu1 %v2815_v20  ;;  %7036 = vmatprep.subr.bf16.mxu1 %v8258_v3 }
 0x4c8   :  { %3243 = vmatprep.mubr.bf16.mxu1 %v2820_v51  ;;  %7076 = vmatprep.subr.bf16.mxu0 %v8264_v58 }
 0x4ca   :  { %7037 = vmatpush3.bf16.msra.mxu1 %v8259_v0  ;;  %7077 = vmatpush3.bf16.msra.mxu0 %v8265_v33 }
 0x4cb   :  { %7038 = vmatprep.subr.bf16.mxu1 %v8262_v56  ;;  %7078 = vmatprep.subr.bf16.mxu0 %v8268_v57 }
 0x4ce   :  { %7039 = vmatpush3.bf16.msra.mxu1 %v8263_v42  ;;  %7079 = vmatpush3.bf16.msra.mxu0 %v8269_v38 }
 0x4cf   :  { %3244 = vmatmul.mubr.bf16.gmra.mxu1 %v2819_v45  ;;  %7040 = vmatprep.subr.bf16.mxu1 %v8266_v23 }
 0x4d0   :  { %7080 = vmatprep.subr.bf16.mxu0 %v8272_v32 }
 0x4d2   :  { %7041 = vmatpush3.bf16.msra.mxu1 %v8267_v31  ;;  %7081 = vmatpush3.bf16.msra.mxu0 %v8273_v18 }
 0x4d3   :  { %7042 = vmatprep.subr.bf16.mxu1 %v8270_v53  ;;  %7082 = vmatprep.subr.bf16.mxu0 %v8276_v24 }
 0x4d6   :  { %7043 = vmatpush3.bf16.msra.mxu1 %v8271_v63  ;;  %7083 = vmatpush3.bf16.msra.mxu0 %v8277_v44 }
 0x4d7   :  { %7044 = vmatprep.subr.bf16.mxu1 %v8274_v9  ;;  %7084 = vmatprep.subr.bf16.mxu0 %v8279_v21 }
 0x4da   :  { %7045 = vmatpush3.bf16.msra.mxu1 %v8275_v34  ;;  %7085 = vmatpush3.bf16.msra.mxu0 %v8281_v59 }
 0x4db   :  { %7110 = vmatprep.subr.bf16.mxu1 %v8278_v48  ;;  %7150 = vmatprep.subr.bf16.mxu0 %v8284_v61 }
 0x544   :  { %v6958_v8 = vpop.f32.mrf.mxu0 }
 0x546   :  { %v6959_v37 = vpop.f32.mrf.mxu0 }
 0x547   :  { %v6960_v1 = vadd.f32 %v6959_v37, %v6958_v8  ;;  %v3376_v8 = vld [vmem:[#allocation5 + $0x1] sm:$0xff] }
 0x548   :  { %v6961_v10 = vpop.f32.mrf.mxu0 }
 0x54a   :  { %v6962_v26 = vpop.f32.mrf.mxu0 }
 0x54b   :  { %v6963_v30 = vadd.f32 %v6962_v26, %v6961_v10 }
 0x554   :  { %v6964_v60 = vpop.f32.mrf.mxu0 }
 0x556   :  { %v6965_v54 = vpop.f32.mrf.mxu0 }
 0x557   :  { %v6966_v47 = vadd.f32 %v6965_v54, %v6964_v60 }
 0x558   :  { %v6967_v39 = vpop.f32.mrf.mxu0 }
 0x55a   :  { %v6968_v12 = vpop.f32.mrf.mxu0 }
 0x55b   :  { %v6969_v42 = vadd.f32 %v6968_v12, %v6967_v39 }
 0x564   :  { %v6970_v35 = vpop.f32.mrf.mxu0 }
 0x566   :  { %v6971_v50 = vpop.f32.mrf.mxu0 }
 0x567   :  { %v6972_v9 = vadd.f32 %v6971_v50, %v6970_v35 }
 0x568   :  { %v6973_v4 = vpop.f32.mrf.mxu0 }
 0x56a   :  { %v6974_v28 = vpop.f32.mrf.mxu0 }
 0x56b   :  { %v6975_v26 = vadd.f32 %v6974_v28, %v6973_v4 }
 0x574   :  { %v10588_v49 = vpop.f32.mrf.mxu0 }
 0x576   :  { %v10590_v41 = vpop.f32.mrf.mxu0 }
 0x577   :  { %v6998_v14 = vpop.f32.mrf.mxu1 }
 0x578   :  { %v10592_v19 = vpop.f32.mrf.mxu0 }
 0x579   :  { %v6999_v13 = vpop.f32.mrf.mxu1 }
 0x57a   :  { %v7000_v7 = vadd.f32 %v6999_v13, %v6998_v14  ;;  %v10594_v11 = vpop.f32.mrf.mxu0  ;;  %v10615_v13 = vld [vmem:[#allocation5] sm:$0xff] }
 0x57b   :  { %v7001_v22 = vpop.f32.mrf.mxu1  ;;  %11624 = vst [vmem:[#allocation36_spill] sm:$0xff] %v10615_v13 }
 0x57c   :  { %v7550_v29 = vpop.f32.mrf.mxu0  ;;  %v3222_v15 = vadd.f32 %v7000_v7, %v6960_v1  ;;  %v8280_v7 = vld [vmem:[%s11596_s10 + $0x138] sm:$0xff]  }
 0x57d   :  { %v7002_v20 = vpop.f32.mrf.mxu1 }
 0x57e   :  { %v7003_v46 = vadd.f32 %v7002_v20, %v7001_v22  ;;  %v3286_v51 = vpop.f32.mrf.mxu0 }
 0x57f   :  { %v3287_v55 = vadd.f32 %v3286_v51, %v3222_v15  ;;  %v7004_v45 = vpop.f32.mrf.mxu1  ;;  %v6978_v51 = vadd.f32 %v10590_v41, %v10588_v49 }
 0x580   :  { %v7551_v52 = vpop.f32.mrf.mxu0  ;;  %v3225_v62 = vadd.f32 %v7003_v46, %v6963_v30  ;;  %v3388_v30 = vld [vmem:[#allocation5 + $0x2] sm:$0xff] }
 0x581   :  { %v3324_v5 = vmul.f32 %v10596_v16, %v3287_v55  ;;  %v7005_v17 = vpop.f32.mrf.mxu1 }
 0x582   :  { %v7006_v36 = vadd.f32 %v7005_v17, %v7004_v45  ;;  %v3289_v25 = vpop.f32.mrf.mxu0 }
 0x583   :  { %v3339_v43 = vadd.f32 %v10598_v2, %v3324_v5  ;;  %v3290_v6 = vadd.f32 %v3289_v25, %v3225_v62  ;;  %v7007_v3 = vpop.f32.mrf.mxu1 }
 0x584   :  { %v3230_v40 = vadd.f32 %v7006_v36, %v6966_v47  ;;  %v10603_v56 = vpop.f32.mrf.mxu0  ;;  %v8283_v47 = vld [vmem:[%s11596_s10 + $0x130] sm:$0xff]   ;;  %v8285_v36 = vld [vmem:[%s11596_s10 + $0x1b8] sm:$0xff]  }
 0x585   :  { %v3347_v0 = vmax.f32 %v3339_v43, 0.0  ;;  %v3325_v27 = vmul.f32 %v10596_v16, %v3290_v6  ;;  %v7008_v58 = vpop.f32.mrf.mxu1  ;;  %v8286_v6 = vld [vmem:[%s11596_s10 + $0x168] sm:$0xff]  }
 0x586   :  { %v3295_v33 = vadd.f32 %v7550_v29, %v3230_v40  ;;  %v7009_v23 = vadd.f32 %v7008_v58, %v7007_v3  ;;  %v3302_v63 = vpop.f32.mrf.mxu0  ;;  %v8282_v29 = vld [vmem:[%s11596_s10 + $0x170] sm:$0xff]   ;;  %v6981_v40 = vadd.f32 %v10594_v11, %v10592_v19  ;;  %v8287_v19 = vld [vmem:[%s11596_s10 + $0x128] sm:$0xff]  }
 0x587   :  { %3356 = vst [vmem:[#allocation5 + $0x11] sm:$0xf] %v3347_v0  ;;  %v3340_v57 = vadd.f32 %v10598_v2, %v3325_v27  ;;  %v7010_v31 = vpop.f32.mrf.mxu1  ;;  %v8288_v3 = vld [vmem:[%s11596_s10 + $0x1f0] sm:$0xff]  }
 0x588   :  { %v3326_v38 = vmul.f32 %v10596_v16, %v3295_v33  ;;  %v3233_v53 = vadd.f32 %v7009_v23, %v6969_v42  ;;  %v10609_v37 = vpop.f32.mrf.mxu0  ;;  %v8289_v11 = vld [vmem:[%s11596_s10 + $0x1b0] sm:$0xff]  }
 0x589   :  { %v3348_v32 = vmax.f32 %v3340_v57, 0.0  ;;  %v7011_v18 = vpop.f32.mrf.mxu1 }
 0x58a   :  { %v3341_v24 = vadd.f32 %v10598_v2, %v3326_v38  ;;  %v3298_v34 = vadd.f32 %v7551_v52, %v3233_v53  ;;  %v7012_v44 = vadd.f32 %v7011_v18, %v7010_v31  ;;  %v3305_v15 = vpop.f32.mrf.mxu0 }
 0x58b   :  { %3357 = vst [vmem:[#allocation5 + $0x21] sm:$0xf] %v3348_v32  ;;  %v7013_v48 = vpop.f32.mrf.mxu1 }
 0x58c   :  { %v3349_v21 = vmax.f32 %v3341_v24, 0.0  ;;  %v3327_v59 = vmul.f32 %v10596_v16, %v3298_v34  ;;  %v3238_v61 = vadd.f32 %v7012_v44, %v6972_v9  ;;  %v8292_v24 = vld [vmem:[%s11596_s10 + $0x1e8] sm:$0xff]  }
 0x58d   :  { %v7014_v10 = vpop.f32.mrf.mxu1 }
 0x58e   :  { %3358 = vst [vmem:[#allocation5 + $0x31] sm:$0xf] %v3349_v21  ;;  %v3342_v60 = vadd.f32 %v10598_v2, %v3327_v59  ;;  %v3303_v54 = vadd.f32 %v3302_v63, %v3238_v61  ;;  %v7015_v39 = vadd.f32 %v7014_v10, %v7013_v48  ;;  %v10612_v12 = vld [vmem:[#allocation5 + $0x11] sm:$0xff]  ;;  %v8290_v63 = vld [vmem:[%s11596_s10 + $0x160] sm:$0xff]   ;;  %v8293_v61 = vld [vmem:[%s11596_s10 + $0x1a8] sm:$0xff]  }
 0x58f   :  { %v3365_v35 = vld [vmem:[#allocation5 + $0x10] sm:$0xff]  ;;  %v7016_v50 = vpop.f32.mrf.mxu1  ;;  %v3401_v14 = vpack.c.bf16 %v10612_v12, %v3376_v8  ;;  %v8291_v21 = vld [vmem:[%s11596_s10 + $0x120] sm:$0xff]  }
 0x590   :  { %v3400_v1 = vpack.c.bf16 %v3365_v35, %v10615_v13  ;;  %v3350_v4 = vmax.f32 %v3342_v60, 0.0  ;;  %v3328_v28 = vmul.f32 %v10596_v16, %v3303_v54  ;;  %v3241_v22 = vadd.f32 %v7015_v39, %v6975_v26  ;;  %v10625_v46 = vld [vmem:[#allocation5 + $0x12] sm:$0xff]  ;;  %v3382_v8 = vld [vmem:[#allocation5 + $0x61] sm:$0xff] }
 0x591   :  { %v7017_v20 = vpop.f32.mrf.mxu1  ;;  %4038 = vmatprep.mubr.bf16.mxu1 %v3401_v14  ;;  %v3402_v43 = vpack.c.bf16 %v10625_v46, %v3388_v30  ;;  %v8294_v60 = vld [vmem:[%s11596_s10 + $0x158] sm:$0xff]   ;;  %v8299_v30 = vld [vmem:[%s11596_s10 + $0x110] sm:$0xff]  }
 0x592   :  { %3359 = vst [vmem:[#allocation5 + $0x41] sm:$0xf] %v3350_v4  ;;  %v3343_v55 = vadd.f32 %v10598_v2, %v3328_v28  ;;  %v3306_v45 = vadd.f32 %v3305_v15, %v3241_v22  ;;  %v7018_v52 = vadd.f32 %v7017_v20, %v7016_v50  ;;  %4039 = vmatmul.mubr.bf16.vlgmr.msra.gmra.mxu1 %v3400_v1  ;;  %v3366_v62 = vld [vmem:[#allocation5 + $0x20] sm:$0xff]  ;;  %v8295_v14 = vld [vmem:[%s11596_s10 + $0x118] sm:$0xff]  }
 0x593   :  { %7111 = vmatpush3.bf16.msra.mxu1 %v8280_v7  ;;  %v7019_v5 = vpop.f32.mrf.mxu1  ;;  %v3403_v17 = vpack.c.bf16 %v3366_v62, %v3365_v35  ;;  %v10646_v27 = vld [vmem:[#allocation5 + $0x21] sm:$0xff]  ;;  %v8300_v15 = vld [vmem:[%s11596_s10 + $0x1d8] sm:$0xff]  }
 0x594   :  { %v3351_v25 = vmax.f32 %v3343_v55, 0.0  ;;  %v3329_v49 = vmul.f32 %v10596_v16, %v3306_v45  ;;  %v3246_v41 = vadd.f32 %v7018_v52, %v6978_v51  ;;  %7112 = vmatprep.subr.bf16.mxu1 %v8282_v29  ;;  %v10683_v59 = vld [vmem:[#allocation5 + $0x22] sm:$0xff]  ;;  %v8301_v51 = vld [vmem:[%s11596_s10 + $0x198] sm:$0xff]   ;;  %v8304_v52 = vld [vmem:[%s11596_s10 + $0x1d0] sm:$0xff]  }
 0x595   :  { %v7020_v0 = vpop.f32.mrf.mxu1  ;;  %4103 = vmatprep.mubr.bf16.mxu0 %v3403_v17  ;;  %v10648_v58 = vld [vmem:[#allocation5 + $0x31] sm:$0xff]  ;;  %v8296_v35 = vld [vmem:[%s11596_s10 + $0x1e0] sm:$0xff]   ;;  %v8302_v45 = vld [vmem:[%s11596_s10 + $0x148] sm:$0xff]  }
 0x596   :  { %v3367_v42 = vld [vmem:[#allocation5 + $0x30] sm:$0xff]  ;;  %3360 = vst [vmem:[#allocation5 + $0x71] sm:$0xf] %v3351_v25  ;;  %v3344_v33 = vadd.f32 %v10598_v2, %v3329_v49  ;;  %v3311_v23 = vadd.f32 %v10603_v56, %v3246_v41  ;;  %v7021_v57 = vadd.f32 %v7020_v0, %v7019_v5  ;;  %4104 = vmatmul.mubr.bf16.vlgmr.msra.gmra.mxu0 %v3402_v43  ;;  %v8297_v1 = vld [vmem:[%s11596_s10 + $0x1a0] sm:$0xff]  }
 0x597   :  { %v10654_v31 = vpack.c.bf16 %v10648_v58, %v10646_v27  ;;  %7113 = vmatpush3.bf16.msra.mxu1 %v8283_v47  ;;  %7151 = vmatpush3.bf16.msra.mxu0 %v8285_v36  ;;  %v10664_v32 = vpack.c.bf16 %v3367_v42, %v3366_v62  ;;  %v10671_v9 = vld [vmem:[#allocation5 + $0x32] sm:$0xff]  ;;  %v3394_v28 = vld [vmem:[#allocation5 + $0x62] sm:$0xff]  ;;  %v3405_v43 = vpack.c.bf16 %v10683_v59, %v10625_v46 }
 0x598   :  { %v3352_v38 = vmax.f32 %v3344_v33, 0.0  ;;  %v3330_v53 = vmul.f32 %v10596_v16, %v3311_v23  ;;  %v3249_v56 = vadd.f32 %v7021_v57, %v6981_v40  ;;  %7114 = vmatprep.subr.bf16.mxu1 %v8286_v6  ;;  %7152 = vmatprep.subr.bf16.mxu0 %v8288_v3  ;;  %v10691_v26 = vpack.c.bf16 %v10671_v9, %v10683_v59  ;;  %v8303_v36 = vld [vmem:[%s11596_s10 + $0x108] sm:$0xff]   ;;  %v8305_v49 = vld [vmem:[%s11596_s10 + $0x190] sm:$0xff]   ;;  %v8306_v41 = vld [vmem:[%s11596_s10 + $0x140] sm:$0xff]  }
 0x599   :  { %4046 = vmatprep.mubr.bf16.mxu1 %v10654_v31  ;;  %v10669_v18 = vld [vmem:[#allocation5 + $0x40] sm:$0xff]  ;;  %v8308_v40 = vld [vmem:[%s11596_s10 + $0x1c8] sm:$0xff]   ;;  %v8310_v57 = vld [vmem:[%s11596_s10 + $0x238] sm:$0xff]  }
 0x59a   :  { %3361 = vst [vmem:[#allocation5 + $0x81] sm:$0xf] %v3352_v38  ;;  %v3345_v34 = vadd.f32 %v10598_v2, %v3330_v53  ;;  %v3314_v44 = vadd.f32 %v10609_v37, %v3249_v56  ;;  %4047 = vmatmul.mubr.bf16.gmra.mxu1 %v10664_v32  ;;  %v3409_v48 = vpack.c.bf16 %v10669_v18, %v3367_v42  ;;  %v8307_v33 = vld [vmem:[%s11596_s10 + $0x100] sm:$0xff]   ;;  %v8309_v23 = vld [vmem:[%s11596_s10 + $0x188] sm:$0xff]   ;;  %v8313_v56 = vld [vmem:[%s11596_s10 + $0x230] sm:$0xff]  }
 0x59b   :  { %7115 = vmatpush3.bf16.msra.mxu1 %v8287_v19  ;;  %7153 = vmatpush3.bf16.msra.mxu0 %v8289_v11  ;;  %v8311_v19 = vld [vmem:[%s11596_s10 + $0x1c0] sm:$0xff]   ;;  %v3404_v38 = vpack.c.bf16 %v10646_v27, %v10612_v12  ;;  %v8314_v12 = vld [vmem:[%s11596_s10 + $0x228] sm:$0xff]   ;;  %v8317_v59 = vld [vmem:[%s11596_s10 + $0x210] sm:$0xff]  }
 0x59c   :  { %v3353_v10 = vmax.f32 %v3345_v34, 0.0  ;;  %v3331_v37 = vmul.f32 %v10596_v16, %v3314_v44  ;;  %4111 = vmatprep.mubr.bf16.mxu0 %v3409_v48  ;;  %7116 = vmatprep.subr.bf16.mxu1 %v8290_v63  ;;  %v10776_v11 = vld [vmem:[#allocation5 + $0x42] sm:$0xff]  ;;  %v8316_v48 = vld [vmem:[%s11596_s10 + $0x218] sm:$0xff]  }
 0x59d   :  { %7154 = vmatprep.subr.bf16.mxu0 %v8292_v24  ;;  %v10696_v54 = vld [vmem:[#allocation5 + $0x71] sm:$0xff]  ;;  %v8312_v53 = vld [vmem:[%s11596_s10 + $0x180] sm:$0xff]   ;;  %v3411_v63 = vpack.c.bf16 %v10776_v11, %v10671_v9 }
 0x59e   :  { %v3371_v39 = vld [vmem:[#allocation5 + $0x70] sm:$0xff]  ;;  %3362 = vst [vmem:[#allocation5 + $0x91] sm:$0xf] %v3353_v10  ;;  %v3346_v16 = vadd.f32 %v10598_v2, %v3331_v37  ;;  %4112 = vmatmul.mubr.bf16.gmra.mxu0 %v10691_v26  ;;  %v3416_v50 = vpack.c.bf16 %v10696_v54, %v3382_v8  ;;  %v8315_v9 = vld [vmem:[%s11596_s10 + $0x220] sm:$0xff]  }
 0x59f   :  { %7117 = vmatpush3.bf16.msra.mxu1 %v8291_v21  ;;  %7155 = vmatpush3.bf16.msra.mxu0 %v8293_v61  ;;  %v3415_v4 = vpack.c.bf16 %v3371_v39, %v10615_v13  ;;  %v8298_v2 = vld [vmem:[%s11596_s10 + $0x150] sm:$0xff]  }
 0x5a0   :  { %v3354_v7 = vmax.f32 %v3346_v16, 0.0  ;;  %4054 = vmatprep.mubr.bf16.mxu1 %v3416_v50  ;;  %7118 = vmatprep.subr.bf16.mxu1 %v8294_v60  ;;  %v10714_v29 = vld [vmem:[#allocation5 + $0x72] sm:$0xff] }
 0x5a1   :  { %7156 = vmatprep.subr.bf16.mxu0 %v8296_v35  ;;  %v3372_v22 = vld [vmem:[#allocation5 + $0x80] sm:$0xff]  ;;  %v3417_v55 = vpack.c.bf16 %v10714_v29, %v3394_v28  ;;  %v3381_v24 = vld [vmem:[#allocation5 + $0x51] sm:$0xff] }
 0x5a2   :  { %3363 = vst [vmem:[#allocation5 + $0xa1] sm:$0xf] %v3354_v7  ;;  %4055 = vmatmul.mubr.bf16.gmra.mxu1 %v3415_v4  ;;  %v3418_v20 = vpack.c.bf16 %v3372_v22, %v3371_v39  ;;  %v10732_v62 = vld [vmem:[#allocation5 + $0x81] sm:$0xff]  ;;  %v3387_v10 = vld [vmem:[#allocation5 + $0xb1] sm:$0xff] }
 0x5a3   :  { %7119 = vmatpush3.bf16.msra.mxu1 %v8295_v14  ;;  %7157 = vmatpush3.bf16.msra.mxu0 %v8297_v1  ;;  %v3396_v42 = vld [vmem:[#allocation5 + $0x82] sm:$0xff]  ;;  %v3393_v39 = vld [vmem:[#allocation5 + $0x52] sm:$0xff] }
 0x5a4   :  { %4119 = vmatprep.mubr.bf16.mxu0 %v3418_v20  ;;  %7120 = vmatprep.subr.bf16.mxu1 %v8298_v2  ;;  %v3420_v44 = vpack.c.bf16 %v3396_v42, %v10714_v29  ;;  %v3414_v16 = vpack.c.bf16 %v3393_v39, %v10776_v11  ;;  %v3399_v50 = vld [vmem:[#allocation5 + $0xb2] sm:$0xff]  ;;  %v8329_v20 = vld [vmem:[%s11599_s13 + $0xe8] sm:$0xff]  }
 0x5a5   :  { %7158 = vmatprep.subr.bf16.mxu0 %v8300_v15  ;;  %v10734_v5 = vld [vmem:[#allocation5 + $0x91] sm:$0xff]  ;;  %v8328_v15 = vld [vmem:[%s11599_s13 + $0x68] sm:$0xff]  }
 0x5a6   :  { %v3373_v17 = vld [vmem:[#allocation5 + $0x90] sm:$0xff]  ;;  %4120 = vmatmul.mubr.bf16.gmra.mxu0 %v3417_v55  ;;  %v10738_v47 = vpack.c.bf16 %v10734_v5, %v10732_v62  ;;  %v8320_v1 = vld [vmem:[%s11599_s13 + $0x78] sm:$0xff]   ;;  %v8332_v55 = vld [vmem:[%s11599_s13 + $0x60] sm:$0xff]  }
 0x5a7   :  { %7121 = vmatpush3.bf16.msra.mxu1 %v8299_v30  ;;  %7159 = vmatpush3.bf16.msra.mxu0 %v8301_v51  ;;  %v10744_v25 = vpack.c.bf16 %v3373_v17, %v3372_v22  ;;  %v3397_v3 = vld [vmem:[#allocation5 + $0x92] sm:$0xff]  ;;  %v8330_v30 = vld [vmem:[%s11599_s13 + $0x28] sm:$0xff]  }
 0x5a8   :  { %4062 = vmatprep.mubr.bf16.mxu1 %v10738_v47  ;;  %7122 = vmatprep.subr.bf16.mxu1 %v8302_v45  ;;  %v10764_v46 = vpack.c.bf16 %v3397_v3, %v3396_v42  ;;  %v8322_v7 = vld [vmem:[%s11599_s13 + $0x38] sm:$0xff]   ;;  %v8324_v2 = vld [vmem:[%s11599_s13 + $0x70] sm:$0xff]   ;;  %v8331_v51 = vld [vmem:[%s11599_s13 + $0xa8] sm:$0xff]  }
 0x5a9   :  { %7160 = vmatprep.subr.bf16.mxu0 %v8304_v52  ;;  %v10754_v6 = vld [vmem:[#allocation5 + $0xa0] sm:$0xff]  ;;  %v8323_v4 = vld [vmem:[%s11599_s13 + $0xb8] sm:$0xff]   ;;  %v8325_v28 = vld [vmem:[%s11599_s13 + $0xf0] sm:$0xff]  }
 0x5aa   :  { %4063 = vmatmul.mubr.bf16.gmra.mxu1 %v10744_v25  ;;  %v3424_v0 = vpack.c.bf16 %v10754_v6, %v3373_v17  ;;  %v3398_v21 = vld [vmem:[#allocation5 + $0xa2] sm:$0xff]  ;;  %v3427_v35 = vpack.c.bf16 %v10615_v13, %v10754_v6  ;;  %v8326_v22 = vld [vmem:[%s11599_s13 + $0x30] sm:$0xff]   ;;  %v8337_v17 = vld [vmem:[%s11599_s13 + $0xd8] sm:$0xff]  }
 0x5ab   :  { %7123 = vmatpush3.bf16.msra.mxu1 %v8303_v36  ;;  %4168 = vmatprep.mubr.bf16.mxu1 %v3405_v43  ;;  %v3426_v61 = vpack.c.bf16 %v3398_v21, %v3397_v3  ;;  %v3386_v8 = vld [vmem:[#allocation5 + $0xa1] sm:$0xff]  ;;  %v3429_v14 = vpack.c.bf16 %v3399_v50, %v3398_v21  ;;  %v8327_v29 = vld [vmem:[%s11599_s13 + $0xb0] sm:$0xff]   ;;  %v8339_v36 = vld [vmem:[%s11599_s13 + $0x98] sm:$0xff]  }
 0x5ac   :  { %7161 = vmatpush3.bf16.msra.mxu0 %v8305_v49  ;;  %4127 = vmatprep.mubr.bf16.mxu0 %v3424_v0  ;;  %v3428_v37 = vpack.c.bf16 %v3387_v10, %v3386_v8  ;;  %v3425_v60 = vpack.c.bf16 %v3386_v8, %v10734_v5  ;;  %v8333_v45 = vld [vmem:[%s11599_s13 + $0xe0] sm:$0xff]   ;;  %v8336_v5 = vld [vmem:[%s11599_s13 + $0x58] sm:$0xff]   ;;  %v8341_v49 = vld [vmem:[%s11599_s13 + $0xd0] sm:$0xff]  }
 0x5ad   :  { %7124 = vmatprep.subr.bf16.mxu1 %v8306_v41  ;;  %7162 = vmatprep.subr.bf16.mxu0 %v8308_v40  ;;  %v8334_v52 = vld [vmem:[%s11599_s13 + $0x20] sm:$0xff]   ;;  %v8342_v41 = vld [vmem:[%s11599_s13 + $0x10] sm:$0xff]   ;;  %v8344_v6 = vld [vmem:[%s11599_s13 + $0x48] sm:$0xff]  }
 0x5ae   :  { %4128 = vmatmul.mubr.bf16.gmra.mxu0 %v10764_v46  ;;  %v8343_v43 = vld [vmem:[%s11599_s13 + $0x90] sm:$0xff]   ;;  %v8345_v3 = vld [vmem:[%s11599_s13 + $0xc8] sm:$0xff]   ;;  %v8348_v42 = vld [vmem:[%s11599_s13 + $0x40] sm:$0xff]  }
 0x5af   :  { %7125 = vmatpush3.bf16.msra.mxu1 %v8307_v33  ;;  %4233 = vmatprep.mubr.bf16.mxu0 %v10654_v31  ;;  %v3380_v31 = vld [vmem:[#allocation5 + $0x41] sm:$0xff] }
 0x5b0   :  { %7163 = vmatpush3.bf16.msra.mxu0 %v8309_v23  ;;  %7556 = vmatprep.subr.bf16.mxu1 %v8310_v57  ;;  %v3413_v27 = vpack.c.bf16 %v3381_v24, %v3380_v31  ;;  %v3410_v34 = vpack.c.bf16 %v3380_v31, %v10648_v58  ;;  %v3419_v58 = vpack.c.bf16 %v10732_v62, %v10696_v54  ;;  %v8319_v54 = vld [vmem:[%s11596_s10 + $0x200] sm:$0xff]   ;;  %v8346_v40 = vld [vmem:[%s11599_s13 + $0x8] sm:$0xff]  }
 0x5b1   :  { %7164 = vmatprep.subr.bf16.mxu0 %v8311_v19  ;;  %v8335_v62 = vld [vmem:[%s11599_s13 + $0xa0] sm:$0xff]   ;;  %v8347_v0 = vld [vmem:[%s11599_s13 + $0x88] sm:$0xff]   ;;  %v8353_v19 = vld [vmem:[%s11599_s13 + $0x1f8] sm:$0xff]  }
 0x5b2   :  { %4169 = vmatmul.mubr.bf16.vlgmr.msra.gmra.mxu1 %v3404_v38  ;;  %v8349_v33 = vld [vmem:[%s11599_s13 + $0xc0] sm:$0xff]  }
 0x5b3   :  { %7557 = vmatpush3.bf16.msra.mxu1 %v8310_v57  ;;  %4176 = vmatprep.mubr.bf16.mxu1 %v3411_v63  ;;  %v8351_v23 = vld [vmem:[%s11599_s13 + $0x80] sm:$0xff]   ;;  %v8352_v57 = vld [vmem:[%s11599_s13 + $0x178] sm:$0xff]  }
 0x5b4   :  { %7165 = vmatpush3.bf16.msra.mxu0 %v8312_v53  ;;  %7558 = vmatprep.subr.bf16.mxu1 %v8313_v56 }
 0x5b5   :  { %7202 = vmatprep.subr.bf16.mxu0 %v8320_v1 }
 0x5b7   :  { %4234 = vmatmul.mubr.bf16.vlgmr.msra.gmra.mxu0 %v10664_v32  ;;  %7559 = vmatpush3.bf16.msra.mxu1 %v8313_v56  ;;  %v3412_v32 = vpack.c.bf16 %v10615_v13, %v10669_v18  ;;  %v8318_v18 = vld [vmem:[%s11596_s10 + $0x208] sm:$0xff]  }
 0x5b8   :  { %4241 = vmatprep.mubr.bf16.mxu0 %v3413_v27  ;;  %7560 = vmatprep.subr.bf16.mxu1 %v8314_v12 }
 0x5b9   :  { %7203 = vmatpush3.bf16.msra.mxu0 %v8322_v7 }
 0x5ba   :  { %4177 = vmatmul.mubr.bf16.gmra.mxu1 %v3410_v34  ;;  %7204 = vmatprep.subr.bf16.mxu0 %v8324_v2 }
 0x5bb   :  { %7561 = vmatpush3.bf16.msra.mxu1 %v8314_v12  ;;  %4184 = vmatprep.mubr.bf16.mxu1 %v3420_v44 }
 0x5bc   :  { %7562 = vmatprep.subr.bf16.mxu1 %v8315_v9 }
 0x5bd   :  { %7205 = vmatpush3.bf16.msra.mxu0 %v8326_v22 }
 0x5be   :  { %7206 = vmatprep.subr.bf16.mxu0 %v8328_v15 }
 0x5bf   :  { %4242 = vmatmul.mubr.bf16.gmra.mxu0 %v3412_v32  ;;  %7563 = vmatpush3.bf16.msra.mxu1 %v8315_v9 }
 0x5c0   :  { %4249 = vmatprep.mubr.bf16.mxu0 %v10738_v47  ;;  %7564 = vmatprep.subr.bf16.mxu1 %v8316_v48  ;;  %v8338_v47 = vld [vmem:[%s11599_s13 + $0x18] sm:$0xff]  }
 0x5c1   :  { %7207 = vmatpush3.bf16.msra.mxu0 %v8330_v30 }
 0x5c2   :  { %4185 = vmatmul.mubr.bf16.gmra.mxu1 %v3419_v58  ;;  %7208 = vmatprep.subr.bf16.mxu0 %v8332_v55 }
 0x5c3   :  { %7565 = vmatpush3.bf16.msra.mxu1 %v8316_v48  ;;  %4192 = vmatprep.mubr.bf16.mxu1 %v3426_v61 }
 0x5c4   :  { %7566 = vmatprep.subr.bf16.mxu1 %v8317_v59 }
 0x5c5   :  { %7209 = vmatpush3.bf16.msra.mxu0 %v8334_v52 }
 0x5c6   :  { %7210 = vmatprep.subr.bf16.mxu0 %v8336_v5 }
 0x5c7   :  { %4250 = vmatmul.mubr.bf16.gmra.mxu0 %v10744_v25  ;;  %7567 = vmatpush3.bf16.msra.mxu1 %v8317_v59  ;;  %v8340_v25 = vld [vmem:[%s11599_s13 + $0x50] sm:$0xff]  }
 0x5c8   :  { %4257 = vmatprep.mubr.bf16.mxu0 %v3428_v37  ;;  %7568 = vmatprep.subr.bf16.mxu1 %v8318_v18 }
 0x5c9   :  { %7211 = vmatpush3.bf16.msra.mxu0 %v8338_v47 }
 0x5ca   :  { %4193 = vmatmul.mubr.bf16.gmra.mxu1 %v3425_v60  ;;  %7212 = vmatprep.subr.bf16.mxu0 %v8340_v25 }
 0x5cb   :  { %7569 = vmatpush3.bf16.msra.mxu1 %v8318_v18  ;;  %7572 = vmatprep.mubr.bf16.mxu1 %v10691_v26  ;;  %v8321_v26 = vld [vmem:[%s11599_s13 + $0xf8] sm:$0xff]  }
 0x5cc   :  { %7570 = vmatprep.subr.bf16.mxu1 %v8319_v54 }
 0x5cd   :  { %7213 = vmatpush3.bf16.msra.mxu0 %v8342_v41 }
 0x5ce   :  { %7214 = vmatprep.subr.bf16.mxu0 %v8344_v6 }
 0x5cf   :  { %4258 = vmatmul.mubr.bf16.gmra.mxu0 %v3427_v35  ;;  %7571 = vmatpush3.bf16.msra.mxu1 %v8319_v54 }
 0x5d0   :  { %7230 = vmatprep.subr.bf16.mxu1 %v8321_v26 }
 0x5d1   :  { %7215 = vmatpush3.bf16.msra.mxu0 %v8346_v40 }
 0x5d2   :  { %7573 = vmatmul.mubr.bf16.vlgmr.msra.gmra.mxu1 %v3414_v16  ;;  %7216 = vmatprep.subr.bf16.mxu0 %v8348_v42 }
 0x5d3   :  { %7576 = vmatprep.mubr.bf16.mxu1 %v10764_v46  ;;  %7231 = vmatpush3.bf16.msra.mxu1 %v8323_v4  ;;  %v8350_v46 = vld [vmem:[%s11599_s13] sm:$0xff]  }
 0x5d4   :  { %7232 = vmatprep.subr.bf16.mxu1 %v8325_v28 }
 0x5d5   :  { %7217 = vmatpush3.bf16.msra.mxu0 %v8350_v46 }
 0x5d6   :  { %7258 = vmatprep.subr.bf16.mxu0 %v8352_v57 }
 0x5d7   :  { %7233 = vmatpush3.bf16.msra.mxu1 %v8327_v29 }
 0x5d8   :  { %7234 = vmatprep.subr.bf16.mxu1 %v8329_v20 }
 0x5da   :  { %7577 = vmatmul.mubr.bf16.gmra.mxu1 %v3429_v14 }
 0x5db   :  { %7235 = vmatpush3.bf16.msra.mxu1 %v8331_v51 }
 0x5dc   :  { %7236 = vmatprep.subr.bf16.mxu1 %v8333_v45 }
 0x5df   :  { %7237 = vmatpush3.bf16.msra.mxu1 %v8335_v62 }
 0x5e0   :  { %7238 = vmatprep.subr.bf16.mxu1 %v8337_v17 }
 0x5e3   :  { %7239 = vmatpush3.bf16.msra.mxu1 %v8339_v36 }
 0x5e4   :  { %7240 = vmatprep.subr.bf16.mxu1 %v8341_v49 }
 0x5e7   :  { %7241 = vmatpush3.bf16.msra.mxu1 %v8343_v43 }
 0x5e8   :  { %7242 = vmatprep.subr.bf16.mxu1 %v8345_v3 }
 0x5eb   :  { %7243 = vmatpush3.bf16.msra.mxu1 %v8347_v0 }
 0x5ec   :  { %7244 = vmatprep.subr.bf16.mxu1 %v8349_v33 }
 0x5ef   :  { %7245 = vmatpush3.bf16.msra.mxu1 %v8351_v23 }
 0x5f0   :  { %7286 = vmatprep.subr.bf16.mxu1 %v8353_v19 }
 0x652   :  { %v7046_v11 = vpop.f32.mrf.mxu1 }
 0x654   :  { %v7047_v38 = vpop.f32.mrf.mxu1 }
 0x655   :  { %v7048_v23 = vadd.f32 %v7047_v38, %v7046_v11 }
 0x656   :  { %v10924_v53 = vpop.f32.mrf.mxu1  ;;  %v7086_v56 = vpop.f32.mrf.mxu0 }
 0x658   :  { %v10926_v63 = vpop.f32.mrf.mxu1  ;;  %v7087_v31 = vpop.f32.mrf.mxu0 }
 0x659   :  { %v7088_v40 = vadd.f32 %v7087_v31, %v7086_v56 }
 0x65a   :  { %v7052_v24 = vpop.f32.mrf.mxu1  ;;  %v7089_v12 = vpop.f32.mrf.mxu0 }
 0x65c   :  { %v7053_v27 = vpop.f32.mrf.mxu1  ;;  %v7090_v34 = vpop.f32.mrf.mxu0 }
 0x65d   :  { %v7054_v42 = vadd.f32 %v7053_v27, %v7052_v24  ;;  %v7091_v57 = vadd.f32 %v7090_v34, %v7089_v12 }
 0x65e   :  { %v7055_v9 = vpop.f32.mrf.mxu1  ;;  %v7092_v44 = vpop.f32.mrf.mxu0 }
 0x660   :  { %v7056_v48 = vpop.f32.mrf.mxu1  ;;  %v7093_v32 = vpop.f32.mrf.mxu0 }
 0x661   :  { %v7094_v6 = vadd.f32 %v7093_v32, %v7092_v44  ;;  %v7057_v56 = vadd.f32 %v7056_v48, %v7055_v9 }
 0x662   :  { %v10928_v21 = vpop.f32.mrf.mxu1  ;;  %v7095_v58 = vpop.f32.mrf.mxu0 }
 0x664   :  { %v10930_v59 = vpop.f32.mrf.mxu1  ;;  %v7096_v61 = vpop.f32.mrf.mxu0 }
 0x665   :  { %v7060_v34 = vadd.f32 %v10930_v59, %v10928_v21 }
 0x666   :  { %v10932_v8 = vpop.f32.mrf.mxu1  ;;  %v10934_v10 = vpop.f32.mrf.mxu0 }
 0x668   :  { %v10936_v18 = vpop.f32.mrf.mxu1  ;;  %v10938_v37 = vpop.f32.mrf.mxu0 }
 0x66a   :  { %v10940_v60 = vpop.f32.mrf.mxu1  ;;  %v10942_v54 = vpop.f32.mrf.mxu0 }
 0x66c   :  { %v10944_v39 = vpop.f32.mrf.mxu1  ;;  %v10946_v35 = vpop.f32.mrf.mxu0 }
 0x66d   :  { %v7103_v9 = vadd.f32 %v10946_v35, %v10942_v54 }
 0x66e   :  { %v10948_v16 = vpop.f32.mrf.mxu1  ;;  %v7104_v50 = vpop.f32.mrf.mxu0 }
 0x66f   :  { %11625 = vst [vmem:[#allocation37_spill] sm:$0xff] %v10948_v16  ;;  %v7097_v16 = vadd.f32 %v7096_v61, %v7095_v58 }
 0x670   :  { %v10950_v14 = vpop.f32.mrf.mxu1  ;;  %v7105_v1 = vpop.f32.mrf.mxu0 }
 0x671   :  { %11626 = vst [vmem:[#allocation38_spill] sm:$0xff] %v10950_v14  ;;  %v4114_v14 = vadd.f32 %v7094_v6, %v7054_v42  ;;  %v4117_v58 = vadd.f32 %v7097_v16, %v7057_v56 }
 0x672   :  { %v10952_v26 = vpop.f32.mrf.mxu0  ;;  %v7126_v7 = vpop.f32.mrf.mxu1 }
 0x673   :  { %11627 = vst [vmem:[#allocation39_spill] sm:$0xff] %v10952_v26 }
 0x674   :  { %v10954_v4 = vpop.f32.mrf.mxu0  ;;  %v7127_v2 = vpop.f32.mrf.mxu1 }
 0x675   :  { %11628 = vst [vmem:[#allocation40_spill] sm:$0xff] %v10954_v4  ;;  %v7128_v19 = vadd.f32 %v7127_v2, %v7126_v7 }
 0x676   :  { %v7129_v28 = vpop.f32.mrf.mxu1 }
 0x677   :  { %v7166_v22 = vpop.f32.mrf.mxu0 }
 0x678   :  { %v7130_v29 = vpop.f32.mrf.mxu1 }
 0x679   :  { %v7167_v15 = vpop.f32.mrf.mxu0  ;;  %v7131_v38 = vadd.f32 %v7130_v29, %v7129_v28 }
 0x67a   :  { %v7132_v20 = vpop.f32.mrf.mxu1  ;;  %v7168_v44 = vadd.f32 %v7167_v15, %v7166_v22 }
 0x67b   :  { %v7169_v30 = vpop.f32.mrf.mxu0 }
 0x67c   :  { %v7133_v51 = vpop.f32.mrf.mxu1 }
 0x67d   :  { %v7170_v55 = vpop.f32.mrf.mxu0  ;;  %v7134_v33 = vadd.f32 %v7133_v51, %v7132_v20  ;;  %v7106_v51 = vadd.f32 %v7105_v1, %v7104_v50  ;;  %v10972_v50 = vld [vmem:[#allocation23] ss:$0 sm:$0xff] }
 0x67e   :  { %v7135_v45 = vpop.f32.mrf.mxu1  ;;  %v7171_v1 = vadd.f32 %v7170_v55, %v7169_v30  ;;  %v11632_v30 = vld [vmem:[#allocation40_spill] sm:$0xff] }
 0x67f   :  { %v7172_v52 = vpop.f32.mrf.mxu0  ;;  %v4179_v31 = vadd.f32 %v7134_v33, %v4114_v14 }
 0x680   :  { %v7136_v62 = vpop.f32.mrf.mxu1 }
 0x681   :  { %v7173_v5 = vpop.f32.mrf.mxu0  ;;  %v7137_v24 = vadd.f32 %v7136_v62, %v7135_v45  ;;  %v6652_v62 = vld [vmem:[#allocation25] ss:$0 sm:$0xff] }
 0x682   :  { %v7138_v17 = vpop.f32.mrf.mxu1  ;;  %v7174_v4 = vadd.f32 %v7173_v5, %v7172_v52  ;;  %v11631_v52 = vld [vmem:[#allocation39_spill] sm:$0xff] }
 0x683   :  { %v7175_v47 = vpop.f32.mrf.mxu0  ;;  %v4182_v28 = vadd.f32 %v7137_v24, %v4117_v58  ;;  %v7109_v55 = vadd.f32 %v11632_v30, %v11631_v52 }
 0x684   :  { %v7139_v36 = vpop.f32.mrf.mxu1  ;;  %v4244_v2 = vadd.f32 %v7174_v4, %v4179_v31  ;;  %v7063_v4 = vadd.f32 %v10936_v18, %v10932_v8 }
 0x685   :  { %v7176_v25 = vpop.f32.mrf.mxu0 }
 0x686   :  { %v10956_v49 = vpop.f32.mrf.mxu1  ;;  %v7177_v61 = vadd.f32 %v7176_v25, %v7175_v47  ;;  %v4125_v45 = vadd.f32 %v7103_v9, %v7063_v4 }
 0x687   :  { %11629 = vst [vmem:[#allocation41_spill] sm:$0xff] %v10956_v49  ;;  %v7178_v41 = vpop.f32.mrf.mxu0  ;;  %v7051_v49 = vadd.f32 %v10926_v63, %v10924_v53  ;;  %v7100_v53 = vadd.f32 %v10938_v37, %v10934_v10  ;;  %v7066_v63 = vadd.f32 %v10944_v39, %v10940_v60  ;;  %v7140_v37 = vadd.f32 %v7139_v36, %v7138_v17  ;;  %v11633_v36 = vld [vmem:[#allocation37_spill] sm:$0xff] }
 0x688   :  { %v10958_v43 = vpop.f32.mrf.mxu1  ;;  %v4247_v35 = vadd.f32 %v7177_v61, %v4182_v28 }
 0x689   :  { %11630 = vst [vmem:[#allocation42_spill] sm:$0xff] %v10958_v43  ;;  %v7179_v3 = vpop.f32.mrf.mxu0  ;;  %v4106_v43 = vadd.f32 %v7088_v40, %v7048_v23  ;;  %v4109_v20 = vadd.f32 %v7091_v57, %v7051_v49  ;;  %v4130_v22 = vadd.f32 %v7106_v51, %v7066_v63  ;;  %v4122_v15 = vadd.f32 %v7100_v53, %v7060_v34  ;;  %v11634_v49 = vld [vmem:[#allocation38_spill] sm:$0xff] }
 0x68a   :  { %v7144_v0 = vpop.f32.mrf.mxu1 }
 0x68b   :  { %v10960_v46 = vpop.f32.mrf.mxu0  ;;  %v4171_v11 = vadd.f32 %v7128_v19, %v4106_v43  ;;  %v4174_v10 = vadd.f32 %v7131_v38, %v4109_v20  ;;  %v7069_v43 = vadd.f32 %v11634_v49, %v11633_v36  ;;  %v4187_v6 = vadd.f32 %v7140_v37, %v4122_v15 }
 0x68c   :  { %v7145_v13 = vpop.f32.mrf.mxu1 }
 0x68d   :  { %v7182_v26 = vpop.f32.mrf.mxu0  ;;  %v4236_v14 = vadd.f32 %v7168_v44, %v4171_v11  ;;  %v7146_v21 = vadd.f32 %v7145_v13, %v7144_v0  ;;  %v7180_v13 = vadd.f32 %v7179_v3, %v7178_v41  ;;  %v4239_v17 = vadd.f32 %v7171_v1, %v4174_v10 }
 0x68e   :  { %v7147_v32 = vpop.f32.mrf.mxu1  ;;  %v11635_v40 = vld [vmem:[#allocation41_spill] sm:$0xff]  ;;  %v4133_v44 = vadd.f32 %v7109_v55, %v7069_v43  ;;  %v7183_v56 = vadd.f32 %v7182_v26, %v10960_v46 }
 0x68f   :  { %v7184_v27 = vpop.f32.mrf.mxu0  ;;  %v4195_v47 = vadd.f32 %v7146_v21, %v4130_v22 }
 0x690   :  { %v7148_v12 = vpop.f32.mrf.mxu1  ;;  %v11636_v0 = vld [vmem:[#allocation42_spill] sm:$0xff] }
 0x691   :  { %v7185_v7 = vpop.f32.mrf.mxu0  ;;  %v7143_v42 = vadd.f32 %v11636_v0, %v11635_v40  ;;  %v7149_v33 = vadd.f32 %v7148_v12, %v7147_v32 }
 0x692   :  { %v7574_v48 = vpop.f32.mrf.mxu1  ;;  %v7186_v60 = vadd.f32 %v7185_v7, %v7184_v27  ;;  %v4252_v27 = vadd.f32 %v7180_v13, %v4187_v6 }
 0x693   :  { %v7187_v59 = vpop.f32.mrf.mxu0  ;;  %v4309_v16 = vadd.f32 %v7574_v48, %v4244_v2  ;;  %v4190_v34 = vadd.f32 %v7143_v42, %v4125_v45  ;;  %v4198_v58 = vadd.f32 %v7149_v33, %v4133_v44  ;;  %v8355_v44 = vld [vmem:[%s11599_s13 + $0x1b8] sm:$0xff]  }
 0x694   :  { %v4300_v29 = vpop.f32.mrf.mxu1  ;;  %v4260_v19 = vadd.f32 %v7186_v60, %v4195_v47 }
 0x695   :  { %v4340_v39 = vmul.f32 %v10972_v50, %v4309_v16  ;;  %v4301_v54 = vadd.f32 %v4300_v29, %v4236_v14  ;;  %v7188_v25 = vpop.f32.mrf.mxu0  ;;  %v4255_v26 = vadd.f32 %v7183_v56, %v4190_v34  ;;  %v8356_v56 = vld [vmem:[%s11599_s13 + $0x170] sm:$0xff]   ;;  %v4422_v34 = vld [vmem:[#allocation6 + $0x42] sm:$0xff] }
 0x696   :  { %v7575_v5 = vpop.f32.mrf.mxu1  ;;  %v7189_v31 = vadd.f32 %v7188_v25, %v7187_v59 }
 0x697   :  { %v4338_v8 = vmul.f32 %v10972_v50, %v4301_v54  ;;  %v4312_v18 = vadd.f32 %v7575_v5, %v4247_v35  ;;  %v4355_v57 = vadd.f32 %v6652_v62, %v4340_v39 }
 0x698   :  { %v4303_v23 = vpop.f32.mrf.mxu1  ;;  %v4263_v63 = vadd.f32 %v7189_v31, %v4198_v58  ;;  %v8357_v31 = vld [vmem:[%s11599_s13 + $0x1f0] sm:$0xff]  }
 0x699   :  { %v4341_v41 = vmul.f32 %v10972_v50, %v4312_v18  ;;  %v4304_v3 = vadd.f32 %v4303_v23, %v4239_v17  ;;  %v4353_v20 = vadd.f32 %v6652_v62, %v4338_v8  ;;  %v4363_v12 = vmax.f32 %v4355_v57, 0.0  ;;  %v4410_v8 = vld [vmem:[#allocation6 + $0x1] sm:$0xff]  ;;  %v4413_v58 = vld [vmem:[#allocation6 + $0x31] sm:$0xff] }
 0x69a   :  { %v7578_v24 = vpop.f32.mrf.mxu1  ;;  %v11637_v23 = vld [vmem:[#allocation36_spill] sm:$0xff] }
 0x69b   :  { %v4356_v51 = vadd.f32 %v6652_v62, %v4341_v41  ;;  %v4339_v11 = vmul.f32 %v10972_v50, %v4304_v3  ;;  %v4325_v38 = vadd.f32 %v7578_v24, %v4260_v19  ;;  %v4361_v46 = vmax.f32 %v4353_v20, 0.0  ;;  %v8354_v19 = vld [vmem:[%s11599_s13 + $0x138] sm:$0xff]   ;;  %v8358_v24 = vld [vmem:[%s11599_s13 + $0x130] sm:$0xff]   ;;  %v4414_v20 = vld [vmem:[#allocation6 + $0x41] sm:$0xff] }
 0x69c   :  { %v4316_v32 = vpop.f32.mrf.mxu1 }
 0x69d   :  { %v4364_v61 = vmax.f32 %v4356_v51, 0.0  ;;  %v4354_v7 = vadd.f32 %v6652_v62, %v4339_v11  ;;  %v4317_v2 = vadd.f32 %v4316_v32, %v4252_v27  ;;  %v4344_v53 = vmul.f32 %v10972_v50, %v4325_v38  ;;  %v8359_v27 = vld [vmem:[%s11599_s13 + $0x1b0] sm:$0xff]   ;;  %v8360_v51 = vld [vmem:[%s11599_s13 + $0x168] sm:$0xff]  }
 0x69e   :  { %v7579_v9 = vpop.f32.mrf.mxu1  ;;  %v8361_v11 = vld [vmem:[%s11599_s13 + $0x1e8] sm:$0xff]  }
 0x69f   :  { %v4370_v48 = vmax.f32 %v4363_v12, %v4364_v61  ;;  %v4362_v14 = vmax.f32 %v4354_v7, 0.0  ;;  %v4342_v1 = vmul.f32 %v10972_v50, %v4317_v2  ;;  %v4328_v28 = vadd.f32 %v7579_v9, %v4263_v63  ;;  %v8362_v63 = vld [vmem:[%s11599_s13 + $0x128] sm:$0xff]  }
 0x6a0   :  { %v4319_v21 = vpop.f32.mrf.mxu1  ;;  %v4359_v4 = vadd.f32 %v6652_v62, %v4344_v53  ;;  %v8363_v9 = vld [vmem:[%s11599_s13 + $0x1a8] sm:$0xff]  }
 0x6a1   :  { %4372 = vst [vmem:[#allocation10 + $0x8] sm:$0xff] %v4370_v48  ;;  %v4369_v59 = vmax.f32 %v4361_v46, %v4362_v14  ;;  %v4320_v16 = vadd.f32 %v4319_v21, %v4255_v26  ;;  %v4345_v22 = vmul.f32 %v10972_v50, %v4328_v28  ;;  %v4357_v10 = vadd.f32 %v6652_v62, %v4342_v1  ;;  %v8364_v14 = vld [vmem:[%s11599_s13 + $0x160] sm:$0xff]  }
 0x6a2   :  { %v4367_v39 = vmax.f32 %v4359_v4, 0.0  ;;  %v8365_v1 = vld [vmem:[%s11599_s13 + $0x1e0] sm:$0xff]   ;;  %v8368_v4 = vld [vmem:[%s11599_s13 + $0x158] sm:$0xff]  }
 0x6a3   :  { %4371 = vst [vmem:[#allocation10] sm:$0xff] %v4369_v59  ;;  %v4343_v37 = vmul.f32 %v10972_v50, %v4320_v16  ;;  %v4360_v29 = vadd.f32 %v6652_v62, %v4345_v22  ;;  %v4365_v35 = vmax.f32 %v4357_v10, 0.0  ;;  %v4418_v50 = vld [vmem:[#allocation6 + $0x2] sm:$0xff]  ;;  %v8369_v22 = vld [vmem:[%s11599_s13 + $0x1d8] sm:$0xff]  }
 0x6a4   :  { %v8366_v59 = vld [vmem:[%s11599_s13 + $0x120] sm:$0xff]   ;;  %v8370_v10 = vld [vmem:[%s11599_s13 + $0x118] sm:$0xff]  }
 0x6a5   :  { %v4358_v60 = vadd.f32 %v6652_v62, %v4343_v37  ;;  %v4368_v54 = vmax.f32 %v4360_v29, 0.0  ;;  %v8367_v16 = vld [vmem:[%s11599_s13 + $0x1a0] sm:$0xff]   ;;  %v8371_v37 = vld [vmem:[%s11599_s13 + $0x198] sm:$0xff]   ;;  %v8372_v29 = vld [vmem:[%s11599_s13 + $0x150] sm:$0xff]  }
 0x6a7   :  { %v4366_v15 = vmax.f32 %v4358_v60, 0.0  ;;  %v4374_v30 = vmax.f32 %v4367_v39, %v4368_v54  ;;  %v8373_v60 = vld [vmem:[%s11599_s13 + $0x1d0] sm:$0xff]  }
 0x6a8   :  { %v4380_v45 = vld [vmem:[#allocation10 + $0x8] ss:$2 sm:$0x3]  ;;  %v4388_v52 = vld [vmem:[#allocation10 + $0x9] ss:$2 sm:$0x3] }
 0x6a9   :  { %v4373_v55 = vmax.f32 %v4365_v35, %v4366_v15  ;;  %v4394_v13 = vmax.f32 %v4380_v45, %v4388_v52  ;;  %4377 = vst [vmem:[#allocation10 + $0x18] sm:$0xff] %v4374_v30  ;;  %v8374_v39 = vld [vmem:[%s11599_s13 + $0x110] sm:$0xff]   ;;  %v8376_v35 = vld [vmem:[%s11599_s13 + $0x148] sm:$0xff]   ;;  %v8380_v30 = vld [vmem:[%s11599_s13 + $0x140] sm:$0xff]  }
 0x6aa   :  { %v4378_v5 = vld [vmem:[#allocation10] ss:$2 sm:$0x3]  ;;  %v4386_v47 = vld [vmem:[#allocation10 + $0x1] ss:$2 sm:$0x3] }
 0x6ab   :  { %4376 = vst [vmem:[#allocation10 + $0x10] sm:$0xff] %v4373_v55  ;;  %v4393_v25 = vmax.f32 %v4378_v5, %v4386_v47  ;;  %4399 = vst [vmem:[#allocation6 + $0x21] sm:$0x3] %v4394_v13  ;;  %v8375_v54 = vld [vmem:[%s11599_s13 + $0x190] sm:$0xff]   ;;  %v8377_v15 = vld [vmem:[%s11599_s13 + $0x1c8] sm:$0xff]  }
 0x6ac   :  { %v8378_v45 = vld [vmem:[%s11599_s13 + $0x108] sm:$0xff]   ;;  %v8381_v55 = vld [vmem:[%s11599_s13 + $0x1c0] sm:$0xff]   ;;  %v8384_v47 = vld [vmem:[%s11599_s13 + $0x238] sm:$0xff]  }
 0x6ad   :  { %4398 = vst [vmem:[#allocation6 + $0x11] sm:$0x3] %v4393_v25  ;;  %v8379_v52 = vld [vmem:[%s11599_s13 + $0x188] sm:$0xff]   ;;  %v8382_v13 = vld [vmem:[%s11599_s13 + $0x100] sm:$0xff]  }
 0x6ae   :  { %v8383_v5 = vld [vmem:[%s11599_s13 + $0x180] sm:$0xff]  }
 0x6b0   :  { %v4384_v18 = vld [vmem:[#allocation10 + $0x18] ss:$2 sm:$0x3]  ;;  %v4392_v62 = vld [vmem:[#allocation10 + $0x19] ss:$2 sm:$0x3] }
 0x6b1   :  { %v4396_v49 = vmax.f32 %v4384_v18, %v4392_v62 }
 0x6b2   :  { %v4382_v17 = vld [vmem:[#allocation10 + $0x10] ss:$2 sm:$0x3]  ;;  %v4390_v36 = vld [vmem:[#allocation10 + $0x11] ss:$2 sm:$0x3] }
 0x6b3   :  { %v10991_v43 = vld [vmem:[#allocation6 + $0x20] sm:$0xff]  ;;  %v4395_v6 = vmax.f32 %v4382_v17, %v4390_v36  ;;  %4401 = vst [vmem:[#allocation6 + $0x61] sm:$0x3] %v4396_v49 }
 0x6b4   :  { %v10993_v40 = vld [vmem:[#allocation6 + $0x11] sm:$0xff]  ;;  %v11037_v26 = vld [vmem:[#allocation6 + $0x21] sm:$0xff] }
 0x6b5   :  { %v4403_v0 = vld [vmem:[#allocation6 + $0x10] sm:$0xff]  ;;  %v4427_v33 = vpack.c.bf16 %v10993_v40, %v4410_v8  ;;  %4400 = vst [vmem:[#allocation6 + $0x51] sm:$0x3] %v4395_v6  ;;  %v11040_v48 = vld [vmem:[#allocation6 + $0x22] sm:$0xff]  ;;  %v4433_v21 = vpack.c.bf16 %v4413_v58, %v11037_v26  ;;  %v4430_v62 = vpack.c.bf16 %v11037_v26, %v10993_v40 }
 0x6b6   :  { %v4419_v42 = vld [vmem:[#allocation6 + $0x12] sm:$0xff]  ;;  %v4426_v57 = vpack.c.bf16 %v4403_v0, %v11637_v23  ;;  %v4429_v41 = vpack.c.bf16 %v10991_v43, %v4403_v0  ;;  %v8409_v26 = vld [vmem:[%s11602_s16 + $0xa0] sm:$0xff]  }
 0x6b7   :  { %v4428_v3 = vpack.c.bf16 %v4419_v42, %v4418_v50  ;;  %5052 = vmatprep.mubr.bf16.mxu0 %v4427_v33  ;;  %v4431_v28 = vpack.c.bf16 %v11040_v48, %v4419_v42  ;;  %v4417_v8 = vld [vmem:[#allocation6 + $0x71] sm:$0xff]  ;;  %v11107_v50 = vld [vmem:[#allocation5] sm:$0xff] }
 0x6b8   :  { %5101 = vmatprep.mubr.bf16.mxu1 %v4429_v41  ;;  %5053 = vmatmul.mubr.bf16.vlgmr.msra.gmra.mxu0 %v4426_v57  ;;  %v4432_v18 = vpack.c.bf16 %v11107_v50, %v10991_v43  ;;  %v8385_v6 = vld [vmem:[%s11599_s13 + $0x230] sm:$0xff]   ;;  %v8386_v43 = vld [vmem:[%s11599_s13 + $0x228] sm:$0xff]   ;;  %v8388_v57 = vld [vmem:[%s11599_s13 + $0x218] sm:$0xff]  }
 0x6b9   :  { %5102 = vmatmul.mubr.bf16.vlgmr.msra.gmra.mxu1 %v4428_v3  ;;  %7259 = vmatpush3.bf16.msra.mxu0 %v8354_v19  ;;  %v4421_v40 = vld [vmem:[#allocation6 + $0x32] sm:$0xff]  ;;  %v8390_v3 = vld [vmem:[%s11599_s13 + $0x208] sm:$0xff]   ;;  %v8391_v19 = vld [vmem:[%s11599_s13 + $0x200] sm:$0xff]  }
 0x6ba   :  { %7287 = vmatpush3.bf16.msra.mxu1 %v8355_v44  ;;  %7260 = vmatprep.subr.bf16.mxu0 %v8356_v56  ;;  %v11022_v38 = vld [vmem:[#allocation6 + $0x60] sm:$0xff]  ;;  %v4434_v33 = vpack.c.bf16 %v4421_v40, %v11040_v48  ;;  %v8389_v41 = vld [vmem:[%s11599_s13 + $0x210] sm:$0xff]   ;;  %v8411_v48 = vld [vmem:[%s11602_s16 + $0xd8] sm:$0xff]  }
 0x6bb   :  { %7288 = vmatprep.subr.bf16.mxu1 %v8357_v31  ;;  %v4416_v25 = vld [vmem:[#allocation6 + $0x61] sm:$0xff]  ;;  %v4441_v0 = vpack.c.bf16 %v11107_v50, %v11022_v38  ;;  %v4425_v44 = vld [vmem:[#allocation6 + $0x72] sm:$0xff] }
 0x6bc   :  { %v11024_v32 = vld [vmem:[#allocation6 + $0x51] sm:$0xff]  ;;  %v4424_v17 = vld [vmem:[#allocation6 + $0x62] sm:$0xff]  ;;  %v4442_v49 = vpack.c.bf16 %v4417_v8, %v4416_v25 }
 0x6bd   :  { %v4407_v12 = vld [vmem:[#allocation6 + $0x50] sm:$0xff]  ;;  %7261 = vmatpush3.bf16.msra.mxu0 %v8358_v24  ;;  %v4436_v7 = vpack.c.bf16 %v11024_v32, %v4414_v20  ;;  %v4439_v42 = vpack.c.bf16 %v4416_v25, %v11024_v32  ;;  %v4443_v56 = vpack.c.bf16 %v4425_v44, %v4424_v17  ;;  %v8392_v31 = vld [vmem:[%s11602_s16 + $0x78] sm:$0xff]   ;;  %v8400_v32 = vld [vmem:[%s11602_s16 + $0x28] sm:$0xff]  }
 0x6be   :  { %v11026_v61 = vld [vmem:[#allocation6 + $0x52] sm:$0xff]  ;;  %7289 = vmatpush3.bf16.msra.mxu1 %v8359_v27  ;;  %v4438_v2 = vpack.c.bf16 %v11022_v38, %v4407_v12  ;;  %v4435_v53 = vpack.c.bf16 %v4407_v12, %v11637_v23  ;;  %7262 = vmatprep.subr.bf16.mxu0 %v8360_v51  ;;  %v8387_v23 = vld [vmem:[%s11599_s13 + $0x220] sm:$0xff]  }
 0x6bf   :  { %7290 = vmatprep.subr.bf16.mxu1 %v8361_v11  ;;  %v4437_v46 = vpack.c.bf16 %v11026_v61, %v4422_v34  ;;  %5060 = vmatprep.mubr.bf16.mxu0 %v4436_v7  ;;  %v4440_v36 = vpack.c.bf16 %v4424_v17, %v11026_v61  ;;  %v8393_v24 = vld [vmem:[%s11602_s16 + $0x38] sm:$0xff]   ;;  %v8394_v27 = vld [vmem:[%s11602_s16 + $0x70] sm:$0xff]   ;;  %v8398_v34 = vld [vmem:[%s11602_s16 + $0x68] sm:$0xff]  }
 0x6c0   :  { %5109 = vmatprep.mubr.bf16.mxu1 %v4438_v2  ;;  %5061 = vmatmul.mubr.bf16.gmra.mxu0 %v4435_v53  ;;  %v8395_v20 = vld [vmem:[%s11602_s16 + $0xf8] sm:$0xff]   ;;  %v8399_v11 = vld [vmem:[%s11602_s16 + $0xf0] sm:$0xff]   ;;  %v8402_v12 = vld [vmem:[%s11602_s16 + $0x60] sm:$0xff]  }
 0x6c1   :  { %5110 = vmatmul.mubr.bf16.gmra.mxu1 %v4437_v46  ;;  %7263 = vmatpush3.bf16.msra.mxu0 %v8362_v63  ;;  %v8397_v51 = vld [vmem:[%s11602_s16 + $0xb8] sm:$0xff]   ;;  %v8396_v38 = vld [vmem:[%s11602_s16 + $0x30] sm:$0xff]   ;;  %v8403_v61 = vld [vmem:[%s11602_s16 + $0xe8] sm:$0xff]  }
 0x6c2   :  { %7291 = vmatpush3.bf16.msra.mxu1 %v8363_v9  ;;  %5150 = vmatprep.mubr.bf16.mxu0 %v4431_v28  ;;  %v8401_v58 = vld [vmem:[%s11602_s16 + $0xb0] sm:$0xff]   ;;  %v8404_v7 = vld [vmem:[%s11602_s16 + $0x20] sm:$0xff]   ;;  %v8405_v2 = vld [vmem:[%s11602_s16 + $0xa8] sm:$0xff]  }
 0x6c3   :  { %5199 = vmatprep.mubr.bf16.mxu1 %v4433_v21  ;;  %7264 = vmatprep.subr.bf16.mxu0 %v8364_v14  ;;  %v8406_v53 = vld [vmem:[%s11602_s16 + $0x58] sm:$0xff]   ;;  %v8407_v63 = vld [vmem:[%s11602_s16 + $0xe0] sm:$0xff]   ;;  %v8410_v46 = vld [vmem:[%s11602_s16 + $0x50] sm:$0xff]  }
 0x6c4   :  { %7292 = vmatprep.subr.bf16.mxu1 %v8365_v1  ;;  %v8408_v9 = vld [vmem:[%s11602_s16 + $0x18] sm:$0xff]   ;;  %v8412_v14 = vld [vmem:[%s11602_s16 + $0x10] sm:$0xff]   ;;  %v8414_v28 = vld [vmem:[%s11602_s16 + $0x48] sm:$0xff]  }
 0x6c5   :  { %7265 = vmatpush3.bf16.msra.mxu0 %v8366_v59  ;;  %v8413_v1 = vld [vmem:[%s11602_s16 + $0x98] sm:$0xff]   ;;  %v8415_v21 = vld [vmem:[%s11602_s16 + $0xd0] sm:$0xff]   ;;  %v8416_v59 = vld [vmem:[%s11602_s16 + $0x8] sm:$0xff]  }
 0x6c6   :  { %7293 = vmatpush3.bf16.msra.mxu1 %v8367_v16  ;;  %7266 = vmatprep.subr.bf16.mxu0 %v8368_v4  ;;  %v8417_v16 = vld [vmem:[%s11602_s16 + $0x90] sm:$0xff]   ;;  %v8418_v4 = vld [vmem:[%s11602_s16 + $0x40] sm:$0xff]  }
 0x6c7   :  { %7294 = vmatprep.subr.bf16.mxu1 %v8369_v22  ;;  %v8419_v22 = vld [vmem:[%s11602_s16 + $0xc8] sm:$0xff]  }
 0x6c9   :  { %7267 = vmatpush3.bf16.msra.mxu0 %v8370_v10  ;;  %v8420_v10 = vld [vmem:[%s11602_s16] sm:$0xff]  }
 0x6ca   :  { %7295 = vmatpush3.bf16.msra.mxu1 %v8371_v37  ;;  %7268 = vmatprep.subr.bf16.mxu0 %v8372_v29  ;;  %v8421_v37 = vld [vmem:[%s11602_s16 + $0x88] sm:$0xff]   ;;  %v8422_v29 = vld [vmem:[%s11602_s16 + $0xc0] sm:$0xff]  }
 0x6cb   :  { %7296 = vmatprep.subr.bf16.mxu1 %v8373_v60  ;;  %v8423_v60 = vld [vmem:[%s11602_s16 + $0x178] sm:$0xff]  }
 0x6cd   :  { %7269 = vmatpush3.bf16.msra.mxu0 %v8374_v39  ;;  %v8424_v39 = vld [vmem:[%s11602_s16 + $0x80] sm:$0xff]  }
 0x6ce   :  { %7297 = vmatpush3.bf16.msra.mxu1 %v8375_v54  ;;  %7270 = vmatprep.subr.bf16.mxu0 %v8376_v35  ;;  %v8427_v54 = vld [vmem:[%s11602_s16 + $0x1f8] sm:$0xff]  }
 0x6cf   :  { %7298 = vmatprep.subr.bf16.mxu1 %v8377_v15 }
 0x6d1   :  { %7271 = vmatpush3.bf16.msra.mxu0 %v8378_v45 }
 0x6d2   :  { %7299 = vmatpush3.bf16.msra.mxu1 %v8379_v52  ;;  %7272 = vmatprep.subr.bf16.mxu0 %v8380_v30 }
 0x6d3   :  { %7300 = vmatprep.subr.bf16.mxu1 %v8381_v55 }
 0x6d5   :  { %7273 = vmatpush3.bf16.msra.mxu0 %v8382_v13 }
 0x6d6   :  { %7301 = vmatpush3.bf16.msra.mxu1 %v8383_v5  ;;  %7580 = vmatprep.subr.bf16.mxu0 %v8384_v47 }
 0x6d7   :  { %7324 = vmatprep.subr.bf16.mxu1 %v8392_v31 }
 0x6d8   :  { %5151 = vmatmul.mubr.bf16.vlgmr.msra.gmra.mxu0 %v4430_v62 }
 0x6d9   :  { %5200 = vmatmul.mubr.bf16.vlgmr.msra.gmra.mxu1 %v4432_v18  ;;  %5158 = vmatprep.mubr.bf16.mxu0 %v4440_v36 }
 0x6da   :  { %5207 = vmatprep.mubr.bf16.mxu1 %v4442_v49  ;;  %7581 = vmatpush3.bf16.msra.mxu0 %v8384_v47 }
 0x6db   :  { %7582 = vmatprep.subr.bf16.mxu0 %v8385_v6  ;;  %7325 = vmatpush3.bf16.msra.mxu1 %v8393_v24 }
 0x6dc   :  { %7326 = vmatprep.subr.bf16.mxu1 %v8394_v27 }
 0x6de   :  { %7583 = vmatpush3.bf16.msra.mxu0 %v8385_v6 }
 0x6df   :  { %7584 = vmatprep.subr.bf16.mxu0 %v8386_v43  ;;  %7327 = vmatpush3.bf16.msra.mxu1 %v8396_v38 }
 0x6e0   :  { %5159 = vmatmul.mubr.bf16.gmra.mxu0 %v4439_v42  ;;  %7328 = vmatprep.subr.bf16.mxu1 %v8398_v34 }
 0x6e1   :  { %5208 = vmatmul.mubr.bf16.gmra.mxu1 %v4441_v0  ;;  %7596 = vmatprep.mubr.bf16.mxu0 %v4434_v33 }
 0x6e2   :  { %7585 = vmatpush3.bf16.msra.mxu0 %v8386_v43 }
 0x6e3   :  { %7586 = vmatprep.subr.bf16.mxu0 %v8387_v23  ;;  %7329 = vmatpush3.bf16.msra.mxu1 %v8400_v32 }
 0x6e4   :  { %7330 = vmatprep.subr.bf16.mxu1 %v8402_v12 }
 0x6e6   :  { %7587 = vmatpush3.bf16.msra.mxu0 %v8387_v23 }
 0x6e7   :  { %7588 = vmatprep.subr.bf16.mxu0 %v8388_v57  ;;  %7331 = vmatpush3.bf16.msra.mxu1 %v8404_v7 }
 0x6e8   :  { %7332 = vmatprep.subr.bf16.mxu1 %v8406_v53 }
 0x6ea   :  { %7589 = vmatpush3.bf16.msra.mxu0 %v8388_v57 }
 0x6eb   :  { %7590 = vmatprep.subr.bf16.mxu0 %v8389_v41  ;;  %7333 = vmatpush3.bf16.msra.mxu1 %v8408_v9 }
 0x6ec   :  { %7334 = vmatprep.subr.bf16.mxu1 %v8410_v46 }
 0x6ee   :  { %7591 = vmatpush3.bf16.msra.mxu0 %v8389_v41 }
 0x6ef   :  { %7592 = vmatprep.subr.bf16.mxu0 %v8390_v3  ;;  %7335 = vmatpush3.bf16.msra.mxu1 %v8412_v14 }
 0x6f0   :  { %7336 = vmatprep.subr.bf16.mxu1 %v8414_v28 }
 0x6f2   :  { %7593 = vmatpush3.bf16.msra.mxu0 %v8390_v3 }
 0x6f3   :  { %7594 = vmatprep.subr.bf16.mxu0 %v8391_v19  ;;  %7337 = vmatpush3.bf16.msra.mxu1 %v8416_v59 }
 0x6f4   :  { %7338 = vmatprep.subr.bf16.mxu1 %v8418_v4  ;;  %v6725_v4 = vld [vmem:[#allocation26] ss:$0 sm:$0xff] }
 0x6f6   :  { %7595 = vmatpush3.bf16.msra.mxu0 %v8391_v19 }
 0x6f7   :  { %7352 = vmatprep.subr.bf16.mxu0 %v8395_v20  ;;  %7339 = vmatpush3.bf16.msra.mxu1 %v8420_v10 }
 0x6f8   :  { %7380 = vmatprep.subr.bf16.mxu1 %v8423_v60  ;;  %v6726_v60 = vld [vmem:[%s11601_s15] ss:$0 sm:$0xff] }
 0x6f9   :  { %7597 = vmatmul.mubr.bf16.vlgmr.msra.gmra.mxu0 %v4443_v56 }
 0x6fa   :  { %7353 = vmatpush3.bf16.msra.mxu0 %v8397_v51 }
 0x6fb   :  { %7354 = vmatprep.subr.bf16.mxu0 %v8399_v11 }
 0x6fe   :  { %7355 = vmatpush3.bf16.msra.mxu0 %v8401_v58 }
 0x6ff   :  { %7356 = vmatprep.subr.bf16.mxu0 %v8403_v61 }
 0x702   :  { %7357 = vmatpush3.bf16.msra.mxu0 %v8405_v2 }
 0x703   :  { %7358 = vmatprep.subr.bf16.mxu0 %v8407_v63 }
 0x706   :  { %7359 = vmatpush3.bf16.msra.mxu0 %v8409_v26 }
 0x707   :  { %7360 = vmatprep.subr.bf16.mxu0 %v8411_v48 }
 0x70a   :  { %7361 = vmatpush3.bf16.msra.mxu0 %v8413_v1 }
 0x70b   :  { %7362 = vmatprep.subr.bf16.mxu0 %v8415_v21 }
 0x70e   :  { %7363 = vmatpush3.bf16.msra.mxu0 %v8417_v16 }
 0x70f   :  { %7364 = vmatprep.subr.bf16.mxu0 %v8419_v22 }
 0x712   :  { %7365 = vmatpush3.bf16.msra.mxu0 %v8421_v37 }
 0x713   :  { %7366 = vmatprep.subr.bf16.mxu0 %v8422_v29 }
 0x716   :  { %7367 = vmatpush3.bf16.msra.mxu0 %v8424_v39 }
 0x717   :  { %7408 = vmatprep.subr.bf16.mxu0 %v8427_v54 }
 0x778   :  { %v7218_v35 = vpop.f32.mrf.mxu0 }
 0x779   :  { %v7246_v15 = vpop.f32.mrf.mxu1 }
 0x77a   :  { %v7219_v45 = vpop.f32.mrf.mxu0 }
 0x77b   :  { %v7247_v52 = vpop.f32.mrf.mxu1  ;;  %v7220_v24 = vadd.f32 %v7219_v45, %v7218_v35 }
 0x77c   :  { %v7221_v30 = vpop.f32.mrf.mxu0  ;;  %v7248_v27 = vadd.f32 %v7247_v52, %v7246_v15 }
 0x77d   :  { %v7249_v55 = vpop.f32.mrf.mxu1 }
 0x77e   :  { %v7222_v13 = vpop.f32.mrf.mxu0  ;;  %v5104_v12 = vadd.f32 %v7248_v27, %v7220_v24 }
 0x77f   :  { %v7250_v5 = vpop.f32.mrf.mxu1  ;;  %v7223_v7 = vadd.f32 %v7222_v13, %v7221_v30 }
 0x780   :  { %v7224_v47 = vpop.f32.mrf.mxu0  ;;  %v7251_v2 = vadd.f32 %v7250_v5, %v7249_v55 }
 0x781   :  { %v7252_v25 = vpop.f32.mrf.mxu1 }
 0x782   :  { %v7225_v8 = vpop.f32.mrf.mxu0  ;;  %v5107_v1 = vadd.f32 %v7251_v2, %v7223_v7  ;;  %v8432_v7 = vld [vmem:[%s11602_s16 + $0x128] sm:$0xff]   ;;  %v8433_v2 = vld [vmem:[%s11602_s16 + $0x1b0] sm:$0xff]  }
 0x783   :  { %v7253_v18 = vpop.f32.mrf.mxu1  ;;  %v7226_v56 = vadd.f32 %v7225_v8, %v7224_v47 }
 0x784   :  { %v7227_v62 = vpop.f32.mrf.mxu0  ;;  %v7254_v31 = vadd.f32 %v7253_v18, %v7252_v25 }
 0x785   :  { %v7255_v17 = vpop.f32.mrf.mxu1 }
 0x786   :  { %v7228_v36 = vpop.f32.mrf.mxu0  ;;  %v5112_v38 = vadd.f32 %v7254_v31, %v7226_v56  ;;  %v5312_v31 = vld [vmem:[#allocation7 + $0x2] sm:$0xff] }
 0x787   :  { %v7256_v6 = vpop.f32.mrf.mxu1  ;;  %v7229_v34 = vadd.f32 %v7228_v36, %v7227_v62 }
 0x788   :  { %v7257_v58 = vadd.f32 %v7256_v6, %v7255_v17 }
 0x78a   :  { %v5115_v9 = vadd.f32 %v7257_v58, %v7229_v34  ;;  %v8430_v58 = vld [vmem:[%s11602_s16 + $0x168] sm:$0xff]  }
 0x798   :  { %v7274_v49 = vpop.f32.mrf.mxu0 }
 0x799   :  { %v7302_v40 = vpop.f32.mrf.mxu1 }
 0x79a   :  { %v7275_v43 = vpop.f32.mrf.mxu0 }
 0x79b   :  { %v7303_v42 = vpop.f32.mrf.mxu1  ;;  %v7276_v32 = vadd.f32 %v7275_v43, %v7274_v49 }
 0x79c   :  { %v7277_v0 = vpop.f32.mrf.mxu0  ;;  %v7304_v28 = vadd.f32 %v7303_v42, %v7302_v40  ;;  %v5308_v42 = vld [vmem:[#allocation7 + $0x41] sm:$0xff] }
 0x79d   :  { %v7305_v23 = vpop.f32.mrf.mxu1  ;;  %v5153_v26 = vadd.f32 %v7276_v32, %v5104_v12  ;;  %v8431_v12 = vld [vmem:[%s11602_s16 + $0x1f0] sm:$0xff]  }
 0x79e   :  { %v7278_v33 = vpop.f32.mrf.mxu0 }
 0x79f   :  { %v7306_v41 = vpop.f32.mrf.mxu1  ;;  %v7279_v46 = vadd.f32 %v7278_v33, %v7277_v0  ;;  %v5202_v29 = vadd.f32 %v7304_v28, %v5153_v26  ;;  %v5304_v0 = vld [vmem:[#allocation7 + $0x1] sm:$0xff] }
 0x7a0   :  { %v7280_v57 = vpop.f32.mrf.mxu0  ;;  %v7307_v54 = vadd.f32 %v7306_v41, %v7305_v23  ;;  %v8435_v26 = vld [vmem:[%s11602_s16 + $0x1e8] sm:$0xff]   ;;  %v8436_v28 = vld [vmem:[%s11602_s16 + $0x120] sm:$0xff]  }
 0x7a1   :  { %v7308_v19 = vpop.f32.mrf.mxu1  ;;  %v5156_v22 = vadd.f32 %v7279_v46, %v5107_v1  ;;  %v5316_v46 = vld [vmem:[#allocation7 + $0x42] sm:$0xff]  ;;  %v5307_v1 = vld [vmem:[#allocation7 + $0x31] sm:$0xff] }
 0x7a2   :  { %v7281_v3 = vpop.f32.mrf.mxu0 }
 0x7a3   :  { %v7309_v20 = vpop.f32.mrf.mxu1  ;;  %v7282_v51 = vadd.f32 %v7281_v3, %v7280_v57  ;;  %v5205_v5 = vadd.f32 %v7307_v54, %v5156_v22  ;;  %v8439_v22 = vld [vmem:[%s11602_s16 + $0x1e0] sm:$0xff]   ;;  %v8444_v54 = vld [vmem:[%s11602_s16 + $0x110] sm:$0xff]  }
 0x7a4   :  { %v7283_v44 = vpop.f32.mrf.mxu0  ;;  %v7310_v48 = vadd.f32 %v7309_v20, %v7308_v19  ;;  %v8425_v19 = vld [vmem:[%s11602_s16 + $0x138] sm:$0xff]  }
 0x7a5   :  { %v7311_v61 = vpop.f32.mrf.mxu1  ;;  %v5161_v53 = vadd.f32 %v7282_v51, %v5112_v38  ;;  %v8428_v51 = vld [vmem:[%s11602_s16 + $0x130] sm:$0xff]  }
 0x7a6   :  { %v7284_v11 = vpop.f32.mrf.mxu0 }
 0x7a7   :  { %v7285_v63 = vadd.f32 %v7284_v11, %v7283_v44  ;;  %v7312_v14 = vpop.f32.mrf.mxu1  ;;  %v5210_v59 = vadd.f32 %v7310_v48, %v5161_v53  ;;  %v8426_v44 = vld [vmem:[%s11602_s16 + $0x170] sm:$0xff]   ;;  %v8429_v11 = vld [vmem:[%s11602_s16 + $0x1b8] sm:$0xff]  }
 0x7a8   :  { %v7313_v10 = vadd.f32 %v7312_v14, %v7311_v61 }
 0x7a9   :  { %v5164_v21 = vadd.f32 %v7285_v63, %v5115_v9  ;;  %v8434_v9 = vld [vmem:[%s11602_s16 + $0x160] sm:$0xff]  }
 0x7ab   :  { %v5213_v45 = vadd.f32 %v7313_v10, %v5164_v21  ;;  %v8437_v21 = vld [vmem:[%s11602_s16 + $0x1a8] sm:$0xff]  }
 0x7b9   :  { %v7598_v16 = vpop.f32.mrf.mxu0 }
 0x7ba   :  { %v5259_v37 = vadd.f32 %v7598_v16, %v5210_v59 }
 0x7bb   :  { %v5250_v39 = vpop.f32.mrf.mxu0 }
 0x7bc   :  { %v5274_v35 = vmul.f32 %v6725_v4, %v5259_v37  ;;  %v5251_v15 = vadd.f32 %v5250_v39, %v5202_v29  ;;  %v8440_v37 = vld [vmem:[%s11602_s16 + $0x118] sm:$0xff]   ;;  %v8441_v29 = vld [vmem:[%s11602_s16 + $0x1a0] sm:$0xff]  }
 0x7bd   :  { %v7599_v52 = vpop.f32.mrf.mxu0  ;;  %v8443_v39 = vld [vmem:[%s11602_s16 + $0x1d8] sm:$0xff]  }
 0x7be   :  { %v5285_v30 = vadd.f32 %v6726_v60, %v5274_v35  ;;  %v5272_v55 = vmul.f32 %v6725_v4, %v5251_v15  ;;  %v5262_v13 = vadd.f32 %v7599_v52, %v5213_v45  ;;  %v8445_v35 = vld [vmem:[%s11602_s16 + $0x198] sm:$0xff]   ;;  %v8446_v15 = vld [vmem:[%s11602_s16 + $0x148] sm:$0xff]   ;;  %v8447_v45 = vld [vmem:[%s11602_s16 + $0x1d0] sm:$0xff]  }
 0x7bf   :  { %v5253_v47 = vpop.f32.mrf.mxu0  ;;  %v8448_v52 = vld [vmem:[%s11602_s16 + $0x108] sm:$0xff]  }
 0x7c0   :  { %v5289_v25 = vmax.f32 %v5285_v30, 0.0  ;;  %v5283_v8 = vadd.f32 %v6726_v60, %v5272_v55  ;;  %v5275_v18 = vmul.f32 %v6725_v4, %v5262_v13  ;;  %v5254_v62 = vadd.f32 %v5253_v47, %v5205_v5  ;;  %v8449_v30 = vld [vmem:[%s11602_s16 + $0x190] sm:$0xff]   ;;  %v8450_v55 = vld [vmem:[%s11602_s16 + $0x140] sm:$0xff]   ;;  %v8451_v13 = vld [vmem:[%s11602_s16 + $0x1c8] sm:$0xff]  }
 0x7c1   :  { %v8452_v5 = vld [vmem:[%s11602_s16 + $0x100] sm:$0xff]   ;;  %v8453_v47 = vld [vmem:[%s11602_s16 + $0x188] sm:$0xff]  }
 0x7c2   :  { %5294 = vst [vmem:[#allocation7 + $0x51] sm:$0x3] %v5289_v25  ;;  %v5287_v17 = vmax.f32 %v5283_v8, 0.0  ;;  %v5286_v36 = vadd.f32 %v6726_v60, %v5275_v18  ;;  %v5273_v49 = vmul.f32 %v6725_v4, %v5254_v62  ;;  %v8438_v4 = vld [vmem:[%s11602_s16 + $0x158] sm:$0xff]   ;;  %v8454_v25 = vld [vmem:[%s11602_s16 + $0x1c0] sm:$0xff]  }
 0x7c3   :  { %v8455_v8 = vld [vmem:[%s11602_s16 + $0x238] sm:$0xff]   ;;  %v8456_v62 = vld [vmem:[%s11602_s16 + $0x180] sm:$0xff]  }
 0x7c4   :  { %5292 = vst [vmem:[#allocation7 + $0x11] sm:$0x3] %v5287_v17  ;;  %v5290_v6 = vmax.f32 %v5286_v36, 0.0  ;;  %v5284_v43 = vadd.f32 %v6726_v60, %v5273_v49  ;;  %v8442_v60 = vld [vmem:[%s11602_s16 + $0x150] sm:$0xff]  }
 0x7c5   :  { %v8457_v49 = vld [vmem:[%s11602_s16 + $0x230] sm:$0xff]  }
 0x7c6   :  { %5295 = vst [vmem:[#allocation7 + $0x61] sm:$0x3] %v5290_v6  ;;  %v5288_v40 = vmax.f32 %v5284_v43, 0.0  ;;  %v5311_v43 = vld [vmem:[#allocation7 + $0x71] sm:$0xff] }
 0x7c8   :  { %5293 = vst [vmem:[#allocation7 + $0x21] sm:$0x3] %v5288_v40 }
 0x7c9   :  { %v11246_v57 = vld [vmem:[#allocation7 + $0x51] sm:$0xff] }
 0x7ca   :  { %v5330_v56 = vpack.c.bf16 %v11246_v57, %v5308_v42  ;;  %v5301_v32 = vld [vmem:[#allocation7 + $0x50] sm:$0xff]  ;;  %v8458_v42 = vld [vmem:[%s11602_s16 + $0x228] sm:$0xff]  }
 0x7cb   :  { %v11244_v33 = vld [vmem:[#allocation7 + $0x11] sm:$0xff]  ;;  %v5329_v63 = vpack.c.bf16 %v5301_v32, %v11107_v50 }
 0x7cc   :  { %v5297_v23 = vld [vmem:[#allocation7 + $0x10] sm:$0xff]  ;;  %v5321_v41 = vpack.c.bf16 %v11244_v33, %v5304_v0 }
 0x7cd   :  { %v5320_v3 = vpack.c.bf16 %v5297_v23, %v11107_v50  ;;  %v5313_v24 = vld [vmem:[#allocation7 + $0x12] sm:$0xff]  ;;  %v11266_v38 = vld [vmem:[#allocation7 + $0x60] sm:$0xff] }
 0x7ce   :  { %5946 = vmatprep.mubr.bf16.mxu1 %v5321_v41  ;;  %v5322_v34 = vpack.c.bf16 %v5313_v24, %v5312_v31  ;;  %v5332_v61 = vpack.c.bf16 %v11266_v38, %v5301_v32  ;;  %v5317_v48 = vld [vmem:[#allocation7 + $0x52] sm:$0xff]  ;;  %v5318_v18 = vld [vmem:[#allocation7 + $0x62] sm:$0xff] }
 0x7cf   :  { %5947 = vmatmul.mubr.bf16.vlgmr.msra.gmra.mxu1 %v5320_v3  ;;  %v11257_v27 = vld [vmem:[#allocation7 + $0x20] sm:$0xff]  ;;  %v5331_v16 = vpack.c.bf16 %v5317_v48, %v5316_v46  ;;  %v5334_v36 = vpack.c.bf16 %v5318_v18, %v5317_v48  ;;  %v5319_v31 = vld [vmem:[#allocation7 + $0x72] sm:$0xff] }
 0x7d0   :  { %7381 = vmatpush3.bf16.msra.mxu1 %v8425_v19  ;;  %5954 = vmatprep.mubr.bf16.mxu1 %v5330_v56  ;;  %v5323_v20 = vpack.c.bf16 %v11257_v27, %v5297_v23  ;;  %v11281_v53 = vld [vmem:[#allocation7 + $0x22] sm:$0xff]  ;;  %v5326_v40 = vpack.c.bf16 %v11107_v50, %v11257_v27  ;;  %v5335_v19 = vpack.c.bf16 %v11107_v50, %v11266_v38  ;;  %v6233_v27 = vld [vmem:[%s11605_s19 + $0xf8] sm:$0xff]  ;;  %v6228_v46 = vld [vmem:[%s11605_s19 + $0xd0] sm:$0xff] }
 0x7d1   :  { %7382 = vmatprep.subr.bf16.mxu1 %v8426_v44  ;;  %v5325_v14 = vpack.c.bf16 %v11281_v53, %v5313_v24  ;;  %v5306_v59 = vld [vmem:[#allocation7 + $0x21] sm:$0xff]  ;;  %v8460_v44 = vld [vmem:[%s11602_s16 + $0x218] sm:$0xff]   ;;  %v5337_v24 = vpack.c.bf16 %v5319_v31, %v5318_v18  ;;  %v6240_v18 = vld [vmem:[%s11605_s19 + $0x130] sm:$0xff] }
 0x7d2   :  { %5995 = vmatprep.mubr.bf16.mxu0 %v5323_v20  ;;  %v5327_v10 = vpack.c.bf16 %v5307_v1, %v5306_v59  ;;  %v5324_v17 = vpack.c.bf16 %v5306_v59, %v11244_v33  ;;  %v5310_v6 = vld [vmem:[#allocation7 + $0x61] sm:$0xff]  ;;  %v5315_v33 = vld [vmem:[#allocation7 + $0x32] sm:$0xff] }
 0x7d3   :  { %5996 = vmatmul.mubr.bf16.vlgmr.msra.gmra.mxu0 %v5322_v34  ;;  %v5336_v0 = vpack.c.bf16 %v5311_v43, %v5310_v6  ;;  %v5333_v23 = vpack.c.bf16 %v5310_v6, %v11246_v57  ;;  %v5328_v41 = vpack.c.bf16 %v5315_v33, %v11281_v53  ;;  %v8459_v3 = vld [vmem:[%s11602_s16 + $0x220] sm:$0xff]   ;;  %v8461_v57 = vld [vmem:[%s11602_s16 + $0x210] sm:$0xff]   ;;  %v8462_v56 = vld [vmem:[%s11602_s16 + $0x208] sm:$0xff]  }
 0x7d4   :  { %7383 = vmatpush3.bf16.msra.mxu1 %v8428_v51  ;;  %7409 = vmatpush3.bf16.msra.mxu0 %v8429_v11  ;;  %v8463_v50 = vld [vmem:[%s11602_s16 + $0x200] sm:$0xff]   ;;  %v6217_v20 = vld [vmem:[%s11605_s19 + $0x78] sm:$0xff]  ;;  %v6232_v51 = vld [vmem:[%s11605_s19 + $0xf0] sm:$0xff] }
 0x7d5   :  { %6003 = vmatprep.mubr.bf16.mxu0 %v5332_v61  ;;  %7384 = vmatprep.subr.bf16.mxu1 %v8430_v58  ;;  %v6216_v11 = vld [vmem:[%s11605_s19 + $0x70] sm:$0xff]  ;;  %v6231_v38 = vld [vmem:[%s11605_s19 + $0xe8] sm:$0xff]  ;;  %v6265_v34 = vld [vmem:[%s11605_s19 + $0x1f8] sm:$0xff] }
 0x7d6   :  { %7410 = vmatprep.subr.bf16.mxu0 %v8431_v12  ;;  %v6215_v58 = vld [vmem:[%s11605_s19 + $0x68] sm:$0xff]  ;;  %v6249_v32 = vld [vmem:[%s11605_s19 + $0x178] sm:$0xff]  ;;  %v6230_v12 = vld [vmem:[%s11605_s19 + $0xe0] sm:$0xff] }
 0x7d7   :  { %5955 = vmatmul.mubr.bf16.gmra.mxu1 %v5329_v63  ;;  %v6264_v61 = vld [vmem:[%s11605_s19 + $0x1f0] sm:$0xff]  ;;  %v6229_v53 = vld [vmem:[%s11605_s19 + $0xd8] sm:$0xff]  ;;  %v6263_v63 = vld [vmem:[%s11605_s19 + $0x1e8] sm:$0xff] }
 0x7d8   :  { %7385 = vmatpush3.bf16.msra.mxu1 %v8432_v7  ;;  %7411 = vmatpush3.bf16.msra.mxu0 %v8433_v2  ;;  %v6214_v7 = vld [vmem:[%s11605_s19 + $0x60] sm:$0xff]  ;;  %v6248_v2 = vld [vmem:[%s11605_s19 + $0x170] sm:$0xff]  ;;  %v6211_v59 = vld [vmem:[%s11605_s19 + $0x48] sm:$0xff] }
 0x7d9   :  { %6044 = vmatprep.mubr.bf16.mxu1 %v5325_v14  ;;  %7386 = vmatprep.subr.bf16.mxu1 %v8434_v9  ;;  %v6213_v9 = vld [vmem:[%s11605_s19 + $0x58] sm:$0xff]  ;;  %v6262_v48 = vld [vmem:[%s11605_s19 + $0x1e0] sm:$0xff]  ;;  %v6212_v14 = vld [vmem:[%s11605_s19 + $0x50] sm:$0xff] }
 0x7da   :  { %7412 = vmatprep.subr.bf16.mxu0 %v8435_v26  ;;  %v6247_v26 = vld [vmem:[%s11605_s19 + $0x168] sm:$0xff]  ;;  %v6246_v1 = vld [vmem:[%s11605_s19 + $0x160] sm:$0xff]  ;;  %v6220_v6 = vld [vmem:[%s11605_s19 + $0x90] sm:$0xff] }
 0x7db   :  { %6004 = vmatmul.mubr.bf16.gmra.mxu0 %v5331_v16  ;;  %v6245_v16 = vld [vmem:[%s11605_s19 + $0x158] sm:$0xff]  ;;  %v6254_v43 = vld [vmem:[%s11605_s19 + $0x1a0] sm:$0xff] }
 0x7dc   :  { %7387 = vmatpush3.bf16.msra.mxu1 %v8436_v28  ;;  %7413 = vmatpush3.bf16.msra.mxu0 %v8437_v21  ;;  %v6227_v28 = vld [vmem:[%s11605_s19 + $0xc8] sm:$0xff]  ;;  %v6261_v21 = vld [vmem:[%s11605_s19 + $0x1d8] sm:$0xff]  ;;  %v6250_v31 = vld [vmem:[%s11605_s19 + $0x180] sm:$0xff] }
 0x7dd   :  { %6093 = vmatprep.mubr.bf16.mxu0 %v5327_v10  ;;  %7388 = vmatprep.subr.bf16.mxu1 %v8438_v4  ;;  %v6226_v4 = vld [vmem:[%s11605_s19 + $0xc0] sm:$0xff]  ;;  %v6253_v33 = vld [vmem:[%s11605_s19 + $0x198] sm:$0xff] }
 0x7de   :  { %7414 = vmatprep.subr.bf16.mxu0 %v8439_v22  ;;  %v6260_v22 = vld [vmem:[%s11605_s19 + $0x1d0] sm:$0xff]  ;;  %v6210_v10 = vld [vmem:[%s11605_s19 + $0x40] sm:$0xff] }
 0x7e0   :  { %7389 = vmatpush3.bf16.msra.mxu1 %v8440_v37  ;;  %7415 = vmatpush3.bf16.msra.mxu0 %v8441_v29  ;;  %v6244_v37 = vld [vmem:[%s11605_s19 + $0x150] sm:$0xff]  ;;  %v6225_v29 = vld [vmem:[%s11605_s19 + $0xb8] sm:$0xff] }
 0x7e1   :  { %7390 = vmatprep.subr.bf16.mxu1 %v8442_v60  ;;  %7416 = vmatprep.subr.bf16.mxu0 %v8443_v39  ;;  %v6259_v60 = vld [vmem:[%s11605_s19 + $0x1c8] sm:$0xff]  ;;  %v6209_v39 = vld [vmem:[%s11605_s19 + $0x38] sm:$0xff] }
 0x7e4   :  { %7391 = vmatpush3.bf16.msra.mxu1 %v8444_v54  ;;  %7417 = vmatpush3.bf16.msra.mxu0 %v8445_v35  ;;  %v6243_v54 = vld [vmem:[%s11605_s19 + $0x148] sm:$0xff]  ;;  %v6224_v35 = vld [vmem:[%s11605_s19 + $0xb0] sm:$0xff] }
 0x7e5   :  { %7392 = vmatprep.subr.bf16.mxu1 %v8446_v15  ;;  %7418 = vmatprep.subr.bf16.mxu0 %v8447_v45  ;;  %v6258_v15 = vld [vmem:[%s11605_s19 + $0x1c0] sm:$0xff]  ;;  %v6208_v45 = vld [vmem:[%s11605_s19 + $0x30] sm:$0xff] }
 0x7e8   :  { %7393 = vmatpush3.bf16.msra.mxu1 %v8448_v52  ;;  %7419 = vmatpush3.bf16.msra.mxu0 %v8449_v30  ;;  %v6242_v52 = vld [vmem:[%s11605_s19 + $0x140] sm:$0xff]  ;;  %v6223_v30 = vld [vmem:[%s11605_s19 + $0xa8] sm:$0xff] }
 0x7e9   :  { %7394 = vmatprep.subr.bf16.mxu1 %v8450_v55  ;;  %7420 = vmatprep.subr.bf16.mxu0 %v8451_v13  ;;  %v6257_v55 = vld [vmem:[%s11605_s19 + $0x1b8] sm:$0xff]  ;;  %v6207_v13 = vld [vmem:[%s11605_s19 + $0x28] sm:$0xff] }
 0x7ec   :  { %7395 = vmatpush3.bf16.msra.mxu1 %v8452_v5  ;;  %7421 = vmatpush3.bf16.msra.mxu0 %v8453_v47  ;;  %v6241_v5 = vld [vmem:[%s11605_s19 + $0x138] sm:$0xff]  ;;  %v6222_v47 = vld [vmem:[%s11605_s19 + $0xa0] sm:$0xff] }
 0x7ed   :  { %7422 = vmatprep.subr.bf16.mxu0 %v8454_v25  ;;  %7600 = vmatprep.subr.bf16.mxu1 %v8455_v8  ;;  %v6256_v25 = vld [vmem:[%s11605_s19 + $0x1b0] sm:$0xff] }
 0x7ef   :  { %6045 = vmatmul.mubr.bf16.vlgmr.msra.gmra.mxu1 %v5324_v17  ;;  %v6255_v17 = vld [vmem:[%s11605_s19 + $0x1a8] sm:$0xff] }
 0x7f0   :  { %6052 = vmatprep.mubr.bf16.mxu1 %v5334_v36  ;;  %7423 = vmatpush3.bf16.msra.mxu0 %v8456_v62  ;;  %v6221_v62 = vld [vmem:[%s11605_s19 + $0x98] sm:$0xff] }
 0x7f1   :  { %7601 = vmatpush3.bf16.msra.mxu1 %v8455_v8  ;;  %7446 = vmatprep.subr.mxu0 %v6233_v27  ;;  %v6206_v8 = vld [vmem:[%s11605_s19 + $0x20] sm:$0xff]  ;;  %v6205_v36 = vld [vmem:[%s11605_s19 + $0x18] sm:$0xff] }
 0x7f2   :  { %7602 = vmatprep.subr.bf16.mxu1 %v8457_v49 }
 0x7f3   :  { %6094 = vmatmul.mubr.bf16.vlgmr.msra.gmra.mxu0 %v5326_v40  ;;  %v6204_v40 = vld [vmem:[%s11605_s19 + $0x10] sm:$0xff] }
 0x7f4   :  { %6101 = vmatprep.mubr.bf16.mxu0 %v5336_v0  ;;  %7447 = vmatpush3.msra.mxu0 %v6217_v20  ;;  %v6238_v0 = vld [vmem:[%s11605_s19 + $0x120] sm:$0xff] }
 0x7f5   :  { %7603 = vmatpush3.bf16.msra.mxu1 %v8457_v49  ;;  %7448 = vmatprep.subr.mxu0 %v6232_v51  ;;  %v6239_v49 = vld [vmem:[%s11605_s19 + $0x128] sm:$0xff] }
 0x7f6   :  { %7604 = vmatprep.subr.bf16.mxu1 %v8458_v42  ;;  %7449 = vmatpush3.msra.mxu0 %v6216_v11 }
 0x7f7   :  { %6053 = vmatmul.mubr.bf16.gmra.mxu1 %v5333_v23  ;;  %7450 = vmatprep.subr.mxu0 %v6231_v38  ;;  %v6203_v23 = vld [vmem:[%s11605_s19 + $0x8] sm:$0xff] }
 0x7f8   :  { %7616 = vmatprep.mubr.bf16.mxu1 %v5328_v41  ;;  %7451 = vmatpush3.msra.mxu0 %v6215_v58  ;;  %v6237_v41 = vld [vmem:[%s11605_s19 + $0x118] sm:$0xff] }
 0x7f9   :  { %7605 = vmatpush3.bf16.msra.mxu1 %v8458_v42  ;;  %7452 = vmatprep.subr.mxu0 %v6230_v12  ;;  %v6219_v42 = vld [vmem:[%s11605_s19 + $0x88] sm:$0xff] }
 0x7fa   :  { %7606 = vmatprep.subr.bf16.mxu1 %v8459_v3  ;;  %7453 = vmatpush3.msra.mxu0 %v6214_v7 }
 0x7fb   :  { %6102 = vmatmul.mubr.bf16.gmra.mxu0 %v5335_v19  ;;  %7454 = vmatprep.subr.mxu0 %v6229_v53  ;;  %v6252_v19 = vld [vmem:[%s11605_s19 + $0x190] sm:$0xff] }
 0x7fc   :  { %7455 = vmatpush3.msra.mxu0 %v6213_v9 }
 0x7fd   :  { %7607 = vmatpush3.bf16.msra.mxu1 %v8459_v3  ;;  %7456 = vmatprep.subr.mxu0 %v6228_v46  ;;  %v6218_v3 = vld [vmem:[%s11605_s19 + $0x80] sm:$0xff] }
 0x7fe   :  { %7608 = vmatprep.subr.bf16.mxu1 %v8460_v44  ;;  %7457 = vmatpush3.msra.mxu0 %v6212_v14 }
 0x7ff   :  { %7458 = vmatprep.subr.mxu0 %v6227_v28 }
 0x800   :  { %7459 = vmatpush3.msra.mxu0 %v6211_v59 }
 0x801   :  { %7609 = vmatpush3.bf16.msra.mxu1 %v8460_v44  ;;  %7460 = vmatprep.subr.mxu0 %v6226_v4  ;;  %v6202_v44 = vld [vmem:[%s11605_s19] sm:$0xff] }
 0x802   :  { %7610 = vmatprep.subr.bf16.mxu1 %v8461_v57  ;;  %7461 = vmatpush3.msra.mxu0 %v6210_v10 }
 0x803   :  { %7462 = vmatprep.subr.mxu0 %v6225_v29 }
 0x804   :  { %7463 = vmatpush3.msra.mxu0 %v6209_v39 }
 0x805   :  { %7611 = vmatpush3.bf16.msra.mxu1 %v8461_v57  ;;  %7464 = vmatprep.subr.mxu0 %v6224_v35  ;;  %v6236_v57 = vld [vmem:[%s11605_s19 + $0x110] sm:$0xff] }
 0x806   :  { %7612 = vmatprep.subr.bf16.mxu1 %v8462_v56  ;;  %7465 = vmatpush3.msra.mxu0 %v6208_v45 }
 0x807   :  { %7466 = vmatprep.subr.mxu0 %v6223_v30 }
 0x808   :  { %7467 = vmatpush3.msra.mxu0 %v6207_v13 }
 0x809   :  { %7613 = vmatpush3.bf16.msra.mxu1 %v8462_v56  ;;  %7468 = vmatprep.subr.mxu0 %v6222_v47  ;;  %v6251_v56 = vld [vmem:[%s11605_s19 + $0x188] sm:$0xff] }
 0x80a   :  { %7614 = vmatprep.subr.bf16.mxu1 %v8463_v50  ;;  %7469 = vmatpush3.msra.mxu0 %v6206_v8 }
 0x80b   :  { %7470 = vmatprep.subr.mxu0 %v6221_v62 }
 0x80c   :  { %7471 = vmatpush3.msra.mxu0 %v6205_v36 }
 0x80d   :  { %7615 = vmatpush3.bf16.msra.mxu1 %v8463_v50  ;;  %7472 = vmatprep.subr.mxu0 %v6220_v6  ;;  %v6235_v50 = vld [vmem:[%s11605_s19 + $0x108] sm:$0xff] }
 0x80e   :  { %7481 = vmatprep.subr.mxu1 %v6265_v34  ;;  %7473 = vmatpush3.msra.mxu0 %v6204_v40 }
 0x80f   :  { %7474 = vmatprep.subr.mxu0 %v6219_v42 }
 0x810   :  { %7617 = vmatmul.mubr.bf16.vlgmr.msra.gmra.mxu1 %v5337_v24  ;;  %7475 = vmatpush3.msra.mxu0 %v6203_v23  ;;  %v6234_v24 = vld [vmem:[%s11605_s19 + $0x100] sm:$0xff] }
 0x811   :  { %7482 = vmatpush3.msra.mxu1 %v6249_v32  ;;  %7476 = vmatprep.subr.mxu0 %v6218_v3 }
 0x812   :  { %7483 = vmatprep.subr.mxu1 %v6264_v61  ;;  %7477 = vmatpush3.msra.mxu0 %v6202_v44 }
 0x813   :  { %7484 = vmatpush3.msra.mxu1 %v6248_v2 }
 0x814   :  { %7485 = vmatprep.subr.mxu1 %v6263_v63 }
 0x815   :  { %7486 = vmatpush3.msra.mxu1 %v6247_v26 }
 0x816   :  { %7487 = vmatprep.subr.mxu1 %v6262_v48 }
 0x817   :  { %7488 = vmatpush3.msra.mxu1 %v6246_v1 }
 0x818   :  { %7489 = vmatprep.subr.mxu1 %v6261_v21 }
 0x819   :  { %7490 = vmatpush3.msra.mxu1 %v6245_v16 }
 0x81a   :  { %7491 = vmatprep.subr.mxu1 %v6260_v22 }
 0x81b   :  { %7492 = vmatpush3.msra.mxu1 %v6244_v37 }
 0x81c   :  { %7493 = vmatprep.subr.mxu1 %v6259_v60 }
 0x81d   :  { %7494 = vmatpush3.msra.mxu1 %v6243_v54 }
 0x81e   :  { %7495 = vmatprep.subr.mxu1 %v6258_v15 }
 0x81f   :  { %7496 = vmatpush3.msra.mxu1 %v6242_v52 }
 0x820   :  { %7497 = vmatprep.subr.mxu1 %v6257_v55 }
 0x821   :  { %7498 = vmatpush3.msra.mxu1 %v6241_v5 }
 0x822   :  { %7499 = vmatprep.subr.mxu1 %v6256_v25 }
 0x823   :  { %7500 = vmatpush3.msra.mxu1 %v6240_v18 }
 0x824   :  { %7501 = vmatprep.subr.mxu1 %v6255_v17 }
 0x825   :  { %7502 = vmatpush3.msra.mxu1 %v6239_v49 }
 0x826   :  { %7503 = vmatprep.subr.mxu1 %v6254_v43 }
 0x827   :  { %7504 = vmatpush3.msra.mxu1 %v6238_v0 }
 0x828   :  { %7505 = vmatprep.subr.mxu1 %v6253_v33 }
 0x829   :  { %7506 = vmatpush3.msra.mxu1 %v6237_v41  ;;  %v6799_v41 = vld [vmem:[%s11603_s17] ss:$0 sm:$0xff] }
 0x82a   :  { %7507 = vmatprep.subr.mxu1 %v6252_v19 }
 0x82b   :  { %7508 = vmatpush3.msra.mxu1 %v6236_v57 }
 0x82c   :  { %7509 = vmatprep.subr.mxu1 %v6251_v56  ;;  %v6800_v56 = vld [vmem:[%s11604_s18] ss:$0 sm:$0xff] }
 0x82d   :  { %7510 = vmatpush3.msra.mxu1 %v6235_v50 }
 0x82e   :  { %7511 = vmatprep.subr.mxu1 %v6250_v31 }
 0x82f   :  { %7512 = vmatpush3.msra.mxu1 %v6234_v24 }
 0x88f   :  { %v7340_v27 = vpop.f32.mrf.mxu1 }
 0x891   :  { %v7341_v20 = vpop.f32.mrf.mxu1 }
 0x892   :  { %v7342_v30 = vadd.f32 %v7341_v20, %v7340_v27 }
 0x893   :  { %v7368_v51 = vpop.f32.mrf.mxu0  ;;  %v7343_v11 = vpop.f32.mrf.mxu1 }
 0x895   :  { %v7369_v38 = vpop.f32.mrf.mxu0  ;;  %v7344_v34 = vpop.f32.mrf.mxu1 }
 0x896   :  { %v7370_v54 = vadd.f32 %v7369_v38, %v7368_v51  ;;  %v7345_v49 = vadd.f32 %v7344_v34, %v7343_v11 }
 0x897   :  { %v7371_v58 = vpop.f32.mrf.mxu0  ;;  %v7346_v32 = vpop.f32.mrf.mxu1 }
 0x898   :  { %v5998_v18 = vadd.f32 %v7370_v54, %v7342_v30 }
 0x899   :  { %v7372_v12 = vpop.f32.mrf.mxu0  ;;  %v7347_v61 = vpop.f32.mrf.mxu1 }
 0x89a   :  { %v7348_v35 = vadd.f32 %v7347_v61, %v7346_v32  ;;  %v7373_v47 = vadd.f32 %v7372_v12, %v7371_v58 }
 0x89b   :  { %v7374_v7 = vpop.f32.mrf.mxu0  ;;  %v7349_v2 = vpop.f32.mrf.mxu1 }
 0x89c   :  { %v6001_v33 = vadd.f32 %v7373_v47, %v7345_v49 }
 0x89d   :  { %v7375_v53 = vpop.f32.mrf.mxu0  ;;  %v7350_v63 = vpop.f32.mrf.mxu1 }
 0x89e   :  { %v7376_v60 = vadd.f32 %v7375_v53, %v7374_v7  ;;  %v7351_v25 = vadd.f32 %v7350_v63, %v7349_v2 }
 0x89f   :  { %v7377_v9 = vpop.f32.mrf.mxu0 }
 0x8a0   :  { %v6006_v55 = vadd.f32 %v7376_v60, %v7348_v35  ;;  %v6801_v60 = vld [vmem:[%s11606_s20] ss:$0 sm:$0xff] }
 0x8a1   :  { %v7378_v46 = vpop.f32.mrf.mxu0 }
 0x8a2   :  { %v7379_v45 = vadd.f32 %v7378_v46, %v7377_v9 }
 0x8a4   :  { %v6009_v6 = vadd.f32 %v7379_v45, %v7351_v25 }
 0x8af   :  { %v7396_v26 = vpop.f32.mrf.mxu1 }
 0x8b1   :  { %v7397_v48 = vpop.f32.mrf.mxu1 }
 0x8b2   :  { %v7398_v13 = vadd.f32 %v7397_v48, %v7396_v26 }
 0x8b3   :  { %v7424_v14 = vpop.f32.mrf.mxu0  ;;  %v7399_v28 = vpop.f32.mrf.mxu1 }
 0x8b4   :  { %v6047_v43 = vadd.f32 %v7398_v13, %v5998_v18 }
 0x8b5   :  { %v7425_v1 = vpop.f32.mrf.mxu0  ;;  %v7400_v59 = vpop.f32.mrf.mxu1 }
 0x8b6   :  { %v7426_v62 = vadd.f32 %v7425_v1, %v7424_v14  ;;  %v7401_v40 = vadd.f32 %v7400_v59, %v7399_v28 }
 0x8b7   :  { %v7427_v21 = vpop.f32.mrf.mxu0  ;;  %v7402_v4 = vpop.f32.mrf.mxu1 }
 0x8b8   :  { %v6096_v57 = vadd.f32 %v7426_v62, %v6047_v43  ;;  %v6050_v31 = vadd.f32 %v7401_v40, %v6001_v33 }
 0x8b9   :  { %v7428_v16 = vpop.f32.mrf.mxu0  ;;  %v7403_v10 = vpop.f32.mrf.mxu1 }
 0x8ba   :  { %v7404_v15 = vadd.f32 %v7403_v10, %v7402_v4  ;;  %v7429_v3 = vadd.f32 %v7428_v16, %v7427_v21 }
 0x8bb   :  { %v7430_v22 = vpop.f32.mrf.mxu0  ;;  %v7405_v29 = vpop.f32.mrf.mxu1 }
 0x8bc   :  { %v6055_v17 = vadd.f32 %v7404_v15, %v6006_v55  ;;  %v6099_v58 = vadd.f32 %v7429_v3, %v6050_v31 }
 0x8bd   :  { %v7431_v37 = vpop.f32.mrf.mxu0  ;;  %v7406_v52 = vpop.f32.mrf.mxu1 }
 0x8be   :  { %v7432_v5 = vadd.f32 %v7431_v37, %v7430_v22  ;;  %v7407_v36 = vadd.f32 %v7406_v52, %v7405_v29 }
 0x8bf   :  { %v7433_v39 = vpop.f32.mrf.mxu0 }
 0x8c0   :  { %v6104_v42 = vadd.f32 %v7432_v5, %v6055_v17  ;;  %v6058_v19 = vadd.f32 %v7407_v36, %v6009_v6 }
 0x8c1   :  { %v7434_v8 = vpop.f32.mrf.mxu0 }
 0x8c2   :  { %v7435_v0 = vadd.f32 %v7434_v8, %v7433_v39 }
 0x8c4   :  { %v6107_v20 = vadd.f32 %v7435_v0, %v6058_v19 }
 0x8d0   :  { %v7618_v23 = vpop.f32.mrf.mxu1 }
 0x8d1   :  { %v6153_v44 = vadd.f32 %v7618_v23, %v6104_v42 }
 0x8d2   :  { %v6144_v50 = vpop.f32.mrf.mxu1 }
 0x8d3   :  { %v6168_v24 = vmul.f32 %v6799_v41, %v6153_v44  ;;  %v6145_v27 = vadd.f32 %v6144_v50, %v6096_v57 }
 0x8d4   :  { %v7619_v51 = vpop.f32.mrf.mxu1 }
 0x8d5   :  { %v6179_v11 = vadd.f32 %v6800_v56, %v6168_v24  ;;  %v6166_v38 = vmul.f32 %v6799_v41, %v6145_v27  ;;  %v6156_v34 = vadd.f32 %v7619_v51, %v6107_v20 }
 0x8d6   :  { %v6147_v32 = vpop.f32.mrf.mxu1 }
 0x8d7   :  { %v6183_v12 = vmax.f32 %v6179_v11, 0.0  ;;  %v6177_v61 = vadd.f32 %v6800_v56, %v6166_v38  ;;  %v6169_v7 = vmul.f32 %v6799_v41, %v6156_v34  ;;  %v6148_v2 = vadd.f32 %v6147_v32, %v6099_v58 }
 0x8d9   :  { %v6181_v53 = vmax.f32 %v6177_v61, 0.0  ;;  %v6180_v63 = vadd.f32 %v6800_v56, %v6169_v7  ;;  %v6167_v9 = vmul.f32 %v6799_v41, %v6148_v2  ;;  %v6187_v26 = vrot.slane %v6183_v12, 7 }
 0x8db   :  { %v6184_v46 = vmax.f32 %v6180_v63, 0.0  ;;  %v6178_v48 = vadd.f32 %v6800_v56, %v6167_v9  ;;  %v6191_v14 = vrot.slane %v6181_v53, 1  ;;  %v6189_v59 = vsel %vm6188_vm13, %v6187_v26, %v6181_v53 }
 0x8dd   :  { %v6182_v1 = vmax.f32 %v6178_v48, 0.0  ;;  %v6192_v28 = vsel %vm6188_vm13, %v6183_v12, %v6191_v14  ;;  %v6196_v21 = vrot.slane %v6184_v46, 7 }
 0x8de   :  { %6337 = vmatprep.mubr.f32.mxu0 %v6192_v28 }
 0x8df   :  { %6338 = vmatmul.mubr.f32.vlgmr.msra.gmra.mxu0 %v6189_v59  ;;  %v6199_v16 = vrot.slane %v6182_v1, 1  ;;  %v6197_v22 = vsel %vm6188_vm13, %v6196_v21, %v6182_v1 }
 0x8e1   :  { %v6200_v4 = vsel %vm6188_vm13, %v6184_v46, %v6199_v16 }
 0x8e2   :  { %6407 = vmatprep.mubr.f32.mxu1 %v6200_v4 }
 0x8e3   :  { %6408 = vmatmul.mubr.f32.vlgmr.msra.gmra.mxu1 %v6197_v22 }
 0x99f   :  { %v7478_v10 = vpop.f32.mrf.mxu0 }
 0x9a1   :  { %v7479_v37 = vpop.f32.mrf.mxu0 }
 0x9a2   :  { %v7480_v29 = vadd.f32 %v7479_v37, %v7478_v10 }
 0x9a3   :  { %v7513_v39 = vpop.f32.mrf.mxu1 }
 0x9a4   :  { %v6340_v35 = vadd.f32 %v7480_v29, %v6801_v60 }
 0x9a5   :  { %v7514_v54 = vpop.f32.mrf.mxu1 }
 0x9a6   :  { %v7515_v15 = vadd.f32 %v7514_v54, %v7513_v39 }
 0x9a8   :  { %v6410_v45 = vadd.f32 %v7515_v15, %v6340_v35 }
 0x9aa   :  { %6414 = vst.msk [vmem:[#allocation28] sm:$0x3] %vm6413_vm14, %v6410_v45 }
 0x9ab   :  { %8692 = shalt.err (!%p8689_p12)
}
 0x9ac   :  { %6424 = dma.vmem_to_hbm [thread:$0]  %s6422_s4, 32, %s11607_s21, [#allocation13]  }
 0x9ad   :  { %8713 = dma.done.wait [#allocation13], 32  }
 0x9ae   :  { %8714 = vsyncadd [#allocation13], 4294967264 }
 0x9af   :  { %6428 = vsyncpa [#allocation12], 1 }
 0x9b0   :  { %6429 = vsyncpa [#allocation15], 1 }
 0x9b1   :  { %6430 = vsyncpa [#allocation18], 1 }
 0x9b2   :  { %6431 = vsyncpa [#allocation21], 1 }
 0x9b3   :  { %6432 = vsyncpa [#allocation24], 1 }
 0x9b4   :  { %6433 = vsyncpa [#allocation27], 1 }
 0x9b5   :  { %6434 = vsyncpa [#allocation13], 1 }

</bundles_post_ra>
